<compile_context>
chip_gen: v7x
topology: tpu7x:2x2x1
jax: 0.10.0
libtpu: 0.0.40
codegen_flags: <defaults>
</compile_context>

<pallas_src>
import functools

import jax
import jax.numpy as jnp
import numpy as np
from jax import lax
from jax.experimental import pallas as pl
from jax.experimental.pallas import tpu as pltpu

D_IN, D_H1, D_H2, D_OUT = 2048, 1024, 800, 512
D_H2P = 896          # 800 zero-padded up to a multiple of 128 lanes
BN_EPS = 1e-5


# ----------------------------- Pallas kernel ------------------------------- #

def _convolstm_head_kernel(x_ref, w1_ref, b1_ref, g1_ref, be1_ref,
                           w2_ref, b2_ref, g2_ref, be2_ref,
                           w3_ref, b3_ref, out_ref, *, bs, ts):
    """Fused ConvoLSTM head for all timesteps at once.

    x_ref:      (bs*ts, 2048) bf16, rows ordered (b, t) with b outermost
    w*_ref:     bf16 weights, pre-transposed to (in, out); hidden-800 dims
                zero-padded to 896
    b*/g*/be*:  (1, out) f32 bias / BN gamma / BN beta (pads exactly 0)
    out_ref:    (bs*ts, 512) f32
    """

    def mm(a_bf16, w_ref):
        # bf16 x bf16 on the MXU, f32 accumulation.
        return jnp.dot(a_bf16, w_ref[...], preferred_element_type=jnp.float32)

    def bn_relu(y, g_ref, be_ref):
        # BatchNorm1d in training mode (fresh module): per-timestep batch
        # statistics over the batch axis, biased variance.  `momentum=0.01`
        # only affects running-stat updates, not the forward output.
        # Rows of `y` come in bs contiguous groups of ts rows, so the
        # per-timestep reduction over the batch is a sum of bs tile-aligned
        # (ts, H) slabs — pure full-vreg VPU work, no cross-lane ops.
        groups = [y[b * ts:(b + 1) * ts] for b in range(bs)]      # each (ts, H)
        acc = groups[0]
        for yg in groups[1:]:
            acc = acc + yg
        mean = acc * (1.0 / bs)                                   # (ts, H)
        centered = [yg - mean for yg in groups]
        vacc = centered[0] * centered[0]
        for c in centered[1:]:
            vacc = vacc + c * c
        var = vacc * (1.0 / bs)                                   # (ts, H)
        scale = lax.rsqrt(var + BN_EPS) * g_ref[...]              # (ts, H)
        return jnp.concatenate(
            [jnp.maximum(c * scale + be_ref[...], 0.0) for c in centered],
            axis=0)                                               # (bs*ts, H)

    x = x_ref[...]                                                # bf16

    y = mm(x, w1_ref) + b1_ref[...]                   # Linear(2048, 1024)
    y = bn_relu(y, g1_ref, be1_ref)                   # BN -> ReLU

    y = mm(y.astype(jnp.bfloat16), w2_ref) + b2_ref[...]   # Linear(1024, 800->896)
    y = bn_relu(y, g2_ref, be2_ref)                   # BN -> ReLU (pads stay 0)

    # Dropout(p=0) is the identity.
    out_ref[...] = (mm(y.astype(jnp.bfloat16), w3_ref)
                    + b3_ref[...]).astype(out_ref.dtype)


# ------------------------------ JAX wrapper -------------------------------- #

def cnn_model_forward(feats, kp):
    """feats: (bs, ts, 2048) frozen-resnet per-frame features -> (bs, ts, 512).

    kp: padded/bf16 kernel params from prepare_kernel_params().
    """
    bs, ts, d_in = feats.shape
    assert d_in == D_IN

    # Contiguous (free) reshape + a single f32->bf16 cast: halves the input
    # DMA and keeps the (b, t)-major row order the in-kernel BN reduction uses.
    x2d = feats.reshape(bs * ts, d_in).astype(jnp.bfloat16)

    args = (x2d, kp["w1"], kp["b1"], kp["g1"], kp["be1"],
            kp["w2"], kp["b2"], kp["g2"], kp["be2"], kp["w3"], kp["b3"])

    # VMEM budget derived from the actual buffers (gridless call -> everything
    # single-buffered), with ~2x headroom for f32 activation temporaries.
    # ~16 MiB total: well inside v5e/v6e (128 MiB) and v7x (64 MiB) VMEM.
    io_bytes = sum(int(np.prod(a.shape)) * jnp.dtype(a.dtype).itemsize
                   for a in args) + bs * ts * D_OUT * 4
    vmem_limit = int(io_bytes * 2) + (2 << 20)

    vmem_spec = pl.BlockSpec(memory_space=pltpu.MemorySpace.VMEM)

    out2d = pl.pallas_call(
        functools.partial(_convolstm_head_kernel, bs=bs, ts=ts),
        out_shape=jax.ShapeDtypeStruct((bs * ts, D_OUT), jnp.float32),
        in_specs=[vmem_spec] * len(args),
        out_specs=vmem_spec,
        compiler_params=pltpu.CompilerParams(vmem_limit_bytes=vmem_limit),
    )(*args)

    return out2d.reshape(bs, ts, D_OUT)


# --------------------------- deterministic params --------------------------- #

def init_params(key):
    ks = jax.random.split(key, 6)

    def linear(kw, kb, fan_in, fan_out):
        bound = 1.0 / np.sqrt(fan_in)                 # PyTorch nn.Linear default
        w = jax.random.uniform(kw, (fan_in, fan_out), jnp.float32, -bound, bound)
        b = jax.random.uniform(kb, (1, fan_out), jnp.float32, -bound, bound)
        return w.astype(jnp.bfloat16), b              # bf16 weights, f32 bias

    w1, b1 = linear(ks[0], ks[1], D_IN, D_H1)
    w2, b2 = linear(ks[2], ks[3], D_H1, D_H2)
    w3, b3 = linear(ks[4], ks[5], D_H2, D_OUT)
    return {
        "w1": w1, "b1": b1,
        "g1": jnp.ones((1, D_H1), jnp.float32),
        "be1": jnp.zeros((1, D_H1), jnp.float32),
        "w2": w2, "b2": b2,
        "g2": jnp.ones((1, D_H2), jnp.float32),
        "be2": jnp.zeros((1, D_H2), jnp.float32),
        "w3": w3, "b3": b3,
    }


def prepare_kernel_params(p):
    """Zero-pad the 800-wide hidden layer to 896 (multiple of 128 lanes).

    gamma/beta/bias pads are exactly 0, so padded channels are 0 after the
    linear, stay 0 through BN ((0-0)*rsqrt(0+eps)*0 + 0) and ReLU, and only
    meet zero rows of w3 -> numerically exact vs the unpadded model.
    """
    def pad_cols(a, new):
        return jnp.pad(a, [(0, 0)] * (a.ndim - 1) + [(0, new - a.shape[-1])])

    return {
        "w1": p["w1"], "b1": p["b1"], "g1": p["g1"], "be1": p["be1"],
        "w2": pad_cols(p["w2"], D_H2P),
        "b2": pad_cols(p["b2"], D_H2P),
        "g2": pad_cols(p["g2"], D_H2P),
        "be2": pad_cols(p["be2"], D_H2P),
        "w3": jnp.pad(p["w3"], [(0, D_H2P - D_H2), (0, 0)]),
        "b3": p["b3"],
    }


# ------------------------------ pure-JAX refs ------------------------------- #

def reference_forward(feats, p, match_bf16_activations):
    """Per-timestep ConvoLSTM head (unpadded params).  If
    match_bf16_activations, round matmul inputs to bf16 like the kernel does
    (weights are bf16-valued either way)."""
    w1 = p["w1"].astype(jnp.float32)
    w2 = p["w2"].astype(jnp.float32)
    w3 = p["w3"].astype(jnp.float32)

    def mm(a, w):
        if match_bf16_activations:
            a = a.astype(jnp.bfloat16).astype(jnp.float32)
        return jnp.dot(a, w, precision=lax.Precision.HIGHEST)

    def bn(y, g, be):
        mean = jnp.mean(y, axis=0, keepdims=True)
        var = jnp.mean((y - mean) ** 2, axis=0, keepdims=True)
        return (y - mean) * lax.rsqrt(var + BN_EPS) * g + be

    outs = []
    for t in range(feats.shape[1]):
        x = feats[:, t, :].astype(jnp.float32)
        y = mm(x, w1) + p["b1"]
        y = jnp.maximum(bn(y, p["g1"], p["be1"]), 0.0)
        y = mm(y, w2) + p["b2"]
        y = jnp.maximum(bn(y, p["g2"], p["be2"]), 0.0)
        outs.append(mm(y, w3) + p["b3"])                 # Dropout(p=0) = identity
    return jnp.stack(outs, axis=1)


# ---------------------------------- main ------------------------------------ #

if __name__ == "__main__":
    key = jax.random.PRNGKey(0)
    k_x, k_p = jax.random.split(key)

    bs, ts = 4, 8   # small batch / seq; feature dims (2048->1024->800->512) fixed
    feats = jax.random.normal(k_x, (bs, ts, D_IN), jnp.float32)
    params = init_params(k_p)
    kparams = prepare_kernel_params(params)             # padded, kernel-ready

    out = jax.block_until_ready(jax.jit(cnn_model_forward)(feats, kparams))

    assert out.shape == (bs, ts, D_OUT), out.shape
    assert bool(jnp.all(jnp.isfinite(out)))

    # Tight check vs a reference doing the same math (bf16 matmul inputs,
    # f32 accumulation, f32 BN/ReLU) on the unpadded model.
    ref_match = jax.block_until_ready(reference_forward(feats, params, True))
    err_match = float(jnp.max(jnp.abs(out - ref_match)))
    assert err_match < 5e-3, f"kernel vs matched reference too large: {err_match}"

    # Loose check that the bf16 activation drift vs full-f32 activations stays
    # bounded through the 3 layers + 2 batch-norms.
    ref_f32 = jax.block_until_ready(reference_forward(feats, params, False))
    err_f32 = float(jnp.max(jnp.abs(out - ref_f32)))
    assert err_f32 < 0.25, f"bf16 activation drift too large: {err_f32}"

    print("KERNEL_OK")
</pallas_src>

<mosaic_0001>
module attributes {stable_mosaic.version = 11 : i64} {
  func.func @_convolstm_head_kernel(%arg0: memref<32x2048xbf16, #tpu.memory_space<vmem>>, %arg1: memref<2048x1024xbf16, #tpu.memory_space<vmem>>, %arg2: memref<1x1024xf32, #tpu.memory_space<vmem>>, %arg3: memref<1x1024xf32, #tpu.memory_space<vmem>>, %arg4: memref<1x1024xf32, #tpu.memory_space<vmem>>, %arg5: memref<1024x896xbf16, #tpu.memory_space<vmem>>, %arg6: memref<1x896xf32, #tpu.memory_space<vmem>>, %arg7: memref<1x896xf32, #tpu.memory_space<vmem>>, %arg8: memref<1x896xf32, #tpu.memory_space<vmem>>, %arg9: memref<896x512xbf16, #tpu.memory_space<vmem>>, %arg10: memref<1x512xf32, #tpu.memory_space<vmem>>, %arg11: memref<32x512xf32, #tpu.memory_space<vmem>>) attributes {dimension_semantics = [], scalar_prefetch = 0 : i64, scratch_operands = 0 : i64, tpu.core_type = #tpu.core_type<tc>} {
    %c0 = arith.constant 0 : index
    %c0_0 = arith.constant 0 : index
    %0 = vector.load %arg0[%c0, %c0_0] : memref<32x2048xbf16, #tpu.memory_space<vmem>>, vector<32x2048xbf16>
    %c0_1 = arith.constant 0 : index
    %c0_2 = arith.constant 0 : index
    %1 = vector.load %arg1[%c0_1, %c0_2] : memref<2048x1024xbf16, #tpu.memory_space<vmem>>, vector<2048x1024xbf16>
    %cst = arith.constant dense<0.000000e+00> : vector<32x1024xf32>
    %2 = tpu.matmul %0, %1, %cst {dimension_numbers = #tpu.dot_dimension_numbers<[1], [0], [0], [1], [0, 0, 1, 1], [], []>} : vector<32x2048xbf16>, vector<2048x1024xbf16>, vector<32x1024xf32> -> vector<32x1024xf32>
    %c0_3 = arith.constant 0 : index
    %c0_4 = arith.constant 0 : index
    %3 = vector.load %arg2[%c0_3, %c0_4] : memref<1x1024xf32, #tpu.memory_space<vmem>>, vector<1x1024xf32>
    %4 = vector.broadcast %3 : vector<1x1024xf32> to vector<32x1024xf32>
    %5 = arith.addf %2, %4 : vector<32x1024xf32>
    %6 = vector.extract_strided_slice %5 {offsets = [0, 0], sizes = [8, 1024], strides = [1, 1]} : vector<32x1024xf32> to vector<8x1024xf32>
    %7 = vector.extract_strided_slice %5 {offsets = [8, 0], sizes = [8, 1024], strides = [1, 1]} : vector<32x1024xf32> to vector<8x1024xf32>
    %8 = vector.extract_strided_slice %5 {offsets = [16, 0], sizes = [8, 1024], strides = [1, 1]} : vector<32x1024xf32> to vector<8x1024xf32>
    %9 = vector.extract_strided_slice %5 {offsets = [24, 0], sizes = [8, 1024], strides = [1, 1]} : vector<32x1024xf32> to vector<8x1024xf32>
    %10 = arith.addf %6, %7 : vector<8x1024xf32>
    %11 = arith.addf %10, %8 : vector<8x1024xf32>
    %12 = arith.addf %11, %9 : vector<8x1024xf32>
    %cst_5 = arith.constant 2.500000e-01 : f32
    %13 = vector.broadcast %cst_5 : f32 to vector<8x1024xf32>
    %14 = arith.mulf %12, %13 : vector<8x1024xf32>
    %15 = arith.subf %6, %14 : vector<8x1024xf32>
    %16 = arith.subf %7, %14 : vector<8x1024xf32>
    %17 = arith.subf %8, %14 : vector<8x1024xf32>
    %18 = arith.subf %9, %14 : vector<8x1024xf32>
    %19 = arith.mulf %15, %15 : vector<8x1024xf32>
    %20 = arith.mulf %16, %16 : vector<8x1024xf32>
    %21 = arith.addf %19, %20 : vector<8x1024xf32>
    %22 = arith.mulf %17, %17 : vector<8x1024xf32>
    %23 = arith.addf %21, %22 : vector<8x1024xf32>
    %24 = arith.mulf %18, %18 : vector<8x1024xf32>
    %25 = arith.addf %23, %24 : vector<8x1024xf32>
    %cst_6 = arith.constant 2.500000e-01 : f32
    %26 = vector.broadcast %cst_6 : f32 to vector<8x1024xf32>
    %27 = arith.mulf %25, %26 : vector<8x1024xf32>
    %cst_7 = arith.constant 9.99999974E-6 : f32
    %28 = vector.broadcast %cst_7 : f32 to vector<8x1024xf32>
    %29 = arith.addf %27, %28 : vector<8x1024xf32>
    %30 = math.rsqrt %29 : vector<8x1024xf32>
    %c0_8 = arith.constant 0 : index
    %c0_9 = arith.constant 0 : index
    %31 = vector.load %arg3[%c0_8, %c0_9] : memref<1x1024xf32, #tpu.memory_space<vmem>>, vector<1x1024xf32>
    %32 = vector.broadcast %31 : vector<1x1024xf32> to vector<8x1024xf32>
    %33 = arith.mulf %30, %32 : vector<8x1024xf32>
    %34 = arith.mulf %15, %33 : vector<8x1024xf32>
    %c0_10 = arith.constant 0 : index
    %c0_11 = arith.constant 0 : index
    %35 = vector.load %arg4[%c0_10, %c0_11] : memref<1x1024xf32, #tpu.memory_space<vmem>>, vector<1x1024xf32>
    %36 = vector.broadcast %35 : vector<1x1024xf32> to vector<8x1024xf32>
    %37 = arith.addf %34, %36 : vector<8x1024xf32>
    %cst_12 = arith.constant 0.000000e+00 : f32
    %38 = vector.broadcast %cst_12 : f32 to vector<8x1024xf32>
    %39 = arith.maximumf %37, %38 : vector<8x1024xf32>
    %40 = arith.mulf %16, %33 : vector<8x1024xf32>
    %c0_13 = arith.constant 0 : index
    %c0_14 = arith.constant 0 : index
    %41 = vector.load %arg4[%c0_13, %c0_14] : memref<1x1024xf32, #tpu.memory_space<vmem>>, vector<1x1024xf32>
    %42 = vector.broadcast %41 : vector<1x1024xf32> to vector<8x1024xf32>
    %43 = arith.addf %40, %42 : vector<8x1024xf32>
    %cst_15 = arith.constant 0.000000e+00 : f32
    %44 = vector.broadcast %cst_15 : f32 to vector<8x1024xf32>
    %45 = arith.maximumf %43, %44 : vector<8x1024xf32>
    %46 = arith.mulf %17, %33 : vector<8x1024xf32>
    %c0_16 = arith.constant 0 : index
    %c0_17 = arith.constant 0 : index
    %47 = vector.load %arg4[%c0_16, %c0_17] : memref<1x1024xf32, #tpu.memory_space<vmem>>, vector<1x1024xf32>
    %48 = vector.broadcast %47 : vector<1x1024xf32> to vector<8x1024xf32>
    %49 = arith.addf %46, %48 : vector<8x1024xf32>
    %cst_18 = arith.constant 0.000000e+00 : f32
    %50 = vector.broadcast %cst_18 : f32 to vector<8x1024xf32>
    %51 = arith.maximumf %49, %50 : vector<8x1024xf32>
    %52 = arith.mulf %18, %33 : vector<8x1024xf32>
    %c0_19 = arith.constant 0 : index
    %c0_20 = arith.constant 0 : index
    %53 = vector.load %arg4[%c0_19, %c0_20] : memref<1x1024xf32, #tpu.memory_space<vmem>>, vector<1x1024xf32>
    %54 = vector.broadcast %53 : vector<1x1024xf32> to vector<8x1024xf32>
    %55 = arith.addf %52, %54 : vector<8x1024xf32>
    %cst_21 = arith.constant 0.000000e+00 : f32
    %56 = vector.broadcast %cst_21 : f32 to vector<8x1024xf32>
    %57 = arith.maximumf %55, %56 : vector<8x1024xf32>
    %58 = tpu.concatenate %39, %45, %51, %57 in 0 : vector<8x1024xf32>, vector<8x1024xf32>, vector<8x1024xf32>, vector<8x1024xf32> -> vector<32x1024xf32>
    %59 = arith.truncf %58 : vector<32x1024xf32> to vector<32x1024xbf16>
    %c0_22 = arith.constant 0 : index
    %c0_23 = arith.constant 0 : index
    %60 = vector.load %arg5[%c0_22, %c0_23] : memref<1024x896xbf16, #tpu.memory_space<vmem>>, vector<1024x896xbf16>
    %cst_24 = arith.constant dense<0.000000e+00> : vector<32x896xf32>
    %61 = tpu.matmul %59, %60, %cst_24 {dimension_numbers = #tpu.dot_dimension_numbers<[1], [0], [0], [1], [0, 0, 1, 1], [], []>} : vector<32x1024xbf16>, vector<1024x896xbf16>, vector<32x896xf32> -> vector<32x896xf32>
    %c0_25 = arith.constant 0 : index
    %c0_26 = arith.constant 0 : index
    %62 = vector.load %arg6[%c0_25, %c0_26] : memref<1x896xf32, #tpu.memory_space<vmem>>, vector<1x896xf32>
    %63 = vector.broadcast %62 : vector<1x896xf32> to vector<32x896xf32>
    %64 = arith.addf %61, %63 : vector<32x896xf32>
    %65 = vector.extract_strided_slice %64 {offsets = [0, 0], sizes = [8, 896], strides = [1, 1]} : vector<32x896xf32> to vector<8x896xf32>
    %66 = vector.extract_strided_slice %64 {offsets = [8, 0], sizes = [8, 896], strides = [1, 1]} : vector<32x896xf32> to vector<8x896xf32>
    %67 = vector.extract_strided_slice %64 {offsets = [16, 0], sizes = [8, 896], strides = [1, 1]} : vector<32x896xf32> to vector<8x896xf32>
    %68 = vector.extract_strided_slice %64 {offsets = [24, 0], sizes = [8, 896], strides = [1, 1]} : vector<32x896xf32> to vector<8x896xf32>
    %69 = arith.addf %65, %66 : vector<8x896xf32>
    %70 = arith.addf %69, %67 : vector<8x896xf32>
    %71 = arith.addf %70, %68 : vector<8x896xf32>
    %cst_27 = arith.constant 2.500000e-01 : f32
    %72 = vector.broadcast %cst_27 : f32 to vector<8x896xf32>
    %73 = arith.mulf %71, %72 : vector<8x896xf32>
    %74 = arith.subf %65, %73 : vector<8x896xf32>
    %75 = arith.subf %66, %73 : vector<8x896xf32>
    %76 = arith.subf %67, %73 : vector<8x896xf32>
    %77 = arith.subf %68, %73 : vector<8x896xf32>
    %78 = arith.mulf %74, %74 : vector<8x896xf32>
    %79 = arith.mulf %75, %75 : vector<8x896xf32>
    %80 = arith.addf %78, %79 : vector<8x896xf32>
    %81 = arith.mulf %76, %76 : vector<8x896xf32>
    %82 = arith.addf %80, %81 : vector<8x896xf32>
    %83 = arith.mulf %77, %77 : vector<8x896xf32>
    %84 = arith.addf %82, %83 : vector<8x896xf32>
    %cst_28 = arith.constant 2.500000e-01 : f32
    %85 = vector.broadcast %cst_28 : f32 to vector<8x896xf32>
    %86 = arith.mulf %84, %85 : vector<8x896xf32>
    %cst_29 = arith.constant 9.99999974E-6 : f32
    %87 = vector.broadcast %cst_29 : f32 to vector<8x896xf32>
    %88 = arith.addf %86, %87 : vector<8x896xf32>
    %89 = math.rsqrt %88 : vector<8x896xf32>
    %c0_30 = arith.constant 0 : index
    %c0_31 = arith.constant 0 : index
    %90 = vector.load %arg7[%c0_30, %c0_31] : memref<1x896xf32, #tpu.memory_space<vmem>>, vector<1x896xf32>
    %91 = vector.broadcast %90 : vector<1x896xf32> to vector<8x896xf32>
    %92 = arith.mulf %89, %91 : vector<8x896xf32>
    %93 = arith.mulf %74, %92 : vector<8x896xf32>
    %c0_32 = arith.constant 0 : index
    %c0_33 = arith.constant 0 : index
    %94 = vector.load %arg8[%c0_32, %c0_33] : memref<1x896xf32, #tpu.memory_space<vmem>>, vector<1x896xf32>
    %95 = vector.broadcast %94 : vector<1x896xf32> to vector<8x896xf32>
    %96 = arith.addf %93, %95 : vector<8x896xf32>
    %cst_34 = arith.constant 0.000000e+00 : f32
    %97 = vector.broadcast %cst_34 : f32 to vector<8x896xf32>
    %98 = arith.maximumf %96, %97 : vector<8x896xf32>
    %99 = arith.mulf %75, %92 : vector<8x896xf32>
    %c0_35 = arith.constant 0 : index
    %c0_36 = arith.constant 0 : index
    %100 = vector.load %arg8[%c0_35, %c0_36] : memref<1x896xf32, #tpu.memory_space<vmem>>, vector<1x896xf32>
    %101 = vector.broadcast %100 : vector<1x896xf32> to vector<8x896xf32>
    %102 = arith.addf %99, %101 : vector<8x896xf32>
    %cst_37 = arith.constant 0.000000e+00 : f32
    %103 = vector.broadcast %cst_37 : f32 to vector<8x896xf32>
    %104 = arith.maximumf %102, %103 : vector<8x896xf32>
    %105 = arith.mulf %76, %92 : vector<8x896xf32>
    %c0_38 = arith.constant 0 : index
    %c0_39 = arith.constant 0 : index
    %106 = vector.load %arg8[%c0_38, %c0_39] : memref<1x896xf32, #tpu.memory_space<vmem>>, vector<1x896xf32>
    %107 = vector.broadcast %106 : vector<1x896xf32> to vector<8x896xf32>
    %108 = arith.addf %105, %107 : vector<8x896xf32>
    %cst_40 = arith.constant 0.000000e+00 : f32
    %109 = vector.broadcast %cst_40 : f32 to vector<8x896xf32>
    %110 = arith.maximumf %108, %109 : vector<8x896xf32>
    %111 = arith.mulf %77, %92 : vector<8x896xf32>
    %c0_41 = arith.constant 0 : index
    %c0_42 = arith.constant 0 : index
    %112 = vector.load %arg8[%c0_41, %c0_42] : memref<1x896xf32, #tpu.memory_space<vmem>>, vector<1x896xf32>
    %113 = vector.broadcast %112 : vector<1x896xf32> to vector<8x896xf32>
    %114 = arith.addf %111, %113 : vector<8x896xf32>
    %cst_43 = arith.constant 0.000000e+00 : f32
    %115 = vector.broadcast %cst_43 : f32 to vector<8x896xf32>
    %116 = arith.maximumf %114, %115 : vector<8x896xf32>
    %117 = tpu.concatenate %98, %104, %110, %116 in 0 : vector<8x896xf32>, vector<8x896xf32>, vector<8x896xf32>, vector<8x896xf32> -> vector<32x896xf32>
    %118 = arith.truncf %117 : vector<32x896xf32> to vector<32x896xbf16>
    %c0_44 = arith.constant 0 : index
    %c0_45 = arith.constant 0 : index
    %119 = vector.load %arg9[%c0_44, %c0_45] : memref<896x512xbf16, #tpu.memory_space<vmem>>, vector<896x512xbf16>
    %cst_46 = arith.constant dense<0.000000e+00> : vector<32x512xf32>
    %120 = tpu.matmul %118, %119, %cst_46 {dimension_numbers = #tpu.dot_dimension_numbers<[1], [0], [0], [1], [0, 0, 1, 1], [], []>} : vector<32x896xbf16>, vector<896x512xbf16>, vector<32x512xf32> -> vector<32x512xf32>
    %c0_47 = arith.constant 0 : index
    %c0_48 = arith.constant 0 : index
    %121 = vector.load %arg10[%c0_47, %c0_48] : memref<1x512xf32, #tpu.memory_space<vmem>>, vector<1x512xf32>
    %122 = vector.broadcast %121 : vector<1x512xf32> to vector<32x512xf32>
    %123 = arith.addf %120, %122 : vector<32x512xf32>
    %c0_49 = arith.constant 0 : index
    %c0_50 = arith.constant 0 : index
    %124 = vector.load %arg11[%c0_49, %c0_50] : memref<32x512xf32, #tpu.memory_space<vmem>>, vector<32x512xf32>
    tpu.vector_store %arg11[%c0_49, %c0_50], %123 {strides = array<i32>} : memref<32x512xf32, #tpu.memory_space<vmem>>, vector<32x512xf32>,
    return
  }
}

</mosaic_0001>

<bundles_post_ra>
// kernel: cnn_model_forward.1
= control target key start
LH: loop header
LB: loop body
LE: loop exit
PB: predicated region body
PF: predicated region fallthrough
CT: control target
= control target key end

     0   :  { %16 = vsyncpa [#allocation3], 0  ;;  %s19135_s0 = inlined_call_operand.vmem [shape: bf16[32,2048], index: 0, kind: input, shape index: {}]   ;;  %s19136_s1 = inlined_call_operand.hbm [shape: bf16[2048,1024], index: 1, kind: input, shape index: {}]   ;;  %s19137_s2 = inlined_call_operand.hbm [shape: f32[1,1024], index: 2, kind: input, shape index: {}]   ;;  %s19138_s3 = inlined_call_operand.hbm [shape: f32[1,1024], index: 3, kind: input, shape index: {}]   ;;  %s19139_s4 = inlined_call_operand.hbm [shape: f32[1,1024], index: 4, kind: input, shape index: {}]   ;;  %s19140_s5 = inlined_call_operand.hbm [shape: bf16[1024,896], index: 5, kind: input, shape index: {}]   ;;  %s19141_s6 = inlined_call_operand.hbm [shape: f32[1,896], index: 6, kind: input, shape index: {}]   ;;  %s19142_s7 = inlined_call_operand.hbm [shape: f32[1,896], index: 7, kind: input, shape index: {}]   ;;  %s19143_s8 = inlined_call_operand.hbm [shape: f32[1,896], index: 8, kind: input, shape index: {}]   ;;  %s19144_s9 = inlined_call_operand.hbm [shape: bf16[896,512], index: 9, kind: input, shape index: {}]   ;;  %s19145_s10 = inlined_call_operand.hbm [shape: f32[1,512], index: 10, kind: input, shape index: {}]   ;;  %s19146_s11 = inlined_call_operand.hbm [shape: f32[32,512], index: 11, kind: output, shape index: {}]  }
   0x1   :  { %17 = vsyncpa [#allocation6], 0 }
   0x2   :  { %18 = vsyncpa [#allocation9], 0 }
   0x3   :  { %19 = vsyncpa [#allocation12], 0 }
   0x4   :  { %20 = vsyncpa [#allocation15], 0 }
   0x5   :  { %21 = vsyncpa [#allocation18], 0 }
   0x6   :  { %22 = vsyncpa [#allocation4], 0  ;;  %s17945_s17 = smov [#allocation5]   ;;  %s17946_s19 = smov [#allocation8]  }
   0x7   :  { %s43_s18 = sshll.u32 %s17945_s17, 4  ;;  %s63_s20 = sshll.u32 %s17946_s19, 4  ;;  %s44_s18 = int_to_ptr.vmem [resolvable:$true] %s43_s18  ;;  %s64_s20 = int_to_ptr.vmem [resolvable:$true] %s63_s20 }
   0x8   :  { %s17689_s23 = scalar_lea.hbm %s19137_s2, 128 }
   0x9   :  { %p17690_p0 = scmp.ne.s32.totalorder %s19137_s2, %s17689_s23  ;;  %p17693_p1 = scmp.lt.u32.totalorder %s17689_s23, %s19137_s2 }
   0xb   :  { %p17695_p2 = pnand %p17693_p1, %p17690_p0 }
   0xd   :  { %17698 = shalt.err (!%p17695_p2)
}
   0xe   :  { %s17699_s28 = scalar_lea.vmem %s44_s18, 128  ;;  %p17704_p4 = scmp.lt.s32.totalorder %s44_s18, %s44_s18 }
   0xf   :  { %p17700_p3 = scmp.ne.s32.totalorder %s44_s18, %s17699_s28  ;;  %p17705_p5 = scmp.lt.s32.totalorder %s17699_s28, %s17699_s28 }
  0x11   :  { %p17706_p6 = por %p17705_p5, %p17704_p4 }
  0x13   :  { %p17707_p7 = pnand %p17706_p6, %p17700_p3 }
  0x15   :  { %17710 = shalt.err (!%p17707_p7)
}
  0x16   :  { %46 = dma.hbm_to_vmem [thread:$0]  %s19137_s2, 128, %s44_s18, [#allocation6]  }
  0x17   :  { %s17711_s14 = scalar_lea.hbm %s19139_s4, 128 }
  0x18   :  { %p17712_p8 = scmp.ne.s32.totalorder %s19139_s4, %s17711_s14  ;;  %p17715_p9 = scmp.lt.u32.totalorder %s17711_s14, %s19139_s4 }
  0x1a   :  { %p17717_p10 = pnand %p17715_p9, %p17712_p8 }
  0x1c   :  { %17720 = shalt.err (!%p17717_p10)
}
  0x1d   :  { %s17721_s21 = scalar_lea.vmem %s64_s20, 128  ;;  %p17726_p12 = scmp.lt.s32.totalorder %s64_s20, %s64_s20 }
  0x1e   :  { %p17722_p11 = scmp.ne.s32.totalorder %s64_s20, %s17721_s21  ;;  %p17727_p13 = scmp.lt.s32.totalorder %s17721_s21, %s17721_s21 }
  0x20   :  { %p17728_p0 = por %p17727_p13, %p17726_p12 }
  0x22   :  { %p17729_p1 = pnand %p17728_p0, %p17722_p11 }
  0x24   :  { %17732 = shalt.err (!%p17729_p1)
}
  0x25   :  { %66 = dma.hbm_to_vmem [thread:$0]  %s19139_s4, 128, %s64_s20, [#allocation9]  }
  0x26   :  { %s17947_s22 = smov [#allocation11]   ;;  %s17948_s24 = smov [#allocation14]  }
  0x27   :  { %s85_s23 = sshll.u32 %s17947_s22, 4  ;;  %s105_s25 = sshll.u32 %s17948_s24, 4  ;;  %s86_s23 = int_to_ptr.vmem [resolvable:$true] %s85_s23  ;;  %s106_s25 = int_to_ptr.vmem [resolvable:$true] %s105_s25 }
  0x28   :  { %s17733_s28 = scalar_lea.hbm %s19141_s6, 112 }
  0x29   :  { %p17734_p2 = scmp.ne.s32.totalorder %s19141_s6, %s17733_s28  ;;  %p17737_p3 = scmp.lt.u32.totalorder %s17733_s28, %s19141_s6 }
  0x2b   :  { %p17739_p4 = pnand %p17737_p3, %p17734_p2 }
  0x2d   :  { %17742 = shalt.err (!%p17739_p4)
}
  0x2e   :  { %s17743_s4 = scalar_lea.vmem %s86_s23, 112  ;;  %s17747_s20 = scalar_lea.vmem %s86_s23, 128 }
  0x2f   :  { %p17744_p5 = scmp.ne.s32.totalorder %s86_s23, %s17743_s4  ;;  %p17748_p6 = scmp.lt.s32.totalorder %s86_s23, %s86_s23 }
  0x30   :  { %p17749_p7 = scmp.lt.s32.totalorder %s17747_s20, %s17743_s4 }
  0x32   :  { %p17750_p8 = por %p17749_p7, %p17748_p6 }
  0x34   :  { %p17751_p9 = pnand %p17750_p8, %p17744_p5 }
  0x36   :  { %17754 = shalt.err (!%p17751_p9)
}
  0x37   :  { %88 = dma.hbm_to_vmem [thread:$0]  %s19141_s6, 112, %s86_s23, [#allocation12]  }
  0x38   :  { %s17755_s19 = scalar_lea.hbm %s19143_s8, 112 }
  0x39   :  { %p17756_p10 = scmp.ne.s32.totalorder %s19143_s8, %s17755_s19  ;;  %p17759_p11 = scmp.lt.u32.totalorder %s17755_s19, %s19143_s8 }
  0x3b   :  { %p17761_p12 = pnand %p17759_p11, %p17756_p10 }
  0x3d   :  { %17764 = shalt.err (!%p17761_p12)
}
  0x3e   :  { %s17765_s24 = scalar_lea.vmem %s106_s25, 112  ;;  %s17769_s26 = scalar_lea.vmem %s106_s25, 128 }
  0x3f   :  { %p17766_p13 = scmp.ne.s32.totalorder %s106_s25, %s17765_s24  ;;  %p17770_p0 = scmp.lt.s32.totalorder %s106_s25, %s106_s25 }
  0x40   :  { %p17771_p1 = scmp.lt.s32.totalorder %s17769_s26, %s17765_s24 }
  0x42   :  { %p17772_p2 = por %p17771_p1, %p17770_p0 }
  0x44   :  { %p17773_p3 = pnand %p17772_p2, %p17766_p13 }
  0x46   :  { %17776 = shalt.err (!%p17773_p3)
}
  0x47   :  { %108 = dma.hbm_to_vmem [thread:$0]  %s19143_s8, 112, %s106_s25, [#allocation15]  }
  0x48   :  { %s17949_s27 = smov [#allocation2]   ;;  %s17777_s12 = scalar_lea.hbm %s19136_s1, 131072 }
  0x49   :  { %s30_s28 = sshll.u32 %s17949_s27, 4  ;;  %p17778_p4 = scmp.ne.s32.totalorder %s19136_s1, %s17777_s12  ;;  %s31_s28 = int_to_ptr.vmem [resolvable:$true] %s30_s28 }
  0x4a   :  { %p17781_p5 = scmp.lt.u32.totalorder %s17777_s12, %s19136_s1 }
  0x4c   :  { %p17783_p6 = pnand %p17781_p5, %p17778_p4 }
  0x4e   :  { %17786 = shalt.err (!%p17783_p6)
}
  0x4f   :  { %s17787_s15 = scalar_lea.vmem %s31_s28, 131072  ;;  %p17792_p8 = scmp.lt.s32.totalorder %s31_s28, %s31_s28 }
  0x50   :  { %p17788_p7 = scmp.ne.s32.totalorder %s31_s28, %s17787_s15  ;;  %p17793_p9 = scmp.lt.s32.totalorder %s17787_s15, %s17787_s15 }
  0x52   :  { %p17794_p10 = por %p17793_p9, %p17792_p8 }
  0x54   :  { %p17795_p11 = pnand %p17794_p10, %p17788_p7 }
  0x56   :  { %17798 = shalt.err (!%p17795_p11)
}
  0x57   :  { %s17950_s8 = smov 512   ;;  %s17951_s25 = smov 32  }
  0x58   :  { %36 = dma.hbm_to_vmem [thread:$0]  %s19136_s1, 131072, %s31_s28, [#allocation3], %s17950_s8, %s17950_s8, %s17951_s25  }
  0x59   :  { %s17952_s19 = smov [#allocation7]   ;;  %s17953_s2 = smov [#allocation10]  }
  0x5a   :  { %s53_s21 = sshll.u32 %s17952_s19, 4  ;;  %s72_s18 = sshll.u32 %s17953_s2, 4  ;;  %s54_s21 = int_to_ptr.vmem [resolvable:$true] %s53_s21  ;;  %s73_s18 = int_to_ptr.vmem [resolvable:$true] %s72_s18 }
  0x5b   :  { %s17799_s26 = scalar_lea.hbm %s19138_s3, 128 }
  0x5c   :  { %p17800_p12 = scmp.ne.s32.totalorder %s19138_s3, %s17799_s26  ;;  %p17803_p13 = scmp.lt.u32.totalorder %s17799_s26, %s19138_s3 }
  0x5e   :  { %p17805_p0 = pnand %p17803_p13, %p17800_p12 }
  0x60   :  { %17808 = shalt.err (!%p17805_p0)
}
  0x61   :  { %s17809_s1 = scalar_lea.vmem %s54_s21, 128  ;;  %p17814_p2 = scmp.lt.s32.totalorder %s54_s21, %s54_s21 }
  0x62   :  { %p17810_p1 = scmp.ne.s32.totalorder %s54_s21, %s17809_s1  ;;  %p17815_p3 = scmp.lt.s32.totalorder %s17809_s1, %s17809_s1 }
  0x64   :  { %p17816_p4 = por %p17815_p3, %p17814_p2 }
  0x66   :  { %p17817_p5 = pnand %p17816_p4, %p17810_p1 }
  0x68   :  { %17820 = shalt.err (!%p17817_p5)
}
  0x69   :  { %56 = dma.hbm_to_vmem [thread:$0]  %s19138_s3, 128, %s54_s21, [#allocation6]  }
  0x6a   :  { %s17821_s4 = scalar_lea.hbm %s19140_s5, 57344 }
  0x6b   :  { %p17822_p6 = scmp.ne.s32.totalorder %s19140_s5, %s17821_s4  ;;  %p17825_p7 = scmp.lt.u32.totalorder %s17821_s4, %s19140_s5 }
  0x6d   :  { %p17827_p8 = pnand %p17825_p7, %p17822_p6 }
  0x6f   :  { %17830 = shalt.err (!%p17827_p8)
}
  0x70   :  { %s17831_s17 = scalar_lea.vmem %s73_s18, 57344  ;;  %p17836_p10 = scmp.lt.s32.totalorder %s73_s18, %s73_s18 }
  0x71   :  { %p17832_p9 = scmp.ne.s32.totalorder %s73_s18, %s17831_s17  ;;  %p17837_p11 = scmp.lt.s32.totalorder %s17831_s17, %s17831_s17 }
  0x73   :  { %p17838_p12 = por %p17837_p11, %p17836_p10 }
  0x75   :  { %p17839_p13 = pnand %p17838_p12, %p17832_p9 }
  0x77   :  { %17842 = shalt.err (!%p17839_p13)
}
  0x78   :  { %s17954_s3 = smov 448   ;;  %s17955_s19 = smov 28  }
  0x79   :  { %78 = dma.hbm_to_vmem [thread:$0]  %s19140_s5, 57344, %s73_s18, [#allocation9], %s17954_s3, %s17954_s3, %s17955_s19  }
  0x7a   :  { %s17956_s22 = smov [#allocation13]   ;;  %s17957_s26 = smov [#allocation16]  }
  0x7b   :  { %s95_s24 = sshll.u32 %s17956_s22, 4  ;;  %s114_s6 = sshll.u32 %s17957_s26, 4  ;;  %s96_s24 = int_to_ptr.vmem [resolvable:$true] %s95_s24  ;;  %s115_s6 = int_to_ptr.vmem [resolvable:$true] %s114_s6 }
  0x7c   :  { %s17843_s29 = scalar_lea.hbm %s19142_s7, 112 }
  0x7d   :  { %p17844_p0 = scmp.ne.s32.totalorder %s19142_s7, %s17843_s29  ;;  %p17847_p1 = scmp.lt.u32.totalorder %s17843_s29, %s19142_s7 }
  0x7f   :  { %p17849_p2 = pnand %p17847_p1, %p17844_p0 }
  0x81   :  { %17852 = shalt.err (!%p17849_p2)
}
  0x82   :  { %s17853_s5 = scalar_lea.vmem %s96_s24, 112  ;;  %s17857_s18 = scalar_lea.vmem %s96_s24, 128 }
  0x83   :  { %p17854_p3 = scmp.ne.s32.totalorder %s96_s24, %s17853_s5  ;;  %p17858_p4 = scmp.lt.s32.totalorder %s96_s24, %s96_s24 }
  0x84   :  { %p17859_p5 = scmp.lt.s32.totalorder %s17857_s18, %s17853_s5 }
  0x86   :  { %p17860_p6 = por %p17859_p5, %p17858_p4 }
  0x88   :  { %p17861_p7 = pnand %p17860_p6, %p17854_p3 }
  0x8a   :  { %17864 = shalt.err (!%p17861_p7)
}
  0x8b   :  { %98 = dma.hbm_to_vmem [thread:$0]  %s19142_s7, 112, %s96_s24, [#allocation12]  }
  0x8c   :  { %s17865_s15 = scalar_lea.hbm %s19144_s9, 28672 }
  0x8d   :  { %p17866_p8 = scmp.ne.s32.totalorder %s19144_s9, %s17865_s15  ;;  %p17869_p9 = scmp.lt.u32.totalorder %s17865_s15, %s19144_s9 }
  0x8f   :  { %p17871_p10 = pnand %p17869_p9, %p17866_p8 }
  0x91   :  { %17874 = shalt.err (!%p17871_p10)
}
  0x92   :  { %s17875_s21 = scalar_lea.vmem %s115_s6, 28672  ;;  %p17880_p12 = scmp.lt.s32.totalorder %s115_s6, %s115_s6 }
  0x93   :  { %p17876_p11 = scmp.ne.s32.totalorder %s115_s6, %s17875_s21  ;;  %p17881_p13 = scmp.lt.s32.totalorder %s17875_s21, %s17875_s21 }
  0x95   :  { %p17882_p0 = por %p17881_p13, %p17880_p12 }
  0x97   :  { %p17883_p1 = pnand %p17882_p0, %p17876_p11 }
  0x99   :  { %17886 = shalt.err (!%p17883_p1)
}
  0x9a   :  { %s17958_s7 = smov 256   ;;  %s17959_s2 = smov 16  }
  0x9b   :  { %120 = dma.hbm_to_vmem [thread:$0]  %s19144_s9, 28672, %s115_s6, [#allocation15], %s17958_s7, %s17958_s7, %s17959_s2  }
  0x9c   :  { %s17960_s26 = smov [#allocation17]   ;;  %s17887_s1 = scalar_lea.hbm %s19145_s10, 64 }
  0x9d   :  { %s127_s23 = sshll.u32 %s17960_s26, 4  ;;  %p17888_p2 = scmp.ne.s32.totalorder %s19145_s10, %s17887_s1  ;;  %s128_s23 = int_to_ptr.vmem [resolvable:$true] %s127_s23 }
  0x9e   :  { %p17891_p3 = scmp.lt.u32.totalorder %s17887_s1, %s19145_s10 }
  0xa0   :  { %p17893_p4 = pnand %p17891_p3, %p17888_p2 }
  0xa2   :  { %17896 = shalt.err (!%p17893_p4)
}
  0xa3   :  { %s17897_s18 = scalar_lea.vmem %s128_s23, 64  ;;  %p17902_p6 = scmp.lt.s32.totalorder %s128_s23, %s128_s23 }
  0xa4   :  { %p17898_p5 = scmp.ne.s32.totalorder %s128_s23, %s17897_s18  ;;  %p17903_p7 = scmp.lt.s32.totalorder %s17897_s18, %s17897_s18 }
  0xa6   :  { %p17904_p8 = por %p17903_p7, %p17902_p6 }
  0xa8   :  { %p17905_p9 = pnand %p17904_p8, %p17898_p5 }
  0xaa   :  { %17908 = shalt.err (!%p17905_p9)
}
  0xab   :  { %130 = dma.hbm_to_vmem [thread:$0]  %s19145_s10, 64, %s128_s23, [#allocation18]  }
  0xac   :  { %17931 = dma.done.wait [#allocation3], 131072  }
  0xad   :  { %17932 = vsyncadd [#allocation3], 4294836224 }
  0xae   :  { %17933 = dma.done.wait [#allocation6], 256  }
  0xaf   :  { %17934 = vsyncadd [#allocation6], 4294967040 }
  0xb0   :  { %17935 = dma.done.wait [#allocation9], 57472  }
  0xb1   :  { %17936 = vsyncadd [#allocation9], 4294909824 }
  0xb2   :  { %17937 = dma.done.wait [#allocation12], 224  }
  0xb3   :  { %17938 = vsyncadd [#allocation12], 4294967072 }
  0xb4   :  { %17939 = dma.done.wait [#allocation15], 28784  }
  0xb5   :  { %17940 = vsyncadd [#allocation15], 4294938512 }
  0xb6   :  { %17941 = dma.done.wait [#allocation18], 64  }
  0xb7   :  { %17942 = vsyncadd [#allocation18], 4294967232  ;;  %v194_v0 = vld [vmem:[#allocation2] sm:$0xff]  ;;  %v18163_v59 = vld [vmem:[%s19135_s0 + $0x8] sm:$0xff] }
  0xb8   :  { %v198_v1 = vld [vmem:[#allocation2 + $0x20] sm:$0xff]  ;;  %v18168_v60 = vld [vmem:[%s19135_s0 + $0x48] sm:$0xff] }
  0xb9   :  { %v322_v2 = vld [vmem:[#allocation2 + $0x400] sm:$0xff]  ;;  %v14435_v3 = vcombine.high %v194_v0, %v198_v1  ;;  %v14434_v5 = vcombine.low %v194_v0, %v198_v1  ;;  %v18172_v63 = vcombine.high %v18163_v59, %v18168_v60 }
  0xba   :  { %v326_v4 = vld [vmem:[#allocation2 + $0x420] sm:$0xff] }
  0xbb   :  { %v202_v6 = vld [vmem:[#allocation2 + $0x40] sm:$0xff]  ;;  %v14563_v8 = vcombine.high %v322_v2, %v326_v4  ;;  %v14562_v9 = vcombine.low %v322_v2, %v326_v4  ;;  %6540 = vmatprep.subr.bf16.mxu1 %v14435_v3  ;;  %6625 = vmatprep.mubr.bf16.mxu0 %v18172_v63 }
  0xbc   :  { %v206_v7 = vld [vmem:[#allocation2 + $0x60] sm:$0xff]  ;;  %6541 = vmatpush1.bf16.msra.mxu1 %v14434_v5 }
  0xbd   :  { %v14443_v10 = vcombine.high %v202_v6, %v206_v7  ;;  %v330_v11 = vld [vmem:[#allocation2 + $0x440] sm:$0xff]  ;;  %6593 = vmatprep.subr.bf16.mxu0 %v14563_v8  ;;  %v14442_v18 = vcombine.low %v202_v6, %v206_v7 }
  0xbe   :  { %v334_v12 = vld [vmem:[#allocation2 + $0x460] sm:$0xff]  ;;  %6594 = vmatpush1.bf16.msra.mxu0 %v14562_v9 }
  0xbf   :  { %v210_v13 = vld [vmem:[#allocation2 + $0x80] sm:$0xff]  ;;  %v14571_v14 = vcombine.high %v330_v11, %v334_v12  ;;  %6542 = vmatprep.subr.bf16.mxu1 %v14443_v10  ;;  %v14570_v19 = vcombine.low %v330_v11, %v334_v12 }
  0xc0   :  { %v214_v15 = vld [vmem:[#allocation2 + $0xa0] sm:$0xff]  ;;  %6543 = vmatpush1.bf16.msra.mxu1 %v14442_v18 }
  0xc1   :  { %v338_v16 = vld [vmem:[#allocation2 + $0x480] sm:$0xff]  ;;  %v14451_v20 = vcombine.high %v210_v13, %v214_v15  ;;  %6595 = vmatprep.subr.bf16.mxu0 %v14571_v14  ;;  %v14450_v26 = vcombine.low %v210_v13, %v214_v15 }
  0xc2   :  { %v342_v17 = vld [vmem:[#allocation2 + $0x4a0] sm:$0xff]  ;;  %6596 = vmatpush1.bf16.msra.mxu0 %v14570_v19 }
  0xc3   :  { %v14579_v21 = vcombine.high %v338_v16, %v342_v17  ;;  %v218_v22 = vld [vmem:[#allocation2 + $0xc0] sm:$0xff]  ;;  %6544 = vmatprep.subr.bf16.mxu1 %v14451_v20  ;;  %v14578_v27 = vcombine.low %v338_v16, %v342_v17 }
  0xc4   :  { %v222_v23 = vld [vmem:[#allocation2 + $0xe0] sm:$0xff]  ;;  %6545 = vmatpush1.bf16.msra.mxu1 %v14450_v26 }
  0xc5   :  { %v346_v24 = vld [vmem:[#allocation2 + $0x4c0] sm:$0xff]  ;;  %v14459_v28 = vcombine.high %v218_v22, %v222_v23  ;;  %6597 = vmatprep.subr.bf16.mxu0 %v14579_v21  ;;  %v14458_v34 = vcombine.low %v218_v22, %v222_v23 }
  0xc6   :  { %v350_v25 = vld [vmem:[#allocation2 + $0x4e0] sm:$0xff]  ;;  %6598 = vmatpush1.bf16.msra.mxu0 %v14578_v27 }
  0xc7   :  { %v14587_v29 = vcombine.high %v346_v24, %v350_v25  ;;  %v226_v30 = vld [vmem:[#allocation2 + $0x100] sm:$0xff]  ;;  %6546 = vmatprep.subr.bf16.mxu1 %v14459_v28  ;;  %v14586_v35 = vcombine.low %v346_v24, %v350_v25 }
  0xc8   :  { %v230_v31 = vld [vmem:[#allocation2 + $0x120] sm:$0xff]  ;;  %6547 = vmatpush1.bf16.msra.mxu1 %v14458_v34 }
  0xc9   :  { %v354_v32 = vld [vmem:[#allocation2 + $0x500] sm:$0xff]  ;;  %v14467_v36 = vcombine.high %v226_v30, %v230_v31  ;;  %6599 = vmatprep.subr.bf16.mxu0 %v14587_v29  ;;  %v14466_v42 = vcombine.low %v226_v30, %v230_v31 }
  0xca   :  { %v358_v33 = vld [vmem:[#allocation2 + $0x520] sm:$0xff]  ;;  %6600 = vmatpush1.bf16.msra.mxu0 %v14586_v35 }
  0xcb   :  { %v14595_v37 = vcombine.high %v354_v32, %v358_v33  ;;  %v234_v38 = vld [vmem:[#allocation2 + $0x140] sm:$0xff]  ;;  %6548 = vmatprep.subr.bf16.mxu1 %v14467_v36  ;;  %v14594_v43 = vcombine.low %v354_v32, %v358_v33 }
  0xcc   :  { %v238_v39 = vld [vmem:[#allocation2 + $0x160] sm:$0xff]  ;;  %6549 = vmatpush1.bf16.msra.mxu1 %v14466_v42 }
  0xcd   :  { %v362_v40 = vld [vmem:[#allocation2 + $0x540] sm:$0xff]  ;;  %v14475_v44 = vcombine.high %v234_v38, %v238_v39  ;;  %6601 = vmatprep.subr.bf16.mxu0 %v14595_v37  ;;  %v14474_v50 = vcombine.low %v234_v38, %v238_v39 }
  0xce   :  { %v366_v41 = vld [vmem:[#allocation2 + $0x560] sm:$0xff]  ;;  %6602 = vmatpush1.bf16.msra.mxu0 %v14594_v43 }
  0xcf   :  { %v14603_v45 = vcombine.high %v362_v40, %v366_v41  ;;  %v242_v46 = vld [vmem:[#allocation2 + $0x180] sm:$0xff]  ;;  %6550 = vmatprep.subr.bf16.mxu1 %v14475_v44  ;;  %v14602_v51 = vcombine.low %v362_v40, %v366_v41 }
  0xd0   :  { %v246_v47 = vld [vmem:[#allocation2 + $0x1a0] sm:$0xff]  ;;  %6551 = vmatpush1.bf16.msra.mxu1 %v14474_v50 }
  0xd1   :  { %v370_v48 = vld [vmem:[#allocation2 + $0x580] sm:$0xff]  ;;  %v14483_v52 = vcombine.high %v242_v46, %v246_v47  ;;  %6603 = vmatprep.subr.bf16.mxu0 %v14603_v45  ;;  %v14482_v0 = vcombine.low %v242_v46, %v246_v47 }
  0xd2   :  { %v374_v49 = vld [vmem:[#allocation2 + $0x5a0] sm:$0xff]  ;;  %6604 = vmatpush1.bf16.msra.mxu0 %v14602_v51 }
  0xd3   :  { %v250_v53 = vld [vmem:[#allocation2 + $0x1c0] sm:$0xff]  ;;  %v14611_v56 = vcombine.high %v370_v48, %v374_v49  ;;  %6552 = vmatprep.subr.bf16.mxu1 %v14483_v52  ;;  %v14610_v1 = vcombine.low %v370_v48, %v374_v49 }
  0xd4   :  { %v18149_v54 = vld [vmem:[%s19135_s0] sm:$0xff]  ;;  %6553 = vmatpush1.bf16.msra.mxu1 %v14482_v0 }
  0xd5   :  { %v18154_v55 = vld [vmem:[%s19135_s0 + $0x40] sm:$0xff]  ;;  %6605 = vmatprep.subr.bf16.mxu0 %v14611_v56 }
  0xd6   :  { %v254_v57 = vld [vmem:[#allocation2 + $0x1e0] sm:$0xff]  ;;  %v18158_v58 = vcombine.high %v18149_v54, %v18154_v55  ;;  %6606 = vmatpush1.bf16.msra.mxu0 %v14610_v1 }
  0xd7   :  { %v378_v61 = vld [vmem:[#allocation2 + $0x5c0] sm:$0xff]  ;;  %v14491_v2 = vcombine.high %v250_v53, %v254_v57  ;;  %v14490_v8 = vcombine.low %v250_v53, %v254_v57 }
  0xd8   :  { %v382_v62 = vld [vmem:[#allocation2 + $0x5e0] sm:$0xff]  ;;  %6572 = vmatprep.mubr.bf16.mxu1 %v18158_v58 }
  0xd9   :  { %v14619_v3 = vcombine.high %v378_v61, %v382_v62  ;;  %v258_v4 = vld [vmem:[#allocation2 + $0x200] sm:$0xff]  ;;  %6554 = vmatprep.subr.bf16.mxu1 %v14491_v2  ;;  %v14618_v9 = vcombine.low %v378_v61, %v382_v62 }
  0xda   :  { %v262_v5 = vld [vmem:[#allocation2 + $0x220] sm:$0xff]  ;;  %6555 = vmatpush1.bf16.msra.mxu1 %v14490_v8 }
  0xdb   :  { %v386_v6 = vld [vmem:[#allocation2 + $0x600] sm:$0xff]  ;;  %v14499_v10 = vcombine.high %v258_v4, %v262_v5  ;;  %6607 = vmatprep.subr.bf16.mxu0 %v14619_v3  ;;  %v14498_v16 = vcombine.low %v258_v4, %v262_v5 }
  0xdc   :  { %v390_v7 = vld [vmem:[#allocation2 + $0x620] sm:$0xff]  ;;  %6608 = vmatpush1.bf16.msra.mxu0 %v14618_v9 }
  0xdd   :  { %v14627_v11 = vcombine.high %v386_v6, %v390_v7  ;;  %v266_v12 = vld [vmem:[#allocation2 + $0x240] sm:$0xff]  ;;  %6556 = vmatprep.subr.bf16.mxu1 %v14499_v10  ;;  %v14626_v17 = vcombine.low %v386_v6, %v390_v7  ;;  %v195_v10 = vld [vmem:[#allocation2 + $0x8] sm:$0xff] }
  0xde   :  { %v270_v13 = vld [vmem:[#allocation2 + $0x260] sm:$0xff]  ;;  %6557 = vmatpush1.bf16.msra.mxu1 %v14498_v16 }
  0xdf   :  { %v394_v14 = vld [vmem:[#allocation2 + $0x640] sm:$0xff]  ;;  %v14507_v18 = vcombine.high %v266_v12, %v270_v13  ;;  %6609 = vmatprep.subr.bf16.mxu0 %v14627_v11  ;;  %v14506_v24 = vcombine.low %v266_v12, %v270_v13  ;;  %v199_v11 = vld [vmem:[#allocation2 + $0x28] sm:$0xff] }
  0xe0   :  { %v398_v15 = vld [vmem:[#allocation2 + $0x660] sm:$0xff]  ;;  %6610 = vmatpush1.bf16.msra.mxu0 %v14626_v17  ;;  %v14437_v16 = vcombine.high %v195_v10, %v199_v11 }
  0xe1   :  { %v14635_v19 = vcombine.high %v394_v14, %v398_v15  ;;  %v274_v20 = vld [vmem:[#allocation2 + $0x280] sm:$0xff]  ;;  %6558 = vmatprep.subr.bf16.mxu1 %v14507_v18  ;;  %v14634_v25 = vcombine.low %v394_v14, %v398_v15 }
  0xe2   :  { %v278_v21 = vld [vmem:[#allocation2 + $0x2a0] sm:$0xff]  ;;  %6559 = vmatpush1.bf16.msra.mxu1 %v14506_v24 }
  0xe3   :  { %v402_v22 = vld [vmem:[#allocation2 + $0x680] sm:$0xff]  ;;  %v14515_v26 = vcombine.high %v274_v20, %v278_v21  ;;  %6611 = vmatprep.subr.bf16.mxu0 %v14635_v19  ;;  %v14514_v32 = vcombine.low %v274_v20, %v278_v21  ;;  %v203_v19 = vld [vmem:[#allocation2 + $0x48] sm:$0xff]  ;;  %v18178_v21 = vcombine.low %v18149_v54, %v18154_v55 }
  0xe4   :  { %v406_v23 = vld [vmem:[#allocation2 + $0x6a0] sm:$0xff]  ;;  %6612 = vmatpush1.bf16.msra.mxu0 %v14634_v25  ;;  %v207_v20 = vld [vmem:[#allocation2 + $0x68] sm:$0xff]  ;;  %v14436_v25 = vcombine.low %v195_v10, %v199_v11 }
  0xe5   :  { %v14643_v27 = vcombine.high %v402_v22, %v406_v23  ;;  %v282_v28 = vld [vmem:[#allocation2 + $0x2c0] sm:$0xff]  ;;  %6560 = vmatprep.subr.bf16.mxu1 %v14515_v26  ;;  %v14642_v33 = vcombine.low %v402_v22, %v406_v23  ;;  %v18188_v26 = vcombine.low %v18163_v59, %v18168_v60  ;;  %v179_v54 = vld [vmem:[%s19135_s0 + $0x88] sm:$0xff] }
  0xe6   :  { %v286_v29 = vld [vmem:[#allocation2 + $0x2e0] sm:$0xff]  ;;  %6561 = vmatpush1.bf16.msra.mxu1 %v14514_v32  ;;  %v187_v55 = vld [vmem:[%s19135_s0 + $0xc8] sm:$0xff] }
  0xe7   :  { %v410_v30 = vld [vmem:[#allocation2 + $0x6c0] sm:$0xff]  ;;  %v14523_v34 = vcombine.high %v282_v28, %v286_v29  ;;  %6613 = vmatprep.subr.bf16.mxu0 %v14643_v27  ;;  %v14522_v40 = vcombine.low %v282_v28, %v286_v29  ;;  %v14445_v28 = vcombine.high %v203_v19, %v207_v20  ;;  %v243_v10 = vld [vmem:[#allocation2 + $0x188] sm:$0xff] }
  0xe8   :  { %v414_v31 = vld [vmem:[#allocation2 + $0x6e0] sm:$0xff]  ;;  %6614 = vmatpush1.bf16.msra.mxu0 %v14642_v33  ;;  %v18199_v33 = vcombine.high %v179_v54, %v187_v55 }
  0xe9   :  { %v14651_v35 = vcombine.high %v410_v30, %v414_v31  ;;  %v290_v36 = vld [vmem:[#allocation2 + $0x300] sm:$0xff]  ;;  %6562 = vmatprep.subr.bf16.mxu1 %v14523_v34  ;;  %v14650_v41 = vcombine.low %v410_v30, %v414_v31  ;;  %v211_v30 = vld [vmem:[#allocation2 + $0x88] sm:$0xff]  ;;  %v14444_v34 = vcombine.low %v203_v19, %v207_v20 }
  0xea   :  { %v294_v37 = vld [vmem:[#allocation2 + $0x320] sm:$0xff]  ;;  %6563 = vmatpush1.bf16.msra.mxu1 %v14522_v40  ;;  %v215_v31 = vld [vmem:[#allocation2 + $0xa8] sm:$0xff] }
  0xeb   :  { %v418_v38 = vld [vmem:[#allocation2 + $0x700] sm:$0xff]  ;;  %v14531_v42 = vcombine.high %v290_v36, %v294_v37  ;;  %6615 = vmatprep.subr.bf16.mxu0 %v14651_v35  ;;  %v14530_v48 = vcombine.low %v290_v36, %v294_v37  ;;  %v14453_v36 = vcombine.high %v211_v30, %v215_v31  ;;  %v219_v40 = vld [vmem:[#allocation2 + $0xc8] sm:$0xff] }
  0xec   :  { %v422_v39 = vld [vmem:[#allocation2 + $0x720] sm:$0xff]  ;;  %6616 = vmatpush1.bf16.msra.mxu0 %v14650_v41  ;;  %v223_v41 = vld [vmem:[#allocation2 + $0xe8] sm:$0xff] }
  0xed   :  { %v14659_v43 = vcombine.high %v418_v38, %v422_v39  ;;  %v298_v44 = vld [vmem:[#allocation2 + $0x340] sm:$0xff]  ;;  %6564 = vmatprep.subr.bf16.mxu1 %v14531_v42  ;;  %v14658_v49 = vcombine.low %v418_v38, %v422_v39  ;;  %v18206_v42 = vld [vmem:[%s19135_s0 + $0x10] sm:$0xff]  ;;  %v255_v20 = vld [vmem:[#allocation2 + $0x1e8] sm:$0xff] }
  0xee   :  { %v302_v45 = vld [vmem:[#allocation2 + $0x360] sm:$0xff]  ;;  %6565 = vmatpush1.bf16.msra.mxu1 %v14530_v48  ;;  %v14461_v48 = vcombine.high %v219_v40, %v223_v41 }
  0xef   :  { %v426_v46 = vld [vmem:[#allocation2 + $0x740] sm:$0xff]  ;;  %v14539_v50 = vcombine.high %v298_v44, %v302_v45  ;;  %6617 = vmatprep.subr.bf16.mxu0 %v14659_v43  ;;  %v14538_v61 = vcombine.low %v298_v44, %v302_v45  ;;  %v18214_v44 = vld [vmem:[%s19135_s0 + $0x50] sm:$0xff]  ;;  %v14452_v45 = vcombine.low %v211_v30, %v215_v31 }
  0xf0   :  { %v430_v47 = vld [vmem:[#allocation2 + $0x760] sm:$0xff]  ;;  %6618 = vmatpush1.bf16.msra.mxu0 %v14658_v49 }
  0xf1   :  { %v14667_v51 = vcombine.high %v426_v46, %v430_v47  ;;  %v306_v52 = vld [vmem:[#allocation2 + $0x380] sm:$0xff]  ;;  %6566 = vmatprep.subr.bf16.mxu1 %v14539_v50  ;;  %v14666_v62 = vcombine.low %v426_v46, %v430_v47  ;;  %v18216_v46 = vcombine.low %v179_v54, %v187_v55  ;;  %v259_v55 = vld [vmem:[#allocation2 + $0x208] sm:$0xff] }
  0xf2   :  { %v310_v53 = vld [vmem:[#allocation2 + $0x3a0] sm:$0xff]  ;;  %6567 = vmatpush1.bf16.msra.mxu1 %v14538_v61 }
  0xf3   :  { %v434_v56 = vld [vmem:[#allocation2 + $0x780] sm:$0xff]  ;;  %v14547_v0 = vcombine.high %v306_v52, %v310_v53  ;;  %6619 = vmatprep.subr.bf16.mxu0 %v14667_v51  ;;  %v14546_v6 = vcombine.low %v306_v52, %v310_v53  ;;  %v227_v51 = vld [vmem:[#allocation2 + $0x108] sm:$0xff] }
  0xf4   :  { %v438_v57 = vld [vmem:[#allocation2 + $0x7a0] sm:$0xff]  ;;  %6620 = vmatpush1.bf16.msra.mxu0 %v14666_v62  ;;  %v231_v53 = vld [vmem:[#allocation2 + $0x128] sm:$0xff] }
  0xf5   :  { %v14675_v1 = vcombine.high %v434_v56, %v438_v57  ;;  %v314_v2 = vld [vmem:[#allocation2 + $0x3c0] sm:$0xff]  ;;  %6568 = vmatprep.subr.bf16.mxu1 %v14547_v0  ;;  %v14674_v7 = vcombine.low %v434_v56, %v438_v57  ;;  %v18220_v56 = vcombine.high %v18206_v42, %v18214_v44  ;;  %v14460_v57 = vcombine.low %v219_v40, %v223_v41 }
  0xf6   :  { %v318_v3 = vld [vmem:[#allocation2 + $0x3e0] sm:$0xff]  ;;  %6569 = vmatpush1.bf16.msra.mxu1 %v14546_v6  ;;  %v14469_v62 = vcombine.high %v227_v51, %v231_v53 }
  0xf7   :  { %v442_v4 = vld [vmem:[#allocation2 + $0x7c0] sm:$0xff]  ;;  %v14555_v8 = vcombine.high %v314_v2, %v318_v3  ;;  %6621 = vmatprep.subr.bf16.mxu0 %v14675_v1  ;;  %v14554_v14 = vcombine.low %v314_v2, %v318_v3  ;;  %v235_v2 = vld [vmem:[#allocation2 + $0x148] sm:$0xff] }
  0xf8   :  { %v446_v5 = vld [vmem:[#allocation2 + $0x7e0] sm:$0xff]  ;;  %6622 = vmatpush1.bf16.msra.mxu0 %v14674_v7 }
  0xf9   :  { %v14683_v9 = vcombine.high %v442_v4, %v446_v5  ;;  %v450_v12 = vld [vmem:[#allocation2 + $0x800] sm:$0xff]  ;;  %6570 = vmatprep.subr.bf16.mxu1 %v14555_v8  ;;  %v14682_v15 = vcombine.low %v442_v4, %v446_v5  ;;  %v239_v4 = vld [vmem:[#allocation2 + $0x168] sm:$0xff]  ;;  %v14468_v5 = vcombine.low %v227_v51, %v231_v53 }
  0xfa   :  { %v454_v13 = vld [vmem:[#allocation2 + $0x820] sm:$0xff]  ;;  %6571 = vmatpush1.bf16.msra.mxu1 %v14554_v14  ;;  %v14477_v7 = vcombine.high %v235_v2, %v239_v4 }
  0xfb   :  { %6623 = vmatprep.subr.bf16.mxu0 %v14683_v9  ;;  %v14691_v17 = vcombine.high %v450_v12, %v454_v13  ;;  %v458_v18 = vld [vmem:[#allocation2 + $0x840] sm:$0xff]  ;;  %v14690_v27 = vcombine.low %v450_v12, %v454_v13  ;;  %6964 = vmatprep.subr.bf16.mxu1 %v14437_v16  ;;  %v247_v12 = vld [vmem:[#allocation2 + $0x1a8] sm:$0xff]  ;;  %v14476_v13 = vcombine.low %v235_v2, %v239_v4 }
  0xfc   :  { %v462_v22 = vld [vmem:[#allocation2 + $0x860] sm:$0xff]  ;;  %6624 = vmatpush1.bf16.msra.mxu0 %v14682_v15  ;;  %v14485_v15 = vcombine.high %v243_v10, %v247_v12 }
  0xfd   :  { %v178_v23 = vld [vmem:[%s19135_s0 + $0x80] sm:$0xff]  ;;  %6646 = vmatprep.subr.bf16.mxu0 %v14691_v17  ;;  %v14699_v29 = vcombine.high %v458_v18, %v462_v22  ;;  %6573 = vmatmul.mubr.bf16.vlgmr.msra.gmra.mrb[0].mxu1 %v18178_v21  ;;  %v14698_v35 = vcombine.low %v458_v18, %v462_v22  ;;  %v251_v18 = vld [vmem:[#allocation2 + $0x1c8] sm:$0xff]  ;;  %v14484_v22 = vcombine.low %v243_v10, %v247_v12 }
  0xfe   :  { %v186_v24 = vld [vmem:[%s19135_s0 + $0xc0] sm:$0xff]  ;;  %6965 = vmatpush1.bf16.msra.mxu1 %v14436_v25 }
  0xff   :  { %v18196_v32 = vcombine.high %v178_v23, %v186_v24  ;;  %v466_v59 = vld [vmem:[#allocation2 + $0x880] sm:$0xff]  ;;  %6626 = vmatmul.mubr.bf16.vlgmr.msra.gmra.mrb[0].mxu0 %v18188_v26  ;;  %6966 = vmatprep.subr.bf16.mxu1 %v14445_v28  ;;  %v18208_v43 = vcombine.low %v178_v23, %v186_v24  ;;  %v14493_v24 = vcombine.high %v251_v18, %v255_v20  ;;  %v263_v28 = vld [vmem:[#allocation2 + $0x228] sm:$0xff] }
 0x100   :  { %v470_v60 = vld [vmem:[#allocation2 + $0x8a0] sm:$0xff]  ;;  %6647 = vmatpush1.bf16.msra.mxu0 %v14690_v27  ;;  %6635 = vmatprep.mubr.bf16.mxu0 %v18199_v33  ;;  %v14501_v31 = vcombine.high %v259_v55, %v263_v28 }
 0x101   :  { %v474_v37 = vld [vmem:[#allocation2 + $0x8c0] sm:$0xff]  ;;  %6648 = vmatprep.subr.bf16.mxu0 %v14699_v29  ;;  %v14707_v39 = vcombine.high %v466_v59, %v470_v60  ;;  %6582 = vmatprep.mubr.bf16.mxu1 %v18196_v32  ;;  %v14706_v47 = vcombine.low %v466_v59, %v470_v60  ;;  %v14492_v29 = vcombine.low %v251_v18, %v255_v20 }
 0x102   :  { %v478_v38 = vld [vmem:[#allocation2 + $0x8e0] sm:$0xff]  ;;  %6967 = vmatpush1.bf16.msra.mxu1 %v14444_v34  ;;  %v267_v34 = vld [vmem:[#allocation2 + $0x248] sm:$0xff] }
 0x103   :  { %6968 = vmatprep.subr.bf16.mxu1 %v14453_v36  ;;  %v482_v49 = vld [vmem:[#allocation2 + $0x900] sm:$0xff]  ;;  %v14715_v52 = vcombine.high %v474_v37, %v478_v38  ;;  %v14714_v61 = vcombine.low %v474_v37, %v478_v38  ;;  %v271_v36 = vld [vmem:[#allocation2 + $0x268] sm:$0xff]  ;;  %v14500_v37 = vcombine.low %v259_v55, %v263_v28 }
 0x104   :  { %6649 = vmatpush1.bf16.msra.mxu0 %v14698_v35  ;;  %v486_v50 = vld [vmem:[#allocation2 + $0x920] sm:$0xff] }
 0x105   :  { %6650 = vmatprep.subr.bf16.mxu0 %v14707_v39  ;;  %6583 = vmatmul.mubr.bf16.gmra.mrb[4].mxu1 %v18208_v43  ;;  %v490_v0 = vld [vmem:[#allocation2 + $0x940] sm:$0xff]  ;;  %v14723_v3 = vcombine.high %v482_v49, %v486_v50  ;;  %v14722_v6 = vcombine.low %v482_v49, %v486_v50  ;;  %v14509_v39 = vcombine.high %v267_v34, %v271_v36 }
 0x106   :  { %6969 = vmatpush1.bf16.msra.mxu1 %v14452_v45  ;;  %v494_v1 = vld [vmem:[#allocation2 + $0x960] sm:$0xff]  ;;  %6996 = vmatprep.mubr.bf16.mxu1 %v18158_v58  ;;  %v275_v45 = vld [vmem:[#allocation2 + $0x288] sm:$0xff]  ;;  %v14508_v49 = vcombine.low %v267_v34, %v271_v36 }
 0x107   :  { %6636 = vmatmul.mubr.bf16.gmra.mrb[4].mxu0 %v18216_v46  ;;  %6970 = vmatprep.subr.bf16.mxu1 %v14461_v48  ;;  %v498_v8 = vld [vmem:[#allocation2 + $0x980] sm:$0xff]  ;;  %v14731_v11 = vcombine.high %v490_v0, %v494_v1  ;;  %v14730_v14 = vcombine.low %v490_v0, %v494_v1  ;;  %v279_v48 = vld [vmem:[#allocation2 + $0x2a8] sm:$0xff] }
 0x108   :  { %6651 = vmatpush1.bf16.msra.mxu0 %v14706_v47  ;;  %6678 = vmatprep.mubr.bf16.mxu0 %v18220_v56  ;;  %v502_v9 = vld [vmem:[#allocation2 + $0x9a0] sm:$0xff]  ;;  %v14517_v51 = vcombine.high %v275_v45, %v279_v48  ;;  %v14516_v0 = vcombine.low %v275_v45, %v279_v48 }
 0x109   :  { %6652 = vmatprep.subr.bf16.mxu0 %v14715_v52  ;;  %v506_v16 = vld [vmem:[#allocation2 + $0x9c0] sm:$0xff]  ;;  %v14739_v19 = vcombine.high %v498_v8, %v502_v9  ;;  %v14738_v23 = vcombine.low %v498_v8, %v502_v9 }
 0x10a   :  { %6971 = vmatpush1.bf16.msra.mxu1 %v14460_v57  ;;  %v510_v17 = vld [vmem:[#allocation2 + $0x9e0] sm:$0xff]  ;;  %v283_v57 = vld [vmem:[#allocation2 + $0x2c8] sm:$0xff] }
 0x10b   :  { %6972 = vmatprep.subr.bf16.mxu1 %v14469_v62  ;;  %v514_v25 = vld [vmem:[#allocation2 + $0xa00] sm:$0xff]  ;;  %v14747_v27 = vcombine.high %v506_v16, %v510_v17  ;;  %v14746_v30 = vcombine.low %v506_v16, %v510_v17  ;;  %v287_v62 = vld [vmem:[#allocation2 + $0x2e8] sm:$0xff] }
 0x10c   :  { %6653 = vmatpush1.bf16.msra.mxu0 %v14714_v61  ;;  %v518_v54 = vld [vmem:[#allocation2 + $0xa20] sm:$0xff]  ;;  %v14525_v2 = vcombine.high %v283_v57, %v287_v62  ;;  %v14524_v8 = vcombine.low %v283_v57, %v287_v62  ;;  %v18234_v57 = vcombine.low %v18206_v42, %v18214_v44 }
 0x10d   :  { %6654 = vmatprep.subr.bf16.mxu0 %v14723_v3  ;;  %v522_v59 = vld [vmem:[#allocation2 + $0xa40] sm:$0xff]  ;;  %v14755_v35 = vcombine.high %v514_v25, %v518_v54  ;;  %v14754_v38 = vcombine.low %v514_v25, %v518_v54 }
 0x10e   :  { %6973 = vmatpush1.bf16.msra.mxu1 %v14468_v5  ;;  %v526_v60 = vld [vmem:[#allocation2 + $0xa60] sm:$0xff]  ;;  %v291_v5 = vld [vmem:[#allocation2 + $0x308] sm:$0xff] }
 0x10f   :  { %6974 = vmatprep.subr.bf16.mxu1 %v14477_v7  ;;  %v530_v40 = vld [vmem:[#allocation2 + $0xa80] sm:$0xff]  ;;  %v14763_v47 = vcombine.high %v522_v59, %v526_v60  ;;  %v14762_v50 = vcombine.low %v522_v59, %v526_v60  ;;  %v295_v7 = vld [vmem:[#allocation2 + $0x328] sm:$0xff] }
 0x110   :  { %6655 = vmatpush1.bf16.msra.mxu0 %v14722_v6  ;;  %v534_v41 = vld [vmem:[#allocation2 + $0xaa0] sm:$0xff]  ;;  %v14533_v10 = vcombine.high %v291_v5, %v295_v7  ;;  %v14532_v16 = vcombine.low %v291_v5, %v295_v7  ;;  %v343_v5 = vld [vmem:[#allocation2 + $0x4a8] sm:$0xff] }
 0x111   :  { %6656 = vmatprep.subr.bf16.mxu0 %v14731_v11  ;;  %v538_v52 = vld [vmem:[#allocation2 + $0xac0] sm:$0xff]  ;;  %v14771_v61 = vcombine.high %v530_v40, %v534_v41  ;;  %v14770_v1 = vcombine.low %v530_v40, %v534_v41 }
 0x112   :  { %6975 = vmatpush1.bf16.msra.mxu1 %v14476_v13  ;;  %v542_v53 = vld [vmem:[#allocation2 + $0xae0] sm:$0xff]  ;;  %v299_v13 = vld [vmem:[#allocation2 + $0x348] sm:$0xff] }
 0x113   :  { %6976 = vmatprep.subr.bf16.mxu1 %v14485_v15  ;;  %v546_v3 = vld [vmem:[#allocation2 + $0xb00] sm:$0xff]  ;;  %v14779_v6 = vcombine.high %v538_v52, %v542_v53  ;;  %v14778_v9 = vcombine.low %v538_v52, %v542_v53  ;;  %v303_v15 = vld [vmem:[#allocation2 + $0x368] sm:$0xff]  ;;  %v188_v53 = vld [vmem:[%s19135_s0 + $0xd0] sm:$0xff] }
 0x114   :  { %6657 = vmatpush1.bf16.msra.mxu0 %v14730_v14  ;;  %v550_v4 = vld [vmem:[#allocation2 + $0xb20] sm:$0xff]  ;;  %v14541_v18 = vcombine.high %v299_v13, %v303_v15  ;;  %v14540_v25 = vcombine.low %v299_v13, %v303_v15 }
 0x115   :  { %6658 = vmatprep.subr.bf16.mxu0 %v14739_v19  ;;  %v554_v11 = vld [vmem:[#allocation2 + $0xb40] sm:$0xff]  ;;  %v14787_v14 = vcombine.high %v546_v3, %v550_v4  ;;  %v14786_v17 = vcombine.low %v546_v3, %v550_v4  ;;  %v339_v4 = vld [vmem:[#allocation2 + $0x488] sm:$0xff] }
 0x116   :  { %6977 = vmatpush1.bf16.msra.mxu1 %v14484_v22  ;;  %v558_v12 = vld [vmem:[#allocation2 + $0xb60] sm:$0xff]  ;;  %v307_v22 = vld [vmem:[#allocation2 + $0x388] sm:$0xff]  ;;  %v14581_v7 = vcombine.high %v339_v4, %v343_v5  ;;  %v14580_v15 = vcombine.low %v339_v4, %v343_v5 }
 0x117   :  { %6978 = vmatprep.subr.bf16.mxu1 %v14493_v24  ;;  %v562_v19 = vld [vmem:[#allocation2 + $0xb80] sm:$0xff]  ;;  %v311_v24 = vld [vmem:[#allocation2 + $0x3a8] sm:$0xff]  ;;  %v14794_v54 = vcombine.low %v554_v11, %v558_v12 }
 0x118   :  { %6659 = vmatpush1.bf16.msra.mxu0 %v14738_v23  ;;  %v566_v20 = vld [vmem:[#allocation2 + $0xba0] sm:$0xff]  ;;  %v14795_v23 = vcombine.high %v554_v11, %v558_v12  ;;  %v14549_v55 = vcombine.high %v307_v22, %v311_v24  ;;  %v14548_v59 = vcombine.low %v307_v22, %v311_v24  ;;  %v351_v11 = vld [vmem:[#allocation2 + $0x4e8] sm:$0xff]  ;;  %v18243_v12 = vld [vmem:[%s19135_s0 + $0x18] sm:$0xff] }
 0x119   :  { %6660 = vmatprep.subr.bf16.mxu0 %v14747_v27  ;;  %v570_v27 = vld [vmem:[#allocation2 + $0xbc0] sm:$0xff]  ;;  %v14802_v60 = vcombine.low %v562_v19, %v566_v20  ;;  %v355_v22 = vld [vmem:[#allocation2 + $0x508] sm:$0xff] }
 0x11a   :  { %6979 = vmatpush1.bf16.msra.mxu1 %v14492_v29  ;;  %v574_v28 = vld [vmem:[#allocation2 + $0xbe0] sm:$0xff]  ;;  %v315_v29 = vld [vmem:[#allocation2 + $0x3c8] sm:$0xff] }
 0x11b   :  { %6980 = vmatprep.subr.bf16.mxu1 %v14501_v31  ;;  %v319_v31 = vld [vmem:[#allocation2 + $0x3e8] sm:$0xff]  ;;  %v14811_v36 = vcombine.high %v570_v27, %v574_v28  ;;  %v14810_v41 = vcombine.low %v570_v27, %v574_v28  ;;  %v590_v48 = vld [vmem:[#allocation2 + $0xc60] sm:$0xff] }
 0x11c   :  { %6661 = vmatpush1.bf16.msra.mxu0 %v14746_v30  ;;  %v14803_v30 = vcombine.high %v562_v19, %v566_v20  ;;  %v14557_v34 = vcombine.high %v315_v29, %v319_v31  ;;  %v14556_v40 = vcombine.low %v315_v29, %v319_v31  ;;  %v598_v3 = vld [vmem:[#allocation2 + $0xca0] sm:$0xff]  ;;  %v359_v24 = vld [vmem:[#allocation2 + $0x528] sm:$0xff] }
 0x11d   :  { %6662 = vmatprep.subr.bf16.mxu0 %v14755_v35  ;;  %v578_v35 = vld [vmem:[#allocation2 + $0xc00] sm:$0xff]  ;;  %v14597_v27 = vcombine.high %v355_v22, %v359_v24  ;;  %v391_v4 = vld [vmem:[#allocation2 + $0x628] sm:$0xff] }
 0x11e   :  { %6981 = vmatpush1.bf16.msra.mxu1 %v14500_v37  ;;  %v582_v37 = vld [vmem:[#allocation2 + $0xc20] sm:$0xff] }
 0x11f   :  { %6982 = vmatprep.subr.bf16.mxu1 %v14509_v39  ;;  %v327_v39 = vld [vmem:[#allocation2 + $0x428] sm:$0xff]  ;;  %v14819_v52 = vcombine.high %v578_v35, %v582_v37  ;;  %v14818_v62 = vcombine.low %v578_v35, %v582_v37  ;;  %v610_v19 = vld [vmem:[#allocation2 + $0xd00] sm:$0xff] }
 0x120   :  { %6663 = vmatpush1.bf16.msra.mxu0 %v14754_v38  ;;  %v323_v38 = vld [vmem:[#allocation2 + $0x408] sm:$0xff]  ;;  %v614_v20 = vld [vmem:[#allocation2 + $0xd20] sm:$0xff] }
 0x121   :  { %6664 = vmatprep.subr.bf16.mxu0 %v14763_v47  ;;  %v14565_v45 = vcombine.high %v323_v38, %v327_v39  ;;  %v586_v47 = vld [vmem:[#allocation2 + $0xc40] sm:$0xff]  ;;  %v14851_v31 = vcombine.high %v610_v19, %v614_v20 }
 0x122   :  { %6983 = vmatpush1.bf16.msra.mxu1 %v14508_v49  ;;  %v331_v49 = vld [vmem:[#allocation2 + $0x448] sm:$0xff]  ;;  %v14826_v44 = vcombine.low %v586_v47, %v590_v48  ;;  %v618_v28 = vld [vmem:[#allocation2 + $0xd40] sm:$0xff] }
 0x123   :  { %6984 = vmatprep.subr.bf16.mxu1 %v14517_v51  ;;  %v180_v51 = vld [vmem:[%s19135_s0 + $0x90] sm:$0xff]  ;;  %v622_v29 = vld [vmem:[#allocation2 + $0xd60] sm:$0xff] }
 0x124   :  { %6665 = vmatpush1.bf16.msra.mxu0 %v14762_v50  ;;  %v335_v50 = vld [vmem:[#allocation2 + $0x468] sm:$0xff]  ;;  %v630_v37 = vld [vmem:[#allocation2 + $0xda0] sm:$0xff] }
 0x125   :  { %6666 = vmatprep.subr.bf16.mxu0 %v14771_v61  ;;  %v14564_v61 = vcombine.low %v323_v38, %v327_v39  ;;  %v14572_v42 = vcombine.low %v331_v49, %v335_v50  ;;  %v371_v38 = vld [vmem:[#allocation2 + $0x588] sm:$0xff]  ;;  %v14859_v39 = vcombine.high %v618_v28, %v622_v29 }
 0x126   :  { %6985 = vmatpush1.bf16.msra.mxu1 %v14516_v0  ;;  %v14573_v0 = vcombine.high %v331_v49, %v335_v50  ;;  %v638_v49 = vld [vmem:[#allocation2 + $0xde0] sm:$0xff] }
 0x127   :  { %6986 = vmatprep.subr.bf16.mxu1 %v14525_v2  ;;  %v14827_v2 = vcombine.high %v586_v47, %v590_v48  ;;  %v634_v48 = vld [vmem:[#allocation2 + $0xdc0] sm:$0xff] }
 0x128   :  { %6667 = vmatpush1.bf16.msra.mxu0 %v14770_v1  ;;  %v594_v1 = vld [vmem:[#allocation2 + $0xc80] sm:$0xff] }
 0x129   :  { %6668 = vmatprep.subr.bf16.mxu0 %v14779_v6  ;;  %v18236_v6 = vcombine.high %v180_v51, %v188_v53  ;;  %v14835_v13 = vcombine.high %v594_v1, %v598_v3 }
 0x12a   :  { %6987 = vmatpush1.bf16.msra.mxu1 %v14524_v8  ;;  %v602_v8 = vld [vmem:[#allocation2 + $0xcc0] sm:$0xff] }
 0x12b   :  { %6988 = vmatprep.subr.bf16.mxu1 %v14533_v10  ;;  %v347_v10 = vld [vmem:[#allocation2 + $0x4c8] sm:$0xff] }
 0x12c   :  { %6669 = vmatpush1.bf16.msra.mxu0 %v14778_v9  ;;  %v606_v9 = vld [vmem:[#allocation2 + $0xce0] sm:$0xff] }
 0x12d   :  { %6670 = vmatprep.subr.bf16.mxu0 %v14787_v14  ;;  %v18249_v14 = vld [vmem:[%s19135_s0 + $0x58] sm:$0xff] }
 0x12e   :  { %6989 = vmatpush1.bf16.msra.mxu1 %v14532_v16  ;;  %v18252_v16 = vcombine.low %v180_v51, %v188_v53  ;;  %v379_v51 = vld [vmem:[#allocation2 + $0x5c8] sm:$0xff] }
 0x12f   :  { %6990 = vmatprep.subr.bf16.mxu1 %v14541_v18  ;;  %v14589_v18 = vcombine.high %v347_v10, %v351_v11 }
 0x130   :  { %6671 = vmatpush1.bf16.msra.mxu0 %v14786_v17  ;;  %v14834_v17 = vcombine.low %v594_v1, %v598_v3  ;;  %v646_v1 = vld [vmem:[#allocation2 + $0xe20] sm:$0xff]  ;;  %v14875_v3 = vcombine.high %v634_v48, %v638_v49 }
 0x131   :  { %6672 = vmatprep.subr.bf16.mxu0 %v14795_v23  ;;  %v14843_v23 = vcombine.high %v602_v8, %v606_v9 }
 0x132   :  { %6991 = vmatpush1.bf16.msra.mxu1 %v14540_v25  ;;  %v18256_v25 = vcombine.high %v18243_v12, %v18249_v14 }
 0x133   :  { %6992 = vmatprep.subr.bf16.mxu1 %v14549_v55  ;;  %v14842_v55 = vcombine.low %v602_v8, %v606_v9  ;;  %v654_v8 = vld [vmem:[#allocation2 + $0xe60] sm:$0xff]  ;;  %v395_v9 = vld [vmem:[#allocation2 + $0x648] sm:$0xff] }
 0x134   :  { %6673 = vmatpush1.bf16.msra.mxu0 %v14794_v54  ;;  %v14588_v54 = vcombine.low %v347_v10, %v351_v11  ;;  %v399_v11 = vld [vmem:[#allocation2 + $0x668] sm:$0xff] }
 0x135   :  { %6674 = vmatprep.subr.bf16.mxu0 %v14803_v30  ;;  %v363_v30 = vld [vmem:[#allocation2 + $0x548] sm:$0xff] }
 0x136   :  { %6993 = vmatpush1.bf16.msra.mxu1 %v14548_v59  ;;  %v367_v59 = vld [vmem:[#allocation2 + $0x568] sm:$0xff] }
 0x137   :  { %6994 = vmatprep.subr.bf16.mxu1 %v14557_v34  ;;  %v14850_v34 = vcombine.low %v610_v19, %v614_v20  ;;  %v14605_v35 = vcombine.high %v363_v30, %v367_v59  ;;  %v662_v19 = vld [vmem:[#allocation2 + $0xea0] sm:$0xff]  ;;  %v403_v20 = vld [vmem:[#allocation2 + $0x688] sm:$0xff] }
 0x138   :  { %6675 = vmatpush1.bf16.msra.mxu0 %v14802_v60  ;;  %v14596_v60 = vcombine.low %v355_v22, %v359_v24  ;;  %v14636_v24 = vcombine.low %v395_v9, %v399_v11 }
 0x139   :  { %6676 = vmatprep.subr.bf16.mxu0 %v14811_v36  ;;  %v626_v36 = vld [vmem:[#allocation2 + $0xd80] sm:$0xff] }
 0x13a   :  { %6995 = vmatpush1.bf16.msra.mxu1 %v14556_v40  ;;  %v375_v40 = vld [vmem:[#allocation2 + $0x5a8] sm:$0xff]  ;;  %v14867_v50 = vcombine.high %v626_v36, %v630_v37 }
 0x13b   :  { %7017 = vmatprep.subr.bf16.mxu1 %v14565_v45  ;;  %v14858_v45 = vcombine.low %v618_v28, %v622_v29  ;;  %v14613_v47 = vcombine.high %v371_v38, %v375_v40  ;;  %v14612_v53 = vcombine.low %v371_v38, %v375_v40  ;;  %v670_v28 = vld [vmem:[#allocation2 + $0xee0] sm:$0xff]  ;;  %v411_v29 = vld [vmem:[#allocation2 + $0x6c8] sm:$0xff] }
 0x13c   :  { %6677 = vmatpush1.bf16.msra.mxu0 %v14810_v41  ;;  %v14604_v41 = vcombine.low %v363_v30, %v367_v59 }
 0x13d   :  { %6699 = vmatprep.subr.bf16.mxu0 %v14819_v52  ;;  %6997 = vmatmul.mubr.bf16.vlgmr.msra.gmra.mrb[8].mxu1 %v18178_v21  ;;  %v383_v52 = vld [vmem:[#allocation2 + $0x5e8] sm:$0xff] }
 0x13e   :  { %7018 = vmatpush1.bf16.msra.mxu1 %v14564_v61  ;;  %7006 = vmatprep.mubr.bf16.mxu1 %v18196_v32  ;;  %v14866_v61 = vcombine.low %v626_v36, %v630_v37  ;;  %v14620_v5 = vcombine.low %v379_v51, %v383_v52  ;;  %v678_v36 = vld [vmem:[#allocation2 + $0xf20] sm:$0xff]  ;;  %v419_v37 = vld [vmem:[#allocation2 + $0x708] sm:$0xff] }
 0x13f   :  { %6679 = vmatmul.mubr.bf16.vlgmr.msra.gmra.mrb[0].mxu0 %v18234_v57  ;;  %7019 = vmatprep.subr.bf16.mxu1 %v14573_v0  ;;  %v642_v0 = vld [vmem:[#allocation2 + $0xe00] sm:$0xff] }
 0x140   :  { %6700 = vmatpush1.bf16.msra.mxu0 %v14818_v62  ;;  %6688 = vmatprep.mubr.bf16.mxu0 %v18236_v6  ;;  %v14621_v62 = vcombine.high %v379_v51, %v383_v52  ;;  %v14883_v10 = vcombine.high %v642_v0, %v646_v1  ;;  %v431_v51 = vld [vmem:[#allocation2 + $0x768] sm:$0xff] }
 0x141   :  { %6701 = vmatprep.subr.bf16.mxu0 %v14827_v2  ;;  %v387_v2 = vld [vmem:[#allocation2 + $0x608] sm:$0xff] }
 0x142   :  { %7020 = vmatpush1.bf16.msra.mxu1 %v14572_v42  ;;  %v14874_v42 = vcombine.low %v634_v48, %v638_v49  ;;  %v686_v48 = vld [vmem:[#allocation2 + $0xf60] sm:$0xff]  ;;  %v427_v49 = vld [vmem:[#allocation2 + $0x748] sm:$0xff] }
 0x143   :  { %7021 = vmatprep.subr.bf16.mxu1 %v14581_v7  ;;  %v650_v7 = vld [vmem:[#allocation2 + $0xe40] sm:$0xff] }
 0x144   :  { %6702 = vmatpush1.bf16.msra.mxu0 %v14826_v44  ;;  %v14629_v44 = vcombine.high %v387_v2, %v391_v4  ;;  %v14891_v22 = vcombine.high %v650_v7, %v654_v8 }
 0x145   :  { %6703 = vmatprep.subr.bf16.mxu0 %v14835_v13  ;;  %7007 = vmatmul.mubr.bf16.gmra.mrb[12].mxu1 %v18208_v43  ;;  %v14628_v13 = vcombine.low %v387_v2, %v391_v4  ;;  %v14668_v4 = vcombine.low %v427_v49, %v431_v51 }
 0x146   :  { %7022 = vmatpush1.bf16.msra.mxu1 %v14580_v15  ;;  %7049 = vmatprep.mubr.bf16.mxu1 %v18172_v63  ;;  %v14882_v15 = vcombine.low %v642_v0, %v646_v1  ;;  %v694_v0 = vld [vmem:[#allocation2 + $0xfa0] sm:$0xff]  ;;  %v435_v1 = vld [vmem:[#allocation2 + $0x788] sm:$0xff] }
 0x147   :  { %6689 = vmatmul.mubr.bf16.gmra.mrb[4].mxu0 %v18252_v16  ;;  %7023 = vmatprep.subr.bf16.mxu1 %v14589_v18  ;;  %v658_v18 = vld [vmem:[#allocation2 + $0xe80] sm:$0xff] }
 0x148   :  { %6704 = vmatpush1.bf16.msra.mxu0 %v14834_v17  ;;  %6731 = vmatprep.mubr.bf16.mxu0 %v18256_v25  ;;  %v14637_v17 = vcombine.high %v395_v9, %v399_v11  ;;  %v14899_v30 = vcombine.high %v658_v18, %v662_v19 }
 0x149   :  { %6705 = vmatprep.subr.bf16.mxu0 %v14843_v23  ;;  %v407_v23 = vld [vmem:[#allocation2 + $0x6a8] sm:$0xff] }
 0x14a   :  { %7024 = vmatpush1.bf16.msra.mxu1 %v14588_v54  ;;  %v14890_v54 = vcombine.low %v650_v7, %v654_v8  ;;  %v14644_v59 = vcombine.low %v403_v20, %v407_v23  ;;  %v702_v7 = vld [vmem:[#allocation2 + $0xfe0] sm:$0xff]  ;;  %v443_v8 = vld [vmem:[#allocation2 + $0x7c8] sm:$0xff] }
 0x14b   :  { %7025 = vmatprep.subr.bf16.mxu1 %v14597_v27  ;;  %v666_v27 = vld [vmem:[#allocation2 + $0xec0] sm:$0xff] }
 0x14c   :  { %6706 = vmatpush1.bf16.msra.mxu0 %v14842_v55  ;;  %v14645_v55 = vcombine.high %v403_v20, %v407_v23  ;;  %v14907_v38 = vcombine.high %v666_v27, %v670_v28  ;;  %v451_v20 = vld [vmem:[#allocation2 + $0x808] sm:$0xff] }
 0x14d   :  { %6707 = vmatprep.subr.bf16.mxu0 %v14851_v31  ;;  %v415_v31 = vld [vmem:[#allocation2 + $0x6e8] sm:$0xff] }
 0x14e   :  { %7026 = vmatpush1.bf16.msra.mxu1 %v14596_v60  ;;  %v14898_v60 = vcombine.low %v658_v18, %v662_v19  ;;  %v14652_v40 = vcombine.low %v411_v29, %v415_v31  ;;  %v710_v19 = vld [vmem:[#allocation2 + $0x1020] sm:$0xff] }
 0x14f   :  { %7027 = vmatprep.subr.bf16.mxu1 %v14605_v35  ;;  %v674_v35 = vld [vmem:[#allocation2 + $0xf00] sm:$0xff] }
 0x150   :  { %6708 = vmatpush1.bf16.msra.mxu0 %v14850_v34  ;;  %v14653_v34 = vcombine.high %v411_v29, %v415_v31  ;;  %v463_v29 = vld [vmem:[#allocation2 + $0x868] sm:$0xff] }
 0x151   :  { %6709 = vmatprep.subr.bf16.mxu0 %v14859_v39  ;;  %v423_v39 = vld [vmem:[#allocation2 + $0x728] sm:$0xff] }
 0x152   :  { %7028 = vmatpush1.bf16.msra.mxu1 %v14604_v41  ;;  %v14906_v41 = vcombine.low %v666_v27, %v670_v28  ;;  %v14660_v52 = vcombine.low %v419_v37, %v423_v39  ;;  %v718_v27 = vld [vmem:[#allocation2 + $0x1060] sm:$0xff]  ;;  %v459_v28 = vld [vmem:[#allocation2 + $0x848] sm:$0xff] }
 0x153   :  { %7029 = vmatprep.subr.bf16.mxu1 %v14613_v47  ;;  %v682_v47 = vld [vmem:[#allocation2 + $0xf40] sm:$0xff] }
 0x154   :  { %6710 = vmatpush1.bf16.msra.mxu0 %v14858_v45  ;;  %v14661_v45 = vcombine.high %v419_v37, %v423_v39  ;;  %v14923_v2 = vcombine.high %v682_v47, %v686_v48  ;;  %v722_v37 = vld [vmem:[#allocation2 + $0x1080] sm:$0xff] }
 0x155   :  { %6711 = vmatprep.subr.bf16.mxu0 %v14867_v50  ;;  %v14915_v50 = vcombine.high %v674_v35, %v678_v36  ;;  %v726_v39 = vld [vmem:[#allocation2 + $0x10a0] sm:$0xff] }
 0x156   :  { %7030 = vmatpush1.bf16.msra.mxu1 %v14612_v53  ;;  %v14914_v53 = vcombine.low %v674_v35, %v678_v36  ;;  %v14701_v36 = vcombine.high %v459_v28, %v463_v29 }
 0x157   :  { %7031 = vmatprep.subr.bf16.mxu1 %v14621_v62  ;;  %v690_v62 = vld [vmem:[#allocation2 + $0xf80] sm:$0xff] }
 0x158   :  { %6712 = vmatpush1.bf16.msra.mxu0 %v14866_v61  ;;  %v14669_v61 = vcombine.high %v427_v49, %v431_v51  ;;  %v14931_v9 = vcombine.high %v690_v62, %v694_v0  ;;  %v734_v49 = vld [vmem:[#allocation2 + $0x10e0] sm:$0xff]  ;;  %v479_v51 = vld [vmem:[#allocation2 + $0x8e8] sm:$0xff] }
 0x159   :  { %6713 = vmatprep.subr.bf16.mxu0 %v14875_v3  ;;  %v439_v3 = vld [vmem:[#allocation2 + $0x7a8] sm:$0xff] }
 0x15a   :  { %7032 = vmatpush1.bf16.msra.mxu1 %v14620_v5  ;;  %v14922_v5 = vcombine.low %v682_v47, %v686_v48  ;;  %v14676_v11 = vcombine.low %v435_v1, %v439_v3  ;;  %v730_v48 = vld [vmem:[#allocation2 + $0x10c0] sm:$0xff] }
 0x15b   :  { %7033 = vmatprep.subr.bf16.mxu1 %v14629_v44  ;;  %v698_v44 = vld [vmem:[#allocation2 + $0xfc0] sm:$0xff] }
 0x15c   :  { %6714 = vmatpush1.bf16.msra.mxu0 %v14874_v42  ;;  %v14677_v42 = vcombine.high %v435_v1, %v439_v3  ;;  %v14939_v18 = vcombine.high %v698_v44, %v702_v7  ;;  %v14962_v1 = vcombine.low %v722_v37, %v726_v39  ;;  %v738_v3 = vld [vmem:[#allocation2 + $0x1100] sm:$0xff] }
 0x15d   :  { %6715 = vmatprep.subr.bf16.mxu0 %v14883_v10  ;;  %v447_v10 = vld [vmem:[#allocation2 + $0x7e8] sm:$0xff] }
 0x15e   :  { %7034 = vmatpush1.bf16.msra.mxu1 %v14628_v13  ;;  %v14930_v13 = vcombine.low %v690_v62, %v694_v0  ;;  %v14684_v23 = vcombine.low %v443_v8, %v447_v10 }
 0x15f   :  { %7035 = vmatprep.subr.bf16.mxu1 %v14637_v17  ;;  %v706_v17 = vld [vmem:[#allocation2 + $0x1000] sm:$0xff] }
 0x160   :  { %6716 = vmatpush1.bf16.msra.mxu0 %v14882_v15  ;;  %v14685_v15 = vcombine.high %v443_v8, %v447_v10  ;;  %v14947_v31 = vcombine.high %v706_v17, %v710_v19  ;;  %v14946_v35 = vcombine.low %v706_v17, %v710_v19 }
 0x161   :  { %6717 = vmatprep.subr.bf16.mxu0 %v14891_v22  ;;  %v455_v22 = vld [vmem:[#allocation2 + $0x828] sm:$0xff] }
 0x162   :  { %7036 = vmatpush1.bf16.msra.mxu1 %v14636_v24  ;;  %v14938_v24 = vcombine.low %v698_v44, %v702_v7  ;;  %v487_v44 = vld [vmem:[#allocation2 + $0x928] sm:$0xff] }
 0x163   :  { %7037 = vmatprep.subr.bf16.mxu1 %v14645_v55  ;;  %v714_v55 = vld [vmem:[#allocation2 + $0x1040] sm:$0xff] }
 0x164   :  { %6718 = vmatpush1.bf16.msra.mxu0 %v14890_v54  ;;  %v14693_v54 = vcombine.high %v451_v20, %v455_v22 }
 0x165   :  { %6719 = vmatprep.subr.bf16.mxu0 %v14899_v30  ;;  %v181_v30 = vld [vmem:[%s19135_s0 + $0x98] sm:$0xff] }
 0x166   :  { %7038 = vmatpush1.bf16.msra.mxu1 %v14644_v59  ;;  %v189_v59 = vld [vmem:[%s19135_s0 + $0xd8] sm:$0xff] }
 0x167   :  { %7039 = vmatprep.subr.bf16.mxu1 %v14653_v34  ;;  %v14692_v34 = vcombine.low %v451_v20, %v455_v22  ;;  %v18288_v0 = vcombine.low %v181_v30, %v189_v59 }
 0x168   :  { %6720 = vmatpush1.bf16.msra.mxu0 %v14898_v60  ;;  %v18270_v60 = vcombine.low %v18243_v12, %v18249_v14  ;;  %v14700_v12 = vcombine.low %v459_v28, %v463_v29  ;;  %v14954_v14 = vcombine.low %v714_v55, %v718_v27 }
 0x169   :  { %6721 = vmatprep.subr.bf16.mxu0 %v14907_v38  ;;  %v14955_v38 = vcombine.high %v714_v55, %v718_v27  ;;  %v503_v27 = vld [vmem:[#allocation2 + $0x9a8] sm:$0xff] }
 0x16a   :  { %7040 = vmatpush1.bf16.msra.mxu1 %v14652_v40  ;;  %v467_v40 = vld [vmem:[#allocation2 + $0x888] sm:$0xff] }
 0x16b   :  { %7041 = vmatprep.subr.bf16.mxu1 %v14661_v45  ;;  %v18272_v45 = vcombine.high %v181_v30, %v189_v59  ;;  %v766_v59 = vld [vmem:[#allocation2 + $0x11e0] sm:$0xff] }
 0x16c   :  { %6722 = vmatpush1.bf16.msra.mxu0 %v14906_v41  ;;  %v471_v41 = vld [vmem:[#allocation2 + $0x8a8] sm:$0xff] }
 0x16d   :  { %6723 = vmatprep.subr.bf16.mxu0 %v14915_v50  ;;  %v14709_v47 = vcombine.high %v467_v40, %v471_v41  ;;  %v475_v50 = vld [vmem:[#allocation2 + $0x8c8] sm:$0xff]  ;;  %v14708_v62 = vcombine.low %v467_v40, %v471_v41  ;;  %v770_v40 = vld [vmem:[#allocation2 + $0x1200] sm:$0xff] }
 0x16e   :  { %7042 = vmatpush1.bf16.msra.mxu1 %v14660_v52  ;;  %v18279_v52 = vld [vmem:[%s19135_s0 + $0x20] sm:$0xff]  ;;  %v14716_v8 = vcombine.low %v475_v50, %v479_v51 }
 0x16f   :  { %7043 = vmatprep.subr.bf16.mxu1 %v14669_v61  ;;  %v18285_v61 = vld [vmem:[%s19135_s0 + $0x60] sm:$0xff] }
 0x170   :  { %6724 = vmatpush1.bf16.msra.mxu0 %v14914_v53  ;;  %v14963_v53 = vcombine.high %v722_v37, %v726_v39  ;;  %v18292_v7 = vcombine.high %v18279_v52, %v18285_v61  ;;  %v774_v41 = vld [vmem:[#allocation2 + $0x1220] sm:$0xff] }
 0x171   :  { %6725 = vmatprep.subr.bf16.mxu0 %v14923_v2  ;;  %v14717_v2 = vcombine.high %v475_v50, %v479_v51  ;;  %v778_v51 = vld [vmem:[#allocation2 + $0x1240] sm:$0xff] }
 0x172   :  { %7044 = vmatpush1.bf16.msra.mxu1 %v14668_v4  ;;  %v742_v4 = vld [vmem:[#allocation2 + $0x1120] sm:$0xff] }
 0x173   :  { %7045 = vmatprep.subr.bf16.mxu1 %v14677_v42  ;;  %v14971_v42 = vcombine.high %v730_v48, %v734_v49  ;;  %v14979_v17 = vcombine.high %v738_v3, %v742_v4  ;;  %v14978_v20 = vcombine.low %v738_v3, %v742_v4  ;;  %v15010_v4 = vcombine.low %v770_v40, %v774_v41 }
 0x174   :  { %6726 = vmatpush1.bf16.msra.mxu0 %v14922_v5  ;;  %v483_v5 = vld [vmem:[#allocation2 + $0x908] sm:$0xff] }
 0x175   :  { %6727 = vmatprep.subr.bf16.mxu0 %v14931_v9  ;;  %v14970_v9 = vcombine.low %v730_v48, %v734_v49  ;;  %v14725_v10 = vcombine.high %v483_v5, %v487_v44  ;;  %v14724_v19 = vcombine.low %v483_v5, %v487_v44  ;;  %v790_v44 = vld [vmem:[#allocation2 + $0x12a0] sm:$0xff] }
 0x176   :  { %7046 = vmatpush1.bf16.msra.mxu1 %v14676_v11  ;;  %v746_v11 = vld [vmem:[#allocation2 + $0x1140] sm:$0xff] }
 0x177   :  { %7047 = vmatprep.subr.bf16.mxu1 %v14685_v15  ;;  %v491_v15 = vld [vmem:[#allocation2 + $0x948] sm:$0xff] }
 0x178   :  { %6728 = vmatpush1.bf16.msra.mxu0 %v14930_v13  ;;  %v750_v13 = vld [vmem:[#allocation2 + $0x1160] sm:$0xff] }
 0x179   :  { %6729 = vmatprep.subr.bf16.mxu0 %v14939_v18  ;;  %v495_v18 = vld [vmem:[#allocation2 + $0x968] sm:$0xff]  ;;  %v14987_v55 = vcombine.high %v746_v11, %v750_v13  ;;  %v14986_v29 = vcombine.low %v746_v11, %v750_v13 }
 0x17a   :  { %7048 = vmatpush1.bf16.msra.mxu1 %v14684_v23  ;;  %v14733_v22 = vcombine.high %v491_v15, %v495_v18  ;;  %v754_v23 = vld [vmem:[#allocation2 + $0x1180] sm:$0xff]  ;;  %v14732_v28 = vcombine.low %v491_v15, %v495_v18 }
 0x17b   :  { %7070 = vmatprep.subr.bf16.mxu1 %v14693_v54  ;;  %v499_v54 = vld [vmem:[#allocation2 + $0x988] sm:$0xff]  ;;  %v798_v18 = vld [vmem:[#allocation2 + $0x12e0] sm:$0xff] }
 0x17c   :  { %6730 = vmatpush1.bf16.msra.mxu0 %v14938_v24  ;;  %v758_v24 = vld [vmem:[#allocation2 + $0x11a0] sm:$0xff]  ;;  %v14741_v30 = vcombine.high %v499_v54, %v503_v27  ;;  %v14740_v37 = vcombine.low %v499_v54, %v503_v27 }
 0x17d   :  { %6752 = vmatprep.subr.bf16.mxu0 %v14947_v31  ;;  %7050 = vmatmul.mubr.bf16.vlgmr.msra.gmra.mrb[8].mxu1 %v18188_v26  ;;  %v762_v31 = vld [vmem:[#allocation2 + $0x11c0] sm:$0xff] }
 0x17e   :  { %7071 = vmatpush1.bf16.msra.mxu1 %v14692_v34  ;;  %7059 = vmatprep.mubr.bf16.mxu1 %v18199_v33  ;;  %v507_v34 = vld [vmem:[#allocation2 + $0x9c8] sm:$0xff]  ;;  %v15002_v49 = vcombine.low %v762_v31, %v766_v59  ;;  %v806_v27 = vld [vmem:[#allocation2 + $0x1320] sm:$0xff] }
 0x17f   :  { %6732 = vmatmul.mubr.bf16.vlgmr.msra.gmra.mrb[0].mxu0 %v18270_v60  ;;  %7072 = vmatprep.subr.bf16.mxu1 %v14701_v36  ;;  %v511_v36 = vld [vmem:[#allocation2 + $0x9e8] sm:$0xff] }
 0x180   :  { %6753 = vmatpush1.bf16.msra.mxu0 %v14946_v35  ;;  %6741 = vmatprep.mubr.bf16.mxu0 %v18272_v45  ;;  %v14995_v35 = vcombine.high %v754_v23, %v758_v24  ;;  %v14749_v39 = vcombine.high %v507_v34, %v511_v36  ;;  %v14748_v48 = vcombine.low %v507_v34, %v511_v36  ;;  %v814_v36 = vld [vmem:[#allocation2 + $0x1360] sm:$0xff] }
 0x181   :  { %6754 = vmatprep.subr.bf16.mxu0 %v14955_v38  ;;  %v14994_v38 = vcombine.low %v754_v23, %v758_v24 }
 0x182   :  { %7073 = vmatpush1.bf16.msra.mxu1 %v14700_v12  ;;  %v515_v12 = vld [vmem:[#allocation2 + $0xa08] sm:$0xff] }
 0x183   :  { %7074 = vmatprep.subr.bf16.mxu1 %v14709_v47  ;;  %v519_v47 = vld [vmem:[#allocation2 + $0xa28] sm:$0xff] }
 0x184   :  { %6755 = vmatpush1.bf16.msra.mxu0 %v14954_v14  ;;  %v15003_v14 = vcombine.high %v762_v31, %v766_v59  ;;  %v14757_v50 = vcombine.high %v515_v12, %v519_v47  ;;  %v14756_v3 = vcombine.low %v515_v12, %v519_v47  ;;  %v822_v47 = vld [vmem:[#allocation2 + $0x13a0] sm:$0xff] }
 0x185   :  { %6756 = vmatprep.subr.bf16.mxu0 %v14963_v53  ;;  %7060 = vmatmul.mubr.bf16.gmra.mrb[12].mxu1 %v18216_v46  ;;  %v782_v53 = vld [vmem:[#allocation2 + $0x1260] sm:$0xff] }
 0x186   :  { %7075 = vmatpush1.bf16.msra.mxu1 %v14708_v62  ;;  %7102 = vmatprep.mubr.bf16.mxu1 %v18220_v56  ;;  %v523_v62 = vld [vmem:[#allocation2 + $0xa48] sm:$0xff]  ;;  %v15018_v13 = vcombine.low %v778_v51, %v782_v53 }
 0x187   :  { %6742 = vmatmul.mubr.bf16.gmra.mrb[4].mxu0 %v18288_v0  ;;  %7076 = vmatprep.subr.bf16.mxu1 %v14717_v2  ;;  %v527_v2 = vld [vmem:[#allocation2 + $0xa68] sm:$0xff] }
 0x188   :  { %6757 = vmatpush1.bf16.msra.mxu0 %v14962_v1  ;;  %6784 = vmatprep.mubr.bf16.mxu0 %v18292_v7  ;;  %v15011_v1 = vcombine.high %v770_v40, %v774_v41  ;;  %v14765_v5 = vcombine.high %v523_v62, %v527_v2  ;;  %v14764_v11 = vcombine.low %v523_v62, %v527_v2  ;;  %v830_v2 = vld [vmem:[#allocation2 + $0x13e0] sm:$0xff] }
 0x189   :  { %6758 = vmatprep.subr.bf16.mxu0 %v14971_v42  ;;  %v786_v42 = vld [vmem:[#allocation2 + $0x1280] sm:$0xff] }
 0x18a   :  { %7077 = vmatpush1.bf16.msra.mxu1 %v14716_v8  ;;  %v531_v8 = vld [vmem:[#allocation2 + $0xa88] sm:$0xff]  ;;  %v15026_v24 = vcombine.low %v786_v42, %v790_v44 }
 0x18b   :  { %7078 = vmatprep.subr.bf16.mxu1 %v14725_v10  ;;  %v535_v10 = vld [vmem:[#allocation2 + $0xaa8] sm:$0xff] }
 0x18c   :  { %6759 = vmatpush1.bf16.msra.mxu0 %v14970_v9  ;;  %v15019_v9 = vcombine.high %v778_v51, %v782_v53  ;;  %v14773_v15 = vcombine.high %v531_v8, %v535_v10  ;;  %v14772_v23 = vcombine.low %v531_v8, %v535_v10 }
 0x18d   :  { %6760 = vmatprep.subr.bf16.mxu0 %v14979_v17  ;;  %v794_v17 = vld [vmem:[#allocation2 + $0x12c0] sm:$0xff] }
 0x18e   :  { %7079 = vmatpush1.bf16.msra.mxu1 %v14724_v19  ;;  %v539_v19 = vld [vmem:[#allocation2 + $0xac8] sm:$0xff]  ;;  %v15034_v59 = vcombine.low %v794_v17, %v798_v18 }
 0x18f   :  { %7080 = vmatprep.subr.bf16.mxu1 %v14733_v22  ;;  %v543_v22 = vld [vmem:[#allocation2 + $0xae8] sm:$0xff] }
 0x190   :  { %6761 = vmatpush1.bf16.msra.mxu0 %v14978_v20  ;;  %v15027_v20 = vcombine.high %v786_v42, %v790_v44  ;;  %v14781_v54 = vcombine.high %v539_v19, %v543_v22  ;;  %v14780_v31 = vcombine.low %v539_v19, %v543_v22  ;;  %v846_v22 = vld [vmem:[#allocation2 + $0x1460] sm:$0xff] }
 0x191   :  { %6762 = vmatprep.subr.bf16.mxu0 %v14987_v55  ;;  %v802_v55 = vld [vmem:[#allocation2 + $0x1300] sm:$0xff] }
 0x192   :  { %7081 = vmatpush1.bf16.msra.mxu1 %v14732_v28  ;;  %v547_v28 = vld [vmem:[#allocation2 + $0xb08] sm:$0xff]  ;;  %v15042_v41 = vcombine.low %v802_v55, %v806_v27 }
 0x193   :  { %7082 = vmatprep.subr.bf16.mxu1 %v14741_v30  ;;  %v551_v30 = vld [vmem:[#allocation2 + $0xb28] sm:$0xff] }
 0x194   :  { %6763 = vmatpush1.bf16.msra.mxu0 %v14986_v29  ;;  %v15035_v29 = vcombine.high %v794_v17, %v798_v18  ;;  %v14789_v34 = vcombine.high %v547_v28, %v551_v30  ;;  %v14788_v40 = vcombine.low %v547_v28, %v551_v30  ;;  %v18306_v28 = vcombine.low %v18279_v52, %v18285_v61 }
 0x195   :  { %6764 = vmatprep.subr.bf16.mxu0 %v14995_v35  ;;  %v810_v35 = vld [vmem:[#allocation2 + $0x1340] sm:$0xff] }
 0x196   :  { %7083 = vmatpush1.bf16.msra.mxu1 %v14740_v37  ;;  %v555_v37 = vld [vmem:[#allocation2 + $0xb48] sm:$0xff]  ;;  %v15050_v53 = vcombine.low %v810_v35, %v814_v36 }
 0x197   :  { %7084 = vmatprep.subr.bf16.mxu1 %v14749_v39  ;;  %v559_v39 = vld [vmem:[#allocation2 + $0xb68] sm:$0xff] }
 0x198   :  { %6765 = vmatpush1.bf16.msra.mxu0 %v14994_v38  ;;  %v15043_v38 = vcombine.high %v802_v55, %v806_v27  ;;  %v14797_v12 = vcombine.high %v555_v37, %v559_v39  ;;  %v14796_v51 = vcombine.low %v555_v37, %v559_v39  ;;  %v190_v27 = vld [vmem:[%s19135_s0 + $0xe0] sm:$0xff]  ;;  %v599_v37 = vld [vmem:[#allocation2 + $0xca8] sm:$0xff] }
 0x199   :  { %6766 = vmatprep.subr.bf16.mxu0 %v15003_v14  ;;  %v818_v14 = vld [vmem:[#allocation2 + $0x1380] sm:$0xff] }
 0x19a   :  { %7085 = vmatpush1.bf16.msra.mxu1 %v14748_v48  ;;  %v563_v48 = vld [vmem:[#allocation2 + $0xb88] sm:$0xff]  ;;  %v15058_v44 = vcombine.low %v818_v14, %v822_v47 }
 0x19b   :  { %7086 = vmatprep.subr.bf16.mxu1 %v14757_v50  ;;  %v567_v50 = vld [vmem:[#allocation2 + $0xba8] sm:$0xff] }
 0x19c   :  { %6767 = vmatpush1.bf16.msra.mxu0 %v15002_v49  ;;  %v15051_v49 = vcombine.high %v810_v35, %v814_v36  ;;  %v14805_v62 = vcombine.high %v563_v48, %v567_v50  ;;  %v14804_v42 = vcombine.low %v563_v48, %v567_v50  ;;  %v854_v35 = vld [vmem:[#allocation2 + $0x14a0] sm:$0xff]  ;;  %v595_v36 = vld [vmem:[#allocation2 + $0xc88] sm:$0xff] }
 0x19d   :  { %6768 = vmatprep.subr.bf16.mxu0 %v15011_v1  ;;  %v826_v1 = vld [vmem:[#allocation2 + $0x13c0] sm:$0xff]  ;;  %v14837_v39 = vcombine.high %v595_v36, %v599_v37  ;;  %v14836_v50 = vcombine.low %v595_v36, %v599_v37  ;;  %v639_v37 = vld [vmem:[#allocation2 + $0xde8] sm:$0xff] }
 0x19e   :  { %7087 = vmatpush1.bf16.msra.mxu1 %v14756_v3  ;;  %v571_v3 = vld [vmem:[#allocation2 + $0xbc8] sm:$0xff]  ;;  %v15067_v10 = vcombine.high %v826_v1, %v830_v2  ;;  %v15066_v18 = vcombine.low %v826_v1, %v830_v2  ;;  %v866_v1 = vld [vmem:[#allocation2 + $0x1500] sm:$0xff] }
 0x19f   :  { %7088 = vmatprep.subr.bf16.mxu1 %v14765_v5  ;;  %v575_v5 = vld [vmem:[#allocation2 + $0xbe8] sm:$0xff]  ;;  %v870_v2 = vld [vmem:[#allocation2 + $0x1520] sm:$0xff] }
 0x1a0   :  { %6769 = vmatpush1.bf16.msra.mxu0 %v15010_v4  ;;  %v15059_v4 = vcombine.high %v818_v14, %v822_v47  ;;  %v14813_v8 = vcombine.high %v571_v3, %v575_v5  ;;  %v14812_v17 = vcombine.low %v571_v3, %v575_v5  ;;  %v607_v14 = vld [vmem:[#allocation2 + $0xce8] sm:$0xff] }
 0x1a1   :  { %6770 = vmatprep.subr.bf16.mxu0 %v15019_v9  ;;  %v834_v9 = vld [vmem:[#allocation2 + $0x1400] sm:$0xff]  ;;  %v18315_v47 = vld [vmem:[%s19135_s0 + $0x28] sm:$0xff] }
 0x1a2   :  { %7089 = vmatpush1.bf16.msra.mxu1 %v14764_v11  ;;  %v838_v11 = vld [vmem:[#allocation2 + $0x1420] sm:$0xff]  ;;  %v611_v3 = vld [vmem:[#allocation2 + $0xd08] sm:$0xff] }
 0x1a3   :  { %7090 = vmatprep.subr.bf16.mxu1 %v14773_v15  ;;  %v583_v15 = vld [vmem:[#allocation2 + $0xc28] sm:$0xff]  ;;  %v15075_v55 = vcombine.high %v834_v9, %v838_v11  ;;  %v15074_v30 = vcombine.low %v834_v9, %v838_v11  ;;  %v878_v11 = vld [vmem:[#allocation2 + $0x1560] sm:$0xff] }
 0x1a4   :  { %6771 = vmatpush1.bf16.msra.mxu0 %v15018_v13  ;;  %v579_v13 = vld [vmem:[#allocation2 + $0xc08] sm:$0xff] }
 0x1a5   :  { %6772 = vmatprep.subr.bf16.mxu0 %v15027_v20  ;;  %v14821_v19 = vcombine.high %v579_v13, %v583_v15  ;;  %v842_v20 = vld [vmem:[#allocation2 + $0x1440] sm:$0xff]  ;;  %v615_v5 = vld [vmem:[#allocation2 + $0xd28] sm:$0xff] }
 0x1a6   :  { %7091 = vmatpush1.bf16.msra.mxu1 %v14772_v23  ;;  %v587_v23 = vld [vmem:[#allocation2 + $0xc48] sm:$0xff]  ;;  %v15082_v61 = vcombine.low %v842_v20, %v846_v22  ;;  %v14853_v9 = vcombine.high %v611_v3, %v615_v5 }
 0x1a7   :  { %7092 = vmatprep.subr.bf16.mxu1 %v14781_v54  ;;  %v182_v54 = vld [vmem:[%s19135_s0 + $0xa0] sm:$0xff] }
 0x1a8   :  { %6773 = vmatpush1.bf16.msra.mxu0 %v15026_v24  ;;  %v591_v24 = vld [vmem:[#allocation2 + $0xc68] sm:$0xff] }
 0x1a9   :  { %6774 = vmatprep.subr.bf16.mxu0 %v15035_v29  ;;  %v14820_v29 = vcombine.low %v579_v13, %v583_v15  ;;  %v14828_v52 = vcombine.low %v587_v23, %v591_v24  ;;  %v619_v13 = vld [vmem:[#allocation2 + $0xd48] sm:$0xff]  ;;  %v15107_v15 = vcombine.high %v866_v1, %v870_v2 }
 0x1aa   :  { %7093 = vmatpush1.bf16.msra.mxu1 %v14780_v31  ;;  %v14829_v31 = vcombine.high %v587_v23, %v591_v24  ;;  %v886_v23 = vld [vmem:[#allocation2 + $0x15a0] sm:$0xff]  ;;  %v627_v24 = vld [vmem:[#allocation2 + $0xd88] sm:$0xff] }
 0x1ab   :  { %7094 = vmatprep.subr.bf16.mxu1 %v14789_v34  ;;  %v15083_v34 = vcombine.high %v842_v20, %v846_v22  ;;  %v882_v22 = vld [vmem:[#allocation2 + $0x1580] sm:$0xff] }
 0x1ac   :  { %6775 = vmatpush1.bf16.msra.mxu0 %v15034_v59  ;;  %v850_v59 = vld [vmem:[#allocation2 + $0x1480] sm:$0xff]  ;;  %v15123_v36 = vcombine.high %v882_v22, %v886_v23 }
 0x1ad   :  { %6776 = vmatprep.subr.bf16.mxu0 %v15043_v38  ;;  %v18308_v38 = vcombine.high %v182_v54, %v190_v27  ;;  %v15091_v48 = vcombine.high %v850_v59, %v854_v35 }
 0x1ae   :  { %7095 = vmatpush1.bf16.msra.mxu1 %v14788_v40  ;;  %v858_v40 = vld [vmem:[#allocation2 + $0x14c0] sm:$0xff] }
 0x1af   :  { %7096 = vmatprep.subr.bf16.mxu1 %v14797_v12  ;;  %v603_v12 = vld [vmem:[#allocation2 + $0xcc8] sm:$0xff] }
 0x1b0   :  { %6777 = vmatpush1.bf16.msra.mxu0 %v15042_v41  ;;  %v862_v41 = vld [vmem:[#allocation2 + $0x14e0] sm:$0xff] }
 0x1b1   :  { %6778 = vmatprep.subr.bf16.mxu0 %v15051_v49  ;;  %v18321_v49 = vld [vmem:[%s19135_s0 + $0x68] sm:$0xff] }
 0x1b2   :  { %7097 = vmatpush1.bf16.msra.mxu1 %v14796_v51  ;;  %v18324_v51 = vcombine.low %v182_v54, %v190_v27 }
 0x1b3   :  { %7098 = vmatprep.subr.bf16.mxu1 %v14805_v62  ;;  %v14845_v62 = vcombine.high %v603_v12, %v607_v14 }
 0x1b4   :  { %6779 = vmatpush1.bf16.msra.mxu0 %v15050_v53  ;;  %v15090_v53 = vcombine.low %v850_v59, %v854_v35  ;;  %v894_v59 = vld [vmem:[#allocation2 + $0x15e0] sm:$0xff] }
 0x1b5   :  { %6780 = vmatprep.subr.bf16.mxu0 %v15059_v4  ;;  %v15099_v4 = vcombine.high %v858_v40, %v862_v41 }
 0x1b6   :  { %7099 = vmatpush1.bf16.msra.mxu1 %v14804_v42  ;;  %v18328_v42 = vcombine.high %v18315_v47, %v18321_v49 }
 0x1b7   :  { %7100 = vmatprep.subr.bf16.mxu1 %v14813_v8  ;;  %v15098_v8 = vcombine.low %v858_v40, %v862_v41  ;;  %v15122_v41 = vcombine.low %v882_v22, %v886_v23  ;;  %v659_v22 = vld [vmem:[#allocation2 + $0xe88] sm:$0xff] }
 0x1b8   :  { %6781 = vmatpush1.bf16.msra.mxu0 %v15058_v44  ;;  %v14844_v44 = vcombine.low %v603_v12, %v607_v14  ;;  %v898_v14 = vld [vmem:[#allocation2 + $0x1600] sm:$0xff] }
 0x1b9   :  { %6782 = vmatprep.subr.bf16.mxu0 %v15067_v10  ;;  %v874_v10 = vld [vmem:[#allocation2 + $0x1540] sm:$0xff] }
 0x1ba   :  { %7101 = vmatpush1.bf16.msra.mxu1 %v14812_v17  ;;  %v623_v17 = vld [vmem:[#allocation2 + $0xd68] sm:$0xff]  ;;  %v15115_v54 = vcombine.high %v874_v10, %v878_v11 }
 0x1bb   :  { %7123 = vmatprep.subr.bf16.mxu1 %v14821_v19  ;;  %v15106_v19 = vcombine.low %v866_v1, %v870_v2  ;;  %v14861_v20 = vcombine.high %v619_v13, %v623_v17  ;;  %v14860_v27 = vcombine.low %v619_v13, %v623_v17 }
 0x1bc   :  { %6783 = vmatpush1.bf16.msra.mxu0 %v15066_v18  ;;  %v14852_v18 = vcombine.low %v611_v3, %v615_v5  ;;  %v910_v5 = vld [vmem:[#allocation2 + $0x1660] sm:$0xff] }
 0x1bd   :  { %6805 = vmatprep.subr.bf16.mxu0 %v15075_v55  ;;  %7103 = vmatmul.mubr.bf16.vlgmr.msra.gmra.mrb[8].mxu1 %v18234_v57  ;;  %v631_v55 = vld [vmem:[#allocation2 + $0xda8] sm:$0xff] }
 0x1be   :  { %7124 = vmatpush1.bf16.msra.mxu1 %v14820_v29  ;;  %7112 = vmatprep.mubr.bf16.mxu1 %v18236_v6  ;;  %v15114_v29 = vcombine.low %v874_v10, %v878_v11 }
 0x1bf   :  { %6785 = vmatmul.mubr.bf16.vlgmr.msra.gmra.mrb[0].mxu0 %v18306_v28  ;;  %7125 = vmatprep.subr.bf16.mxu1 %v14829_v31  ;;  %v890_v31 = vld [vmem:[#allocation2 + $0x15c0] sm:$0xff] }
 0x1c0   :  { %6806 = vmatpush1.bf16.msra.mxu0 %v15074_v30  ;;  %6794 = vmatprep.mubr.bf16.mxu0 %v18308_v38  ;;  %v14869_v30 = vcombine.high %v627_v24, %v631_v55  ;;  %v15130_v2 = vcombine.low %v890_v31, %v894_v59 }
 0x1c1   :  { %6807 = vmatprep.subr.bf16.mxu0 %v15083_v34  ;;  %v635_v34 = vld [vmem:[#allocation2 + $0xdc8] sm:$0xff] }
 0x1c2   :  { %7126 = vmatpush1.bf16.msra.mxu1 %v14828_v52  ;;  %v14877_v12 = vcombine.high %v635_v34, %v639_v37  ;;  %v14876_v1 = vcombine.low %v635_v34, %v639_v37 }
 0x1c3   :  { %7127 = vmatprep.subr.bf16.mxu1 %v14837_v39  ;;  %v14868_v39 = vcombine.low %v627_v24, %v631_v55 }
 0x1c4   :  { %6808 = vmatpush1.bf16.msra.mxu0 %v15082_v61 }
 0x1c5   :  { %6809 = vmatprep.subr.bf16.mxu0 %v15091_v48  ;;  %7113 = vmatmul.mubr.bf16.gmra.mrb[12].mxu1 %v18252_v16  ;;  %v902_v48 = vld [vmem:[#allocation2 + $0x1620] sm:$0xff] }
 0x1c6   :  { %7128 = vmatpush1.bf16.msra.mxu1 %v14836_v50  ;;  %7155 = vmatprep.mubr.bf16.mxu1 %v18256_v25  ;;  %v643_v50 = vld [vmem:[#allocation2 + $0xe08] sm:$0xff]  ;;  %v15138_v17 = vcombine.low %v898_v14, %v902_v48 }
 0x1c7   :  { %6795 = vmatmul.mubr.bf16.gmra.mrb[4].mxu0 %v18324_v51  ;;  %7129 = vmatprep.subr.bf16.mxu1 %v14845_v62  ;;  %v647_v62 = vld [vmem:[#allocation2 + $0xe28] sm:$0xff] }
 0x1c8   :  { %6810 = vmatpush1.bf16.msra.mxu0 %v15090_v53  ;;  %6837 = vmatprep.mubr.bf16.mxu0 %v18328_v42  ;;  %v15131_v53 = vcombine.high %v890_v31, %v894_v59  ;;  %v14885_v3 = vcombine.high %v643_v50, %v647_v62  ;;  %v14884_v13 = vcombine.low %v643_v50, %v647_v62  ;;  %v926_v31 = vld [vmem:[#allocation2 + $0x16e0] sm:$0xff]  ;;  %v667_v59 = vld [vmem:[#allocation2 + $0xec8] sm:$0xff] }
 0x1c9   :  { %6811 = vmatprep.subr.bf16.mxu0 %v15099_v4  ;;  %v906_v4 = vld [vmem:[#allocation2 + $0x1640] sm:$0xff] }
 0x1ca   :  { %7130 = vmatpush1.bf16.msra.mxu1 %v14844_v44  ;;  %v651_v44 = vld [vmem:[#allocation2 + $0xe48] sm:$0xff]  ;;  %v15147_v24 = vcombine.high %v906_v4, %v910_v5 }
 0x1cb   :  { %7131 = vmatprep.subr.bf16.mxu1 %v14853_v9  ;;  %v655_v9 = vld [vmem:[#allocation2 + $0xe68] sm:$0xff] }
 0x1cc   :  { %6812 = vmatpush1.bf16.msra.mxu0 %v15098_v8  ;;  %v15139_v8 = vcombine.high %v898_v14, %v902_v48  ;;  %v14892_v55 = vcombine.low %v651_v44, %v655_v9  ;;  %v934_v14 = vld [vmem:[#allocation2 + $0x1720] sm:$0xff]  ;;  %v675_v48 = vld [vmem:[#allocation2 + $0xf08] sm:$0xff] }
 0x1cd   :  { %6813 = vmatprep.subr.bf16.mxu0 %v15107_v15 }
 0x1ce   :  { %7132 = vmatpush1.bf16.msra.mxu1 %v14852_v18  ;;  %v14893_v18 = vcombine.high %v651_v44, %v655_v9 }
 0x1cf   :  { %7133 = vmatprep.subr.bf16.mxu1 %v14861_v20  ;;  %v918_v20 = vld [vmem:[#allocation2 + $0x16a0] sm:$0xff] }
 0x1d0   :  { %6814 = vmatpush1.bf16.msra.mxu0 %v15106_v19  ;;  %v18334_v35 = vpop.f32.mrb[0].mxu1  ;;  %v914_v19 = vld [vmem:[#allocation2 + $0x1680] sm:$0xff] }
 0x1d1   :  { %6815 = vmatprep.subr.bf16.mxu0 %v15115_v54  ;;  %v18336_v52 = vpop.f32.mrb[1].mxu1  ;;  %v663_v54 = vld [vmem:[#allocation2 + $0xea8] sm:$0xff]  ;;  %v15155_v34 = vcombine.high %v914_v19, %v918_v20 }
 0x1d2   :  { %v18338_v61 = vpop.f32.mrb[2].mxu1  ;;  %7134 = vmatpush1.bf16.msra.mxu1 %v14860_v27  ;;  %v15146_v27 = vcombine.low %v906_v4, %v910_v5  ;;  %v14900_v37 = vcombine.low %v659_v22, %v663_v54  ;;  %v942_v4 = vld [vmem:[#allocation2 + $0x1760] sm:$0xff]  ;;  %v683_v5 = vld [vmem:[#allocation2 + $0xf48] sm:$0xff] }
 0x1d3   :  { %v18340_v40 = vpop.f32.mrb[3].mxu1  ;;  %7135 = vmatprep.subr.bf16.mxu1 %v14869_v30  ;;  %v922_v30 = vld [vmem:[#allocation2 + $0x16c0] sm:$0xff] }
 0x1d4   :  { %6816 = vmatpush1.bf16.msra.mxu0 %v15114_v29  ;;  %v14901_v29 = vcombine.high %v659_v22, %v663_v54  ;;  %v15163_v50 = vcombine.high %v922_v30, %v926_v31 }
 0x1d5   :  { %6817 = vmatprep.subr.bf16.mxu0 %v15123_v36  ;;  %v671_v36 = vld [vmem:[#allocation2 + $0xee8] sm:$0xff] }
 0x1d6   :  { %7136 = vmatpush1.bf16.msra.mxu1 %v14868_v39  ;;  %v15154_v39 = vcombine.low %v914_v19, %v918_v20  ;;  %v14908_v62 = vcombine.low %v667_v59, %v671_v36  ;;  %v950_v19 = vld [vmem:[#allocation2 + $0x17a0] sm:$0xff]  ;;  %v691_v20 = vld [vmem:[#allocation2 + $0xf88] sm:$0xff] }
 0x1d7   :  { %7137 = vmatprep.subr.bf16.mxu1 %v14877_v12  ;;  %v930_v12 = vld [vmem:[#allocation2 + $0x1700] sm:$0xff] }
 0x1d8   :  { %6818 = vmatpush1.bf16.msra.mxu0 %v15122_v41  ;;  %v18342_v10 = vpop.f32.mrb[4].mxu1  ;;  %v14909_v41 = vcombine.high %v667_v59, %v671_v36  ;;  %v15171_v44 = vcombine.high %v930_v12, %v934_v14 }
 0x1d9   :  { %6819 = vmatprep.subr.bf16.mxu0 %v15131_v53  ;;  %v18344_v11 = vpop.f32.mrb[5].mxu1  ;;  %v679_v53 = vld [vmem:[#allocation2 + $0xf28] sm:$0xff] }
 0x1da   :  { %7138 = vmatpush1.bf16.msra.mxu1 %v14876_v1  ;;  %v18346_v15 = vpop.f32.mrb[6].mxu1  ;;  %v15162_v1 = vcombine.low %v922_v30, %v926_v31  ;;  %v14916_v9 = vcombine.low %v675_v48, %v679_v53  ;;  %v958_v30 = vld [vmem:[#allocation2 + $0x17e0] sm:$0xff]  ;;  %v699_v31 = vld [vmem:[#allocation2 + $0xfc8] sm:$0xff] }
 0x1db   :  { %7139 = vmatprep.subr.bf16.mxu1 %v14885_v3  ;;  %v18348_v23 = vpop.f32.mrb[7].mxu1  ;;  %v938_v3 = vld [vmem:[#allocation2 + $0x1740] sm:$0xff] }
 0x1dc   :  { %6820 = vmatpush1.bf16.msra.mxu0 %v15130_v2  ;;  %v14917_v2 = vcombine.high %v675_v48, %v679_v53  ;;  %v15179_v22 = vcombine.high %v938_v3, %v942_v4 }
 0x1dd   :  { %6821 = vmatprep.subr.bf16.mxu0 %v15139_v8  ;;  %v687_v8 = vld [vmem:[#allocation2 + $0xf68] sm:$0xff] }
 0x1de   :  { %7140 = vmatpush1.bf16.msra.mxu1 %v14884_v13  ;;  %v15170_v13 = vcombine.low %v930_v12, %v934_v14  ;;  %v14924_v54 = vcombine.low %v683_v5, %v687_v8  ;;  %v966_v12 = vld [vmem:[#allocation2 + $0x1820] sm:$0xff]  ;;  %v707_v14 = vld [vmem:[#allocation2 + $0x1008] sm:$0xff] }
 0x1df   :  { %7141 = vmatprep.subr.bf16.mxu1 %v14893_v18  ;;  %v946_v18 = vld [vmem:[#allocation2 + $0x1780] sm:$0xff] }
 0x1e0   :  { %6822 = vmatpush1.bf16.msra.mxu0 %v15138_v17  ;;  %v14925_v17 = vcombine.high %v683_v5, %v687_v8  ;;  %v15187_v59 = vcombine.high %v946_v18, %v950_v19  ;;  %v719_v5 = vld [vmem:[#allocation2 + $0x1068] sm:$0xff] }
 0x1e1   :  { %6823 = vmatprep.subr.bf16.mxu0 %v15147_v24  ;;  %v695_v24 = vld [vmem:[#allocation2 + $0xfa8] sm:$0xff] }
 0x1e2   :  { %7142 = vmatpush1.bf16.msra.mxu1 %v14892_v55  ;;  %v15178_v55 = vcombine.low %v938_v3, %v942_v4  ;;  %v14932_v36 = vcombine.low %v691_v20, %v695_v24  ;;  %v974_v3 = vld [vmem:[#allocation2 + $0x1860] sm:$0xff]  ;;  %v715_v4 = vld [vmem:[#allocation2 + $0x1048] sm:$0xff] }
 0x1e3   :  { %7143 = vmatprep.subr.bf16.mxu1 %v14901_v29  ;;  %v954_v29 = vld [vmem:[#allocation2 + $0x17c0] sm:$0xff] }
 0x1e4   :  { %6824 = vmatpush1.bf16.msra.mxu0 %v15146_v27  ;;  %v14933_v27 = vcombine.high %v691_v20, %v695_v24  ;;  %v15195_v48 = vcombine.high %v954_v29, %v958_v30  ;;  %v978_v20 = vld [vmem:[#allocation2 + $0x1880] sm:$0xff]  ;;  %v723_v24 = vld [vmem:[#allocation2 + $0x1088] sm:$0xff] }
 0x1e5   :  { %6825 = vmatprep.subr.bf16.mxu0 %v15155_v34  ;;  %v703_v34 = vld [vmem:[#allocation2 + $0xfe8] sm:$0xff] }
 0x1e6   :  { %7144 = vmatpush1.bf16.msra.mxu1 %v14900_v37  ;;  %v15186_v37 = vcombine.low %v946_v18, %v950_v19  ;;  %v14940_v53 = vcombine.low %v699_v31, %v703_v34  ;;  %v14957_v19 = vcombine.high %v715_v4, %v719_v5 }
 0x1e7   :  { %7145 = vmatprep.subr.bf16.mxu1 %v14909_v41  ;;  %v962_v41 = vld [vmem:[#allocation2 + $0x1800] sm:$0xff] }
 0x1e8   :  { %6826 = vmatpush1.bf16.msra.mxu0 %v15154_v39  ;;  %v14941_v39 = vcombine.high %v699_v31, %v703_v34  ;;  %v15203_v8 = vcombine.high %v962_v41, %v966_v12  ;;  %v15202_v18 = vcombine.low %v962_v41, %v966_v12  ;;  %v990_v31 = vld [vmem:[#allocation2 + $0x18e0] sm:$0xff]  ;;  %v735_v34 = vld [vmem:[#allocation2 + $0x10e8] sm:$0xff] }
 0x1e9   :  { %6827 = vmatprep.subr.bf16.mxu0 %v15163_v50  ;;  %v711_v50 = vld [vmem:[#allocation2 + $0x1028] sm:$0xff] }
 0x1ea   :  { %7146 = vmatpush1.bf16.msra.mxu1 %v14908_v62  ;;  %v15194_v62 = vcombine.low %v954_v29, %v958_v30  ;;  %v986_v30 = vld [vmem:[#allocation2 + $0x18c0] sm:$0xff] }
 0x1eb   :  { %7147 = vmatprep.subr.bf16.mxu1 %v14917_v2  ;;  %v970_v2 = vld [vmem:[#allocation2 + $0x1840] sm:$0xff] }
 0x1ec   :  { %6828 = vmatpush1.bf16.msra.mxu0 %v15162_v1  ;;  %v14949_v1 = vcombine.high %v707_v14, %v711_v50 }
 0x1ed   :  { %6829 = vmatprep.subr.bf16.mxu0 %v15171_v44  ;;  %v183_v44 = vld [vmem:[%s19135_s0 + $0xa8] sm:$0xff] }
 0x1ee   :  { %7148 = vmatpush1.bf16.msra.mxu1 %v14916_v9  ;;  %v191_v9 = vld [vmem:[%s19135_s0 + $0xe8] sm:$0xff] }
 0x1ef   :  { %7149 = vmatprep.subr.bf16.mxu1 %v14925_v17  ;;  %v14948_v17 = vcombine.low %v707_v14, %v711_v50  ;;  %v18376_v12 = vcombine.low %v183_v44, %v191_v9  ;;  %v994_v50 = vld [vmem:[#allocation2 + $0x1900] sm:$0xff] }
 0x1f0   :  { %6830 = vmatpush1.bf16.msra.mxu0 %v15170_v13  ;;  %v18358_v13 = vcombine.low %v18315_v47, %v18321_v49  ;;  %v14956_v47 = vcombine.low %v715_v4, %v719_v5  ;;  %v15210_v49 = vcombine.low %v970_v2, %v974_v3  ;;  %v15226_v5 = vcombine.low %v986_v30, %v990_v31 }
 0x1f1   :  { %6831 = vmatprep.subr.bf16.mxu0 %v15179_v22  ;;  %v982_v22 = vld [vmem:[#allocation2 + $0x18a0] sm:$0xff] }
 0x1f2   :  { %7150 = vmatpush1.bf16.msra.mxu1 %v14924_v54  ;;  %v15211_v54 = vcombine.high %v970_v2, %v974_v3  ;;  %v15218_v14 = vcombine.low %v978_v20, %v982_v22  ;;  %v743_v2 = vld [vmem:[#allocation2 + $0x1128] sm:$0xff] }
 0x1f3   :  { %7151 = vmatprep.subr.bf16.mxu1 %v14933_v27  ;;  %v18360_v27 = vcombine.high %v183_v44, %v191_v9  ;;  %v1006_v9 = vld [vmem:[#allocation2 + $0x1960] sm:$0xff] }
 0x1f4   :  { %6832 = vmatpush1.bf16.msra.mxu0 %v15178_v55  ;;  %v727_v55 = vld [vmem:[#allocation2 + $0x10a8] sm:$0xff] }
 0x1f5   :  { %6833 = vmatprep.subr.bf16.mxu0 %v15187_v59  ;;  %v14965_v29 = vcombine.high %v723_v24, %v727_v55  ;;  %v731_v59 = vld [vmem:[#allocation2 + $0x10c8] sm:$0xff]  ;;  %v14964_v41 = vcombine.low %v723_v24, %v727_v55  ;;  %v1014_v55 = vld [vmem:[#allocation2 + $0x19a0] sm:$0xff] }
 0x1f6   :  { %7152 = vmatpush1.bf16.msra.mxu1 %v14932_v36  ;;  %v18367_v36 = vld [vmem:[%s19135_s0 + $0x30] sm:$0xff]  ;;  %v14972_v4 = vcombine.low %v731_v59, %v735_v34 }
 0x1f7   :  { %7153 = vmatprep.subr.bf16.mxu1 %v14941_v39  ;;  %v18373_v39 = vld [vmem:[%s19135_s0 + $0x70] sm:$0xff] }
 0x1f8   :  { %6834 = vmatpush1.bf16.msra.mxu0 %v15186_v37  ;;  %v15219_v37 = vcombine.high %v978_v20, %v982_v22  ;;  %v18380_v3 = vcombine.high %v18367_v36, %v18373_v39 }
 0x1f9   :  { %6835 = vmatprep.subr.bf16.mxu0 %v15195_v48  ;;  %v14973_v48 = vcombine.high %v731_v59, %v735_v34  ;;  %v1018_v34 = vld [vmem:[#allocation2 + $0x19c0] sm:$0xff] }
 0x1fa   :  { %7154 = vmatpush1.bf16.msra.mxu1 %v14940_v53  ;;  %v998_v53 = vld [vmem:[#allocation2 + $0x1920] sm:$0xff] }
 0x1fb   :  { %7176 = vmatprep.subr.bf16.mxu1 %v14949_v1  ;;  %v15227_v1 = vcombine.high %v986_v30, %v990_v31  ;;  %v15234_v22 = vcombine.low %v994_v50, %v998_v53 }
 0x1fc   :  { %6836 = vmatpush1.bf16.msra.mxu0 %v15194_v62  ;;  %v739_v62 = vld [vmem:[#allocation2 + $0x1108] sm:$0xff] }
 0x1fd   :  { %6858 = vmatprep.subr.bf16.mxu0 %v15203_v8  ;;  %7156 = vmatmul.mubr.bf16.vlgmr.msra.gmra.mrb[8].mxu1 %v18270_v60  ;;  %v14981_v44 = vcombine.high %v739_v62, %v743_v2  ;;  %v1002_v8 = vld [vmem:[#allocation2 + $0x1940] sm:$0xff]  ;;  %v14980_v20 = vcombine.low %v739_v62, %v743_v2 }
 0x1fe   :  { %7177 = vmatpush1.bf16.msra.mxu1 %v14948_v17  ;;  %7165 = vmatprep.mubr.bf16.mxu1 %v18272_v45  ;;  %v747_v17 = vld [vmem:[#allocation2 + $0x1148] sm:$0xff]  ;;  %v15242_v31 = vcombine.low %v1002_v8, %v1006_v9  ;;  %v1030_v2 = vld [vmem:[#allocation2 + $0x1a20] sm:$0xff] }
 0x1ff   :  { %6838 = vmatmul.mubr.bf16.vlgmr.msra.gmra.mrb[0].mxu0 %v18358_v13  ;;  %7178 = vmatprep.subr.bf16.mxu1 %v14957_v19  ;;  %v751_v19 = vld [vmem:[#allocation2 + $0x1168] sm:$0xff] }
 0x200   :  { %6859 = vmatpush1.bf16.msra.mxu0 %v15202_v18  ;;  %6847 = vmatprep.mubr.bf16.mxu0 %v18360_v27  ;;  %v15235_v18 = vcombine.high %v994_v50, %v998_v53  ;;  %v14989_v24 = vcombine.high %v747_v17, %v751_v19  ;;  %v14988_v30 = vcombine.low %v747_v17, %v751_v19  ;;  %v1038_v19 = vld [vmem:[#allocation2 + $0x1a60] sm:$0xff] }
 0x201   :  { %6860 = vmatprep.subr.bf16.mxu0 %v15211_v54  ;;  %v1010_v54 = vld [vmem:[#allocation2 + $0x1980] sm:$0xff] }
 0x202   :  { %7179 = vmatpush1.bf16.msra.mxu1 %v14956_v47  ;;  %v755_v47 = vld [vmem:[#allocation2 + $0x1188] sm:$0xff]  ;;  %v15250_v53 = vcombine.low %v1010_v54, %v1014_v55 }
 0x203   :  { %7180 = vmatprep.subr.bf16.mxu1 %v14965_v29  ;;  %v759_v29 = vld [vmem:[#allocation2 + $0x11a8] sm:$0xff] }
 0x204   :  { %6861 = vmatpush1.bf16.msra.mxu0 %v15210_v49  ;;  %v15243_v49 = vcombine.high %v1002_v8, %v1006_v9  ;;  %v14997_v59 = vcombine.high %v755_v47, %v759_v29  ;;  %v14996_v50 = vcombine.low %v755_v47, %v759_v29  ;;  %v1046_v29 = vld [vmem:[#allocation2 + $0x1aa0] sm:$0xff] }
 0x205   :  { %6862 = vmatprep.subr.bf16.mxu0 %v15219_v37  ;;  %7166 = vmatmul.mubr.bf16.gmra.mrb[12].mxu1 %v18288_v0  ;;  %v1022_v37 = vld [vmem:[#allocation2 + $0x19e0] sm:$0xff] }
 0x206   :  { %7181 = vmatpush1.bf16.msra.mxu1 %v14964_v41  ;;  %7208 = vmatprep.mubr.bf16.mxu1 %v18292_v7  ;;  %v763_v41 = vld [vmem:[#allocation2 + $0x11c8] sm:$0xff]  ;;  %v15258_v9 = vcombine.low %v1018_v34, %v1022_v37 }
 0x207   :  { %6848 = vmatmul.mubr.bf16.gmra.mrb[4].mxu0 %v18376_v12  ;;  %7182 = vmatprep.subr.bf16.mxu1 %v14973_v48  ;;  %v767_v48 = vld [vmem:[#allocation2 + $0x11e8] sm:$0xff] }
 0x208   :  { %6863 = vmatpush1.bf16.msra.mxu0 %v15218_v14  ;;  %6890 = vmatprep.mubr.bf16.mxu0 %v18380_v3  ;;  %v15251_v14 = vcombine.high %v1010_v54, %v1014_v55  ;;  %v15005_v62 = vcombine.high %v763_v41, %v767_v48  ;;  %v15004_v8 = vcombine.low %v763_v41, %v767_v48  ;;  %v1054_v48 = vld [vmem:[#allocation2 + $0x1ae0] sm:$0xff] }
 0x209   :  { %6864 = vmatprep.subr.bf16.mxu0 %v15227_v1  ;;  %v1026_v1 = vld [vmem:[#allocation2 + $0x1a00] sm:$0xff] }
 0x20a   :  { %7183 = vmatpush1.bf16.msra.mxu1 %v14972_v4  ;;  %v771_v4 = vld [vmem:[#allocation2 + $0x1208] sm:$0xff]  ;;  %v15266_v55 = vcombine.low %v1026_v1, %v1030_v2 }
 0x20b   :  { %7184 = vmatprep.subr.bf16.mxu1 %v14981_v44  ;;  %v775_v44 = vld [vmem:[#allocation2 + $0x1228] sm:$0xff] }
 0x20c   :  { %6865 = vmatpush1.bf16.msra.mxu0 %v15226_v5  ;;  %v15259_v5 = vcombine.high %v1018_v34, %v1022_v37  ;;  %v15013_v17 = vcombine.high %v771_v4, %v775_v44  ;;  %v15012_v54 = vcombine.low %v771_v4, %v775_v44  ;;  %v1062_v44 = vld [vmem:[#allocation2 + $0x1b20] sm:$0xff] }
 0x20d   :  { %6866 = vmatprep.subr.bf16.mxu0 %v15235_v18  ;;  %v1034_v18 = vld [vmem:[#allocation2 + $0x1a40] sm:$0xff] }
 0x20e   :  { %7185 = vmatpush1.bf16.msra.mxu1 %v14980_v20  ;;  %v779_v20 = vld [vmem:[#allocation2 + $0x1248] sm:$0xff]  ;;  %v15274_v37 = vcombine.low %v1034_v18, %v1038_v19 }
 0x20f   :  { %7186 = vmatprep.subr.bf16.mxu1 %v14989_v24  ;;  %v783_v24 = vld [vmem:[#allocation2 + $0x1268] sm:$0xff] }
 0x210   :  { %6867 = vmatpush1.bf16.msra.mxu0 %v15234_v22  ;;  %v15267_v22 = vcombine.high %v1026_v1, %v1030_v2  ;;  %v15021_v47 = vcombine.high %v779_v20, %v783_v24  ;;  %v15020_v34 = vcombine.low %v779_v20, %v783_v24  ;;  %v1070_v24 = vld [vmem:[#allocation2 + $0x1b60] sm:$0xff] }
 0x211   :  { %6868 = vmatprep.subr.bf16.mxu0 %v15243_v49  ;;  %v1042_v49 = vld [vmem:[#allocation2 + $0x1a80] sm:$0xff] }
 0x212   :  { %7187 = vmatpush1.bf16.msra.mxu1 %v14988_v30  ;;  %v787_v30 = vld [vmem:[#allocation2 + $0x1288] sm:$0xff]  ;;  %v15282_v2 = vcombine.low %v1042_v49, %v1046_v29 }
 0x213   :  { %7188 = vmatprep.subr.bf16.mxu1 %v14997_v59  ;;  %v791_v59 = vld [vmem:[#allocation2 + $0x12a8] sm:$0xff] }
 0x214   :  { %6869 = vmatpush1.bf16.msra.mxu0 %v15242_v31  ;;  %v15275_v31 = vcombine.high %v1034_v18, %v1038_v19  ;;  %v15029_v41 = vcombine.high %v787_v30, %v791_v59  ;;  %v15028_v1 = vcombine.low %v787_v30, %v791_v59  ;;  %v1078_v59 = vld [vmem:[#allocation2 + $0x1ba0] sm:$0xff] }
 0x215   :  { %6870 = vmatprep.subr.bf16.mxu0 %v15251_v14  ;;  %v1050_v14 = vld [vmem:[#allocation2 + $0x1ac0] sm:$0xff] }
 0x216   :  { %7189 = vmatpush1.bf16.msra.mxu1 %v14996_v50  ;;  %v795_v50 = vld [vmem:[#allocation2 + $0x12c8] sm:$0xff]  ;;  %v15290_v19 = vcombine.low %v1050_v14, %v1054_v48 }
 0x217   :  { %7190 = vmatprep.subr.bf16.mxu1 %v15005_v62  ;;  %v799_v62 = vld [vmem:[#allocation2 + $0x12e8] sm:$0xff] }
 0x218   :  { %6871 = vmatpush1.bf16.msra.mxu0 %v15250_v53  ;;  %v15283_v53 = vcombine.high %v1042_v49, %v1046_v29  ;;  %v15037_v4 = vcombine.high %v795_v50, %v799_v62  ;;  %v15036_v18 = vcombine.low %v795_v50, %v799_v62  ;;  %v1086_v62 = vld [vmem:[#allocation2 + $0x1be0] sm:$0xff] }
 0x219   :  { %6872 = vmatprep.subr.bf16.mxu0 %v15259_v5  ;;  %v1058_v5 = vld [vmem:[#allocation2 + $0x1b00] sm:$0xff] }
 0x21a   :  { %7191 = vmatpush1.bf16.msra.mxu1 %v15004_v8  ;;  %v803_v8 = vld [vmem:[#allocation2 + $0x1308] sm:$0xff]  ;;  %v15298_v29 = vcombine.low %v1058_v5, %v1062_v44 }
 0x21b   :  { %7192 = vmatprep.subr.bf16.mxu1 %v15013_v17  ;;  %v807_v17 = vld [vmem:[#allocation2 + $0x1328] sm:$0xff] }
 0x21c   :  { %6873 = vmatpush1.bf16.msra.mxu0 %v15258_v9  ;;  %v15291_v9 = vcombine.high %v1050_v14, %v1054_v48  ;;  %v15045_v20 = vcombine.high %v803_v8, %v807_v17  ;;  %v15044_v49 = vcombine.low %v803_v8, %v807_v17  ;;  %v1094_v17 = vld [vmem:[#allocation2 + $0x1c20] sm:$0xff] }
 0x21d   :  { %6874 = vmatprep.subr.bf16.mxu0 %v15267_v22  ;;  %v1066_v22 = vld [vmem:[#allocation2 + $0x1b40] sm:$0xff] }
 0x21e   :  { %7193 = vmatpush1.bf16.msra.mxu1 %v15012_v54  ;;  %v811_v54 = vld [vmem:[#allocation2 + $0x1348] sm:$0xff]  ;;  %v15306_v48 = vcombine.low %v1066_v22, %v1070_v24 }
 0x21f   :  { %7194 = vmatprep.subr.bf16.mxu1 %v15021_v47  ;;  %v815_v47 = vld [vmem:[#allocation2 + $0x1368] sm:$0xff] }
 0x220   :  { %6875 = vmatpush1.bf16.msra.mxu0 %v15266_v55  ;;  %v15299_v55 = vcombine.high %v1058_v5, %v1062_v44  ;;  %v15053_v30 = vcombine.high %v811_v54, %v815_v47  ;;  %v15052_v14 = vcombine.low %v811_v54, %v815_v47  ;;  %v1102_v47 = vld [vmem:[#allocation2 + $0x1c60] sm:$0xff] }
 0x221   :  { %6876 = vmatprep.subr.bf16.mxu0 %v15275_v31  ;;  %v1074_v31 = vld [vmem:[#allocation2 + $0x1b80] sm:$0xff] }
 0x222   :  { %7195 = vmatpush1.bf16.msra.mxu1 %v15020_v34  ;;  %v819_v34 = vld [vmem:[#allocation2 + $0x1388] sm:$0xff]  ;;  %v15314_v44 = vcombine.low %v1074_v31, %v1078_v59 }
 0x223   :  { %7196 = vmatprep.subr.bf16.mxu1 %v15029_v41  ;;  %v823_v41 = vld [vmem:[#allocation2 + $0x13a8] sm:$0xff] }
 0x224   :  { %6877 = vmatpush1.bf16.msra.mxu0 %v15274_v37  ;;  %v15307_v37 = vcombine.high %v1066_v22, %v1070_v24  ;;  %v15061_v50 = vcombine.high %v819_v34, %v823_v41  ;;  %v15060_v5 = vcombine.low %v819_v34, %v823_v41  ;;  %v18394_v34 = vcombine.low %v18367_v36, %v18373_v39 }
 0x225   :  { %6878 = vmatprep.subr.bf16.mxu0 %v15283_v53  ;;  %v1082_v53 = vld [vmem:[#allocation2 + $0x1bc0] sm:$0xff] }
 0x226   :  { %7197 = vmatpush1.bf16.msra.mxu1 %v15028_v1  ;;  %v827_v1 = vld [vmem:[#allocation2 + $0x13c8] sm:$0xff]  ;;  %v15322_v24 = vcombine.low %v1082_v53, %v1086_v62 }
 0x227   :  { %7198 = vmatprep.subr.bf16.mxu1 %v15037_v4  ;;  %v831_v4 = vld [vmem:[#allocation2 + $0x13e8] sm:$0xff] }
 0x228   :  { %6879 = vmatpush1.bf16.msra.mxu0 %v15282_v2  ;;  %v15315_v2 = vcombine.high %v1074_v31, %v1078_v59  ;;  %v15069_v8 = vcombine.high %v827_v1, %v831_v4  ;;  %v15068_v22 = vcombine.low %v827_v1, %v831_v4  ;;  %v192_v59 = vld [vmem:[%s19135_s0 + $0xf0] sm:$0xff]  ;;  %v855_v1 = vld [vmem:[#allocation2 + $0x14a8] sm:$0xff] }
 0x229   :  { %6880 = vmatprep.subr.bf16.mxu0 %v15291_v9  ;;  %v1090_v9 = vld [vmem:[#allocation2 + $0x1c00] sm:$0xff] }
 0x22a   :  { %7199 = vmatpush1.bf16.msra.mxu1 %v15036_v18  ;;  %v835_v18 = vld [vmem:[#allocation2 + $0x1408] sm:$0xff]  ;;  %v15331_v31 = vcombine.high %v1090_v9, %v1094_v17  ;;  %v15330_v41 = vcombine.low %v1090_v9, %v1094_v17  ;;  %v18403_v17 = vld [vmem:[%s19135_s0 + $0x38] sm:$0xff] }
 0x22b   :  { %7200 = vmatprep.subr.bf16.mxu1 %v15045_v20  ;;  %v839_v20 = vld [vmem:[#allocation2 + $0x1428] sm:$0xff] }
 0x22c   :  { %6881 = vmatpush1.bf16.msra.mxu0 %v15290_v19  ;;  %v15323_v19 = vcombine.high %v1082_v53, %v1086_v62  ;;  %v15077_v54 = vcombine.high %v835_v18, %v839_v20  ;;  %v851_v53 = vld [vmem:[#allocation2 + $0x1488] sm:$0xff] }
 0x22d   :  { %6882 = vmatprep.subr.bf16.mxu0 %v15299_v55  ;;  %v1098_v55 = vld [vmem:[#allocation2 + $0x1c40] sm:$0xff]  ;;  %v15093_v4 = vcombine.high %v851_v53, %v855_v1  ;;  %v863_v9 = vld [vmem:[#allocation2 + $0x14e8] sm:$0xff] }
 0x22e   :  { %7201 = vmatpush1.bf16.msra.mxu1 %v15044_v49  ;;  %v843_v49 = vld [vmem:[#allocation2 + $0x1448] sm:$0xff]  ;;  %v15339_v62 = vcombine.high %v1098_v55, %v1102_v47  ;;  %v15338_v39 = vcombine.low %v1098_v55, %v1102_v47  ;;  %v1122_v55 = vld [vmem:[#allocation2 + $0x1d00] sm:$0xff] }
 0x22f   :  { %7202 = vmatprep.subr.bf16.mxu1 %v15053_v30  ;;  %v184_v30 = vld [vmem:[%s19135_s0 + $0xb0] sm:$0xff]  ;;  %v1126_v47 = vld [vmem:[#allocation2 + $0x1d20] sm:$0xff] }
 0x230   :  { %6883 = vmatpush1.bf16.msra.mxu0 %v15298_v29  ;;  %v847_v29 = vld [vmem:[#allocation2 + $0x1468] sm:$0xff] }
 0x231   :  { %6884 = vmatprep.subr.bf16.mxu0 %v15307_v37  ;;  %v15076_v37 = vcombine.low %v835_v18, %v839_v20  ;;  %v15084_v36 = vcombine.low %v843_v49, %v847_v29  ;;  %v15092_v20 = vcombine.low %v851_v53, %v855_v1  ;;  %v15363_v53 = vcombine.high %v1122_v55, %v1126_v47 }
 0x232   :  { %7203 = vmatpush1.bf16.msra.mxu1 %v15052_v14  ;;  %v15085_v14 = vcombine.high %v843_v49, %v847_v29  ;;  %v867_v49 = vld [vmem:[#allocation2 + $0x1508] sm:$0xff] }
 0x233   :  { %7204 = vmatprep.subr.bf16.mxu1 %v15061_v50  ;;  %v1110_v50 = vld [vmem:[#allocation2 + $0x1ca0] sm:$0xff] }
 0x234   :  { %6885 = vmatpush1.bf16.msra.mxu0 %v15306_v48  ;;  %v1106_v48 = vld [vmem:[#allocation2 + $0x1c80] sm:$0xff] }
 0x235   :  { %6886 = vmatprep.subr.bf16.mxu0 %v15315_v2  ;;  %v18396_v2 = vcombine.high %v184_v30, %v192_v59  ;;  %v15347_v18 = vcombine.high %v1106_v48, %v1110_v50 }
 0x236   :  { %7205 = vmatpush1.bf16.msra.mxu1 %v15060_v5  ;;  %v1114_v5 = vld [vmem:[#allocation2 + $0x1cc0] sm:$0xff] }
 0x237   :  { %7206 = vmatprep.subr.bf16.mxu1 %v15069_v8  ;;  %19159 = vst [vmem:[#allocation27_spill] sm:$0xff] %v18396_v2  ;;  %v859_v8 = vld [vmem:[#allocation2 + $0x14c8] sm:$0xff] }
 0x238   :  { %6887 = vmatpush1.bf16.msra.mxu0 %v15314_v44  ;;  %v1118_v44 = vld [vmem:[#allocation2 + $0x1ce0] sm:$0xff] }
 0x239   :  { %6888 = vmatprep.subr.bf16.mxu0 %v15323_v19  ;;  %v18409_v19 = vld [vmem:[%s19135_s0 + $0x78] sm:$0xff]  ;;  %v15355_v29 = vcombine.high %v1114_v5, %v1118_v44 }
 0x23a   :  { %7207 = vmatpush1.bf16.msra.mxu1 %v15068_v22  ;;  %v18412_v22 = vcombine.low %v184_v30, %v192_v59  ;;  %v15354_v30 = vcombine.low %v1114_v5, %v1118_v44  ;;  %v1142_v5 = vld [vmem:[#allocation2 + $0x1da0] sm:$0xff]  ;;  %v883_v44 = vld [vmem:[#allocation2 + $0x1588] sm:$0xff] }
 0x23b   :  { %7229 = vmatprep.subr.bf16.mxu1 %v15077_v54  ;;  %v15101_v54 = vcombine.high %v859_v8, %v863_v9 }
 0x23c   :  { %6889 = vmatpush1.bf16.msra.mxu0 %v15322_v24  ;;  %19160 = vst [vmem:[#allocation28_spill] sm:$0xff] %v18412_v22  ;;  %v15346_v24 = vcombine.low %v1106_v48, %v1110_v50  ;;  %v1134_v48 = vld [vmem:[#allocation2 + $0x1d60] sm:$0xff]  ;;  %v875_v50 = vld [vmem:[#allocation2 + $0x1548] sm:$0xff] }
 0x23d   :  { %6911 = vmatprep.subr.bf16.mxu0 %v15331_v31  ;;  %7209 = vmatmul.mubr.bf16.vlgmr.msra.gmra.mrb[8].mxu1 %v18306_v28  ;;  %v871_v31 = vld [vmem:[#allocation2 + $0x1528] sm:$0xff] }
 0x23e   :  { %7230 = vmatpush1.bf16.msra.mxu1 %v15076_v37  ;;  %7218 = vmatprep.mubr.bf16.mxu1 %v18308_v38  ;;  %v18416_v37 = vcombine.high %v18403_v17, %v18409_v19  ;;  %v15109_v59 = vcombine.high %v867_v49, %v871_v31  ;;  %v15108_v1 = vcombine.low %v867_v49, %v871_v31 }
 0x23f   :  { %6891 = vmatmul.mubr.bf16.vlgmr.msra.gmra.mrb[0].mxu0 %v18394_v34  ;;  %7231 = vmatprep.subr.bf16.mxu1 %v15085_v14  ;;  %v1130_v14 = vld [vmem:[#allocation2 + $0x1d40] sm:$0xff] }
 0x240   :  { %6912 = vmatpush1.bf16.msra.mxu0 %v15330_v41  ;;  %6900 = vmatprep.mubr.bf16.mxu0 %v18396_v2  ;;  %19161 = vst [vmem:[#allocation29_spill] sm:$0xff] %v18416_v37  ;;  %v15100_v41 = vcombine.low %v859_v8, %v863_v9  ;;  %v15371_v8 = vcombine.high %v1130_v14, %v1134_v48  ;;  %v887_v9 = vld [vmem:[#allocation2 + $0x15a8] sm:$0xff] }
 0x241   :  { %6913 = vmatprep.subr.bf16.mxu0 %v15339_v62  ;;  %v879_v62 = vld [vmem:[#allocation2 + $0x1568] sm:$0xff] }
 0x242   :  { %7232 = vmatpush1.bf16.msra.mxu1 %v15084_v36  ;;  %v15362_v36 = vcombine.low %v1122_v55, %v1126_v47  ;;  %v895_v55 = vld [vmem:[#allocation2 + $0x15e8] sm:$0xff]  ;;  %v15124_v47 = vcombine.low %v883_v44, %v887_v9 }
 0x243   :  { %7233 = vmatprep.subr.bf16.mxu1 %v15093_v4  ;;  %v1138_v4 = vld [vmem:[#allocation2 + $0x1d80] sm:$0xff] }
 0x244   :  { %6914 = vmatpush1.bf16.msra.mxu0 %v15338_v39  ;;  %v15117_v39 = vcombine.high %v875_v50, %v879_v62  ;;  %v15379_v49 = vcombine.high %v1138_v4, %v1142_v5  ;;  %v15378_v31 = vcombine.low %v1138_v4, %v1142_v5  ;;  %v911_v4 = vld [vmem:[#allocation2 + $0x1668] sm:$0xff] }
 0x245   :  { %6915 = vmatprep.subr.bf16.mxu0 %v15347_v18  ;;  %7219 = vmatmul.mubr.bf16.gmra.mrb[12].mxu1 %v18324_v51  ;;  %v15116_v18 = vcombine.low %v875_v50, %v879_v62 }
 0x246   :  { %7234 = vmatpush1.bf16.msra.mxu1 %v15092_v20  ;;  %7261 = vmatprep.mubr.bf16.mxu1 %v18328_v42  ;;  %v15370_v20 = vcombine.low %v1130_v14, %v1134_v48  ;;  %v903_v14 = vld [vmem:[#allocation2 + $0x1628] sm:$0xff] }
 0x247   :  { %6901 = vmatmul.mubr.bf16.gmra.mrb[4].mxu0 %v18412_v22  ;;  %7235 = vmatprep.subr.bf16.mxu1 %v15101_v54  ;;  %v1146_v54 = vld [vmem:[#allocation2 + $0x1dc0] sm:$0xff] }
 0x248   :  { %6916 = vmatpush1.bf16.msra.mxu0 %v15346_v24  ;;  %6943 = vmatprep.mubr.bf16.mxu0 %v18416_v37  ;;  %v15125_v24 = vcombine.high %v883_v44, %v887_v9 }
 0x249   :  { %6917 = vmatprep.subr.bf16.mxu0 %v15355_v29  ;;  %v1150_v29 = vld [vmem:[#allocation2 + $0x1de0] sm:$0xff] }
 0x24a   :  { %7236 = vmatpush1.bf16.msra.mxu1 %v15100_v41  ;;  %v891_v41 = vld [vmem:[#allocation2 + $0x15c8] sm:$0xff]  ;;  %v15387_v50 = vcombine.high %v1146_v54, %v1150_v29  ;;  %v15386_v62 = vcombine.low %v1146_v54, %v1150_v29 }
 0x24b   :  { %7237 = vmatprep.subr.bf16.mxu1 %v15109_v59  ;;  %v1154_v59 = vld [vmem:[#allocation2 + $0x1e00] sm:$0xff]  ;;  %v15132_v48 = vcombine.low %v891_v41, %v895_v55  ;;  %v919_v54 = vld [vmem:[#allocation2 + $0x16a8] sm:$0xff] }
 0x24c   :  { %6918 = vmatpush1.bf16.msra.mxu0 %v15354_v30  ;;  %v15133_v30 = vcombine.high %v891_v41, %v895_v55 }
 0x24d   :  { %6919 = vmatprep.subr.bf16.mxu0 %v15363_v53  ;;  %v1158_v53 = vld [vmem:[#allocation2 + $0x1e20] sm:$0xff] }
 0x24e   :  { %7238 = vmatpush1.bf16.msra.mxu1 %v15108_v1  ;;  %v899_v1 = vld [vmem:[#allocation2 + $0x1608] sm:$0xff]  ;;  %v15395_v44 = vcombine.high %v1154_v59, %v1158_v53  ;;  %v15394_v9 = vcombine.low %v1154_v59, %v1158_v53 }
 0x24f   :  { %7239 = vmatprep.subr.bf16.mxu1 %v15117_v39  ;;  %v1162_v39 = vld [vmem:[#allocation2 + $0x1e40] sm:$0xff]  ;;  %v15140_v5 = vcombine.low %v899_v1, %v903_v14  ;;  %v927_v59 = vld [vmem:[#allocation2 + $0x16e8] sm:$0xff] }
 0x250   :  { %6920 = vmatpush1.bf16.msra.mxu0 %v15362_v36  ;;  %v15141_v36 = vcombine.high %v899_v1, %v903_v14 }
 0x251   :  { %6921 = vmatprep.subr.bf16.mxu0 %v15371_v8  ;;  %v1166_v8 = vld [vmem:[#allocation2 + $0x1e60] sm:$0xff] }
 0x252   :  { %7240 = vmatpush1.bf16.msra.mxu1 %v15116_v18  ;;  %v907_v18 = vld [vmem:[#allocation2 + $0x1648] sm:$0xff]  ;;  %v15403_v41 = vcombine.high %v1162_v39, %v1166_v8  ;;  %v15402_v55 = vcombine.low %v1162_v39, %v1166_v8 }
 0x253   :  { %7241 = vmatprep.subr.bf16.mxu1 %v15125_v24  ;;  %v1170_v24 = vld [vmem:[#allocation2 + $0x1e80] sm:$0xff]  ;;  %v15148_v29 = vcombine.low %v907_v18, %v911_v4  ;;  %v935_v39 = vld [vmem:[#allocation2 + $0x1728] sm:$0xff] }
 0x254   :  { %6922 = vmatpush1.bf16.msra.mxu0 %v15370_v20  ;;  %v15149_v20 = vcombine.high %v907_v18, %v911_v4 }
 0x255   :  { %6923 = vmatprep.subr.bf16.mxu0 %v15379_v49  ;;  %v1174_v49 = vld [vmem:[#allocation2 + $0x1ea0] sm:$0xff] }
 0x256   :  { %7242 = vmatpush1.bf16.msra.mxu1 %v15124_v47  ;;  %v915_v47 = vld [vmem:[#allocation2 + $0x1688] sm:$0xff]  ;;  %v15411_v1 = vcombine.high %v1170_v24, %v1174_v49  ;;  %v15410_v14 = vcombine.low %v1170_v24, %v1174_v49 }
 0x257   :  { %7243 = vmatprep.subr.bf16.mxu1 %v15133_v30  ;;  %v1178_v30 = vld [vmem:[#allocation2 + $0x1ec0] sm:$0xff]  ;;  %v15156_v53 = vcombine.low %v915_v47, %v919_v54  ;;  %v943_v24 = vld [vmem:[#allocation2 + $0x1768] sm:$0xff] }
 0x258   :  { %6924 = vmatpush1.bf16.msra.mxu0 %v15378_v31  ;;  %v15157_v31 = vcombine.high %v915_v47, %v919_v54 }
 0x259   :  { %6925 = vmatprep.subr.bf16.mxu0 %v15387_v50  ;;  %v1182_v50 = vld [vmem:[#allocation2 + $0x1ee0] sm:$0xff] }
 0x25a   :  { %7244 = vmatpush1.bf16.msra.mxu1 %v15132_v48  ;;  %v923_v48 = vld [vmem:[#allocation2 + $0x16c8] sm:$0xff]  ;;  %v15419_v18 = vcombine.high %v1178_v30, %v1182_v50  ;;  %v15418_v4 = vcombine.low %v1178_v30, %v1182_v50 }
 0x25b   :  { %7245 = vmatprep.subr.bf16.mxu1 %v15141_v36  ;;  %v1186_v36 = vld [vmem:[#allocation2 + $0x1f00] sm:$0xff]  ;;  %v15164_v8 = vcombine.low %v923_v48, %v927_v59  ;;  %v951_v30 = vld [vmem:[#allocation2 + $0x17a8] sm:$0xff] }
 0x25c   :  { %6926 = vmatpush1.bf16.msra.mxu0 %v15386_v62  ;;  %v15165_v62 = vcombine.high %v923_v48, %v927_v59 }
 0x25d   :  { %6927 = vmatprep.subr.bf16.mxu0 %v15395_v44  ;;  %v1190_v44 = vld [vmem:[#allocation2 + $0x1f20] sm:$0xff] }
 0x25e   :  { %7246 = vmatpush1.bf16.msra.mxu1 %v15140_v5  ;;  %v931_v5 = vld [vmem:[#allocation2 + $0x1708] sm:$0xff]  ;;  %v15427_v47 = vcombine.high %v1186_v36, %v1190_v44  ;;  %v15426_v54 = vcombine.low %v1186_v36, %v1190_v44 }
 0x25f   :  { %7247 = vmatprep.subr.bf16.mxu1 %v15149_v20  ;;  %v1194_v20 = vld [vmem:[#allocation2 + $0x1f40] sm:$0xff]  ;;  %v15172_v49 = vcombine.low %v931_v5, %v935_v39  ;;  %v959_v36 = vld [vmem:[#allocation2 + $0x17e8] sm:$0xff] }
 0x260   :  { %6928 = vmatpush1.bf16.msra.mxu0 %v15394_v9  ;;  %v15173_v9 = vcombine.high %v931_v5, %v935_v39 }
 0x261   :  { %6929 = vmatprep.subr.bf16.mxu0 %v15403_v41  ;;  %v1198_v41 = vld [vmem:[#allocation2 + $0x1f60] sm:$0xff] }
 0x262   :  { %7248 = vmatpush1.bf16.msra.mxu1 %v15148_v29  ;;  %v939_v29 = vld [vmem:[#allocation2 + $0x1748] sm:$0xff]  ;;  %v15435_v48 = vcombine.high %v1194_v20, %v1198_v41  ;;  %v15434_v59 = vcombine.low %v1194_v20, %v1198_v41  ;;  %v200_v20 = vld [vmem:[#allocation2 + $0x30] sm:$0xff] }
 0x263   :  { %7249 = vmatprep.subr.bf16.mxu1 %v15157_v31  ;;  %v1202_v31 = vld [vmem:[#allocation2 + $0x1f80] sm:$0xff]  ;;  %v15180_v50 = vcombine.low %v939_v29, %v943_v24 }
 0x264   :  { %6930 = vmatpush1.bf16.msra.mxu0 %v15402_v55  ;;  %v15181_v55 = vcombine.high %v939_v29, %v943_v24  ;;  %v971_v24 = vld [vmem:[#allocation2 + $0x1848] sm:$0xff] }
 0x265   :  { %6931 = vmatprep.subr.bf16.mxu0 %v15411_v1  ;;  %v1206_v1 = vld [vmem:[#allocation2 + $0x1fa0] sm:$0xff] }
 0x266   :  { %7250 = vmatpush1.bf16.msra.mxu1 %v15156_v53  ;;  %v947_v53 = vld [vmem:[#allocation2 + $0x1788] sm:$0xff]  ;;  %v15443_v5 = vcombine.high %v1202_v31, %v1206_v1  ;;  %v15442_v39 = vcombine.low %v1202_v31, %v1206_v1  ;;  %v185_v31 = vld [vmem:[%s19135_s0 + $0xb8] sm:$0xff] }
 0x267   :  { %7251 = vmatprep.subr.bf16.mxu1 %v15165_v62  ;;  %v1210_v62 = vld [vmem:[#allocation2 + $0x1fc0] sm:$0xff]  ;;  %v15188_v44 = vcombine.low %v947_v53, %v951_v30 }
 0x268   :  { %6932 = vmatpush1.bf16.msra.mxu0 %v15410_v14  ;;  %v15189_v14 = vcombine.high %v947_v53, %v951_v30  ;;  %v208_v53 = vld [vmem:[#allocation2 + $0x70] sm:$0xff]  ;;  %v193_v30 = vld [vmem:[%s19135_s0 + $0xf8] sm:$0xff]  ;;  %s17962_s0 = smov [#allocation19]  }
 0x269   :  { %6933 = vmatprep.subr.bf16.mxu0 %v15419_v18  ;;  %v1214_v18 = vld [vmem:[#allocation2 + $0x1fe0] sm:$0xff]  ;;  %s14385_s21 = sshll.u32 %s17962_s0, 4  ;;  %s14386_s21 = int_to_ptr.vmem [resolvable:$true] %s14385_s21 }
 0x26a   :  { %7252 = vmatpush1.bf16.msra.mxu1 %v15164_v8  ;;  %v955_v8 = vld [vmem:[#allocation2 + $0x17c8] sm:$0xff]  ;;  %v15451_v29 = vcombine.high %v1210_v62, %v1214_v18  ;;  %s17909_s7 = scalar_lea.vmem %s14386_s21, 2048  ;;  %p17914_p11 = scmp.lt.s32.totalorder %s14386_s21, %s14386_s21 }
 0x26b   :  { %7253 = vmatprep.subr.bf16.mxu1 %v15173_v9  ;;  %v963_v9 = vld [vmem:[#allocation2 + $0x1808] sm:$0xff]  ;;  %v15196_v41 = vcombine.low %v955_v8, %v959_v36  ;;  %p17910_p10 = scmp.ne.s32.totalorder %s14386_s21, %s17909_s7  ;;  %p17915_p12 = scmp.lt.s32.totalorder %s17909_s7, %s17909_s7 }
 0x26c   :  { %6934 = vmatpush1.bf16.msra.mxu0 %v15418_v4  ;;  %v15197_v4 = vcombine.high %v955_v8, %v959_v36  ;;  %v979_v36 = vld [vmem:[#allocation2 + $0x1888] sm:$0xff] }
 0x26d   :  { %6935 = vmatprep.subr.bf16.mxu0 %v15427_v47  ;;  %v967_v47 = vld [vmem:[#allocation2 + $0x1828] sm:$0xff]  ;;  %p17916_p13 = por %p17915_p12, %p17914_p11 }
 0x26e   :  { %7254 = vmatpush1.bf16.msra.mxu1 %v15172_v49  ;;  %v196_v49 = vld [vmem:[#allocation2 + $0x10] sm:$0xff] }
 0x26f   :  { %7255 = vmatprep.subr.bf16.mxu1 %v15181_v55  ;;  %v15450_v55 = vcombine.low %v1210_v62, %v1214_v18  ;;  %v14439_v1 = vcombine.high %v196_v49, %v200_v20  ;;  %v14438_v62 = vcombine.low %v196_v49, %v200_v20  ;;  %v987_v49 = vld [vmem:[#allocation2 + $0x18c8] sm:$0xff]  ;;  %v220_v20 = vld [vmem:[#allocation2 + $0xd0] sm:$0xff]  ;;  %p17917_p0 = pnand %p17916_p13, %p17910_p10 }
 0x270   :  { %6936 = vmatpush1.bf16.msra.mxu0 %v15426_v54  ;;  %v975_v54 = vld [vmem:[#allocation2 + $0x1868] sm:$0xff] }
 0x271   :  { %6937 = vmatprep.subr.bf16.mxu0 %v15435_v48  ;;  %v15205_v48 = vcombine.high %v963_v9, %v967_v47  ;;  %v15213_v18 = vcombine.high %v971_v24, %v975_v54 }
 0x272   :  { %7256 = vmatpush1.bf16.msra.mxu1 %v15180_v50  ;;  %v204_v50 = vld [vmem:[#allocation2 + $0x50] sm:$0xff] }
 0x273   :  { %7257 = vmatprep.subr.bf16.mxu1 %v15189_v14  ;;  %v15204_v14 = vcombine.low %v963_v9, %v967_v47  ;;  %v14447_v8 = vcombine.high %v204_v50, %v208_v53 }
 0x274   :  { %6938 = vmatpush1.bf16.msra.mxu0 %v15434_v59  ;;  %v18430_v59 = vcombine.low %v18403_v17, %v18409_v19  ;;  %v15212_v17 = vcombine.low %v971_v24, %v975_v54  ;;  %v14446_v19 = vcombine.low %v204_v50, %v208_v53  ;;  %v995_v53 = vld [vmem:[#allocation2 + $0x1908] sm:$0xff] }
 0x275   :  { %6939 = vmatprep.subr.bf16.mxu0 %v15443_v5  ;;  %v18432_v5 = vcombine.high %v185_v31, %v193_v30 }
 0x276   :  { %7258 = vmatpush1.bf16.msra.mxu1 %v15188_v44  ;;  %19162 = vst [vmem:[#allocation30_spill] sm:$0xff] %v18430_v59  ;;  %v983_v44 = vld [vmem:[#allocation2 + $0x18a8] sm:$0xff] }
 0x277   :  { %7259 = vmatprep.subr.bf16.mxu1 %v15197_v4  ;;  %19163 = vst [vmem:[#allocation31_spill] sm:$0xff] %v18432_v5  ;;  %v216_v4 = vld [vmem:[#allocation2 + $0xb0] sm:$0xff]  ;;  %v15221_v9 = vcombine.high %v979_v36, %v983_v44 }
 0x278   :  { %6940 = vmatpush1.bf16.msra.mxu0 %v15442_v39  ;;  %v212_v39 = vld [vmem:[#allocation2 + $0x90] sm:$0xff] }
 0x279   :  { %6941 = vmatprep.subr.bf16.mxu0 %v15451_v29  ;;  %v14455_v47 = vcombine.high %v212_v39, %v216_v4  ;;  %v991_v29 = vld [vmem:[#allocation2 + $0x18e8] sm:$0xff]  ;;  %v14454_v24 = vcombine.low %v212_v39, %v216_v4  ;;  %v236_v39 = vld [vmem:[#allocation2 + $0x150] sm:$0xff] }
 0x27a   :  { %7260 = vmatpush1.bf16.msra.mxu1 %v15196_v41  ;;  %v224_v41 = vld [vmem:[#allocation2 + $0xf0] sm:$0xff]  ;;  %v15229_v54 = vcombine.high %v987_v49, %v991_v29 }
 0x27b   :  { %7282 = vmatprep.subr.bf16.mxu1 %v15205_v48  ;;  %v15220_v48 = vcombine.low %v979_v36, %v983_v44  ;;  %v14463_v50 = vcombine.high %v220_v20, %v224_v41  ;;  %v1003_v36 = vld [vmem:[#allocation2 + $0x1948] sm:$0xff]  ;;  %v240_v4 = vld [vmem:[#allocation2 + $0x170] sm:$0xff] }
 0x27c   :  { %6942 = vmatpush1.bf16.msra.mxu0 %v15450_v55  ;;  %v18438_v55 = vcombine.low %v185_v31, %v193_v30  ;;  %v14462_v31 = vcombine.low %v220_v20, %v224_v41  ;;  %v1007_v44 = vld [vmem:[#allocation2 + $0x1968] sm:$0xff]  ;;  %v244_v20 = vld [vmem:[#allocation2 + $0x190] sm:$0xff] }
 0x27d   :  { %7388 = vmatprep.subr.bf16.mxu0 %v14439_v1  ;;  %7262 = vmatmul.mubr.bf16.vlgmr.msra.gmra.mrb[8].mxu1 %v18358_v13  ;;  %v999_v1 = vld [vmem:[#allocation2 + $0x1928] sm:$0xff]  ;;  %v248_v41 = vld [vmem:[#allocation2 + $0x1b0] sm:$0xff] }
 0x27e   :  { %7283 = vmatpush1.bf16.msra.mxu1 %v15204_v14  ;;  %7271 = vmatprep.mubr.bf16.mxu1 %v18360_v27  ;;  %19164 = vst [vmem:[#allocation32_spill] sm:$0xff] %v18438_v55  ;;  %v228_v14 = vld [vmem:[#allocation2 + $0x110] sm:$0xff]  ;;  %v15237_v30 = vcombine.high %v995_v53, %v999_v1 }
 0x27f   :  { %6944 = vmatmul.mubr.bf16.vlgmr.msra.gmra.mrb[0].mxu0 %v18430_v59  ;;  %7284 = vmatprep.subr.bf16.mxu1 %v15213_v18  ;;  %v15228_v18 = vcombine.low %v987_v49, %v991_v29  ;;  %v1011_v49 = vld [vmem:[#allocation2 + $0x1988] sm:$0xff] }
 0x280   :  { %7389 = vmatpush1.bf16.msra.mxu0 %v14438_v62  ;;  %6953 = vmatprep.mubr.bf16.mxu0 %v18432_v5  ;;  %v232_v62 = vld [vmem:[#allocation2 + $0x130] sm:$0xff]  ;;  %v1015_v29 = vld [vmem:[#allocation2 + $0x19a8] sm:$0xff] }
 0x281   :  { %7390 = vmatprep.subr.bf16.mxu0 %v14447_v8  ;;  %v14471_v8 = vcombine.high %v228_v14, %v232_v62 }
 0x282   :  { %7285 = vmatpush1.bf16.msra.mxu1 %v15212_v17  ;;  %v15236_v17 = vcombine.low %v995_v53, %v999_v1  ;;  %v1023_v53 = vld [vmem:[#allocation2 + $0x19e8] sm:$0xff]  ;;  %v252_v1 = vld [vmem:[#allocation2 + $0x1d0] sm:$0xff] }
 0x283   :  { %7286 = vmatprep.subr.bf16.mxu1 %v15221_v9  ;;  %v15245_v9 = vcombine.high %v1003_v36, %v1007_v44 }
 0x284   :  { %7391 = vmatpush1.bf16.msra.mxu0 %v14446_v19  ;;  %v14470_v19 = vcombine.low %v228_v14, %v232_v62  ;;  %v15252_v14 = vcombine.low %v1011_v49, %v1015_v29  ;;  %v14486_v62 = vcombine.low %v244_v20, %v248_v41 }
 0x285   :  { %7392 = vmatprep.subr.bf16.mxu0 %v14455_v47  ;;  %7272 = vmatmul.mubr.bf16.gmra.mrb[12].mxu1 %v18376_v12  ;;  %v14479_v47 = vcombine.high %v236_v39, %v240_v4 }
 0x286   :  { %7287 = vmatpush1.bf16.msra.mxu1 %v15220_v48  ;;  %7314 = vmatprep.mubr.bf16.mxu1 %v18380_v3  ;;  %v15244_v48 = vcombine.low %v1003_v36, %v1007_v44  ;;  %v1031_v36 = vld [vmem:[#allocation2 + $0x1a28] sm:$0xff]  ;;  %v260_v44 = vld [vmem:[#allocation2 + $0x210] sm:$0xff] }
 0x287   :  { %6954 = vmatmul.mubr.bf16.gmra.mrb[4].mxu0 %v18438_v55  ;;  %7288 = vmatprep.subr.bf16.mxu1 %v15229_v54  ;;  %v15253_v54 = vcombine.high %v1011_v49, %v1015_v29  ;;  %v1039_v49 = vld [vmem:[#allocation2 + $0x1a68] sm:$0xff]  ;;  %v268_v29 = vld [vmem:[#allocation2 + $0x250] sm:$0xff] }
 0x288   :  { %7393 = vmatpush1.bf16.msra.mxu0 %v14454_v24  ;;  %7420 = vmatprep.mubr.bf16.mxu0 %v18158_v58  ;;  %v14478_v24 = vcombine.low %v236_v39, %v240_v4 }
 0x289   :  { %7394 = vmatprep.subr.bf16.mxu0 %v14463_v50  ;;  %v14487_v50 = vcombine.high %v244_v20, %v248_v41 }
 0x28a   :  { %7289 = vmatpush1.bf16.msra.mxu1 %v15228_v18  ;;  %v1019_v18 = vld [vmem:[#allocation2 + $0x19c8] sm:$0xff] }
 0x28b   :  { %7290 = vmatprep.subr.bf16.mxu1 %v15237_v30  ;;  %v15261_v30 = vcombine.high %v1019_v18, %v1023_v53  ;;  %v15260_v39 = vcombine.low %v1019_v18, %v1023_v53  ;;  %v1047_v18 = vld [vmem:[#allocation2 + $0x1aa8] sm:$0xff]  ;;  %v276_v53 = vld [vmem:[#allocation2 + $0x290] sm:$0xff] }
 0x28c   :  { %7395 = vmatpush1.bf16.msra.mxu0 %v14462_v31  ;;  %v256_v31 = vld [vmem:[#allocation2 + $0x1f0] sm:$0xff] }
 0x28d   :  { %7396 = vmatprep.subr.bf16.mxu0 %v14471_v8  ;;  %v14495_v8 = vcombine.high %v252_v1, %v256_v31  ;;  %v14494_v4 = vcombine.low %v252_v1, %v256_v31 }
 0x28e   :  { %7291 = vmatpush1.bf16.msra.mxu1 %v15236_v17  ;;  %v1027_v17 = vld [vmem:[#allocation2 + $0x1a08] sm:$0xff] }
 0x28f   :  { %7292 = vmatprep.subr.bf16.mxu1 %v15245_v9  ;;  %v15269_v9 = vcombine.high %v1027_v17, %v1031_v36  ;;  %v15268_v20 = vcombine.low %v1027_v17, %v1031_v36  ;;  %v1055_v17 = vld [vmem:[#allocation2 + $0x1ae8] sm:$0xff]  ;;  %v284_v36 = vld [vmem:[#allocation2 + $0x2d0] sm:$0xff] }
 0x290   :  { %7397 = vmatpush1.bf16.msra.mxu0 %v14470_v19  ;;  %v264_v19 = vld [vmem:[#allocation2 + $0x230] sm:$0xff] }
 0x291   :  { %7398 = vmatprep.subr.bf16.mxu0 %v14479_v47  ;;  %v14503_v47 = vcombine.high %v260_v44, %v264_v19  ;;  %v14502_v41 = vcombine.low %v260_v44, %v264_v19 }
 0x292   :  { %7293 = vmatpush1.bf16.msra.mxu1 %v15244_v48  ;;  %v1035_v48 = vld [vmem:[#allocation2 + $0x1a48] sm:$0xff] }
 0x293   :  { %7294 = vmatprep.subr.bf16.mxu1 %v15253_v54  ;;  %v15277_v54 = vcombine.high %v1035_v48, %v1039_v49  ;;  %v15276_v1 = vcombine.low %v1035_v48, %v1039_v49  ;;  %v1063_v48 = vld [vmem:[#allocation2 + $0x1b28] sm:$0xff]  ;;  %v292_v49 = vld [vmem:[#allocation2 + $0x310] sm:$0xff] }
 0x294   :  { %7399 = vmatpush1.bf16.msra.mxu0 %v14478_v24  ;;  %v272_v24 = vld [vmem:[#allocation2 + $0x270] sm:$0xff] }
 0x295   :  { %7400 = vmatprep.subr.bf16.mxu0 %v14487_v50  ;;  %v14511_v50 = vcombine.high %v268_v29, %v272_v24  ;;  %v14510_v31 = vcombine.low %v268_v29, %v272_v24 }
 0x296   :  { %7295 = vmatpush1.bf16.msra.mxu1 %v15252_v14  ;;  %v1043_v14 = vld [vmem:[#allocation2 + $0x1a88] sm:$0xff] }
 0x297   :  { %7296 = vmatprep.subr.bf16.mxu1 %v15261_v30  ;;  %v15285_v30 = vcombine.high %v1043_v14, %v1047_v18  ;;  %v15284_v44 = vcombine.low %v1043_v14, %v1047_v18  ;;  %v1071_v14 = vld [vmem:[#allocation2 + $0x1b68] sm:$0xff]  ;;  %v300_v18 = vld [vmem:[#allocation2 + $0x350] sm:$0xff] }
 0x298   :  { %7401 = vmatpush1.bf16.msra.mxu0 %v14486_v62  ;;  %v280_v62 = vld [vmem:[#allocation2 + $0x2b0] sm:$0xff] }
 0x299   :  { %7402 = vmatprep.subr.bf16.mxu0 %v14495_v8  ;;  %v14519_v8 = vcombine.high %v276_v53, %v280_v62  ;;  %v14518_v19 = vcombine.low %v276_v53, %v280_v62 }
 0x29a   :  { %7297 = vmatpush1.bf16.msra.mxu1 %v15260_v39  ;;  %v1051_v39 = vld [vmem:[#allocation2 + $0x1ac8] sm:$0xff] }
 0x29b   :  { %7298 = vmatprep.subr.bf16.mxu1 %v15269_v9  ;;  %v15293_v9 = vcombine.high %v1051_v39, %v1055_v17  ;;  %v15292_v29 = vcombine.low %v1051_v39, %v1055_v17  ;;  %v1079_v39 = vld [vmem:[#allocation2 + $0x1ba8] sm:$0xff]  ;;  %v308_v17 = vld [vmem:[#allocation2 + $0x390] sm:$0xff] }
 0x29c   :  { %7403 = vmatpush1.bf16.msra.mxu0 %v14494_v4  ;;  %v288_v4 = vld [vmem:[#allocation2 + $0x2f0] sm:$0xff] }
 0x29d   :  { %7404 = vmatprep.subr.bf16.mxu0 %v14503_v47  ;;  %v14527_v47 = vcombine.high %v284_v36, %v288_v4  ;;  %v14526_v24 = vcombine.low %v284_v36, %v288_v4 }
 0x29e   :  { %7299 = vmatpush1.bf16.msra.mxu1 %v15268_v20  ;;  %v1059_v20 = vld [vmem:[#allocation2 + $0x1b08] sm:$0xff] }
 0x29f   :  { %7300 = vmatprep.subr.bf16.mxu1 %v15277_v54  ;;  %v15301_v54 = vcombine.high %v1059_v20, %v1063_v48  ;;  %v15300_v53 = vcombine.low %v1059_v20, %v1063_v48  ;;  %v1087_v20 = vld [vmem:[#allocation2 + $0x1be8] sm:$0xff]  ;;  %v316_v48 = vld [vmem:[#allocation2 + $0x3d0] sm:$0xff] }
 0x2a0   :  { %7405 = vmatpush1.bf16.msra.mxu0 %v14502_v41  ;;  %v296_v41 = vld [vmem:[#allocation2 + $0x330] sm:$0xff] }
 0x2a1   :  { %7406 = vmatprep.subr.bf16.mxu0 %v14511_v50  ;;  %v14535_v50 = vcombine.high %v292_v49, %v296_v41  ;;  %v14534_v62 = vcombine.low %v292_v49, %v296_v41 }
 0x2a2   :  { %7301 = vmatpush1.bf16.msra.mxu1 %v15276_v1  ;;  %v1067_v1 = vld [vmem:[#allocation2 + $0x1b48] sm:$0xff] }
 0x2a3   :  { %7302 = vmatprep.subr.bf16.mxu1 %v15285_v30  ;;  %v15309_v30 = vcombine.high %v1067_v1, %v1071_v14  ;;  %v15308_v36 = vcombine.low %v1067_v1, %v1071_v14  ;;  %v1095_v1 = vld [vmem:[#allocation2 + $0x1c28] sm:$0xff]  ;;  %v324_v14 = vld [vmem:[#allocation2 + $0x410] sm:$0xff] }
 0x2a4   :  { %7407 = vmatpush1.bf16.msra.mxu0 %v14510_v31  ;;  %v304_v31 = vld [vmem:[#allocation2 + $0x370] sm:$0xff] }
 0x2a5   :  { %7408 = vmatprep.subr.bf16.mxu0 %v14519_v8  ;;  %v14543_v8 = vcombine.high %v300_v18, %v304_v31  ;;  %v14542_v4 = vcombine.low %v300_v18, %v304_v31 }
 0x2a6   :  { %7303 = vmatpush1.bf16.msra.mxu1 %v15284_v44  ;;  %v1075_v44 = vld [vmem:[#allocation2 + $0x1b88] sm:$0xff] }
 0x2a7   :  { %7304 = vmatprep.subr.bf16.mxu1 %v15293_v9  ;;  %v15317_v9 = vcombine.high %v1075_v44, %v1079_v39  ;;  %v15316_v49 = vcombine.low %v1075_v44, %v1079_v39  ;;  %v1103_v44 = vld [vmem:[#allocation2 + $0x1c68] sm:$0xff]  ;;  %v332_v39 = vld [vmem:[#allocation2 + $0x450] sm:$0xff] }
 0x2a8   :  { %7409 = vmatpush1.bf16.msra.mxu0 %v14518_v19  ;;  %v312_v19 = vld [vmem:[#allocation2 + $0x3b0] sm:$0xff] }
 0x2a9   :  { %7410 = vmatprep.subr.bf16.mxu0 %v14527_v47  ;;  %v14551_v47 = vcombine.high %v308_v17, %v312_v19  ;;  %v14550_v41 = vcombine.low %v308_v17, %v312_v19 }
 0x2aa   :  { %7305 = vmatpush1.bf16.msra.mxu1 %v15292_v29  ;;  %v1083_v29 = vld [vmem:[#allocation2 + $0x1bc8] sm:$0xff] }
 0x2ab   :  { %7306 = vmatprep.subr.bf16.mxu1 %v15301_v54  ;;  %v15325_v54 = vcombine.high %v1083_v29, %v1087_v20  ;;  %v15324_v18 = vcombine.low %v1083_v29, %v1087_v20  ;;  %v1111_v29 = vld [vmem:[#allocation2 + $0x1ca8] sm:$0xff]  ;;  %v340_v20 = vld [vmem:[#allocation2 + $0x490] sm:$0xff] }
 0x2ac   :  { %7411 = vmatpush1.bf16.msra.mxu0 %v14526_v24  ;;  %v320_v24 = vld [vmem:[#allocation2 + $0x3f0] sm:$0xff] }
 0x2ad   :  { %7412 = vmatprep.subr.bf16.mxu0 %v14535_v50  ;;  %v14559_v50 = vcombine.high %v316_v48, %v320_v24  ;;  %v14558_v31 = vcombine.low %v316_v48, %v320_v24  ;;  %v344_v48 = vld [vmem:[#allocation2 + $0x4b0] sm:$0xff] }
 0x2ae   :  { %7307 = vmatpush1.bf16.msra.mxu1 %v15300_v53  ;;  %v1091_v53 = vld [vmem:[#allocation2 + $0x1c08] sm:$0xff] }
 0x2af   :  { %7308 = vmatprep.subr.bf16.mxu1 %v15309_v30  ;;  %v15333_v30 = vcombine.high %v1091_v53, %v1095_v1  ;;  %v15332_v17 = vcombine.low %v1091_v53, %v1095_v1  ;;  %v1115_v53 = vld [vmem:[#allocation2 + $0x1cc8] sm:$0xff] }
 0x2b0   :  { %7413 = vmatpush1.bf16.msra.mxu0 %v14534_v62  ;;  %v328_v62 = vld [vmem:[#allocation2 + $0x430] sm:$0xff]  ;;  %v1119_v1 = vld [vmem:[#allocation2 + $0x1ce8] sm:$0xff] }
 0x2b1   :  { %7414 = vmatprep.subr.bf16.mxu0 %v14543_v8  ;;  %v14567_v8 = vcombine.high %v324_v14, %v328_v62  ;;  %v14566_v19 = vcombine.low %v324_v14, %v328_v62  ;;  %v348_v14 = vld [vmem:[#allocation2 + $0x4d0] sm:$0xff] }
 0x2b2   :  { %7309 = vmatpush1.bf16.msra.mxu1 %v15308_v36  ;;  %v1099_v36 = vld [vmem:[#allocation2 + $0x1c48] sm:$0xff]  ;;  %v352_v62 = vld [vmem:[#allocation2 + $0x4f0] sm:$0xff] }
 0x2b3   :  { %7310 = vmatprep.subr.bf16.mxu1 %v15317_v9  ;;  %v15341_v9 = vcombine.high %v1099_v36, %v1103_v44  ;;  %v15340_v24 = vcombine.low %v1099_v36, %v1103_v44  ;;  %v1123_v36 = vld [vmem:[#allocation2 + $0x1d08] sm:$0xff] }
 0x2b4   :  { %7415 = vmatpush1.bf16.msra.mxu0 %v14542_v4  ;;  %v336_v4 = vld [vmem:[#allocation2 + $0x470] sm:$0xff]  ;;  %v1127_v44 = vld [vmem:[#allocation2 + $0x1d28] sm:$0xff] }
 0x2b5   :  { %7416 = vmatprep.subr.bf16.mxu0 %v14551_v47  ;;  %v14575_v47 = vcombine.high %v332_v39, %v336_v4 }
 0x2b6   :  { %7311 = vmatpush1.bf16.msra.mxu1 %v15316_v49  ;;  %v1107_v49 = vld [vmem:[#allocation2 + $0x1c88] sm:$0xff] }
 0x2b7   :  { %7312 = vmatprep.subr.bf16.mxu1 %v15325_v54  ;;  %v15349_v54 = vcombine.high %v1107_v49, %v1111_v29 }
 0x2b8   :  { %7417 = vmatpush1.bf16.msra.mxu0 %v14550_v41  ;;  %v14574_v41 = vcombine.low %v332_v39, %v336_v4  ;;  %v356_v39 = vld [vmem:[#allocation2 + $0x510] sm:$0xff] }
 0x2b9   :  { %7418 = vmatprep.subr.bf16.mxu0 %v14559_v50  ;;  %v14583_v50 = vcombine.high %v340_v20, %v344_v48  ;;  %v360_v4 = vld [vmem:[#allocation2 + $0x530] sm:$0xff] }
 0x2ba   :  { %7313 = vmatpush1.bf16.msra.mxu1 %v15324_v18  ;;  %v15348_v18 = vcombine.low %v1107_v49, %v1111_v29  ;;  %v1131_v49 = vld [vmem:[#allocation2 + $0x1d48] sm:$0xff] }
 0x2bb   :  { %7335 = vmatprep.subr.bf16.mxu1 %v15333_v30  ;;  %v15357_v30 = vcombine.high %v1115_v53, %v1119_v1  ;;  %v1135_v29 = vld [vmem:[#allocation2 + $0x1d68] sm:$0xff] }
 0x2bc   :  { %7419 = vmatpush1.bf16.msra.mxu0 %v14558_v31  ;;  %v14582_v31 = vcombine.low %v340_v20, %v344_v48  ;;  %v364_v20 = vld [vmem:[#allocation2 + $0x550] sm:$0xff] }
 0x2bd   :  { %7441 = vmatprep.subr.bf16.mxu0 %v14567_v8  ;;  %7315 = vmatmul.mubr.bf16.vlgmr.msra.gmra.mrb[8].mxu1 %v18394_v34  ;;  %v14591_v8 = vcombine.high %v348_v14, %v352_v62  ;;  %v368_v48 = vld [vmem:[#allocation2 + $0x570] sm:$0xff] }
 0x2be   :  { %7336 = vmatpush1.bf16.msra.mxu1 %v15332_v17  ;;  %7324 = vmatprep.mubr.bf16.mxu1 %v18396_v2  ;;  %v15356_v17 = vcombine.low %v1115_v53, %v1119_v1  ;;  %v1139_v53 = vld [vmem:[#allocation2 + $0x1d88] sm:$0xff] }
 0x2bf   :  { %7421 = vmatmul.mubr.bf16.vlgmr.msra.gmra.mrb[8].mxu0 %v18178_v21  ;;  %7337 = vmatprep.subr.bf16.mxu1 %v15341_v9  ;;  %v15365_v9 = vcombine.high %v1123_v36, %v1127_v44  ;;  %v1143_v1 = vld [vmem:[#allocation2 + $0x1da8] sm:$0xff] }
 0x2c0   :  { %7442 = vmatpush1.bf16.msra.mxu0 %v14566_v19  ;;  %7430 = vmatprep.mubr.bf16.mxu0 %v18196_v32  ;;  %v14590_v19 = vcombine.low %v348_v14, %v352_v62  ;;  %v372_v14 = vld [vmem:[#allocation2 + $0x590] sm:$0xff] }
 0x2c1   :  { %7443 = vmatprep.subr.bf16.mxu0 %v14575_v47  ;;  %v14599_v47 = vcombine.high %v356_v39, %v360_v4  ;;  %v376_v62 = vld [vmem:[#allocation2 + $0x5b0] sm:$0xff] }
 0x2c2   :  { %7338 = vmatpush1.bf16.msra.mxu1 %v15340_v24  ;;  %v15364_v24 = vcombine.low %v1123_v36, %v1127_v44  ;;  %v1151_v36 = vld [vmem:[#allocation2 + $0x1de8] sm:$0xff]  ;;  %v380_v44 = vld [vmem:[#allocation2 + $0x5d0] sm:$0xff] }
 0x2c3   :  { %7339 = vmatprep.subr.bf16.mxu1 %v15349_v54  ;;  %v15373_v54 = vcombine.high %v1131_v49, %v1135_v29 }
 0x2c4   :  { %7444 = vmatpush1.bf16.msra.mxu0 %v14574_v41  ;;  %v14598_v41 = vcombine.low %v356_v39, %v360_v4  ;;  %v15380_v39 = vcombine.low %v1139_v53, %v1143_v1  ;;  %v14614_v4 = vcombine.low %v372_v14, %v376_v62 }
 0x2c5   :  { %7445 = vmatprep.subr.bf16.mxu0 %v14583_v50  ;;  %7325 = vmatmul.mubr.bf16.gmra.mrb[12].mxu1 %v18412_v22  ;;  %v14607_v50 = vcombine.high %v364_v20, %v368_v48 }
 0x2c6   :  { %7340 = vmatpush1.bf16.msra.mxu1 %v15348_v18  ;;  %7367 = vmatprep.mubr.bf16.mxu1 %v18416_v37  ;;  %v15372_v18 = vcombine.low %v1131_v49, %v1135_v29  ;;  %v1159_v49 = vld [vmem:[#allocation2 + $0x1e28] sm:$0xff]  ;;  %v388_v29 = vld [vmem:[#allocation2 + $0x610] sm:$0xff] }
 0x2c7   :  { %7431 = vmatmul.mubr.bf16.gmra.mrb[12].mxu0 %v18208_v43  ;;  %7341 = vmatprep.subr.bf16.mxu1 %v15357_v30  ;;  %v15381_v30 = vcombine.high %v1139_v53, %v1143_v1  ;;  %v1167_v53 = vld [vmem:[#allocation2 + $0x1e68] sm:$0xff]  ;;  %v396_v1 = vld [vmem:[#allocation2 + $0x650] sm:$0xff] }
 0x2c8   :  { %7446 = vmatpush1.bf16.msra.mxu0 %v14582_v31  ;;  %7473 = vmatprep.mubr.bf16.mxu0 %v18172_v63  ;;  %v14606_v31 = vcombine.low %v364_v20, %v368_v48 }
 0x2c9   :  { %7447 = vmatprep.subr.bf16.mxu0 %v14591_v8  ;;  %v14615_v8 = vcombine.high %v372_v14, %v376_v62 }
 0x2ca   :  { %7342 = vmatpush1.bf16.msra.mxu1 %v15356_v17  ;;  %v1147_v17 = vld [vmem:[#allocation2 + $0x1dc8] sm:$0xff] }
 0x2cb   :  { %7343 = vmatprep.subr.bf16.mxu1 %v15365_v9  ;;  %v15389_v9 = vcombine.high %v1147_v17, %v1151_v36  ;;  %v15388_v20 = vcombine.low %v1147_v17, %v1151_v36  ;;  %v1175_v17 = vld [vmem:[#allocation2 + $0x1ea8] sm:$0xff]  ;;  %v404_v36 = vld [vmem:[#allocation2 + $0x690] sm:$0xff] }
 0x2cc   :  { %7448 = vmatpush1.bf16.msra.mxu0 %v14590_v19  ;;  %v384_v19 = vld [vmem:[#allocation2 + $0x5f0] sm:$0xff] }
 0x2cd   :  { %7449 = vmatprep.subr.bf16.mxu0 %v14599_v47  ;;  %v14623_v47 = vcombine.high %v380_v44, %v384_v19  ;;  %v14622_v48 = vcombine.low %v380_v44, %v384_v19 }
 0x2ce   :  { %7344 = vmatpush1.bf16.msra.mxu1 %v15364_v24  ;;  %v1155_v24 = vld [vmem:[#allocation2 + $0x1e08] sm:$0xff] }
 0x2cf   :  { %7345 = vmatprep.subr.bf16.mxu1 %v15373_v54  ;;  %v15397_v54 = vcombine.high %v1155_v24, %v1159_v49  ;;  %v15396_v14 = vcombine.low %v1155_v24, %v1159_v49  ;;  %v1183_v24 = vld [vmem:[#allocation2 + $0x1ee8] sm:$0xff]  ;;  %v412_v49 = vld [vmem:[#allocation2 + $0x6d0] sm:$0xff] }
 0x2d0   :  { %7450 = vmatpush1.bf16.msra.mxu0 %v14598_v41  ;;  %v392_v41 = vld [vmem:[#allocation2 + $0x630] sm:$0xff] }
 0x2d1   :  { %7451 = vmatprep.subr.bf16.mxu0 %v14607_v50  ;;  %v14631_v50 = vcombine.high %v388_v29, %v392_v41  ;;  %v14630_v62 = vcombine.low %v388_v29, %v392_v41 }
 0x2d2   :  { %7346 = vmatpush1.bf16.msra.mxu1 %v15372_v18  ;;  %v1163_v18 = vld [vmem:[#allocation2 + $0x1e48] sm:$0xff] }
 0x2d3   :  { %7347 = vmatprep.subr.bf16.mxu1 %v15381_v30  ;;  %v15405_v30 = vcombine.high %v1163_v18, %v1167_v53  ;;  %v15404_v44 = vcombine.low %v1163_v18, %v1167_v53  ;;  %v1191_v18 = vld [vmem:[#allocation2 + $0x1f28] sm:$0xff]  ;;  %v420_v53 = vld [vmem:[#allocation2 + $0x710] sm:$0xff] }
 0x2d4   :  { %7452 = vmatpush1.bf16.msra.mxu0 %v14606_v31  ;;  %v400_v31 = vld [vmem:[#allocation2 + $0x670] sm:$0xff] }
 0x2d5   :  { %7453 = vmatprep.subr.bf16.mxu0 %v14615_v8  ;;  %v14639_v8 = vcombine.high %v396_v1, %v400_v31  ;;  %v14638_v19 = vcombine.low %v396_v1, %v400_v31 }
 0x2d6   :  { %7348 = vmatpush1.bf16.msra.mxu1 %v15380_v39  ;;  %v1171_v39 = vld [vmem:[#allocation2 + $0x1e88] sm:$0xff] }
 0x2d7   :  { %7349 = vmatprep.subr.bf16.mxu1 %v15389_v9  ;;  %v15413_v9 = vcombine.high %v1171_v39, %v1175_v17  ;;  %v15412_v29 = vcombine.low %v1171_v39, %v1175_v17  ;;  %v1199_v39 = vld [vmem:[#allocation2 + $0x1f68] sm:$0xff]  ;;  %v428_v17 = vld [vmem:[#allocation2 + $0x750] sm:$0xff] }
 0x2d8   :  { %7454 = vmatpush1.bf16.msra.mxu0 %v14614_v4  ;;  %v408_v4 = vld [vmem:[#allocation2 + $0x6b0] sm:$0xff] }
 0x2d9   :  { %7455 = vmatprep.subr.bf16.mxu0 %v14623_v47  ;;  %v14647_v47 = vcombine.high %v404_v36, %v408_v4  ;;  %v14646_v41 = vcombine.low %v404_v36, %v408_v4 }
 0x2da   :  { %7350 = vmatpush1.bf16.msra.mxu1 %v15388_v20  ;;  %v1179_v20 = vld [vmem:[#allocation2 + $0x1ec8] sm:$0xff] }
 0x2db   :  { %7351 = vmatprep.subr.bf16.mxu1 %v15397_v54  ;;  %v15421_v54 = vcombine.high %v1179_v20, %v1183_v24  ;;  %v15420_v1 = vcombine.low %v1179_v20, %v1183_v24  ;;  %v1207_v20 = vld [vmem:[#allocation2 + $0x1fa8] sm:$0xff]  ;;  %v436_v24 = vld [vmem:[#allocation2 + $0x790] sm:$0xff] }
 0x2dc   :  { %7456 = vmatpush1.bf16.msra.mxu0 %v14622_v48  ;;  %v416_v48 = vld [vmem:[#allocation2 + $0x6f0] sm:$0xff] }
 0x2dd   :  { %7457 = vmatprep.subr.bf16.mxu0 %v14631_v50  ;;  %v14655_v50 = vcombine.high %v412_v49, %v416_v48  ;;  %v14654_v31 = vcombine.low %v412_v49, %v416_v48 }
 0x2de   :  { %7352 = vmatpush1.bf16.msra.mxu1 %v15396_v14  ;;  %v1187_v14 = vld [vmem:[#allocation2 + $0x1f08] sm:$0xff] }
 0x2df   :  { %7353 = vmatprep.subr.bf16.mxu1 %v15405_v30  ;;  %v15429_v30 = vcombine.high %v1187_v14, %v1191_v18  ;;  %v15428_v36 = vcombine.low %v1187_v14, %v1191_v18  ;;  %v1215_v14 = vld [vmem:[#allocation2 + $0x1fe8] sm:$0xff]  ;;  %v444_v18 = vld [vmem:[#allocation2 + $0x7d0] sm:$0xff] }
 0x2e0   :  { %7458 = vmatpush1.bf16.msra.mxu0 %v14630_v62  ;;  %v424_v62 = vld [vmem:[#allocation2 + $0x730] sm:$0xff] }
 0x2e1   :  { %7459 = vmatprep.subr.bf16.mxu0 %v14639_v8  ;;  %v14663_v8 = vcombine.high %v420_v53, %v424_v62  ;;  %v14662_v4 = vcombine.low %v420_v53, %v424_v62 }
 0x2e2   :  { %7354 = vmatpush1.bf16.msra.mxu1 %v15404_v44  ;;  %v1195_v44 = vld [vmem:[#allocation2 + $0x1f48] sm:$0xff] }
 0x2e3   :  { %7355 = vmatprep.subr.bf16.mxu1 %v15413_v9  ;;  %v15437_v9 = vcombine.high %v1195_v44, %v1199_v39  ;;  %v15436_v49 = vcombine.low %v1195_v44, %v1199_v39  ;;  %v201_v44 = vld [vmem:[#allocation2 + $0x38] sm:$0xff]  ;;  %v452_v39 = vld [vmem:[#allocation2 + $0x810] sm:$0xff] }
 0x2e4   :  { %7460 = vmatpush1.bf16.msra.mxu0 %v14638_v19  ;;  %v432_v19 = vld [vmem:[#allocation2 + $0x770] sm:$0xff] }
 0x2e5   :  { %7461 = vmatprep.subr.bf16.mxu0 %v14647_v47  ;;  %v14671_v47 = vcombine.high %v428_v17, %v432_v19  ;;  %v14670_v48 = vcombine.low %v428_v17, %v432_v19 }
 0x2e6   :  { %7356 = vmatpush1.bf16.msra.mxu1 %v15412_v29  ;;  %v1203_v29 = vld [vmem:[#allocation2 + $0x1f88] sm:$0xff] }
 0x2e7   :  { %7357 = vmatprep.subr.bf16.mxu1 %v15421_v54  ;;  %v15445_v54 = vcombine.high %v1203_v29, %v1207_v20  ;;  %v15444_v53 = vcombine.low %v1203_v29, %v1207_v20  ;;  %v209_v29 = vld [vmem:[#allocation2 + $0x78] sm:$0xff]  ;;  %v460_v20 = vld [vmem:[#allocation2 + $0x850] sm:$0xff] }
 0x2e8   :  { %7462 = vmatpush1.bf16.msra.mxu0 %v14646_v41  ;;  %v440_v41 = vld [vmem:[#allocation2 + $0x7b0] sm:$0xff] }
 0x2e9   :  { %7463 = vmatprep.subr.bf16.mxu0 %v14655_v50  ;;  %v14679_v50 = vcombine.high %v436_v24, %v440_v41  ;;  %v14678_v62 = vcombine.low %v436_v24, %v440_v41 }
 0x2ea   :  { %7358 = vmatpush1.bf16.msra.mxu1 %v15420_v1  ;;  %v1211_v1 = vld [vmem:[#allocation2 + $0x1fc8] sm:$0xff] }
 0x2eb   :  { %7359 = vmatprep.subr.bf16.mxu1 %v15429_v30  ;;  %v15453_v30 = vcombine.high %v1211_v1, %v1215_v14  ;;  %v15452_v17 = vcombine.low %v1211_v1, %v1215_v14  ;;  %v217_v1 = vld [vmem:[#allocation2 + $0xb8] sm:$0xff]  ;;  %v468_v14 = vld [vmem:[#allocation2 + $0x890] sm:$0xff] }
 0x2ec   :  { %7464 = vmatpush1.bf16.msra.mxu0 %v14654_v31  ;;  %v448_v31 = vld [vmem:[#allocation2 + $0x7f0] sm:$0xff] }
 0x2ed   :  { %7465 = vmatprep.subr.bf16.mxu0 %v14663_v8  ;;  %v14687_v8 = vcombine.high %v444_v18, %v448_v31  ;;  %v14686_v19 = vcombine.low %v444_v18, %v448_v31  ;;  %v472_v18 = vld [vmem:[#allocation2 + $0x8b0] sm:$0xff] }
 0x2ee   :  { %7360 = vmatpush1.bf16.msra.mxu1 %v15428_v36  ;;  %v197_v36 = vld [vmem:[#allocation2 + $0x18] sm:$0xff] }
 0x2ef   :  { %7361 = vmatprep.subr.bf16.mxu1 %v15437_v9  ;;  %v14441_v9 = vcombine.high %v197_v36, %v201_v44  ;;  %v14440_v24 = vcombine.low %v197_v36, %v201_v44  ;;  %v221_v36 = vld [vmem:[#allocation2 + $0xd8] sm:$0xff] }
 0x2f0   :  { %7466 = vmatpush1.bf16.msra.mxu0 %v14662_v4  ;;  %v456_v4 = vld [vmem:[#allocation2 + $0x830] sm:$0xff]  ;;  %v225_v44 = vld [vmem:[#allocation2 + $0xf8] sm:$0xff] }
 0x2f1   :  { %7467 = vmatprep.subr.bf16.mxu0 %v14671_v47  ;;  %v14695_v47 = vcombine.high %v452_v39, %v456_v4  ;;  %v14694_v41 = vcombine.low %v452_v39, %v456_v4  ;;  %v476_v39 = vld [vmem:[#allocation2 + $0x8d0] sm:$0xff] }
 0x2f2   :  { %7362 = vmatpush1.bf16.msra.mxu1 %v15436_v49  ;;  %v205_v49 = vld [vmem:[#allocation2 + $0x58] sm:$0xff]  ;;  %v480_v4 = vld [vmem:[#allocation2 + $0x8f0] sm:$0xff] }
 0x2f3   :  { %7363 = vmatprep.subr.bf16.mxu1 %v15445_v54  ;;  %v14449_v54 = vcombine.high %v205_v49, %v209_v29  ;;  %v14448_v31 = vcombine.low %v205_v49, %v209_v29  ;;  %v229_v49 = vld [vmem:[#allocation2 + $0x118] sm:$0xff] }
 0x2f4   :  { %7468 = vmatpush1.bf16.msra.mxu0 %v14670_v48  ;;  %v464_v48 = vld [vmem:[#allocation2 + $0x870] sm:$0xff]  ;;  %v233_v29 = vld [vmem:[#allocation2 + $0x138] sm:$0xff] }
 0x2f5   :  { %7469 = vmatprep.subr.bf16.mxu0 %v14679_v50  ;;  %v14703_v50 = vcombine.high %v460_v20, %v464_v48 }
 0x2f6   :  { %7364 = vmatpush1.bf16.msra.mxu1 %v15444_v53  ;;  %v213_v53 = vld [vmem:[#allocation2 + $0x98] sm:$0xff] }
 0x2f7   :  { %7365 = vmatprep.subr.bf16.mxu1 %v15453_v30  ;;  %v14457_v30 = vcombine.high %v213_v53, %v217_v1 }
 0x2f8   :  { %7470 = vmatpush1.bf16.msra.mxu0 %v14678_v62  ;;  %v14702_v62 = vcombine.low %v460_v20, %v464_v48  ;;  %v484_v20 = vld [vmem:[#allocation2 + $0x910] sm:$0xff] }
 0x2f9   :  { %7471 = vmatprep.subr.bf16.mxu0 %v14687_v8  ;;  %v14711_v8 = vcombine.high %v468_v14, %v472_v18  ;;  %v488_v48 = vld [vmem:[#allocation2 + $0x930] sm:$0xff] }
 0x2fa   :  { %7366 = vmatpush1.bf16.msra.mxu1 %v15452_v17  ;;  %v14456_v17 = vcombine.low %v213_v53, %v217_v1  ;;  %v237_v53 = vld [vmem:[#allocation2 + $0x158] sm:$0xff] }
 0x2fb   :  { %7812 = vmatprep.subr.bf16.mxu1 %v14441_v9  ;;  %v14465_v9 = vcombine.high %v221_v36, %v225_v44  ;;  %v241_v1 = vld [vmem:[#allocation2 + $0x178] sm:$0xff] }
 0x2fc   :  { %7472 = vmatpush1.bf16.msra.mxu0 %v14686_v19  ;;  %v14710_v19 = vcombine.low %v468_v14, %v472_v18  ;;  %v492_v14 = vld [vmem:[#allocation2 + $0x950] sm:$0xff] }
 0x2fd   :  { %7494 = vmatprep.subr.bf16.mxu0 %v14695_v47  ;;  %7368 = vmatmul.mubr.bf16.vlgmr.msra.gmra.mrb[8].mxu1 %v18430_v59  ;;  %v14719_v47 = vcombine.high %v476_v39, %v480_v4  ;;  %v496_v18 = vld [vmem:[#allocation2 + $0x970] sm:$0xff] }
 0x2fe   :  { %7813 = vmatpush1.bf16.msra.mxu1 %v14440_v24  ;;  %7377 = vmatprep.mubr.bf16.mxu1 %v18432_v5  ;;  %v14464_v24 = vcombine.low %v221_v36, %v225_v44  ;;  %v245_v36 = vld [vmem:[#allocation2 + $0x198] sm:$0xff] }
 0x2ff   :  { %7474 = vmatmul.mubr.bf16.vlgmr.msra.gmra.mrb[8].mxu0 %v18188_v26  ;;  %7814 = vmatprep.subr.bf16.mxu1 %v14449_v54  ;;  %v14473_v54 = vcombine.high %v229_v49, %v233_v29  ;;  %v249_v44 = vld [vmem:[#allocation2 + $0x1b8] sm:$0xff] }
 0x300   :  { %7495 = vmatpush1.bf16.msra.mxu0 %v14694_v41  ;;  %7483 = vmatprep.mubr.bf16.mxu0 %v18199_v33  ;;  %v14718_v41 = vcombine.low %v476_v39, %v480_v4  ;;  %v500_v39 = vld [vmem:[#allocation2 + $0x990] sm:$0xff]  ;;  %v393_v5 = vld [vmem:[#allocation2 + $0x638] sm:$0xff] }
 0x301   :  { %7496 = vmatprep.subr.bf16.mxu0 %v14703_v50  ;;  %v14727_v50 = vcombine.high %v484_v20, %v488_v48  ;;  %v504_v4 = vld [vmem:[#allocation2 + $0x9b0] sm:$0xff] }
 0x302   :  { %7815 = vmatpush1.bf16.msra.mxu1 %v14448_v31  ;;  %v14472_v31 = vcombine.low %v229_v49, %v233_v29  ;;  %v257_v49 = vld [vmem:[#allocation2 + $0x1f8] sm:$0xff]  ;;  %v508_v29 = vld [vmem:[#allocation2 + $0x9d0] sm:$0xff] }
 0x303   :  { %7816 = vmatprep.subr.bf16.mxu1 %v14457_v30  ;;  %v14481_v30 = vcombine.high %v237_v53, %v241_v1 }
 0x304   :  { %7497 = vmatpush1.bf16.msra.mxu0 %v14702_v62  ;;  %v14726_v62 = vcombine.low %v484_v20, %v488_v48  ;;  %v512_v20 = vld [vmem:[#allocation2 + $0x9f0] sm:$0xff]  ;;  %v14488_v48 = vcombine.low %v245_v36, %v249_v44 }
 0x305   :  { %7498 = vmatprep.subr.bf16.mxu0 %v14711_v8  ;;  %7378 = vmatmul.mubr.bf16.gmra.mrb[12].mxu1 %v18438_v55  ;;  %v14735_v8 = vcombine.high %v492_v14, %v496_v18 }
 0x306   :  { %7817 = vmatpush1.bf16.msra.mxu1 %v14456_v17  ;;  %7844 = vmatprep.mubr.bf16.mxu1 %v18158_v58  ;;  %v14480_v17 = vcombine.low %v237_v53, %v241_v1  ;;  %v14743_v58 = vcombine.high %v500_v39, %v504_v4  ;;  %v265_v53 = vld [vmem:[#allocation2 + $0x238] sm:$0xff]  ;;  %v516_v1 = vld [vmem:[#allocation2 + $0xa10] sm:$0xff] }
 0x307   :  { %7484 = vmatmul.mubr.bf16.gmra.mrb[12].mxu0 %v18216_v46  ;;  %7818 = vmatprep.subr.bf16.mxu1 %v14465_v9  ;;  %v14489_v9 = vcombine.high %v245_v36, %v249_v44  ;;  %v273_v36 = vld [vmem:[#allocation2 + $0x278] sm:$0xff]  ;;  %v524_v44 = vld [vmem:[#allocation2 + $0xa50] sm:$0xff] }
 0x308   :  { %7499 = vmatpush1.bf16.msra.mxu0 %v14710_v19  ;;  %7526 = vmatprep.mubr.bf16.mxu0 %v18220_v56  ;;  %v14734_v19 = vcombine.low %v492_v14, %v496_v18  ;;  %v520_v14 = vld [vmem:[#allocation2 + $0xa30] sm:$0xff] }
 0x309   :  { %7500 = vmatprep.subr.bf16.mxu0 %v14719_v47  ;;  %v253_v47 = vld [vmem:[#allocation2 + $0x1d8] sm:$0xff] }
 0x30a   :  { %7819 = vmatpush1.bf16.msra.mxu1 %v14464_v24  ;;  %v14742_v24 = vcombine.low %v500_v39, %v504_v4  ;;  %v14496_v18 = vcombine.low %v253_v47, %v257_v49  ;;  %v528_v39 = vld [vmem:[#allocation2 + $0xa70] sm:$0xff] }
 0x30b   :  { %7820 = vmatprep.subr.bf16.mxu1 %v14473_v54  ;;  %v14751_v54 = vcombine.high %v508_v29, %v512_v20 }
 0x30c   :  { %7501 = vmatpush1.bf16.msra.mxu0 %v14718_v41  ;;  %v14497_v41 = vcombine.high %v253_v47, %v257_v49  ;;  %v281_v47 = vld [vmem:[#allocation2 + $0x2b8] sm:$0xff]  ;;  %v532_v49 = vld [vmem:[#allocation2 + $0xa90] sm:$0xff] }
 0x30d   :  { %7502 = vmatprep.subr.bf16.mxu0 %v14727_v50  ;;  %v261_v50 = vld [vmem:[#allocation2 + $0x218] sm:$0xff] }
 0x30e   :  { %7821 = vmatpush1.bf16.msra.mxu1 %v14472_v31  ;;  %v14750_v31 = vcombine.low %v508_v29, %v512_v20  ;;  %v14504_v4 = vcombine.low %v261_v50, %v265_v53  ;;  %v536_v29 = vld [vmem:[#allocation2 + $0xab0] sm:$0xff] }
 0x30f   :  { %7822 = vmatprep.subr.bf16.mxu1 %v14481_v30  ;;  %v14759_v30 = vcombine.high %v516_v1, %v520_v14 }
 0x310   :  { %7503 = vmatpush1.bf16.msra.mxu0 %v14726_v62  ;;  %v14505_v62 = vcombine.high %v261_v50, %v265_v53  ;;  %v289_v50 = vld [vmem:[#allocation2 + $0x2f8] sm:$0xff]  ;;  %v540_v53 = vld [vmem:[#allocation2 + $0xad0] sm:$0xff] }
 0x311   :  { %7504 = vmatprep.subr.bf16.mxu0 %v14735_v8  ;;  %v269_v8 = vld [vmem:[#allocation2 + $0x258] sm:$0xff] }
 0x312   :  { %7823 = vmatpush1.bf16.msra.mxu1 %v14480_v17  ;;  %v14758_v17 = vcombine.low %v516_v1, %v520_v14  ;;  %v14512_v20 = vcombine.low %v269_v8, %v273_v36  ;;  %v544_v1 = vld [vmem:[#allocation2 + $0xaf0] sm:$0xff] }
 0x313   :  { %7824 = vmatprep.subr.bf16.mxu1 %v14489_v9  ;;  %v14767_v9 = vcombine.high %v524_v44, %v528_v39 }
 0x314   :  { %7505 = vmatpush1.bf16.msra.mxu0 %v14734_v19  ;;  %v14513_v19 = vcombine.high %v269_v8, %v273_v36  ;;  %v297_v8 = vld [vmem:[#allocation2 + $0x338] sm:$0xff]  ;;  %v548_v36 = vld [vmem:[#allocation2 + $0xb10] sm:$0xff] }
 0x315   :  { %7506 = vmatprep.subr.bf16.mxu0 %v14743_v58  ;;  %v277_v58 = vld [vmem:[#allocation2 + $0x298] sm:$0xff] }
 0x316   :  { %7825 = vmatpush1.bf16.msra.mxu1 %v14488_v48  ;;  %v14766_v48 = vcombine.low %v524_v44, %v528_v39  ;;  %v14520_v14 = vcombine.low %v277_v58, %v281_v47  ;;  %v552_v44 = vld [vmem:[#allocation2 + $0xb30] sm:$0xff] }
 0x317   :  { %7826 = vmatprep.subr.bf16.mxu1 %v14497_v41  ;;  %v14775_v41 = vcombine.high %v532_v49, %v536_v29 }
 0x318   :  { %7507 = vmatpush1.bf16.msra.mxu0 %v14742_v24  ;;  %v14521_v24 = vcombine.high %v277_v58, %v281_v47  ;;  %v305_v58 = vld [vmem:[#allocation2 + $0x378] sm:$0xff]  ;;  %v556_v47 = vld [vmem:[#allocation2 + $0xb50] sm:$0xff] }
 0x319   :  { %7508 = vmatprep.subr.bf16.mxu0 %v14751_v54  ;;  %v285_v54 = vld [vmem:[#allocation2 + $0x2d8] sm:$0xff] }
 0x31a   :  { %7827 = vmatpush1.bf16.msra.mxu1 %v14496_v18  ;;  %v14774_v18 = vcombine.low %v532_v49, %v536_v29  ;;  %v14528_v39 = vcombine.low %v285_v54, %v289_v50  ;;  %v560_v49 = vld [vmem:[#allocation2 + $0xb70] sm:$0xff] }
 0x31b   :  { %7828 = vmatprep.subr.bf16.mxu1 %v14505_v62  ;;  %v14783_v62 = vcombine.high %v540_v53, %v544_v1 }
 0x31c   :  { %7509 = vmatpush1.bf16.msra.mxu0 %v14750_v31  ;;  %v14529_v31 = vcombine.high %v285_v54, %v289_v50  ;;  %v313_v54 = vld [vmem:[#allocation2 + $0x3b8] sm:$0xff]  ;;  %v564_v50 = vld [vmem:[#allocation2 + $0xb90] sm:$0xff] }
 0x31d   :  { %7510 = vmatprep.subr.bf16.mxu0 %v14759_v30  ;;  %v293_v30 = vld [vmem:[#allocation2 + $0x318] sm:$0xff] }
 0x31e   :  { %7829 = vmatpush1.bf16.msra.mxu1 %v14504_v4  ;;  %v14782_v4 = vcombine.low %v540_v53, %v544_v1  ;;  %v14536_v29 = vcombine.low %v293_v30, %v297_v8  ;;  %v568_v53 = vld [vmem:[#allocation2 + $0xbb0] sm:$0xff] }
 0x31f   :  { %7830 = vmatprep.subr.bf16.mxu1 %v14513_v19  ;;  %v14791_v19 = vcombine.high %v548_v36, %v552_v44 }
 0x320   :  { %7511 = vmatpush1.bf16.msra.mxu0 %v14758_v17  ;;  %v14537_v17 = vcombine.high %v293_v30, %v297_v8  ;;  %v321_v30 = vld [vmem:[#allocation2 + $0x3f8] sm:$0xff]  ;;  %v572_v8 = vld [vmem:[#allocation2 + $0xbd0] sm:$0xff] }
 0x321   :  { %7512 = vmatprep.subr.bf16.mxu0 %v14767_v9  ;;  %v301_v9 = vld [vmem:[#allocation2 + $0x358] sm:$0xff] }
 0x322   :  { %7831 = vmatpush1.bf16.msra.mxu1 %v14512_v20  ;;  %v14790_v20 = vcombine.low %v548_v36, %v552_v44  ;;  %v14544_v1 = vcombine.low %v301_v9, %v305_v58  ;;  %v576_v36 = vld [vmem:[#allocation2 + $0xbf0] sm:$0xff] }
 0x323   :  { %7832 = vmatprep.subr.bf16.mxu1 %v14521_v24  ;;  %v14799_v24 = vcombine.high %v556_v47, %v560_v49 }
 0x324   :  { %7513 = vmatpush1.bf16.msra.mxu0 %v14766_v48  ;;  %v14545_v48 = vcombine.high %v301_v9, %v305_v58  ;;  %v329_v9 = vld [vmem:[#allocation2 + $0x438] sm:$0xff]  ;;  %v580_v58 = vld [vmem:[#allocation2 + $0xc10] sm:$0xff] }
 0x325   :  { %7514 = vmatprep.subr.bf16.mxu0 %v14775_v41  ;;  %v309_v41 = vld [vmem:[#allocation2 + $0x398] sm:$0xff] }
 0x326   :  { %7833 = vmatpush1.bf16.msra.mxu1 %v14520_v14  ;;  %v14798_v14 = vcombine.low %v556_v47, %v560_v49  ;;  %v14552_v44 = vcombine.low %v309_v41, %v313_v54  ;;  %v584_v47 = vld [vmem:[#allocation2 + $0xc30] sm:$0xff] }
 0x327   :  { %7834 = vmatprep.subr.bf16.mxu1 %v14529_v31  ;;  %v14807_v31 = vcombine.high %v564_v50, %v568_v53 }
 0x328   :  { %7515 = vmatpush1.bf16.msra.mxu0 %v14774_v18  ;;  %v14553_v18 = vcombine.high %v309_v41, %v313_v54  ;;  %v337_v41 = vld [vmem:[#allocation2 + $0x478] sm:$0xff]  ;;  %v588_v54 = vld [vmem:[#allocation2 + $0xc50] sm:$0xff] }
 0x329   :  { %7516 = vmatprep.subr.bf16.mxu0 %v14783_v62  ;;  %v317_v62 = vld [vmem:[#allocation2 + $0x3d8] sm:$0xff] }
 0x32a   :  { %7835 = vmatpush1.bf16.msra.mxu1 %v14528_v39  ;;  %v14806_v39 = vcombine.low %v564_v50, %v568_v53  ;;  %v14560_v49 = vcombine.low %v317_v62, %v321_v30  ;;  %v592_v50 = vld [vmem:[#allocation2 + $0xc70] sm:$0xff] }
 0x32b   :  { %7836 = vmatprep.subr.bf16.mxu1 %v14537_v17  ;;  %v14815_v17 = vcombine.high %v572_v8, %v576_v36 }
 0x32c   :  { %7517 = vmatpush1.bf16.msra.mxu0 %v14782_v4  ;;  %v14561_v4 = vcombine.high %v317_v62, %v321_v30  ;;  %v345_v62 = vld [vmem:[#allocation2 + $0x4b8] sm:$0xff]  ;;  %v596_v30 = vld [vmem:[#allocation2 + $0xc90] sm:$0xff] }
 0x32d   :  { %7518 = vmatprep.subr.bf16.mxu0 %v14791_v19  ;;  %v325_v19 = vld [vmem:[#allocation2 + $0x418] sm:$0xff] }
 0x32e   :  { %7837 = vmatpush1.bf16.msra.mxu1 %v14536_v29  ;;  %v14814_v29 = vcombine.low %v572_v8, %v576_v36  ;;  %v14568_v53 = vcombine.low %v325_v19, %v329_v9  ;;  %v600_v8 = vld [vmem:[#allocation2 + $0xcb0] sm:$0xff] }
 0x32f   :  { %7838 = vmatprep.subr.bf16.mxu1 %v14545_v48  ;;  %v14823_v48 = vcombine.high %v580_v58, %v584_v47 }
 0x330   :  { %7519 = vmatpush1.bf16.msra.mxu0 %v14790_v20  ;;  %v14569_v20 = vcombine.high %v325_v19, %v329_v9  ;;  %v349_v19 = vld [vmem:[#allocation2 + $0x4d8] sm:$0xff] }
 0x331   :  { %7520 = vmatprep.subr.bf16.mxu0 %v14799_v24  ;;  %v333_v24 = vld [vmem:[#allocation2 + $0x458] sm:$0xff] }
 0x332   :  { %7839 = vmatpush1.bf16.msra.mxu1 %v14544_v1  ;;  %v14822_v1 = vcombine.low %v580_v58, %v584_v47  ;;  %v14576_v36 = vcombine.low %v333_v24, %v337_v41  ;;  %v353_v9 = vld [vmem:[#allocation2 + $0x4f8] sm:$0xff]  ;;  %v604_v58 = vld [vmem:[#allocation2 + $0xcd0] sm:$0xff] }
 0x333   :  { %7840 = vmatprep.subr.bf16.mxu1 %v14553_v18  ;;  %v14831_v18 = vcombine.high %v588_v54, %v592_v50  ;;  %v608_v47 = vld [vmem:[#allocation2 + $0xcf0] sm:$0xff] }
 0x334   :  { %7521 = vmatpush1.bf16.msra.mxu0 %v14798_v14  ;;  %v14577_v14 = vcombine.high %v333_v24, %v337_v41  ;;  %v357_v24 = vld [vmem:[#allocation2 + $0x518] sm:$0xff] }
 0x335   :  { %7522 = vmatprep.subr.bf16.mxu0 %v14807_v31  ;;  %v341_v31 = vld [vmem:[#allocation2 + $0x498] sm:$0xff] }
 0x336   :  { %7841 = vmatpush1.bf16.msra.mxu1 %v14552_v44  ;;  %v14830_v44 = vcombine.low %v588_v54, %v592_v50  ;;  %v361_v41 = vld [vmem:[#allocation2 + $0x538] sm:$0xff]  ;;  %v612_v54 = vld [vmem:[#allocation2 + $0xd10] sm:$0xff] }
 0x337   :  { %7842 = vmatprep.subr.bf16.mxu1 %v14561_v4  ;;  %v1220_v4 = vlaneseq  ;;  %v616_v50 = vld [vmem:[#allocation2 + $0xd30] sm:$0xff] }
 0x338   :  { %7523 = vmatpush1.bf16.msra.mxu0 %v14806_v39  ;;  %v14585_v39 = vcombine.high %v341_v31, %v345_v62 }
 0x339   :  { %7524 = vmatprep.subr.bf16.mxu0 %v14815_v17  ;;  %v14839_v17 = vcombine.high %v596_v30, %v600_v8 }
 0x33a   :  { %7843 = vmatpush1.bf16.msra.mxu1 %v14560_v49  ;;  %v14838_v49 = vcombine.low %v596_v30, %v600_v8  ;;  %v1218_v30 = vld [vmem:[#allocation5] sm:$0xff]  ;;  %v620_v8 = vld [vmem:[#allocation2 + $0xd50] sm:$0xff] }
 0x33b   :  { %7865 = vmatprep.subr.bf16.mxu1 %v14569_v20  ;;  %v18464_v20 = vshrl.u32 %v1220_v4, 7 }
 0x33c   :  { %7525 = vmatpush1.bf16.msra.mxu0 %v14814_v29  ;;  %v14593_v29 = vcombine.high %v349_v19, %v353_v9 }
 0x33d   :  { %7547 = vmatprep.subr.bf16.mxu0 %v14823_v48  ;;  %7845 = vmatmul.mubr.bf16.vlgmr.msra.gmra.mrb[16].mxu1 %v18178_v21  ;;  %v14584_v21 = vcombine.low %v341_v31, %v345_v62  ;;  %v14847_v48 = vcombine.high %v604_v58, %v608_v47  ;;  %v365_v31 = vld [vmem:[#allocation2 + $0x558] sm:$0xff] }
 0x33e   :  { %7866 = vmatpush1.bf16.msra.mxu1 %v14568_v53  ;;  %7854 = vmatprep.mubr.bf16.mxu1 %v18196_v32  ;;  %v14592_v53 = vcombine.low %v349_v19, %v353_v9  ;;  %v14846_v32 = vcombine.low %v604_v58, %v608_v47  ;;  %v369_v62 = vld [vmem:[#allocation2 + $0x578] sm:$0xff] }
 0x33f   :  { %7527 = vmatmul.mubr.bf16.vlgmr.msra.gmra.mrb[8].mxu0 %v18234_v57  ;;  %7867 = vmatprep.subr.bf16.mxu1 %v14577_v14  ;;  %v18469_v14 = vsub.s32 0, %v18464_v20  ;;  %v14609_v4 = vcombine.high %v365_v31, %v369_v62  ;;  %v373_v9 = vld [vmem:[#allocation2 + $0x598] sm:$0xff] }
 0x340   :  { %7548 = vmatpush1.bf16.msra.mxu0 %v14822_v1  ;;  %7536 = vmatprep.mubr.bf16.mxu0 %v18236_v6  ;;  %v14601_v1 = vcombine.high %v357_v24, %v361_v41  ;;  %v377_v58 = vld [vmem:[#allocation2 + $0x5b8] sm:$0xff] }
 0x341   :  { %7549 = vmatprep.subr.bf16.mxu0 %v14831_v18  ;;  %v14855_v18 = vcombine.high %v612_v54, %v616_v50 }
 0x342   :  { %7868 = vmatpush1.bf16.msra.mxu1 %v14576_v36  ;;  %v624_v36 = vld [vmem:[#allocation2 + $0xd70] sm:$0xff] }
 0x343   :  { %7869 = vmatprep.subr.bf16.mxu1 %v14585_v39  ;;  %v14854_v39 = vcombine.low %v612_v54, %v616_v50  ;;  %v14863_v19 = vcombine.high %v620_v8, %v624_v36  ;;  %v381_v54 = vld [vmem:[#allocation2 + $0x5d8] sm:$0xff] }
 0x344   :  { %7550 = vmatpush1.bf16.msra.mxu0 %v14830_v44  ;;  %v14600_v44 = vcombine.low %v357_v24, %v361_v41  ;;  %v385_v50 = vld [vmem:[#allocation2 + $0x5f8] sm:$0xff] }
 0x345   :  { %7551 = vmatprep.subr.bf16.mxu0 %v14839_v17  ;;  %7855 = vmatmul.mubr.bf16.gmra.mrb[20].mxu1 %v18208_v43  ;;  %v18473_v43 = vsub.s32 1, %v18464_v20  ;;  %v1223_v17 = vrot.slane %v1218_v30, %v18469_v14 }
 0x346   :  { %7870 = vmatpush1.bf16.msra.mxu1 %v14584_v21  ;;  %7897 = vmatprep.mubr.bf16.mxu1 %v18172_v63  ;;  %v628_v21 = vld [vmem:[#allocation2 + $0xd90] sm:$0xff]  ;;  %v14862_v63 = vcombine.low %v620_v8, %v624_v36  ;;  %v14616_v8 = vcombine.low %v373_v9, %v377_v58 }
 0x347   :  { %7537 = vmatmul.mubr.bf16.gmra.mrb[12].mxu0 %v18252_v16  ;;  %7871 = vmatprep.subr.bf16.mxu1 %v14593_v29  ;;  %v1227_v47 = vrot.slane %v1218_v30, %v18473_v43  ;;  %v14608_v29 = vcombine.low %v365_v31, %v369_v62  ;;  %v6575_v24 = vadd.f32 %v18334_v35, %v1223_v17 }
 0x348   :  { %7552 = vmatpush1.bf16.msra.mxu0 %v14838_v49  ;;  %7579 = vmatprep.mubr.bf16.mxu0 %v18256_v25  ;;  %v632_v49 = vld [vmem:[#allocation2 + $0xdb0] sm:$0xff]  ;;  %v6579_v30 = vadd.f32 %v18338_v61, %v1223_v17  ;;  %v389_v61 = vld [vmem:[#allocation2 + $0x618] sm:$0xff] }
 0x349   :  { %7553 = vmatprep.subr.bf16.mxu0 %v14847_v48  ;;  %v14617_v48 = vcombine.high %v373_v9, %v377_v58  ;;  %v14871_v41 = vcombine.high %v628_v21, %v632_v49  ;;  %v14624_v58 = vcombine.low %v381_v54, %v385_v50 }
 0x34a   :  { %7872 = vmatpush1.bf16.msra.mxu1 %v14592_v53  ;;  %v6577_v53 = vadd.f32 %v18336_v52, %v1227_v47 }
 0x34b   :  { %7873 = vmatprep.subr.bf16.mxu1 %v14601_v1  ;;  %v636_v1 = vld [vmem:[#allocation2 + $0xdd0] sm:$0xff] }
 0x34c   :  { %7554 = vmatpush1.bf16.msra.mxu0 %v14846_v32 }
 0x34d   :  { %7555 = vmatprep.subr.bf16.mxu0 %v14855_v18  ;;  %v640_v18 = vld [vmem:[#allocation2 + $0xdf0] sm:$0xff] }
 0x34e   :  { %7874 = vmatpush1.bf16.msra.mxu1 %v14600_v44  ;;  %v6581_v44 = vadd.f32 %v18340_v40, %v1227_v47  ;;  %v14879_v55 = vcombine.high %v636_v1, %v640_v18 }
 0x34f   :  { %7875 = vmatprep.subr.bf16.mxu1 %v14609_v4  ;;  %v14625_v4 = vcombine.high %v381_v54, %v385_v50  ;;  %v6589_v54 = vadd.f32 %v18346_v15, %v1223_v17  ;;  %v6591_v50 = vadd.f32 %v18348_v23, %v1227_v47  ;;  %v660_v15 = vld [vmem:[#allocation2 + $0xe90] sm:$0xff]  ;;  %v405_v23 = vld [vmem:[#allocation2 + $0x698] sm:$0xff] }
 0x350   :  { %7556 = vmatpush1.bf16.msra.mxu0 %v14854_v39  ;;  %v14870_v39 = vcombine.low %v628_v21, %v632_v49  ;;  %v14878_v49 = vcombine.low %v636_v1, %v640_v18  ;;  %v14632_v1 = vcombine.low %v389_v61, %v393_v5 }
 0x351   :  { %7557 = vmatprep.subr.bf16.mxu0 %v14863_v19 }
 0x352   :  { %v6945_v32 = vpop.f32.mrb[0].mxu0  ;;  %7876 = vmatpush1.bf16.msra.mxu1 %v14608_v29  ;;  %v14633_v29 = vcombine.high %v389_v61, %v393_v5  ;;  %v409_v5 = vld [vmem:[#allocation2 + $0x6b8] sm:$0xff] }
 0x353   :  { %v18482_v31 = vadd.f32 %v6945_v32, %v6575_v24  ;;  %v6947_v62 = vpop.f32.mrb[1].mxu0  ;;  %7877 = vmatprep.subr.bf16.mxu1 %v14617_v48  ;;  %v644_v24 = vld [vmem:[#allocation2 + $0xe10] sm:$0xff]  ;;  %v413_v61 = vld [vmem:[#allocation2 + $0x6d8] sm:$0xff] }
 0x354   :  { %v18484_v36 = vadd.f32 %v6947_v62, %v6577_v53  ;;  %v6949_v35 = vpop.f32.mrb[2].mxu0  ;;  %7558 = vmatpush1.bf16.msra.mxu0 %v14862_v63  ;;  %v648_v32 = vld [vmem:[#allocation2 + $0xe30] sm:$0xff]  ;;  %v6585_v63 = vadd.f32 %v18342_v10, %v1223_v17  ;;  %v401_v53 = vld [vmem:[#allocation2 + $0x678] sm:$0xff] }
 0x355   :  { %v18486_v52 = vadd.f32 %v6949_v35, %v6579_v30  ;;  %v6951_v19 = vpop.f32.mrb[3].mxu0  ;;  %7559 = vmatprep.subr.bf16.mxu0 %v14871_v41  ;;  %v14887_v48 = vcombine.high %v644_v24, %v648_v32  ;;  %v397_v41 = vld [vmem:[#allocation2 + $0x658] sm:$0xff]  ;;  %v6587_v30 = vadd.f32 %v18344_v11, %v1227_v47  ;;  %v652_v62 = vld [vmem:[#allocation2 + $0xe50] sm:$0xff]  ;;  %v14886_v10 = vcombine.low %v644_v24, %v648_v32 }
 0x356   :  { %v18488_v40 = vadd.f32 %v6951_v19, %v6581_v44  ;;  %7878 = vmatpush1.bf16.msra.mxu1 %v14616_v8  ;;  %v656_v35 = vld [vmem:[#allocation2 + $0xe70] sm:$0xff] }
 0x357   :  { %v8236_v9 = vadd.f32 %v18486_v52, %v18482_v31  ;;  %7879 = vmatprep.subr.bf16.mxu1 %v14625_v4  ;;  %v14895_v37 = vcombine.high %v652_v62, %v656_v35  ;;  %v664_v17 = vld [vmem:[#allocation2 + $0xeb0] sm:$0xff]  ;;  %v14894_v24 = vcombine.low %v652_v62, %v656_v35 }
 0x358   :  { %v8237_v21 = vadd.f32 %v18488_v40, %v18484_v36  ;;  %7560 = vmatpush1.bf16.msra.mxu0 %v14870_v39 }
 0x359   :  { %7561 = vmatprep.subr.bf16.mxu0 %v14879_v55  ;;  %v14641_v55 = vcombine.high %v397_v41, %v401_v53 }
 0x35a   :  { %v6955_v44 = vpop.f32.mrb[4].mxu0  ;;  %7880 = vmatpush1.bf16.msra.mxu1 %v14624_v58  ;;  %v14640_v58 = vcombine.low %v397_v41, %v401_v53 }
 0x35b   :  { %v16251_v8 = vadd.f32 %v6955_v44, %v6585_v63  ;;  %v6957_v39 = vpop.f32.mrb[5].mxu0  ;;  %7881 = vmatprep.subr.bf16.mxu1 %v14633_v29  ;;  %v417_v63 = vld [vmem:[#allocation2 + $0x6f8] sm:$0xff]  ;;  %v14903_v29 = vcombine.high %v660_v15, %v664_v17  ;;  %v668_v44 = vld [vmem:[#allocation2 + $0xed0] sm:$0xff] }
 0x35c   :  { %v16253_v18 = vadd.f32 %v6957_v39, %v6587_v30  ;;  %v6959_v4 = vpop.f32.mrb[6].mxu0  ;;  %7562 = vmatpush1.bf16.msra.mxu0 %v14878_v49  ;;  %v14649_v30 = vcombine.high %v405_v23, %v409_v5 }
 0x35d   :  { %v8244_v19 = vadd.f32 %v16251_v8, %v8236_v9  ;;  %v16255_v59 = vadd.f32 %v6959_v4, %v6589_v54  ;;  %v6961_v11 = vpop.f32.mrb[7].mxu0  ;;  %7563 = vmatprep.subr.bf16.mxu0 %v14887_v48  ;;  %v14902_v9 = vcombine.low %v660_v15, %v664_v17  ;;  %v672_v54 = vld [vmem:[#allocation2 + $0xef0] sm:$0xff]  ;;  %v425_v4 = vld [vmem:[#allocation2 + $0x738] sm:$0xff] }
 0x35e   :  { %v8245_v22 = vadd.f32 %v16253_v18, %v8237_v21  ;;  %v16257_v2 = vadd.f32 %v6961_v11, %v6591_v50  ;;  %7882 = vmatpush1.bf16.msra.mxu1 %v14632_v1  ;;  %v14648_v21 = vcombine.low %v405_v23, %v409_v5  ;;  %v14657_v50 = vcombine.high %v413_v61, %v417_v63 }
 0x35f   :  { %v8252_v47 = vadd.f32 %v16255_v59, %v8244_v19  ;;  %7883 = vmatprep.subr.bf16.mxu1 %v14641_v55  ;;  %v14910_v19 = vcombine.low %v668_v44, %v672_v54  ;;  %v14656_v11 = vcombine.low %v413_v61, %v417_v63  ;;  %v684_v61 = vld [vmem:[#allocation2 + $0xf50] sm:$0xff] }
 0x360   :  { %v8253_v49 = vadd.f32 %v16257_v2, %v8245_v22  ;;  %7564 = vmatpush1.bf16.msra.mxu0 %v14886_v10  ;;  %v688_v63 = vld [vmem:[#allocation2 + $0xf70] sm:$0xff] }
 0x361   :  { %v8260_v32 = vmul.f32 0.25, %v8252_v47  ;;  %7565 = vmatprep.subr.bf16.mxu0 %v14895_v37 }
 0x362   :  { %v8261_v48 = vmul.f32 0.25, %v8253_v49  ;;  %7884 = vmatpush1.bf16.msra.mxu1 %v14640_v58  ;;  %v429_v49 = vld [vmem:[#allocation2 + $0x758] sm:$0xff] }
 0x363   :  { %v18499_v39 = vsub.f32 %v18482_v31, %v8260_v32  ;;  %v18502_v41 = vsub.f32 %v18486_v52, %v8260_v32  ;;  %v18504_v22 = vsub.f32 %v16251_v8, %v8260_v32  ;;  %v18506_v53 = vsub.f32 %v16255_v59, %v8260_v32  ;;  %v421_v8 = vld [vmem:[#allocation2 + $0x718] sm:$0xff]  ;;  %7885 = vmatprep.subr.bf16.mxu1 %v14649_v30 }
 0x364   :  { %v18509_v37 = vsub.f32 %v18484_v36, %v8261_v48  ;;  %v18512_v62 = vsub.f32 %v18488_v40, %v8261_v48  ;;  %v18514_v35 = vsub.f32 %v16253_v18, %v8261_v48  ;;  %v18516_v1 = vsub.f32 %v16257_v2, %v8261_v48  ;;  %7566 = vmatpush1.bf16.msra.mxu0 %v14894_v24  ;;  %v676_v2 = vld [vmem:[#allocation2 + $0xf10] sm:$0xff]  ;;  %v433_v24 = vld [vmem:[#allocation2 + $0x778] sm:$0xff] }
 0x365   :  { %v8300_v31 = vmul.f32 %v18499_v39, %v18499_v39  ;;  %v8308_v52 = vmul.f32 %v18502_v41, %v18502_v41  ;;  %7567 = vmatprep.subr.bf16.mxu0 %v14903_v29  ;;  %v14911_v59 = vcombine.high %v668_v44, %v672_v54  ;;  %v680_v18 = vld [vmem:[#allocation2 + $0xf30] sm:$0xff]  ;;  %v8324_v55 = vmul.f32 %v18504_v22, %v18504_v22 }
 0x366   :  { %v8301_v36 = vmul.f32 %v18509_v37, %v18509_v37  ;;  %v8309_v40 = vmul.f32 %v18512_v62, %v18512_v62  ;;  %7886 = vmatpush1.bf16.msra.mxu1 %v14648_v21  ;;  %v8325_v17 = vmul.f32 %v18514_v35, %v18514_v35  ;;  %v14665_v23 = vcombine.high %v421_v8, %v425_v4 }
 0x367   :  { %v8316_v10 = vadd.f32 %v8308_v52, %v8300_v31  ;;  %7887 = vmatprep.subr.bf16.mxu1 %v14657_v50  ;;  %v8340_v58 = vmul.f32 %v18506_v53, %v18506_v53  ;;  %v14919_v5 = vcombine.high %v676_v2, %v680_v18  ;;  %v8341_v29 = vmul.f32 %v18516_v1, %v18516_v1  ;;  %v437_v31 = vld [vmem:[#allocation2 + $0x798] sm:$0xff] }
 0x368   :  { %v8317_v15 = vadd.f32 %v8309_v40, %v8301_v36  ;;  %7568 = vmatpush1.bf16.msra.mxu0 %v14902_v9  ;;  %v14664_v21 = vcombine.low %v421_v8, %v425_v4  ;;  %v14918_v30 = vcombine.low %v676_v2, %v680_v18  ;;  %v14673_v44 = vcombine.high %v429_v49, %v433_v24  ;;  %v441_v52 = vld [vmem:[#allocation2 + $0x7b8] sm:$0xff]  ;;  %v692_v36 = vld [vmem:[#allocation2 + $0xf90] sm:$0xff] }
 0x369   :  { %v8332_v47 = vadd.f32 %v8324_v55, %v8316_v10  ;;  %7569 = vmatprep.subr.bf16.mxu0 %v14911_v59  ;;  %v14927_v50 = vcombine.high %v684_v61, %v688_v63  ;;  %v696_v40 = vld [vmem:[#allocation2 + $0xfb0] sm:$0xff]  ;;  %v14672_v55 = vcombine.low %v429_v49, %v433_v24  ;;  %v14681_v8 = vcombine.high %v437_v31, %v441_v52  ;;  %v445_v2 = vld [vmem:[#allocation2 + $0x7d8] sm:$0xff] }
 0x36a   :  { %v8333_v32 = vadd.f32 %v8325_v17, %v8317_v15  ;;  %7888 = vmatpush1.bf16.msra.mxu1 %v14656_v11  ;;  %v14926_v11 = vcombine.low %v684_v61, %v688_v63  ;;  %v14935_v4 = vcombine.high %v692_v36, %v696_v40  ;;  %v449_v18 = vld [vmem:[#allocation2 + $0x7f8] sm:$0xff]  ;;  %v704_v17 = vld [vmem:[#allocation2 + $0xff0] sm:$0xff] }
 0x36b   :  { %v8348_v48 = vadd.f32 %v8340_v58, %v8332_v47  ;;  %7889 = vmatprep.subr.bf16.mxu1 %v14665_v23  ;;  %v14680_v23 = vcombine.low %v437_v31, %v441_v52  ;;  %v14934_v47 = vcombine.low %v692_v36, %v696_v40  ;;  %v14689_v58 = vcombine.high %v445_v2, %v449_v18  ;;  %v453_v24 = vld [vmem:[#allocation2 + $0x818] sm:$0xff]  ;;  %v712_v61 = vld [vmem:[#allocation2 + $0x1030] sm:$0xff] }
 0x36c   :  { %v8349_v9 = vadd.f32 %v8341_v29, %v8333_v32  ;;  %7570 = vmatpush1.bf16.msra.mxu0 %v14910_v19  ;;  %v700_v19 = vld [vmem:[#allocation2 + $0xfd0] sm:$0xff]  ;;  %v457_v32 = vld [vmem:[#allocation2 + $0x838] sm:$0xff]  ;;  %v14688_v63 = vcombine.low %v445_v2, %v449_v18 }
 0x36d   :  { %v8356_v54 = vmul.f32 0.25, %v8348_v48  ;;  %7571 = vmatprep.subr.bf16.mxu0 %v14919_v5  ;;  %v18534_v5 = vld [vmem:[#allocation7] sm:$0xff]  ;;  %v14943_v49 = vcombine.high %v700_v19, %v704_v17  ;;  %v708_v29 = vld [vmem:[#allocation2 + $0x1010] sm:$0xff]  ;;  %v14696_v40 = vcombine.low %v453_v24, %v457_v32  ;;  %v469_v2 = vld [vmem:[#allocation2 + $0x898] sm:$0xff] }
 0x36e   :  { %v8357_v59 = vmul.f32 0.25, %v8349_v9  ;;  %7890 = vmatpush1.bf16.msra.mxu1 %v14664_v21  ;;  %v8385_v48 = vrot.slane %v18534_v5, %v18469_v14  ;;  %v14942_v21 = vcombine.low %v700_v19, %v704_v17  ;;  %v14697_v9 = vcombine.high %v453_v24, %v457_v32  ;;  %v716_v31 = vld [vmem:[#allocation2 + $0x1050] sm:$0xff]  ;;  %v473_v18 = vld [vmem:[#allocation2 + $0x8b8] sm:$0xff] }
 0x36f   :  { %v8364_v10 = vadd.f32 1e-05, %v8356_v54  ;;  %7891 = vmatprep.subr.bf16.mxu1 %v14673_v44  ;;  %v14951_v44 = vcombine.high %v708_v29, %v712_v61  ;;  %v461_v54 = vld [vmem:[#allocation2 + $0x858] sm:$0xff]  ;;  %v720_v52 = vld [vmem:[#allocation2 + $0x1070] sm:$0xff] }
 0x370   :  { %v8365_v15 = vadd.f32 1e-05, %v8357_v59  ;;  %7572 = vmatpush1.bf16.msra.mxu0 %v14918_v30  ;;  %v8389_v30 = vrot.slane %v18534_v5, %v18473_v43  ;;  %v18540_v36 = vld [vmem:[#allocation8] sm:$0xff] }
 0x371   :  { %17652 = vrsqrt.f32 %v8364_v10  ;;  %7573 = vmatprep.subr.bf16.mxu0 %v14927_v50  ;;  %v465_v50 = vld [vmem:[#allocation2 + $0x878] sm:$0xff]  ;;  %v8443_v17 = vrot.slane %v18540_v36, %v18469_v14  ;;  %v8447_v24 = vrot.slane %v18540_v36, %v18473_v43 }
 0x372   :  { %17654 = vrsqrt.f32 %v8365_v15  ;;  %7892 = vmatpush1.bf16.msra.mxu1 %v14672_v55  ;;  %v14950_v15 = vcombine.low %v708_v29, %v712_v61  ;;  %v477_v29 = vld [vmem:[#allocation2 + $0x8d8] sm:$0xff] }
 0x373   :  { %7893 = vmatprep.subr.bf16.mxu1 %v14681_v8  ;;  %v481_v61 = vld [vmem:[#allocation2 + $0x8f8] sm:$0xff] }
 0x374   :  { %7574 = vmatpush1.bf16.msra.mxu0 %v14926_v11  ;;  %v14705_v11 = vcombine.high %v461_v54, %v465_v50 }
 0x375   :  { %7575 = vmatprep.subr.bf16.mxu0 %v14935_v4  ;;  %v14959_v4 = vcombine.high %v716_v31, %v720_v52 }
 0x376   :  { %7894 = vmatpush1.bf16.msra.mxu1 %v14680_v23 }
 0x377   :  { %7895 = vmatprep.subr.bf16.mxu1 %v14689_v58  ;;  %v724_v58 = vld [vmem:[#allocation2 + $0x1090] sm:$0xff] }
 0x378   :  { %7576 = vmatpush1.bf16.msra.mxu0 %v14934_v47 }
 0x379   :  { %7577 = vmatprep.subr.bf16.mxu0 %v14943_v49  ;;  %v728_v49 = vld [vmem:[#allocation2 + $0x10b0] sm:$0xff] }
 0x37a   :  { %7896 = vmatpush1.bf16.msra.mxu1 %v14688_v63  ;;  %v14958_v63 = vcombine.low %v716_v31, %v720_v52 }
 0x37b   :  { %v17653_v59 = vpop.eup %17652  ;;  %7918 = vmatprep.subr.bf16.mxu1 %v14697_v9  ;;  %v14712_v9 = vcombine.low %v469_v2, %v473_v18 }
 0x37c   :  { %v17655_v10 = vpop.eup %17654  ;;  %v8422_v55 = vmul.f32 %v17653_v59, %v8385_v48  ;;  %7578 = vmatpush1.bf16.msra.mxu0 %v14942_v21 }
 0x37d   :  { %v8423_v8 = vmul.f32 %v17655_v10, %v8389_v30  ;;  %7600 = vmatprep.subr.bf16.mxu0 %v14951_v44  ;;  %7898 = vmatmul.mubr.bf16.vlgmr.msra.gmra.mrb[16].mxu1 %v18188_v26  ;;  %v14967_v26 = vcombine.high %v724_v58, %v728_v49  ;;  %v732_v30 = vld [vmem:[#allocation2 + $0x10d0] sm:$0xff] }
 0x37e   :  { %v8430_v19 = vmul.f32 %v8422_v55, %v18499_v39  ;;  %v8496_v23 = vmul.f32 %v8422_v55, %v18502_v41  ;;  %v8544_v47 = vmul.f32 %v8422_v55, %v18506_v53  ;;  %7919 = vmatpush1.bf16.msra.mxu1 %v14696_v40  ;;  %v14704_v39 = vcombine.low %v461_v54, %v465_v50  ;;  %v736_v44 = vld [vmem:[#allocation2 + $0x10f0] sm:$0xff] }
 0x37f   :  { %v8545_v32 = vmul.f32 %v8423_v8, %v18516_v1  ;;  %7580 = vmatmul.mubr.bf16.vlgmr.msra.gmra.mrb[8].mxu0 %v18270_v60  ;;  %7920 = vmatprep.subr.bf16.mxu1 %v14705_v11  ;;  %v14713_v41 = vcombine.high %v469_v2, %v473_v18  ;;  %v8431_v53 = vmul.f32 %v8423_v8, %v18509_v37  ;;  %v489_v11 = vld [vmem:[#allocation2 + $0x938] sm:$0xff] }
 0x380   :  { %7601 = vmatpush1.bf16.msra.mxu0 %v14950_v15  ;;  %7589 = vmatprep.mubr.bf16.mxu0 %v18272_v45  ;;  %v8497_v48 = vmul.f32 %v8423_v8, %v18512_v62  ;;  %v8552_v21 = vadd.f32 %v8544_v47, %v8443_v17  ;;  %v14966_v1 = vcombine.low %v724_v58, %v728_v49  ;;  %v485_v15 = vld [vmem:[#allocation2 + $0x918] sm:$0xff]  ;;  %v740_v47 = vld [vmem:[#allocation2 + $0x1110] sm:$0xff] }
 0x381   :  { %7602 = vmatprep.subr.bf16.mxu0 %v14959_v4  ;;  %v14721_v54 = vcombine.high %v477_v29, %v481_v61  ;;  %7907 = vmatprep.mubr.bf16.mxu1 %v18199_v33  ;;  %v8553_v50 = vadd.f32 %v8545_v32, %v8447_v24  ;;  %v8481_v31 = vadd.f32 %v8447_v24, %v8431_v53  ;;  %v744_v58 = vld [vmem:[#allocation2 + $0x1130] sm:$0xff] }
 0x382   :  { %7921 = vmatpush1.bf16.msra.mxu1 %v14704_v39  ;;  %v8505_v52 = vadd.f32 %v8497_v48, %v8447_v24  ;;  %v8480_v59 = vadd.f32 %v8443_v17, %v8430_v19  ;;  %v8504_v37 = vadd.f32 %v8496_v23, %v8443_v17  ;;  %v8521_v40 = vmul.f32 %v8423_v8, %v18514_v35  ;;  %v748_v53 = vld [vmem:[#allocation2 + $0x1150] sm:$0xff] }
 0x383   :  { %7922 = vmatprep.subr.bf16.mxu1 %v14713_v41  ;;  %v8520_v62 = vmul.f32 %v8422_v55, %v18504_v22  ;;  %v14975_v10 = vcombine.high %v732_v30, %v736_v44  ;;  %v8489_v4 = vmax.f32 %v8481_v31, 0.0  ;;  %v8560_v18 = vmax.f32 %v8552_v21, 0.0 }
 0x384   :  { %7603 = vmatpush1.bf16.msra.mxu0 %v14958_v63  ;;  %v8513_v2 = vmax.f32 %v8505_v52, 0.0  ;;  %v14720_v33 = vcombine.low %v477_v29, %v481_v61  ;;  %v8488_v19 = vmax.f32 %v8480_v59, 0.0  ;;  %v8512_v49 = vmax.f32 %v8504_v37, 0.0  ;;  %v493_v61 = vld [vmem:[#allocation2 + $0x958] sm:$0xff] }
 0x385   :  { %7604 = vmatprep.subr.bf16.mxu0 %v14967_v26  ;;  %7908 = vmatmul.mubr.bf16.gmra.mrb[20].mxu1 %v18216_v46  ;;  %v8561_v32 = vmax.f32 %v8553_v50, 0.0  ;;  %v8529_v22 = vadd.f32 %v8521_v40, %v8447_v24  ;;  %v8528_v55 = vadd.f32 %v8520_v62, %v8443_v17  ;;  %v14974_v8 = vcombine.low %v732_v30, %v736_v44  ;;  %v497_v46 = vld [vmem:[#allocation2 + $0x978] sm:$0xff]  ;;  %v752_v26 = vld [vmem:[#allocation2 + $0x1170] sm:$0xff] }
 0x386   :  { %7923 = vmatpush1.bf16.msra.mxu1 %v14712_v9  ;;  %v18560_v35 = vpack.c.bf16 %v8513_v2, %v8489_v4  ;;  %v14729_v23 = vcombine.high %v485_v15, %v489_v11  ;;  %v18562_v39 = vpack.c.bf16 %v8512_v49, %v8488_v19  ;;  %v14983_v29 = vcombine.high %v740_v47, %v744_v58  ;;  %v501_v30 = vld [vmem:[#allocation2 + $0x998] sm:$0xff]  ;;  %v760_v50 = vld [vmem:[#allocation2 + $0x11b0] sm:$0xff] }
 0x387   :  { %7590 = vmatmul.mubr.bf16.gmra.mrb[12].mxu0 %v18288_v0  ;;  %7924 = vmatprep.subr.bf16.mxu1 %v14721_v54  ;;  %v8537_v63 = vmax.f32 %v8529_v22, 0.0  ;;  %v8536_v41 = vmax.f32 %v8528_v55, 0.0  ;;  %v14728_v17 = vcombine.low %v485_v15, %v489_v11  ;;  %v14982_v21 = vcombine.low %v740_v47, %v744_v58  ;;  %v505_v44 = vld [vmem:[#allocation2 + $0x9b8] sm:$0xff]  ;;  %v756_v54 = vld [vmem:[#allocation2 + $0x1190] sm:$0xff] }
 0x388   :  { %7605 = vmatpush1.bf16.msra.mxu0 %v14966_v1  ;;  %7632 = vmatprep.mubr.bf16.mxu0 %v18292_v7  ;;  %v14737_v1 = vcombine.high %v493_v61, %v497_v46  ;;  %v14991_v9 = vcombine.high %v748_v53, %v752_v26  ;;  %v14736_v31 = vcombine.low %v493_v61, %v497_v46  ;;  %v509_v37 = vld [vmem:[#allocation2 + $0x9d8] sm:$0xff]  ;;  %v764_v62 = vld [vmem:[#allocation2 + $0x11d0] sm:$0xff] }
 0x389   :  { %7606 = vmatprep.subr.bf16.mxu0 %v14975_v10  ;;  %7950 = vmatprep.mubr.bf16.mxu1 %v18220_v56  ;;  %v18566_v24 = vpack.c.bf16 %v8561_v32, %v8537_v63  ;;  %v18568_v48 = vpack.c.bf16 %v8560_v18, %v8536_v41  ;;  %v14990_v56 = vcombine.low %v748_v53, %v752_v26  ;;  %v513_v40 = vld [vmem:[#allocation2 + $0x9f8] sm:$0xff]  ;;  %v768_v10 = vld [vmem:[#allocation2 + $0x11f0] sm:$0xff] }
 0x38a   :  { %7925 = vmatpush1.bf16.msra.mxu1 %v14720_v33  ;;  %v14745_v52 = vcombine.high %v501_v30, %v505_v44  ;;  %v14999_v59 = vcombine.high %v756_v54, %v760_v50  ;;  %v14744_v15 = vcombine.low %v501_v30, %v505_v44  ;;  %v14998_v11 = vcombine.low %v756_v54, %v760_v50  ;;  %v517_v18 = vld [vmem:[#allocation2 + $0xa18] sm:$0xff]  ;;  %v772_v47 = vld [vmem:[#allocation2 + $0x1210] sm:$0xff] }
 0x38b   :  { %7926 = vmatprep.subr.bf16.mxu1 %v14729_v23  ;;  %v14753_v4 = vcombine.high %v509_v37, %v513_v40  ;;  %v15007_v2 = vcombine.high %v764_v62, %v768_v10  ;;  %v521_v33 = vld [vmem:[#allocation2 + $0xa38] sm:$0xff]  ;;  %v776_v58 = vld [vmem:[#allocation2 + $0x1230] sm:$0xff]  ;;  %v14752_v19 = vcombine.low %v509_v37, %v513_v40  ;;  %v15006_v49 = vcombine.low %v764_v62, %v768_v10 }
 0x38c   :  { %7607 = vmatpush1.bf16.msra.mxu0 %v14974_v8  ;;  %v14761_v32 = vcombine.high %v517_v18, %v521_v33  ;;  %v15015_v22 = vcombine.high %v772_v47, %v776_v58  ;;  %v525_v55 = vld [vmem:[#allocation2 + $0xa58] sm:$0xff]  ;;  %v780_v23 = vld [vmem:[#allocation2 + $0x1250] sm:$0xff]  ;;  %v14760_v61 = vcombine.low %v517_v18, %v521_v33  ;;  %v15014_v46 = vcombine.low %v772_v47, %v776_v58 }
 0x38d   :  { %7608 = vmatprep.subr.bf16.mxu0 %v14983_v29  ;;  %v529_v8 = vld [vmem:[#allocation2 + $0xa78] sm:$0xff]  ;;  %v784_v29 = vld [vmem:[#allocation2 + $0x1270] sm:$0xff] }
 0x38e   :  { %7927 = vmatpush1.bf16.msra.mxu1 %v14728_v17  ;;  %v14769_v63 = vcombine.high %v525_v55, %v529_v8  ;;  %v15023_v41 = vcombine.high %v780_v23, %v784_v29  ;;  %v533_v53 = vld [vmem:[#allocation2 + $0xa98] sm:$0xff]  ;;  %v788_v17 = vld [vmem:[#allocation2 + $0x1290] sm:$0xff] }
 0x38f   :  { %7928 = vmatprep.subr.bf16.mxu1 %v14737_v1  ;;  %v537_v26 = vld [vmem:[#allocation2 + $0xab8] sm:$0xff]  ;;  %v14768_v1 = vcombine.low %v525_v55, %v529_v8 }
 0x390   :  { %7609 = vmatpush1.bf16.msra.mxu0 %v14982_v21  ;;  %v792_v21 = vld [vmem:[#allocation2 + $0x12b0] sm:$0xff]  ;;  %v14777_v30 = vcombine.high %v533_v53, %v537_v26  ;;  %v541_v54 = vld [vmem:[#allocation2 + $0xad8] sm:$0xff] }
 0x391   :  { %7610 = vmatprep.subr.bf16.mxu0 %v14991_v9  ;;  %v15022_v9 = vcombine.low %v780_v23, %v784_v29  ;;  %v15031_v44 = vcombine.high %v788_v17, %v792_v21  ;;  %v545_v50 = vld [vmem:[#allocation2 + $0xaf8] sm:$0xff] }
 0x392   :  { %7929 = vmatpush1.bf16.msra.mxu1 %v14736_v31  ;;  %v796_v31 = vld [vmem:[#allocation2 + $0x12d0] sm:$0xff]  ;;  %v14785_v37 = vcombine.high %v541_v54, %v545_v50  ;;  %v549_v62 = vld [vmem:[#allocation2 + $0xb18] sm:$0xff] }
 0x393   :  { %7930 = vmatprep.subr.bf16.mxu1 %v14745_v52  ;;  %v14776_v52 = vcombine.low %v533_v53, %v537_v26  ;;  %v553_v10 = vld [vmem:[#allocation2 + $0xb38] sm:$0xff] }
 0x394   :  { %7611 = vmatpush1.bf16.msra.mxu0 %v14990_v56  ;;  %v800_v56 = vld [vmem:[#allocation2 + $0x12f0] sm:$0xff]  ;;  %v14793_v18 = vcombine.high %v549_v62, %v553_v10  ;;  %v557_v47 = vld [vmem:[#allocation2 + $0xb58] sm:$0xff] }
 0x395   :  { %7612 = vmatprep.subr.bf16.mxu0 %v14999_v59  ;;  %v15030_v59 = vcombine.low %v788_v17, %v792_v21  ;;  %v15039_v40 = vcombine.high %v796_v31, %v800_v56  ;;  %v561_v58 = vld [vmem:[#allocation2 + $0xb78] sm:$0xff] }
 0x396   :  { %7931 = vmatpush1.bf16.msra.mxu1 %v14744_v15  ;;  %v804_v15 = vld [vmem:[#allocation2 + $0x1310] sm:$0xff]  ;;  %v14801_v55 = vcombine.high %v557_v47, %v561_v58  ;;  %v565_v23 = vld [vmem:[#allocation2 + $0xb98] sm:$0xff] }
 0x397   :  { %7932 = vmatprep.subr.bf16.mxu1 %v14753_v4  ;;  %v14784_v4 = vcombine.low %v541_v54, %v545_v50  ;;  %v569_v29 = vld [vmem:[#allocation2 + $0xbb8] sm:$0xff] }
 0x398   :  { %7613 = vmatpush1.bf16.msra.mxu0 %v14998_v11  ;;  %v808_v11 = vld [vmem:[#allocation2 + $0x1330] sm:$0xff]  ;;  %v14809_v53 = vcombine.high %v565_v23, %v569_v29  ;;  %v573_v17 = vld [vmem:[#allocation2 + $0xbd8] sm:$0xff] }
 0x399   :  { %7614 = vmatprep.subr.bf16.mxu0 %v15007_v2  ;;  %v15038_v2 = vcombine.low %v796_v31, %v800_v56  ;;  %v15047_v33 = vcombine.high %v804_v15, %v808_v11  ;;  %v577_v21 = vld [vmem:[#allocation2 + $0xbf8] sm:$0xff] }
 0x39a   :  { %7933 = vmatpush1.bf16.msra.mxu1 %v14752_v19  ;;  %v812_v19 = vld [vmem:[#allocation2 + $0x1350] sm:$0xff]  ;;  %v14817_v54 = vcombine.high %v573_v17, %v577_v21  ;;  %v581_v31 = vld [vmem:[#allocation2 + $0xc18] sm:$0xff] }
 0x39b   :  { %7934 = vmatprep.subr.bf16.mxu1 %v14761_v32  ;;  %v14792_v32 = vcombine.low %v549_v62, %v553_v10  ;;  %v585_v56 = vld [vmem:[#allocation2 + $0xc38] sm:$0xff] }
 0x39c   :  { %7615 = vmatpush1.bf16.msra.mxu0 %v15006_v49  ;;  %v816_v49 = vld [vmem:[#allocation2 + $0x1370] sm:$0xff]  ;;  %v14825_v62 = vcombine.high %v581_v31, %v585_v56 }
 0x39d   :  { %7616 = vmatprep.subr.bf16.mxu0 %v15015_v22  ;;  %v15046_v22 = vcombine.low %v804_v15, %v808_v11  ;;  %v15055_v8 = vcombine.high %v812_v19, %v816_v49  ;;  %v589_v15 = vld [vmem:[#allocation2 + $0xc58] sm:$0xff] }
 0x39e   :  { %7935 = vmatpush1.bf16.msra.mxu1 %v14760_v61  ;;  %v820_v61 = vld [vmem:[#allocation2 + $0x1390] sm:$0xff]  ;;  %v593_v11 = vld [vmem:[#allocation2 + $0xc78] sm:$0xff] }
 0x39f   :  { %7936 = vmatprep.subr.bf16.mxu1 %v14769_v63  ;;  %v14800_v63 = vcombine.low %v557_v47, %v561_v58  ;;  %v14833_v47 = vcombine.high %v589_v15, %v593_v11 }
 0x3a0   :  { %7617 = vmatpush1.bf16.msra.mxu0 %v15014_v46  ;;  %v824_v46 = vld [vmem:[#allocation2 + $0x13b0] sm:$0xff] }
 0x3a1   :  { %7618 = vmatprep.subr.bf16.mxu0 %v15023_v41  ;;  %v15054_v41 = vcombine.low %v812_v19, %v816_v49  ;;  %v15063_v26 = vcombine.high %v820_v61, %v824_v46  ;;  %v597_v19 = vld [vmem:[#allocation2 + $0xc98] sm:$0xff] }
 0x3a2   :  { %7937 = vmatpush1.bf16.msra.mxu1 %v14768_v1  ;;  %v828_v1 = vld [vmem:[#allocation2 + $0x13d0] sm:$0xff]  ;;  %v601_v49 = vld [vmem:[#allocation2 + $0xcb8] sm:$0xff] }
 0x3a3   :  { %7938 = vmatprep.subr.bf16.mxu1 %v14777_v30  ;;  %v14808_v30 = vcombine.low %v565_v23, %v569_v29  ;;  %v14841_v23 = vcombine.high %v597_v19, %v601_v49 }
 0x3a4   :  { %7619 = vmatpush1.bf16.msra.mxu0 %v15022_v9  ;;  %v832_v9 = vld [vmem:[#allocation2 + $0x13f0] sm:$0xff] }
 0x3a5   :  { %7620 = vmatprep.subr.bf16.mxu0 %v15031_v44  ;;  %v15062_v44 = vcombine.low %v820_v61, %v824_v46  ;;  %v15071_v50 = vcombine.high %v828_v1, %v832_v9  ;;  %v605_v61 = vld [vmem:[#allocation2 + $0xcd8] sm:$0xff] }
 0x3a6   :  { %7939 = vmatpush1.bf16.msra.mxu1 %v14776_v52  ;;  %v836_v52 = vld [vmem:[#allocation2 + $0x1410] sm:$0xff]  ;;  %v609_v46 = vld [vmem:[#allocation2 + $0xcf8] sm:$0xff] }
 0x3a7   :  { %7940 = vmatprep.subr.bf16.mxu1 %v14785_v37  ;;  %v14816_v37 = vcombine.low %v573_v17, %v577_v21  ;;  %v613_v21 = vld [vmem:[#allocation2 + $0xd18] sm:$0xff] }
 0x3a8   :  { %7621 = vmatpush1.bf16.msra.mxu0 %v15030_v59  ;;  %v840_v59 = vld [vmem:[#allocation2 + $0x1430] sm:$0xff] }
 0x3a9   :  { %7622 = vmatprep.subr.bf16.mxu0 %v15039_v40  ;;  %v15070_v40 = vcombine.low %v828_v1, %v832_v9  ;;  %v15079_v10 = vcombine.high %v836_v52, %v840_v59  ;;  %v617_v1 = vld [vmem:[#allocation2 + $0xd38] sm:$0xff]  ;;  %v868_v9 = vld [vmem:[#allocation2 + $0x1510] sm:$0xff] }
 0x3aa   :  { %7941 = vmatpush1.bf16.msra.mxu1 %v14784_v4  ;;  %v844_v4 = vld [vmem:[#allocation2 + $0x1450] sm:$0xff] }
 0x3ab   :  { %7942 = vmatprep.subr.bf16.mxu1 %v14793_v18  ;;  %v14824_v18 = vcombine.low %v581_v31, %v585_v56  ;;  %v621_v31 = vld [vmem:[#allocation2 + $0xd58] sm:$0xff] }
 0x3ac   :  { %7623 = vmatpush1.bf16.msra.mxu0 %v15038_v2  ;;  %v848_v2 = vld [vmem:[#allocation2 + $0x1470] sm:$0xff]  ;;  %v625_v56 = vld [vmem:[#allocation2 + $0xd78] sm:$0xff] }
 0x3ad   :  { %7624 = vmatprep.subr.bf16.mxu0 %v15047_v33  ;;  %v15078_v33 = vcombine.low %v836_v52, %v840_v59  ;;  %v15087_v58 = vcombine.high %v844_v4, %v848_v2  ;;  %v876_v52 = vld [vmem:[#allocation2 + $0x1550] sm:$0xff] }
 0x3ae   :  { %7943 = vmatpush1.bf16.msra.mxu1 %v14792_v32  ;;  %v852_v32 = vld [vmem:[#allocation2 + $0x1490] sm:$0xff] }
 0x3af   :  { %7944 = vmatprep.subr.bf16.mxu1 %v14801_v55  ;;  %v14832_v55 = vcombine.low %v589_v15, %v593_v11  ;;  %v880_v59 = vld [vmem:[#allocation2 + $0x1570] sm:$0xff]  ;;  %v629_v11 = vld [vmem:[#allocation2 + $0xd98] sm:$0xff] }
 0x3b0   :  { %7625 = vmatpush1.bf16.msra.mxu0 %v15046_v22  ;;  %v856_v22 = vld [vmem:[#allocation2 + $0x14b0] sm:$0xff]  ;;  %v15119_v15 = vcombine.high %v876_v52, %v880_v59 }
 0x3b1   :  { %7626 = vmatprep.subr.bf16.mxu0 %v15055_v8  ;;  %v15086_v8 = vcombine.low %v844_v4, %v848_v2  ;;  %v15095_v29 = vcombine.high %v852_v32, %v856_v22  ;;  %v633_v4 = vld [vmem:[#allocation2 + $0xdb8] sm:$0xff]  ;;  %v884_v2 = vld [vmem:[#allocation2 + $0x1590] sm:$0xff] }
 0x3b2   :  { %7945 = vmatpush1.bf16.msra.mxu1 %v14800_v63  ;;  %v860_v63 = vld [vmem:[#allocation2 + $0x14d0] sm:$0xff] }
 0x3b3   :  { %7946 = vmatprep.subr.bf16.mxu1 %v14809_v53  ;;  %v15094_v53 = vcombine.low %v852_v32, %v856_v22 }
 0x3b4   :  { %7627 = vmatpush1.bf16.msra.mxu0 %v15054_v41  ;;  %v864_v41 = vld [vmem:[#allocation2 + $0x14f0] sm:$0xff] }
 0x3b5   :  { %7628 = vmatprep.subr.bf16.mxu0 %v15063_v26  ;;  %v14849_v26 = vcombine.high %v605_v61, %v609_v46  ;;  %v15103_v17 = vcombine.high %v860_v63, %v864_v41 }
 0x3b6   :  { %7947 = vmatpush1.bf16.msra.mxu1 %v14808_v30  ;;  %v872_v30 = vld [vmem:[#allocation2 + $0x1530] sm:$0xff] }
 0x3b7   :  { %7948 = vmatprep.subr.bf16.mxu1 %v14817_v54  ;;  %v14857_v54 = vcombine.high %v613_v21, %v617_v1 }
 0x3b8   :  { %7629 = vmatpush1.bf16.msra.mxu0 %v15062_v44  ;;  %v14848_v44 = vcombine.low %v605_v61, %v609_v46  ;;  %v896_v61 = vld [vmem:[#allocation2 + $0x15f0] sm:$0xff] }
 0x3b9   :  { %7630 = vmatprep.subr.bf16.mxu0 %v15071_v50  ;;  %v15111_v50 = vcombine.high %v868_v9, %v872_v30 }
 0x3ba   :  { %7949 = vmatpush1.bf16.msra.mxu1 %v14816_v37  ;;  %v15110_v37 = vcombine.low %v868_v9, %v872_v30  ;;  %v645_v30 = vld [vmem:[#allocation2 + $0xe18] sm:$0xff] }
 0x3bb   :  { %7971 = vmatprep.subr.bf16.mxu1 %v14825_v62  ;;  %v14865_v62 = vcombine.high %v621_v31, %v625_v56 }
 0x3bc   :  { %7631 = vmatpush1.bf16.msra.mxu0 %v15070_v40  ;;  %v18579_v40 = vsub.s32 2, %v18464_v20 }
 0x3bd   :  { %7653 = vmatprep.subr.bf16.mxu0 %v15079_v10  ;;  %7951 = vmatmul.mubr.bf16.vlgmr.msra.gmra.mrb[16].mxu1 %v18234_v57  ;;  %v14840_v57 = vcombine.low %v597_v19, %v601_v49  ;;  %v18582_v10 = vsub.s32 3, %v18464_v20  ;;  %v14873_v19 = vcombine.high %v629_v11, %v633_v4 }
 0x3be   :  { %7972 = vmatpush1.bf16.msra.mxu1 %v14824_v18  ;;  %7960 = vmatprep.mubr.bf16.mxu1 %v18236_v6  ;;  %v15102_v6 = vcombine.low %v860_v63, %v864_v41  ;;  %v888_v18 = vld [vmem:[#allocation2 + $0x15b0] sm:$0xff]  ;;  %v14872_v41 = vcombine.low %v629_v11, %v633_v4 }
 0x3bf   :  { %7633 = vmatmul.mubr.bf16.vlgmr.msra.gmra.mrb[8].mxu0 %v18306_v28  ;;  %7973 = vmatprep.subr.bf16.mxu1 %v14833_v47  ;;  %v15127_v22 = vcombine.high %v884_v2, %v888_v18  ;;  %v15126_v63 = vcombine.low %v884_v2, %v888_v18  ;;  %v908_v2 = vld [vmem:[#allocation2 + $0x1650] sm:$0xff] }
 0x3c0   :  { %7654 = vmatpush1.bf16.msra.mxu0 %v15078_v33  ;;  %7642 = vmatprep.mubr.bf16.mxu0 %v18308_v38  ;;  %v17682_v33 = vld [vmem:[#allocation5] sm:$0xff]  ;;  %v912_v18 = vld [vmem:[#allocation2 + $0x1670] sm:$0xff] }
 0x3c1   :  { %7655 = vmatprep.subr.bf16.mxu0 %v15087_v58  ;;  %v1231_v47 = vrot.slane %v17682_v33, %v18579_v40  ;;  %v15118_v58 = vcombine.low %v876_v52, %v880_v59  ;;  %v1235_v32 = vrot.slane %v17682_v33, %v18582_v10 }
 0x3c2   :  { %7974 = vmatpush1.bf16.msra.mxu1 %v14832_v55  ;;  %v637_v55 = vld [vmem:[#allocation2 + $0xdd8] sm:$0xff] }
 0x3c3   :  { %7975 = vmatprep.subr.bf16.mxu1 %v14841_v23 }
 0x3c4   :  { %7656 = vmatpush1.bf16.msra.mxu0 %v15086_v8  ;;  %v641_v8 = vld [vmem:[#allocation2 + $0xdf8] sm:$0xff] }
 0x3c5   :  { %7657 = vmatprep.subr.bf16.mxu0 %v15095_v29  ;;  %7961 = vmatmul.mubr.bf16.gmra.mrb[20].mxu1 %v18252_v16  ;;  %v14856_v16 = vcombine.low %v613_v21, %v617_v1  ;;  %v892_v29 = vld [vmem:[#allocation2 + $0x15d0] sm:$0xff] }
 0x3c6   :  { %7976 = vmatpush1.bf16.msra.mxu1 %v14840_v57  ;;  %8003 = vmatprep.mubr.bf16.mxu1 %v18256_v25  ;;  %v14864_v25 = vcombine.low %v621_v31, %v625_v56  ;;  %v15135_v9 = vcombine.high %v892_v29, %v896_v61  ;;  %v14880_v56 = vcombine.low %v637_v55, %v641_v8 }
 0x3c7   :  { %7643 = vmatmul.mubr.bf16.gmra.mrb[12].mxu0 %v18324_v51  ;;  %7977 = vmatprep.subr.bf16.mxu1 %v14849_v26  ;;  %v15134_v52 = vcombine.low %v892_v29, %v896_v61  ;;  %v15151_v61 = vcombine.high %v908_v2, %v912_v18 }
 0x3c8   :  { %7658 = vmatpush1.bf16.msra.mxu0 %v15094_v53  ;;  %7685 = vmatprep.mubr.bf16.mxu0 %v18328_v42 }
 0x3c9   :  { %7659 = vmatprep.subr.bf16.mxu0 %v15103_v17  ;;  %v14881_v17 = vcombine.high %v637_v55, %v641_v8 }
 0x3ca   :  { %7978 = vmatpush1.bf16.msra.mxu1 %v14848_v44  ;;  %v649_v44 = vld [vmem:[#allocation2 + $0xe38] sm:$0xff] }
 0x3cb   :  { %7979 = vmatprep.subr.bf16.mxu1 %v14857_v54  ;;  %v900_v54 = vld [vmem:[#allocation2 + $0x1610] sm:$0xff]  ;;  %v14889_v59 = vcombine.high %v645_v30, %v649_v44 }
 0x3cc   :  { %7660 = vmatpush1.bf16.msra.mxu0 %v15102_v6 }
 0x3cd   :  { %7661 = vmatprep.subr.bf16.mxu0 %v15111_v50  ;;  %v904_v50 = vld [vmem:[#allocation2 + $0x1630] sm:$0xff] }
 0x3ce   :  { %7980 = vmatpush1.bf16.msra.mxu1 %v14856_v16 }
 0x3cf   :  { %7981 = vmatprep.subr.bf16.mxu1 %v14865_v62  ;;  %v653_v62 = vld [vmem:[#allocation2 + $0xe58] sm:$0xff] }
 0x3d0   :  { %7662 = vmatpush1.bf16.msra.mxu0 %v15110_v37  ;;  %v7369_v49 = vpop.f32.mrb[8].mxu1  ;;  %v15143_v37 = vcombine.high %v900_v54, %v904_v50 }
 0x3d1   :  { %7663 = vmatprep.subr.bf16.mxu0 %v15119_v15  ;;  %v7371_v23 = vpop.f32.mrb[9].mxu1  ;;  %v18586_v57 = vadd.f32 %v7369_v49, %v1231_v47  ;;  %v657_v15 = vld [vmem:[#allocation2 + $0xe78] sm:$0xff] }
 0x3d2   :  { %v7373_v46 = vpop.f32.mrb[10].mxu1  ;;  %7982 = vmatpush1.bf16.msra.mxu1 %v14864_v25  ;;  %v18590_v21 = vadd.f32 %v7371_v23, %v1235_v32  ;;  %v14897_v8 = vcombine.high %v653_v62, %v657_v15 }
 0x3d3   :  { %v18588_v53 = vadd.f32 %v7373_v46, %v1231_v47  ;;  %v7375_v26 = vpop.f32.mrb[11].mxu1  ;;  %7983 = vmatprep.subr.bf16.mxu1 %v14873_v19  ;;  %v14888_v19 = vcombine.low %v645_v30, %v649_v44  ;;  %v916_v46 = vld [vmem:[#allocation2 + $0x1690] sm:$0xff]  ;;  %v15150_v30 = vcombine.low %v908_v2, %v912_v18 }
 0x3d4   :  { %7664 = vmatpush1.bf16.msra.mxu0 %v15118_v58  ;;  %v18592_v1 = vadd.f32 %v7375_v26, %v1235_v32  ;;  %v15142_v58 = vcombine.low %v900_v54, %v904_v50  ;;  %v661_v26 = vld [vmem:[#allocation2 + $0xe98] sm:$0xff] }
 0x3d5   :  { %7665 = vmatprep.subr.bf16.mxu0 %v15127_v22  ;;  %v8238_v6 = vadd.f32 %v18588_v53, %v18586_v57 }
 0x3d6   :  { %v8239_v31 = vadd.f32 %v18592_v1, %v18590_v21  ;;  %7984 = vmatpush1.bf16.msra.mxu1 %v14872_v41  ;;  %v920_v41 = vld [vmem:[#allocation2 + $0x16b0] sm:$0xff] }
 0x3d7   :  { %7985 = vmatprep.subr.bf16.mxu1 %v14881_v17  ;;  %v665_v17 = vld [vmem:[#allocation2 + $0xeb8] sm:$0xff]  ;;  %v15159_v44 = vcombine.high %v916_v46, %v920_v41 }
 0x3d8   :  { %7666 = vmatpush1.bf16.msra.mxu0 %v15126_v63  ;;  %v7379_v16 = vpop.f32.mrb[12].mxu1  ;;  %v14905_v50 = vcombine.high %v661_v26, %v665_v17 }
 0x3d9   :  { %7667 = vmatprep.subr.bf16.mxu0 %v15135_v9  ;;  %v16262_v11 = vadd.f32 %v7379_v16, %v1231_v47  ;;  %v7381_v4 = vpop.f32.mrb[13].mxu1 }
 0x3da   :  { %v16263_v25 = vadd.f32 %v7381_v4, %v1235_v32  ;;  %v7383_v33 = vpop.f32.mrb[14].mxu1  ;;  %7986 = vmatpush1.bf16.msra.mxu1 %v14880_v56  ;;  %v14896_v56 = vcombine.low %v653_v62, %v657_v15  ;;  %v924_v62 = vld [vmem:[#allocation2 + $0x16d0] sm:$0xff] }
 0x3db   :  { %v8246_v49 = vadd.f32 %v16262_v11, %v8238_v6  ;;  %v16264_v22 = vadd.f32 %v7383_v33, %v1231_v47  ;;  %v7385_v55 = vpop.f32.mrb[15].mxu1  ;;  %7987 = vmatprep.subr.bf16.mxu1 %v14889_v59  ;;  %v14904_v6 = vcombine.low %v661_v26, %v665_v17  ;;  %v928_v15 = vld [vmem:[#allocation2 + $0x16f0] sm:$0xff] }
 0x3dc   :  { %7668 = vmatpush1.bf16.msra.mxu0 %v15134_v52  ;;  %v8247_v23 = vadd.f32 %v16263_v25, %v8239_v31  ;;  %v16265_v29 = vadd.f32 %v7385_v55, %v1235_v32  ;;  %v669_v32 = vld [vmem:[#allocation2 + $0xed8] sm:$0xff] }
 0x3dd   :  { %7669 = vmatprep.subr.bf16.mxu0 %v15143_v37  ;;  %v8254_v63 = vadd.f32 %v16264_v22, %v8246_v49  ;;  %v673_v31 = vld [vmem:[#allocation2 + $0xef8] sm:$0xff] }
 0x3de   :  { %v8255_v9 = vadd.f32 %v16265_v29, %v8247_v23  ;;  %7988 = vmatpush1.bf16.msra.mxu1 %v14888_v19  ;;  %v677_v19 = vld [vmem:[#allocation2 + $0xf18] sm:$0xff]  ;;  %v936_v23 = vld [vmem:[#allocation2 + $0x1730] sm:$0xff] }
 0x3df   :  { %v8262_v54 = vmul.f32 0.25, %v8254_v63  ;;  %7989 = vmatprep.subr.bf16.mxu1 %v14897_v8  ;;  %v681_v49 = vld [vmem:[#allocation2 + $0xf38] sm:$0xff]  ;;  %v932_v8 = vld [vmem:[#allocation2 + $0x1710] sm:$0xff]  ;;  %v14912_v63 = vcombine.low %v669_v32, %v673_v31 }
 0x3e0   :  { %7670 = vmatpush1.bf16.msra.mxu0 %v15142_v58  ;;  %v8263_v47 = vmul.f32 0.25, %v8255_v9  ;;  %v14913_v58 = vcombine.high %v669_v32, %v673_v31  ;;  %v14921_v17 = vcombine.high %v677_v19, %v681_v49  ;;  %v14920_v32 = vcombine.low %v677_v19, %v681_v49 }
 0x3e1   :  { %7671 = vmatprep.subr.bf16.mxu0 %v15151_v61  ;;  %v18599_v52 = vsub.f32 %v18586_v57, %v8262_v54  ;;  %v18602_v59 = vsub.f32 %v18588_v53, %v8262_v54  ;;  %v18604_v16 = vsub.f32 %v16262_v11, %v8262_v54  ;;  %v18606_v37 = vsub.f32 %v16264_v22, %v8262_v54 }
 0x3e2   :  { %v18609_v4 = vsub.f32 %v18590_v21, %v8263_v47  ;;  %v18612_v2 = vsub.f32 %v18592_v1, %v8263_v47  ;;  %v18614_v18 = vsub.f32 %v16263_v25, %v8263_v47  ;;  %v18616_v33 = vsub.f32 %v16265_v29, %v8263_v47  ;;  %7990 = vmatpush1.bf16.msra.mxu1 %v14896_v56  ;;  %v689_v47 = vld [vmem:[#allocation2 + $0xf78] sm:$0xff] }
 0x3e3   :  { %v8302_v57 = vmul.f32 %v18599_v52, %v18599_v52  ;;  %v8310_v53 = vmul.f32 %v18602_v59, %v18602_v59  ;;  %v15158_v11 = vcombine.low %v916_v46, %v920_v41  ;;  %v15167_v25 = vcombine.high %v924_v62, %v928_v15  ;;  %7991 = vmatprep.subr.bf16.mxu1 %v14905_v50  ;;  %v940_v50 = vld [vmem:[#allocation2 + $0x1750] sm:$0xff] }
 0x3e4   :  { %7672 = vmatpush1.bf16.msra.mxu0 %v15150_v30  ;;  %v8303_v21 = vmul.f32 %v18609_v4, %v18609_v4  ;;  %v8311_v1 = vmul.f32 %v18612_v2, %v18612_v2  ;;  %v8326_v55 = vmul.f32 %v18604_v16, %v18604_v16  ;;  %v8327_v61 = vmul.f32 %v18614_v18, %v18614_v18  ;;  %v685_v30 = vld [vmem:[#allocation2 + $0xf58] sm:$0xff] }
 0x3e5   :  { %7673 = vmatprep.subr.bf16.mxu0 %v15159_v44  ;;  %v8318_v22 = vadd.f32 %v8310_v53, %v8302_v57  ;;  %v15166_v46 = vcombine.low %v924_v62, %v928_v15  ;;  %v8342_v26 = vmul.f32 %v18606_v37, %v18606_v37  ;;  %v8343_v56 = vmul.f32 %v18616_v33, %v18616_v33 }
 0x3e6   :  { %v8319_v29 = vadd.f32 %v8311_v1, %v8303_v21  ;;  %7992 = vmatpush1.bf16.msra.mxu1 %v14904_v6  ;;  %v15175_v54 = vcombine.high %v932_v8, %v936_v23  ;;  %v944_v6 = vld [vmem:[#allocation2 + $0x1770] sm:$0xff]  ;;  %v15174_v15 = vcombine.low %v932_v8, %v936_v23  ;;  %v14929_v57 = vcombine.high %v685_v30, %v689_v47  ;;  %v697_v21 = vld [vmem:[#allocation2 + $0xfb8] sm:$0xff] }
 0x3e7   :  { %v8334_v41 = vadd.f32 %v8326_v55, %v8318_v22  ;;  %7993 = vmatprep.subr.bf16.mxu1 %v14913_v58  ;;  %v693_v58 = vld [vmem:[#allocation2 + $0xf98] sm:$0xff]  ;;  %v952_v22 = vld [vmem:[#allocation2 + $0x17b0] sm:$0xff] }
 0x3e8   :  { %7674 = vmatpush1.bf16.msra.mxu0 %v15158_v11  ;;  %v8335_v9 = vadd.f32 %v8327_v61, %v8319_v29  ;;  %v15183_v11 = vcombine.high %v940_v50, %v944_v6  ;;  %v14928_v29 = vcombine.low %v685_v30, %v689_v47  ;;  %v15182_v61 = vcombine.low %v940_v50, %v944_v6  ;;  %v701_v8 = vld [vmem:[#allocation2 + $0xfd8] sm:$0xff]  ;;  %v964_v30 = vld [vmem:[#allocation2 + $0x1810] sm:$0xff] }
 0x3e9   :  { %7675 = vmatprep.subr.bf16.mxu0 %v15167_v25  ;;  %v8350_v44 = vadd.f32 %v8342_v26, %v8334_v41  ;;  %v948_v25 = vld [vmem:[#allocation2 + $0x1790] sm:$0xff]  ;;  %v14937_v19 = vcombine.high %v693_v58, %v697_v21  ;;  %v705_v23 = vld [vmem:[#allocation2 + $0xff8] sm:$0xff]  ;;  %v14936_v41 = vcombine.low %v693_v58, %v697_v21  ;;  %v8397_v6 = vrot.slane %v18534_v5, %v18582_v10 }
 0x3ea   :  { %v8351_v62 = vadd.f32 %v8343_v56, %v8335_v9  ;;  %7994 = vmatpush1.bf16.msra.mxu1 %v14912_v63  ;;  %v15191_v49 = vcombine.high %v948_v25, %v952_v22  ;;  %v960_v63 = vld [vmem:[#allocation2 + $0x17f0] sm:$0xff]  ;;  %v15190_v26 = vcombine.low %v948_v25, %v952_v22  ;;  %v709_v56 = vld [vmem:[#allocation2 + $0x1018] sm:$0xff]  ;;  %v14944_v50 = vcombine.low %v701_v8, %v705_v23 }
 0x3eb   :  { %v8358_v31 = vmul.f32 0.25, %v8350_v44  ;;  %7995 = vmatprep.subr.bf16.mxu1 %v14921_v17  ;;  %v14945_v17 = vcombine.high %v701_v8, %v705_v23  ;;  %v968_v47 = vld [vmem:[#allocation2 + $0x1830] sm:$0xff]  ;;  %v8393_v44 = vrot.slane %v18534_v5, %v18579_v40  ;;  %v18640_v25 = vrot.slane %v18540_v36, %v18579_v40 }
 0x3ec   :  { %7676 = vmatpush1.bf16.msra.mxu0 %v15166_v46  ;;  %v8359_v53 = vmul.f32 0.25, %v8351_v62  ;;  %v956_v46 = vld [vmem:[#allocation2 + $0x17d0] sm:$0xff]  ;;  %v15206_v22 = vcombine.low %v964_v30, %v968_v47 }
 0x3ed   :  { %7677 = vmatprep.subr.bf16.mxu0 %v15175_v54  ;;  %v8366_v1 = vadd.f32 1e-05, %v8358_v31  ;;  %v15199_v9 = vcombine.high %v956_v46, %v960_v63  ;;  %v713_v54 = vld [vmem:[#allocation2 + $0x1038] sm:$0xff]  ;;  %v15198_v62 = vcombine.low %v956_v46, %v960_v63  ;;  %v15207_v31 = vcombine.high %v964_v30, %v968_v47  ;;  %v976_v58 = vld [vmem:[#allocation2 + $0x1870] sm:$0xff] }
 0x3ee   :  { %v8367_v55 = vadd.f32 1e-05, %v8359_v53  ;;  %7996 = vmatpush1.bf16.msra.mxu1 %v14920_v32  ;;  %v14953_v32 = vcombine.high %v709_v56, %v713_v54  ;;  %v14952_v5 = vcombine.low %v709_v56, %v713_v54  ;;  %v725_v46 = vld [vmem:[#allocation2 + $0x1098] sm:$0xff] }
 0x3ef   :  { %17656 = vrsqrt.f32 %v8366_v1  ;;  %7997 = vmatprep.subr.bf16.mxu1 %v14929_v57  ;;  %v721_v57 = vld [vmem:[#allocation2 + $0x1078] sm:$0xff] }
 0x3f0   :  { %7678 = vmatpush1.bf16.msra.mxu0 %v15174_v15  ;;  %17658 = vrsqrt.f32 %v8367_v55  ;;  %v717_v15 = vld [vmem:[#allocation2 + $0x1058] sm:$0xff] }
 0x3f1   :  { %7679 = vmatprep.subr.bf16.mxu0 %v15183_v11  ;;  %v972_v11 = vld [vmem:[#allocation2 + $0x1850] sm:$0xff]  ;;  %v729_v63 = vld [vmem:[#allocation2 + $0x10b8] sm:$0xff] }
 0x3f2   :  { %7998 = vmatpush1.bf16.msra.mxu1 %v14928_v29  ;;  %v8455_v29 = vrot.slane %v18540_v36, %v18582_v10  ;;  %v15215_v23 = vcombine.high %v972_v11, %v976_v58  ;;  %v984_v36 = vld [vmem:[#allocation2 + $0x18b0] sm:$0xff] }
 0x3f3   :  { %7999 = vmatprep.subr.bf16.mxu1 %v14937_v19 }
 0x3f4   :  { %7680 = vmatpush1.bf16.msra.mxu0 %v15182_v61  ;;  %v14961_v61 = vcombine.high %v717_v15, %v721_v57 }
 0x3f5   :  { %7681 = vmatprep.subr.bf16.mxu0 %v15191_v49 }
 0x3f6   :  { %8000 = vmatpush1.bf16.msra.mxu1 %v14936_v41 }
 0x3f7   :  { %8001 = vmatprep.subr.bf16.mxu1 %v14945_v17  ;;  %v980_v17 = vld [vmem:[#allocation2 + $0x1890] sm:$0xff] }
 0x3f8   :  { %7682 = vmatpush1.bf16.msra.mxu0 %v15190_v26  ;;  %v15214_v26 = vcombine.low %v972_v11, %v976_v58  ;;  %v15223_v47 = vcombine.high %v980_v17, %v984_v36 }
 0x3f9   :  { %7683 = vmatprep.subr.bf16.mxu0 %v15199_v9  ;;  %v17657_v53 = vpop.eup %17656 }
 0x3fa   :  { %v17659_v21 = vpop.eup %17658  ;;  %v8424_v1 = vmul.f32 %v17657_v53, %v8393_v44  ;;  %8002 = vmatpush1.bf16.msra.mxu1 %v14944_v50  ;;  %v733_v44 = vld [vmem:[#allocation2 + $0x10d8] sm:$0xff]  ;;  %v14968_v53 = vcombine.low %v725_v46, %v729_v63 }
 0x3fb   :  { %v8425_v55 = vmul.f32 %v17659_v21, %v8397_v6  ;;  %8024 = vmatprep.subr.bf16.mxu1 %v14953_v32  ;;  %v988_v6 = vld [vmem:[#allocation2 + $0x18d0] sm:$0xff] }
 0x3fc   :  { %7684 = vmatpush1.bf16.msra.mxu0 %v15198_v62  ;;  %v8432_v19 = vmul.f32 %v8424_v1, %v18599_v52  ;;  %v8498_v49 = vmul.f32 %v8424_v1, %v18602_v59  ;;  %v8546_v8 = vmul.f32 %v8424_v1, %v18606_v37  ;;  %v14960_v52 = vcombine.low %v717_v15, %v721_v57  ;;  %v992_v62 = vld [vmem:[#allocation2 + $0x18f0] sm:$0xff] }
 0x3fd   :  { %7706 = vmatprep.subr.bf16.mxu0 %v15207_v31  ;;  %v8547_v41 = vmul.f32 %v8425_v55, %v18616_v33  ;;  %8004 = vmatmul.mubr.bf16.vlgmr.msra.gmra.mrb[16].mxu1 %v18270_v60  ;;  %v8433_v9 = vmul.f32 %v8425_v55, %v18609_v4  ;;  %v8499_v56 = vmul.f32 %v8425_v55, %v18612_v2  ;;  %v737_v4 = vld [vmem:[#allocation2 + $0x10f8] sm:$0xff] }
 0x3fe   :  { %8025 = vmatpush1.bf16.msra.mxu1 %v14952_v5  ;;  %v8482_v59 = vadd.f32 %v18640_v25, %v8432_v19  ;;  %v8506_v37 = vadd.f32 %v8498_v49, %v18640_v25  ;;  %v14969_v33 = vcombine.high %v725_v46, %v729_v63  ;;  %v8554_v50 = vadd.f32 %v8546_v8, %v18640_v25  ;;  %v741_v19 = vld [vmem:[#allocation2 + $0x1118] sm:$0xff]  ;;  %v996_v63 = vld [vmem:[#allocation2 + $0x1910] sm:$0xff] }
 0x3ff   :  { %7686 = vmatmul.mubr.bf16.vlgmr.msra.gmra.mrb[8].mxu0 %v18358_v13  ;;  %8026 = vmatprep.subr.bf16.mxu1 %v14961_v61  ;;  %v8483_v54 = vadd.f32 %v8455_v29, %v8433_v9  ;;  %v8507_v60 = vadd.f32 %v8499_v56, %v8455_v29  ;;  %v8555_v30 = vadd.f32 %v8547_v41, %v8455_v29  ;;  %v745_v49 = vld [vmem:[#allocation2 + $0x1138] sm:$0xff]  ;;  %v1004_v9 = vld [vmem:[#allocation2 + $0x1950] sm:$0xff] }
 0x400   :  { %7707 = vmatpush1.bf16.msra.mxu0 %v15206_v22  ;;  %7695 = vmatprep.mubr.bf16.mxu0 %v18360_v27  ;;  %v8490_v2 = vmax.f32 %v8482_v59, 0.0  ;;  %v8514_v15 = vmax.f32 %v8506_v37, 0.0  ;;  %v15222_v57 = vcombine.low %v980_v17, %v984_v36  ;;  %v8523_v11 = vmul.f32 %v8425_v55, %v18614_v18  ;;  %v1000_v18 = vld [vmem:[#allocation2 + $0x1930] sm:$0xff]  ;;  %v753_v36 = vld [vmem:[#allocation2 + $0x1178] sm:$0xff] }
 0x401   :  { %7708 = vmatprep.subr.bf16.mxu0 %v15215_v23  ;;  %8013 = vmatprep.mubr.bf16.mxu1 %v18272_v45  ;;  %v8491_v32 = vmax.f32 %v8483_v54, 0.0  ;;  %v8515_v31 = vmax.f32 %v8507_v60, 0.0  ;;  %v8522_v58 = vmul.f32 %v8424_v1, %v18604_v16  ;;  %v14977_v21 = vcombine.high %v733_v44, %v737_v4  ;;  %v757_v54 = vld [vmem:[#allocation2 + $0x1198] sm:$0xff] }
 0x402   :  { %8027 = vmatpush1.bf16.msra.mxu1 %v14960_v52  ;;  %v18661_v5 = vpack.c.bf16 %v8514_v15, %v8490_v2  ;;  %v8563_v61 = vmax.f32 %v8555_v30, 0.0  ;;  %v15231_v45 = vcombine.high %v988_v6, %v992_v62  ;;  %v8531_v8 = vadd.f32 %v8523_v11, %v8455_v29  ;;  %v749_v29 = vld [vmem:[#allocation2 + $0x1158] sm:$0xff]  ;;  %v1012_v30 = vld [vmem:[#allocation2 + $0x1990] sm:$0xff] }
 0x403   :  { %8028 = vmatprep.subr.bf16.mxu1 %v14969_v33  ;;  %v18659_v22 = vpack.c.bf16 %v8515_v31, %v8491_v32  ;;  %v8530_v23 = vadd.f32 %v8522_v58, %v18640_v25  ;;  %v8562_v46 = vmax.f32 %v8554_v50, 0.0  ;;  %v14976_v16 = vcombine.low %v733_v44, %v737_v4  ;;  %v761_v60 = vld [vmem:[#allocation2 + $0x11b8] sm:$0xff]  ;;  %v1024_v32 = vld [vmem:[#allocation2 + $0x19f0] sm:$0xff] }
 0x404   :  { %7709 = vmatpush1.bf16.msra.mxu0 %v15214_v26  ;;  %v8539_v1 = vmax.f32 %v8531_v8, 0.0  ;;  %v15230_v41 = vcombine.low %v988_v6, %v992_v62  ;;  %v14985_v26 = vcombine.high %v741_v19, %v745_v49  ;;  %v15239_v17 = vcombine.high %v996_v63, %v1000_v18  ;;  %v765_v50 = vld [vmem:[#allocation2 + $0x11d8] sm:$0xff]  ;;  %v1020_v62 = vld [vmem:[#allocation2 + $0x19d0] sm:$0xff] }
 0x405   :  { %7710 = vmatprep.subr.bf16.mxu0 %v15223_v47  ;;  %8014 = vmatmul.mubr.bf16.gmra.mrb[20].mxu1 %v18288_v0  ;;  %v8538_v55 = vmax.f32 %v8530_v23, 0.0  ;;  %v1008_v0 = vld [vmem:[#allocation2 + $0x1970] sm:$0xff]  ;;  %v14984_v52 = vcombine.low %v741_v19, %v745_v49  ;;  %v15238_v59 = vcombine.low %v996_v63, %v1000_v18  ;;  %v14993_v37 = vcombine.high %v749_v29, %v753_v36  ;;  %v769_v6 = vld [vmem:[#allocation2 + $0x11f8] sm:$0xff] }
 0x406   :  { %8029 = vmatpush1.bf16.msra.mxu1 %v14968_v53  ;;  %v18667_v25 = vpack.c.bf16 %v8563_v61, %v8539_v1  ;;  %8056 = vmatprep.mubr.bf16.mxu1 %v18292_v7  ;;  %v15247_v33 = vcombine.high %v1004_v9, %v1008_v0  ;;  %v1016_v47 = vld [vmem:[#allocation2 + $0x19b0] sm:$0xff]  ;;  %v14992_v44 = vcombine.low %v749_v29, %v753_v36  ;;  %v773_v11 = vld [vmem:[#allocation2 + $0x1218] sm:$0xff] }
 0x407   :  { %7696 = vmatmul.mubr.bf16.gmra.mrb[12].mxu0 %v18376_v12  ;;  %8030 = vmatprep.subr.bf16.mxu1 %v14977_v21  ;;  %v18670_v56 = vpack.c.bf16 %v8562_v46, %v8538_v55  ;;  %v15246_v4 = vcombine.low %v1004_v9, %v1008_v0  ;;  %v15001_v7 = vcombine.high %v757_v54, %v761_v60  ;;  %v777_v58 = vld [vmem:[#allocation2 + $0x1238] sm:$0xff]  ;;  %v1028_v21 = vld [vmem:[#allocation2 + $0x1a10] sm:$0xff] }
 0x408   :  { %7711 = vmatpush1.bf16.msra.mxu0 %v15222_v57  ;;  %7738 = vmatprep.mubr.bf16.mxu0 %v18380_v3  ;;  %v15255_v2 = vcombine.high %v1012_v30, %v1016_v47  ;;  %v15000_v31 = vcombine.low %v757_v54, %v761_v60  ;;  %v15254_v15 = vcombine.low %v1012_v30, %v1016_v47  ;;  %v1032_v61 = vld [vmem:[#allocation2 + $0x1a30] sm:$0xff]  ;;  %v781_v23 = vld [vmem:[#allocation2 + $0x1258] sm:$0xff] }
 0x409   :  { %7712 = vmatprep.subr.bf16.mxu0 %v15231_v45  ;;  %v15009_v57 = vcombine.high %v765_v50, %v769_v6  ;;  %v15263_v53 = vcombine.high %v1020_v62, %v1024_v32  ;;  %v15008_v45 = vcombine.low %v765_v50, %v769_v6  ;;  %v15262_v19 = vcombine.low %v1020_v62, %v1024_v32  ;;  %v785_v46 = vld [vmem:[#allocation2 + $0x1278] sm:$0xff]  ;;  %v1036_v63 = vld [vmem:[#allocation2 + $0x1a50] sm:$0xff] }
 0x40a   :  { %8031 = vmatpush1.bf16.msra.mxu1 %v14976_v16  ;;  %v15017_v49 = vcombine.high %v773_v11, %v777_v58  ;;  %v15271_v8 = vcombine.high %v1028_v21, %v1032_v61  ;;  %v1040_v18 = vld [vmem:[#allocation2 + $0x1a70] sm:$0xff]  ;;  %v15016_v16 = vcombine.low %v773_v11, %v777_v58  ;;  %v15270_v1 = vcombine.low %v1028_v21, %v1032_v61 }
 0x40b   :  { %8032 = vmatprep.subr.bf16.mxu1 %v14985_v26  ;;  %v15025_v55 = vcombine.high %v781_v23, %v785_v46  ;;  %v789_v26 = vld [vmem:[#allocation2 + $0x1298] sm:$0xff]  ;;  %v1044_v29 = vld [vmem:[#allocation2 + $0x1a90] sm:$0xff]  ;;  %v15024_v9 = vcombine.low %v781_v23, %v785_v46  ;;  %v15278_v0 = vcombine.low %v1036_v63, %v1040_v18 }
 0x40c   :  { %7713 = vmatpush1.bf16.msra.mxu0 %v15230_v41  ;;  %v15279_v41 = vcombine.high %v1036_v63, %v1040_v18  ;;  %v1048_v36 = vld [vmem:[#allocation2 + $0x1ab0] sm:$0xff] }
 0x40d   :  { %7714 = vmatprep.subr.bf16.mxu0 %v15239_v17  ;;  %v793_v17 = vld [vmem:[#allocation2 + $0x12b8] sm:$0xff]  ;;  %v1052_v54 = vld [vmem:[#allocation2 + $0x1ad0] sm:$0xff]  ;;  %v15286_v47 = vcombine.low %v1044_v29, %v1048_v36 }
 0x40e   :  { %8033 = vmatpush1.bf16.msra.mxu1 %v14984_v52  ;;  %v15033_v52 = vcombine.high %v789_v26, %v793_v17  ;;  %v1056_v60 = vld [vmem:[#allocation2 + $0x1af0] sm:$0xff]  ;;  %v15032_v30 = vcombine.low %v789_v26, %v793_v17 }
 0x40f   :  { %8034 = vmatprep.subr.bf16.mxu1 %v14993_v37  ;;  %v797_v37 = vld [vmem:[#allocation2 + $0x12d8] sm:$0xff]  ;;  %v1060_v50 = vld [vmem:[#allocation2 + $0x1b10] sm:$0xff]  ;;  %v15294_v32 = vcombine.low %v1052_v54, %v1056_v60 }
 0x410   :  { %7715 = vmatpush1.bf16.msra.mxu0 %v15238_v59  ;;  %v15287_v59 = vcombine.high %v1044_v29, %v1048_v36  ;;  %v1064_v6 = vld [vmem:[#allocation2 + $0x1b30] sm:$0xff] }
 0x411   :  { %7716 = vmatprep.subr.bf16.mxu0 %v15247_v33  ;;  %v801_v33 = vld [vmem:[#allocation2 + $0x12f8] sm:$0xff]  ;;  %v1068_v11 = vld [vmem:[#allocation2 + $0x1b50] sm:$0xff]  ;;  %v15302_v61 = vcombine.low %v1060_v50, %v1064_v6 }
 0x412   :  { %8035 = vmatpush1.bf16.msra.mxu1 %v14992_v44  ;;  %v15041_v44 = vcombine.high %v797_v37, %v801_v33  ;;  %v15040_v62 = vcombine.low %v797_v37, %v801_v33  ;;  %v1072_v58 = vld [vmem:[#allocation2 + $0x1b70] sm:$0xff] }
 0x413   :  { %8036 = vmatprep.subr.bf16.mxu1 %v15001_v7  ;;  %v805_v7 = vld [vmem:[#allocation2 + $0x1318] sm:$0xff]  ;;  %v1076_v23 = vld [vmem:[#allocation2 + $0x1b90] sm:$0xff]  ;;  %v15310_v18 = vcombine.low %v1068_v11, %v1072_v58 }
 0x414   :  { %7717 = vmatpush1.bf16.msra.mxu0 %v15246_v4  ;;  %v15295_v4 = vcombine.high %v1052_v54, %v1056_v60  ;;  %v1080_v46 = vld [vmem:[#allocation2 + $0x1bb0] sm:$0xff] }
 0x415   :  { %7718 = vmatprep.subr.bf16.mxu0 %v15255_v2  ;;  %v809_v2 = vld [vmem:[#allocation2 + $0x1338] sm:$0xff]  ;;  %v1084_v26 = vld [vmem:[#allocation2 + $0x1bd0] sm:$0xff]  ;;  %v15318_v36 = vcombine.low %v1076_v23, %v1080_v46 }
 0x416   :  { %8037 = vmatpush1.bf16.msra.mxu1 %v15000_v31  ;;  %v15049_v31 = vcombine.high %v805_v7, %v809_v2  ;;  %v15048_v21 = vcombine.low %v805_v7, %v809_v2  ;;  %v1088_v17 = vld [vmem:[#allocation2 + $0x1bf0] sm:$0xff] }
 0x417   :  { %8038 = vmatprep.subr.bf16.mxu1 %v15009_v57  ;;  %v813_v57 = vld [vmem:[#allocation2 + $0x1358] sm:$0xff]  ;;  %v1092_v37 = vld [vmem:[#allocation2 + $0x1c10] sm:$0xff]  ;;  %v15326_v60 = vcombine.low %v1084_v26, %v1088_v17 }
 0x418   :  { %7719 = vmatpush1.bf16.msra.mxu0 %v15254_v15  ;;  %v15303_v15 = vcombine.high %v1060_v50, %v1064_v6  ;;  %v1096_v33 = vld [vmem:[#allocation2 + $0x1c30] sm:$0xff] }
 0x419   :  { %7720 = vmatprep.subr.bf16.mxu0 %v15263_v53  ;;  %v817_v53 = vld [vmem:[#allocation2 + $0x1378] sm:$0xff]  ;;  %v1100_v7 = vld [vmem:[#allocation2 + $0x1c50] sm:$0xff]  ;;  %v15334_v6 = vcombine.low %v1092_v37, %v1096_v33 }
 0x41a   :  { %8039 = vmatpush1.bf16.msra.mxu1 %v15008_v45  ;;  %v15057_v45 = vcombine.high %v813_v57, %v817_v53  ;;  %v15056_v63 = vcombine.low %v813_v57, %v817_v53  ;;  %v1104_v2 = vld [vmem:[#allocation2 + $0x1c70] sm:$0xff] }
 0x41b   :  { %8040 = vmatprep.subr.bf16.mxu1 %v15017_v49  ;;  %v821_v49 = vld [vmem:[#allocation2 + $0x1398] sm:$0xff]  ;;  %v1108_v57 = vld [vmem:[#allocation2 + $0x1c90] sm:$0xff] }
 0x41c   :  { %7721 = vmatpush1.bf16.msra.mxu0 %v15262_v19  ;;  %v15311_v19 = vcombine.high %v1068_v11, %v1072_v58  ;;  %v1112_v53 = vld [vmem:[#allocation2 + $0x1cb0] sm:$0xff]  ;;  %v15342_v58 = vcombine.low %v1100_v7, %v1104_v2 }
 0x41d   :  { %7722 = vmatprep.subr.bf16.mxu0 %v15271_v8  ;;  %v825_v8 = vld [vmem:[#allocation2 + $0x13b8] sm:$0xff] }
 0x41e   :  { %8041 = vmatpush1.bf16.msra.mxu1 %v15016_v16  ;;  %v15065_v16 = vcombine.high %v821_v49, %v825_v8  ;;  %v15064_v29 = vcombine.low %v821_v49, %v825_v8  ;;  %v19165_v49 = vld [vmem:[#allocation27_spill] sm:$0xff] }
 0x41f   :  { %8042 = vmatprep.subr.bf16.mxu1 %v15025_v55  ;;  %v829_v55 = vld [vmem:[#allocation2 + $0x13d8] sm:$0xff]  ;;  %v1116_v8 = vld [vmem:[#allocation2 + $0x1cd0] sm:$0xff] }
 0x420   :  { %7723 = vmatpush1.bf16.msra.mxu0 %v15270_v1  ;;  %v15319_v1 = vcombine.high %v1076_v23, %v1080_v46  ;;  %v1120_v23 = vld [vmem:[#allocation2 + $0x1cf0] sm:$0xff]  ;;  %v15350_v46 = vcombine.low %v1108_v57, %v1112_v53 }
 0x421   :  { %7724 = vmatprep.subr.bf16.mxu0 %v15279_v41  ;;  %v833_v41 = vld [vmem:[#allocation2 + $0x13f8] sm:$0xff] }
 0x422   :  { %8043 = vmatpush1.bf16.msra.mxu1 %v15024_v9  ;;  %v15073_v9 = vcombine.high %v829_v55, %v833_v41  ;;  %v15072_v54 = vcombine.low %v829_v55, %v833_v41  ;;  %v1124_v55 = vld [vmem:[#allocation2 + $0x1d10] sm:$0xff] }
 0x423   :  { %8044 = vmatprep.subr.bf16.mxu1 %v15033_v52  ;;  %v837_v52 = vld [vmem:[#allocation2 + $0x1418] sm:$0xff]  ;;  %v1128_v41 = vld [vmem:[#allocation2 + $0x1d30] sm:$0xff] }
 0x424   :  { %7725 = vmatpush1.bf16.msra.mxu0 %v15278_v0  ;;  %v15327_v0 = vcombine.high %v1084_v26, %v1088_v17  ;;  %v19166_v17 = vld [vmem:[#allocation28_spill] sm:$0xff] }
 0x425   :  { %7726 = vmatprep.subr.bf16.mxu0 %v15287_v59  ;;  %v841_v59 = vld [vmem:[#allocation2 + $0x1438] sm:$0xff] }
 0x426   :  { %8045 = vmatpush1.bf16.msra.mxu1 %v15032_v30  ;;  %v15081_v30 = vcombine.high %v837_v52, %v841_v59  ;;  %v15080_v50 = vcombine.low %v837_v52, %v841_v59  ;;  %v19167_v52 = vld [vmem:[#allocation29_spill] sm:$0xff]  ;;  %v1132_v59 = vld [vmem:[#allocation2 + $0x1d50] sm:$0xff] }
 0x427   :  { %8046 = vmatprep.subr.bf16.mxu1 %v15041_v44  ;;  %v845_v44 = vld [vmem:[#allocation2 + $0x1458] sm:$0xff] }
 0x428   :  { %7727 = vmatpush1.bf16.msra.mxu0 %v15286_v47  ;;  %v15335_v47 = vcombine.high %v1092_v37, %v1096_v33  ;;  %v1136_v37 = vld [vmem:[#allocation2 + $0x1d70] sm:$0xff]  ;;  %v15366_v33 = vcombine.low %v1124_v55, %v1128_v41 }
 0x429   :  { %7728 = vmatprep.subr.bf16.mxu0 %v15295_v4  ;;  %v849_v4 = vld [vmem:[#allocation2 + $0x1478] sm:$0xff] }
 0x42a   :  { %8047 = vmatpush1.bf16.msra.mxu1 %v15040_v62  ;;  %v15089_v62 = vcombine.high %v845_v44, %v849_v4  ;;  %v15088_v11 = vcombine.low %v845_v44, %v849_v4  ;;  %v1140_v44 = vld [vmem:[#allocation2 + $0x1d90] sm:$0xff] }
 0x42b   :  { %8048 = vmatprep.subr.bf16.mxu1 %v15049_v31  ;;  %v853_v31 = vld [vmem:[#allocation2 + $0x1498] sm:$0xff]  ;;  %v1144_v4 = vld [vmem:[#allocation2 + $0x1db0] sm:$0xff] }
 0x42c   :  { %7729 = vmatpush1.bf16.msra.mxu0 %v15294_v32  ;;  %v15343_v32 = vcombine.high %v1100_v7, %v1104_v2  ;;  %v15374_v2 = vcombine.low %v1132_v59, %v1136_v37 }
 0x42d   :  { %7730 = vmatprep.subr.bf16.mxu0 %v15303_v15  ;;  %v857_v15 = vld [vmem:[#allocation2 + $0x14b8] sm:$0xff] }
 0x42e   :  { %8049 = vmatpush1.bf16.msra.mxu1 %v15048_v21  ;;  %v15097_v21 = vcombine.high %v853_v31, %v857_v15 }
 0x42f   :  { %8050 = vmatprep.subr.bf16.mxu1 %v15057_v45  ;;  %v861_v45 = vld [vmem:[#allocation2 + $0x14d8] sm:$0xff] }
 0x430   :  { %7731 = vmatpush1.bf16.msra.mxu0 %v15302_v61  ;;  %v15351_v61 = vcombine.high %v1108_v57, %v1112_v53  ;;  %v15382_v57 = vcombine.low %v1140_v44, %v1144_v4 }
 0x431   :  { %7732 = vmatprep.subr.bf16.mxu0 %v15311_v19  ;;  %v865_v19 = vld [vmem:[#allocation2 + $0x14f8] sm:$0xff] }
 0x432   :  { %8051 = vmatpush1.bf16.msra.mxu1 %v15056_v63  ;;  %v15105_v63 = vcombine.high %v861_v45, %v865_v19  ;;  %v15104_v26 = vcombine.low %v861_v45, %v865_v19  ;;  %v1160_v45 = vld [vmem:[#allocation2 + $0x1e30] sm:$0xff] }
 0x433   :  { %8052 = vmatprep.subr.bf16.mxu1 %v15065_v16  ;;  %v869_v16 = vld [vmem:[#allocation2 + $0x1518] sm:$0xff] }
 0x434   :  { %7733 = vmatpush1.bf16.msra.mxu0 %v15310_v18  ;;  %v15359_v18 = vcombine.high %v1116_v8, %v1120_v23 }
 0x435   :  { %7734 = vmatprep.subr.bf16.mxu0 %v15319_v1  ;;  %v873_v1 = vld [vmem:[#allocation2 + $0x1538] sm:$0xff] }
 0x436   :  { %8053 = vmatpush1.bf16.msra.mxu1 %v15064_v29  ;;  %v15113_v29 = vcombine.high %v869_v16, %v873_v1 }
 0x437   :  { %8054 = vmatprep.subr.bf16.mxu1 %v15073_v9  ;;  %v877_v9 = vld [vmem:[#allocation2 + $0x1558] sm:$0xff] }
 0x438   :  { %7735 = vmatpush1.bf16.msra.mxu0 %v15318_v36  ;;  %v15367_v36 = vcombine.high %v1124_v55, %v1128_v41 }
 0x439   :  { %7736 = vmatprep.subr.bf16.mxu0 %v15327_v0  ;;  %v881_v0 = vld [vmem:[#allocation2 + $0x1578] sm:$0xff] }
 0x43a   :  { %8055 = vmatpush1.bf16.msra.mxu1 %v15072_v54  ;;  %v15121_v54 = vcombine.high %v877_v9, %v881_v0  ;;  %v15120_v7 = vcombine.low %v877_v9, %v881_v0  ;;  %v1176_v9 = vld [vmem:[#allocation2 + $0x1eb0] sm:$0xff] }
 0x43b   :  { %8077 = vmatprep.subr.bf16.mxu1 %v15081_v30  ;;  %v885_v30 = vld [vmem:[#allocation2 + $0x1598] sm:$0xff] }
 0x43c   :  { %7737 = vmatpush1.bf16.msra.mxu0 %v15326_v60  ;;  %v15375_v60 = vcombine.high %v1132_v59, %v1136_v37 }
 0x43d   :  { %7759 = vmatprep.subr.bf16.mxu0 %v15335_v47  ;;  %8057 = vmatmul.mubr.bf16.vlgmr.msra.gmra.mrb[16].mxu1 %v18306_v28  ;;  %v15096_v28 = vcombine.low %v853_v31, %v857_v15  ;;  %v889_v47 = vld [vmem:[#allocation2 + $0x15b8] sm:$0xff]  ;;  %v1152_v31 = vld [vmem:[#allocation2 + $0x1df0] sm:$0xff] }
 0x43e   :  { %8078 = vmatpush1.bf16.msra.mxu1 %v15080_v50  ;;  %8066 = vmatprep.mubr.bf16.mxu1 %v18308_v38  ;;  %v15358_v38 = vcombine.low %v1116_v8, %v1120_v23  ;;  %v15129_v50 = vcombine.high %v885_v30, %v889_v47  ;;  %v15128_v15 = vcombine.low %v885_v30, %v889_v47  ;;  %v1184_v30 = vld [vmem:[#allocation2 + $0x1ef0] sm:$0xff] }
 0x43f   :  { %7739 = vmatmul.mubr.bf16.vlgmr.msra.gmra.mrb[8].mxu0 %v18394_v34  ;;  %8079 = vmatprep.subr.bf16.mxu1 %v15089_v62  ;;  %v897_v62 = vld [vmem:[#allocation2 + $0x15f8] sm:$0xff] }
 0x440   :  { %7760 = vmatpush1.bf16.msra.mxu0 %v15334_v6  ;;  %7748 = vmatprep.mubr.bf16.mxu0 %v19165_v49  ;;  %v893_v6 = vld [vmem:[#allocation2 + $0x15d8] sm:$0xff] }
 0x441   :  { %7761 = vmatprep.subr.bf16.mxu0 %v15343_v32  ;;  %v1148_v32 = vld [vmem:[#allocation2 + $0x1dd0] sm:$0xff]  ;;  %v15137_v53 = vcombine.high %v893_v6, %v897_v62  ;;  %v15136_v19 = vcombine.low %v893_v6, %v897_v62 }
 0x442   :  { %8080 = vmatpush1.bf16.msra.mxu1 %v15088_v11  ;;  %v15391_v11 = vcombine.high %v1148_v32, %v1152_v31  ;;  %v15390_v8 = vcombine.low %v1148_v32, %v1152_v31  ;;  %v1192_v6 = vld [vmem:[#allocation2 + $0x1f30] sm:$0xff] }
 0x443   :  { %8081 = vmatprep.subr.bf16.mxu1 %v15097_v21  ;;  %v905_v21 = vld [vmem:[#allocation2 + $0x1638] sm:$0xff] }
 0x444   :  { %7762 = vmatpush1.bf16.msra.mxu0 %v15342_v58  ;;  %v901_v58 = vld [vmem:[#allocation2 + $0x1618] sm:$0xff] }
 0x445   :  { %7763 = vmatprep.subr.bf16.mxu0 %v15351_v61  ;;  %8067 = vmatmul.mubr.bf16.gmra.mrb[20].mxu1 %v18324_v51  ;;  %v15112_v51 = vcombine.low %v869_v16, %v873_v1  ;;  %v1156_v61 = vld [vmem:[#allocation2 + $0x1e10] sm:$0xff]  ;;  %v15145_v23 = vcombine.high %v901_v58, %v905_v21  ;;  %v15144_v1 = vcombine.low %v901_v58, %v905_v21 }
 0x446   :  { %8082 = vmatpush1.bf16.msra.mxu1 %v15096_v28  ;;  %8109 = vmatprep.mubr.bf16.mxu1 %v18328_v42  ;;  %v15383_v42 = vcombine.high %v1140_v44, %v1144_v4  ;;  %v15399_v28 = vcombine.high %v1156_v61, %v1160_v45  ;;  %v1168_v16 = vld [vmem:[#allocation2 + $0x1e70] sm:$0xff]  ;;  %v15398_v55 = vcombine.low %v1156_v61, %v1160_v45 }
 0x447   :  { %7749 = vmatmul.mubr.bf16.gmra.mrb[12].mxu0 %v19166_v17  ;;  %8083 = vmatprep.subr.bf16.mxu1 %v15105_v63  ;;  %v913_v63 = vld [vmem:[#allocation2 + $0x1678] sm:$0xff]  ;;  %v1200_v58 = vld [vmem:[#allocation2 + $0x1f70] sm:$0xff] }
 0x448   :  { %7764 = vmatpush1.bf16.msra.mxu0 %v15350_v46  ;;  %7791 = vmatprep.mubr.bf16.mxu0 %v19167_v52  ;;  %v909_v46 = vld [vmem:[#allocation2 + $0x1658] sm:$0xff] }
 0x449   :  { %7765 = vmatprep.subr.bf16.mxu0 %v15359_v18  ;;  %v1164_v18 = vld [vmem:[#allocation2 + $0x1e50] sm:$0xff]  ;;  %v15153_v41 = vcombine.high %v909_v46, %v913_v63  ;;  %v15152_v0 = vcombine.low %v909_v46, %v913_v63 }
 0x44a   :  { %8084 = vmatpush1.bf16.msra.mxu1 %v15104_v26  ;;  %v15407_v26 = vcombine.high %v1164_v18, %v1168_v16  ;;  %v15406_v59 = vcombine.low %v1164_v18, %v1168_v16  ;;  %v1208_v46 = vld [vmem:[#allocation2 + $0x1fb0] sm:$0xff] }
 0x44b   :  { %8085 = vmatprep.subr.bf16.mxu1 %v15113_v29  ;;  %v921_v29 = vld [vmem:[#allocation2 + $0x16b8] sm:$0xff] }
 0x44c   :  { %7766 = vmatpush1.bf16.msra.mxu0 %v15358_v38  ;;  %v917_v38 = vld [vmem:[#allocation2 + $0x1698] sm:$0xff] }
 0x44d   :  { %7767 = vmatprep.subr.bf16.mxu0 %v15367_v36  ;;  %v1172_v36 = vld [vmem:[#allocation2 + $0x1e90] sm:$0xff]  ;;  %v15161_v37 = vcombine.high %v917_v38, %v921_v29  ;;  %v15160_v47 = vcombine.low %v917_v38, %v921_v29 }
 0x44e   :  { %8086 = vmatpush1.bf16.msra.mxu1 %v15112_v51  ;;  %v15415_v51 = vcombine.high %v1172_v36, %v1176_v9  ;;  %v15414_v44 = vcombine.low %v1172_v36, %v1176_v9  ;;  %v1216_v38 = vld [vmem:[#allocation2 + $0x1ff0] sm:$0xff] }
 0x44f   :  { %8087 = vmatprep.subr.bf16.mxu1 %v15121_v54  ;;  %v929_v54 = vld [vmem:[#allocation2 + $0x16f8] sm:$0xff] }
 0x450   :  { %7768 = vmatpush1.bf16.msra.mxu0 %v15366_v33  ;;  %v925_v33 = vld [vmem:[#allocation2 + $0x16d8] sm:$0xff] }
 0x451   :  { %7769 = vmatprep.subr.bf16.mxu0 %v15375_v60  ;;  %v1180_v60 = vld [vmem:[#allocation2 + $0x1ed0] sm:$0xff]  ;;  %v15169_v4 = vcombine.high %v925_v33, %v929_v54  ;;  %v15168_v62 = vcombine.low %v925_v33, %v929_v54 }
 0x452   :  { %8088 = vmatpush1.bf16.msra.mxu1 %v15120_v7  ;;  %v15423_v7 = vcombine.high %v1180_v60, %v1184_v30  ;;  %v15422_v32 = vcombine.low %v1180_v60, %v1184_v30  ;;  %v16678_v60 = vld [vmem:[#allocation10 + $0x4] ss:$28 sps:$4 sm:$0xff]  }
 0x453   :  { %8089 = vmatprep.subr.bf16.mxu1 %v15129_v50  ;;  %v937_v50 = vld [vmem:[#allocation2 + $0x1738] sm:$0xff] }
 0x454   :  { %7770 = vmatpush1.bf16.msra.mxu0 %v15374_v2  ;;  %v933_v2 = vld [vmem:[#allocation2 + $0x1718] sm:$0xff] }
 0x455   :  { %7771 = vmatprep.subr.bf16.mxu0 %v15383_v42  ;;  %v1188_v42 = vld [vmem:[#allocation2 + $0x1f10] sm:$0xff]  ;;  %v15177_v31 = vcombine.high %v933_v2, %v937_v50  ;;  %v15176_v21 = vcombine.low %v933_v2, %v937_v50  ;;  %v973_v30 = vld [vmem:[#allocation2 + $0x1858] sm:$0xff] }
 0x456   :  { %8090 = vmatpush1.bf16.msra.mxu1 %v15128_v15  ;;  %v15431_v15 = vcombine.high %v1188_v42, %v1192_v6  ;;  %v15430_v61 = vcombine.low %v1188_v42, %v1192_v6  ;;  %v16681_v2 = vld [vmem:[#allocation10 + $0x3c] ss:$28 sps:$4 sm:$0xff]   ;;  %v981_v50 = vld [vmem:[#allocation2 + $0x1898] sm:$0xff] }
 0x457   :  { %8091 = vmatprep.subr.bf16.mxu1 %v15137_v53  ;;  %v945_v53 = vld [vmem:[#allocation2 + $0x1778] sm:$0xff]  ;;  %v19168_v6 = vld [vmem:[#allocation30_spill] sm:$0xff] }
 0x458   :  { %7772 = vmatpush1.bf16.msra.mxu0 %v15382_v57  ;;  %v941_v57 = vld [vmem:[#allocation2 + $0x1758] sm:$0xff] }
 0x459   :  { %7773 = vmatprep.subr.bf16.mxu0 %v15391_v11  ;;  %v1196_v11 = vld [vmem:[#allocation2 + $0x1f50] sm:$0xff]  ;;  %v15185_v45 = vcombine.high %v941_v57, %v945_v53  ;;  %v15184_v63 = vcombine.low %v941_v57, %v945_v53  ;;  %v985_v42 = vld [vmem:[#allocation2 + $0x18b8] sm:$0xff]  ;;  %v16684_v57 = vld [vmem:[#allocation10 + $0x74] ss:$28 sps:$4 sm:$0xff]  }
 0x45a   :  { %8092 = vmatpush1.bf16.msra.mxu1 %v15136_v19  ;;  %v15439_v19 = vcombine.high %v1196_v11, %v1200_v58  ;;  %v15438_v18 = vcombine.low %v1196_v11, %v1200_v58  ;;  %v989_v53 = vld [vmem:[#allocation2 + $0x18d8] sm:$0xff]  ;;  %v15224_v58 = vcombine.low %v981_v50, %v985_v42 }
 0x45b   :  { %8093 = vmatprep.subr.bf16.mxu1 %v15145_v23  ;;  %v953_v23 = vld [vmem:[#allocation2 + $0x17b8] sm:$0xff] }
 0x45c   :  { %7774 = vmatpush1.bf16.msra.mxu0 %v15390_v8  ;;  %v949_v8 = vld [vmem:[#allocation2 + $0x1798] sm:$0xff] }
 0x45d   :  { %7775 = vmatprep.subr.bf16.mxu0 %v15399_v28  ;;  %v1204_v28 = vld [vmem:[#allocation2 + $0x1f90] sm:$0xff]  ;;  %v15193_v16 = vcombine.high %v949_v8, %v953_v23  ;;  %v15192_v29 = vcombine.low %v949_v8, %v953_v23  ;;  %v993_v11 = vld [vmem:[#allocation2 + $0x18f8] sm:$0xff] }
 0x45e   :  { %8094 = vmatpush1.bf16.msra.mxu1 %v15144_v1  ;;  %v15447_v1 = vcombine.high %v1204_v28, %v1208_v46  ;;  %v15446_v36 = vcombine.low %v1204_v28, %v1208_v46  ;;  %v19170_v8 = vld [vmem:[#allocation32_spill] sm:$0xff]  ;;  %v15232_v23 = vcombine.low %v989_v53, %v993_v11 }
 0x45f   :  { %8095 = vmatprep.subr.bf16.mxu1 %v15153_v41  ;;  %v961_v41 = vld [vmem:[#allocation2 + $0x17f8] sm:$0xff] }
 0x460   :  { %7776 = vmatpush1.bf16.msra.mxu0 %v15398_v55  ;;  %v957_v55 = vld [vmem:[#allocation2 + $0x17d8] sm:$0xff] }
 0x461   :  { %7777 = vmatprep.subr.bf16.mxu0 %v15407_v26  ;;  %v1212_v26 = vld [vmem:[#allocation2 + $0x1fd0] sm:$0xff]  ;;  %v15201_v9 = vcombine.high %v957_v55, %v961_v41  ;;  %v16690_v46 = vld [vmem:[#allocation10 + $0xe4] ss:$28 sps:$4 sm:$0xff]  }
 0x462   :  { %8096 = vmatpush1.bf16.msra.mxu1 %v15152_v0  ;;  %v15455_v0 = vcombine.high %v1212_v26, %v1216_v38  ;;  %v15454_v33 = vcombine.low %v1212_v26, %v1216_v38  ;;  %v1017_v26 = vld [vmem:[#allocation2 + $0x19b8] sm:$0xff] }
 0x463   :  { %8097 = vmatprep.subr.bf16.mxu1 %v15161_v37  ;;  %v969_v37 = vld [vmem:[#allocation2 + $0x1838] sm:$0xff] }
 0x464   :  { %7778 = vmatpush1.bf16.msra.mxu0 %v15406_v59  ;;  %v965_v59 = vld [vmem:[#allocation2 + $0x1818] sm:$0xff] }
 0x465   :  { %7779 = vmatprep.subr.bf16.mxu0 %v15415_v51  ;;  %v15200_v51 = vcombine.low %v957_v55, %v961_v41  ;;  %v15209_v54 = vcombine.high %v965_v59, %v969_v37  ;;  %v16693_v55 = vld [vmem:[#allocation10 + $0x11c] ss:$28 sps:$4 sm:$0xff]   ;;  %v1013_v41 = vld [vmem:[#allocation2 + $0x1998] sm:$0xff] }
 0x466   :  { %8098 = vmatpush1.bf16.msra.mxu1 %v15160_v47  ;;  %v977_v47 = vld [vmem:[#allocation2 + $0x1878] sm:$0xff] }
 0x467   :  { %8099 = vmatprep.subr.bf16.mxu1 %v15169_v4  ;;  %v16676_v4 = vld [vmem:[#allocation10] ss:$28 sps:$4 sm:$0xff]  }
 0x468   :  { %7780 = vmatpush1.bf16.msra.mxu0 %v15414_v44  ;;  %v15208_v44 = vcombine.low %v965_v59, %v969_v37  ;;  %v15256_v59 = vcombine.low %v1013_v41, %v1017_v26  ;;  %v16694_v37 = vld [vmem:[#allocation10 + $0x150] ss:$28 sps:$4 sm:$0xff]  }
 0x469   :  { %7781 = vmatprep.subr.bf16.mxu0 %v15423_v7  ;;  %v15217_v7 = vcombine.high %v973_v30, %v977_v47 }
 0x46a   :  { %8100 = vmatpush1.bf16.msra.mxu1 %v15168_v62  ;;  %v15216_v62 = vcombine.low %v973_v30, %v977_v47  ;;  %v16697_v47 = vld [vmem:[#allocation10 + $0x188] ss:$28 sps:$4 sm:$0xff]  }
 0x46b   :  { %8101 = vmatprep.subr.bf16.mxu1 %v15177_v31  ;;  %v15225_v31 = vcombine.high %v981_v50, %v985_v42  ;;  %v16700_v42 = vld [vmem:[#allocation10 + $0x1c0] ss:$28 sps:$4 sm:$0xff]  }
 0x46c   :  { %7782 = vmatpush1.bf16.msra.mxu0 %v15422_v32  ;;  %v16679_v32 = vld [vmem:[#allocation10 + $0x38] ss:$28 sps:$4 sm:$0xff]  }
 0x46d   :  { %7783 = vmatprep.subr.bf16.mxu0 %v15431_v15  ;;  %v19169_v15 = vld [vmem:[#allocation31_spill] sm:$0xff] }
 0x46e   :  { %8102 = vmatpush1.bf16.msra.mxu1 %v15176_v21  ;;  %v15233_v21 = vcombine.high %v989_v53, %v993_v11  ;;  %v16703_v11 = vld [vmem:[#allocation10 + $0x1f8] ss:$28 sps:$4 sm:$0xff]  }
 0x46f   :  { %8103 = vmatprep.subr.bf16.mxu1 %v15185_v45  ;;  %v997_v45 = vld [vmem:[#allocation2 + $0x1918] sm:$0xff] }
 0x470   :  { %7784 = vmatpush1.bf16.msra.mxu0 %v15430_v61  ;;  %v16687_v61 = vld [vmem:[#allocation10 + $0xac] ss:$28 sps:$4 sm:$0xff]  }
 0x471   :  { %7785 = vmatprep.subr.bf16.mxu0 %v15439_v19  ;;  %v1001_v19 = vld [vmem:[#allocation2 + $0x1938] sm:$0xff] }
 0x472   :  { %8104 = vmatpush1.bf16.msra.mxu1 %v15184_v63  ;;  %v15241_v28 = vcombine.high %v997_v45, %v1001_v19  ;;  %v1005_v63 = vld [vmem:[#allocation2 + $0x1958] sm:$0xff] }
 0x473   :  { %8105 = vmatprep.subr.bf16.mxu1 %v15193_v16  ;;  %v15240_v16 = vcombine.low %v997_v45, %v1001_v19  ;;  %v16706_v19 = vld [vmem:[#allocation10 + $0x230] ss:$28 sps:$4 sm:$0xff]  }
 0x474   :  { %7786 = vmatpush1.bf16.msra.mxu0 %v15438_v18  ;;  %v1009_v18 = vld [vmem:[#allocation2 + $0x1978] sm:$0xff] }
 0x475   :  { %7787 = vmatprep.subr.bf16.mxu0 %v15447_v1  ;;  %v15249_v1 = vcombine.high %v1005_v63, %v1009_v18  ;;  %v15248_v38 = vcombine.low %v1005_v63, %v1009_v18  ;;  %v16709_v18 = vld [vmem:[#allocation10 + $0x268] ss:$28 sps:$4 sm:$0xff]  }
 0x476   :  { %8106 = vmatpush1.bf16.msra.mxu1 %v15192_v29  ;;  %v16691_v29 = vld [vmem:[#allocation10 + $0x118] ss:$28 sps:$4 sm:$0xff]  }
 0x477   :  { %8107 = vmatprep.subr.bf16.mxu1 %v15201_v9  ;;  %v16696_v9 = vld [vmem:[#allocation10 + $0x154] ss:$28 sps:$4 sm:$0xff]  }
 0x478   :  { %7788 = vmatpush1.bf16.msra.mxu0 %v15446_v36  ;;  %v15257_v36 = vcombine.high %v1013_v41, %v1017_v26  ;;  %v16712_v26 = vld [vmem:[#allocation10 + $0x2a0] ss:$28 sps:$4 sm:$0xff]  }
 0x479   :  { %7789 = vmatprep.subr.bf16.mxu0 %v15455_v0  ;;  %v1021_v0 = vld [vmem:[#allocation2 + $0x19d8] sm:$0xff] }
 0x47a   :  { %8108 = vmatpush1.bf16.msra.mxu1 %v15200_v51 }
 0x47b   :  { %8130 = vmatprep.subr.bf16.mxu1 %v15209_v54  ;;  %v1029_v54 = vld [vmem:[#allocation2 + $0x1a18] sm:$0xff] }
 0x47c   :  { %7790 = vmatpush1.bf16.msra.mxu0 %v15454_v33  ;;  %v16699_v33 = vld [vmem:[#allocation10 + $0x18c] ss:$28 sps:$4 sm:$0xff]  }
 0x47d   :  { %11437 = vmatprep.subr.bf16.mxu0 %v16678_v60  ;;  %8110 = vmatmul.mubr.bf16.vlgmr.msra.gmra.mrb[16].mxu1 %v18358_v13  ;;  %v16682_v13 = vld [vmem:[#allocation10 + $0x70] ss:$28 sps:$4 sm:$0xff]   ;;  %v1033_v60 = vld [vmem:[#allocation2 + $0x1a38] sm:$0xff] }
 0x47e   :  { %8131 = vmatpush1.bf16.msra.mxu1 %v15208_v44  ;;  %8119 = vmatprep.mubr.bf16.mxu1 %v18360_v27  ;;  %v16685_v27 = vld [vmem:[#allocation10 + $0xa8] ss:$28 sps:$4 sm:$0xff]   ;;  %v15273_v44 = vcombine.high %v1029_v54, %v1033_v60  ;;  %v15272_v50 = vcombine.low %v1029_v54, %v1033_v60  ;;  %v16718_v60 = vld [vmem:[#allocation10 + $0x310] ss:$28 sps:$4 sm:$0xff]  }
 0x47f   :  { %7792 = vmatmul.mubr.bf16.vlgmr.msra.gmra.mrb[8].mxu0 %v19168_v6  ;;  %8132 = vmatprep.subr.bf16.mxu1 %v15217_v7  ;;  %v1037_v7 = vld [vmem:[#allocation2 + $0x1a58] sm:$0xff] }
 0x480   :  { %11438 = vmatpush1.bf16.msra.mxu0 %v16676_v4  ;;  %7801 = vmatprep.mubr.bf16.mxu0 %v19169_v15  ;;  %v16702_v4 = vld [vmem:[#allocation10 + $0x1c4] ss:$28 sps:$4 sm:$0xff]  }
 0x481   :  { %11439 = vmatprep.subr.bf16.mxu0 %v16681_v2  ;;  %v1041_v2 = vld [vmem:[#allocation2 + $0x1a78] sm:$0xff] }
 0x482   :  { %8133 = vmatpush1.bf16.msra.mxu1 %v15216_v62  ;;  %v15281_v62 = vcombine.high %v1037_v7, %v1041_v2  ;;  %v15280_v53 = vcombine.low %v1037_v7, %v1041_v2  ;;  %v16721_v2 = vld [vmem:[#allocation10 + $0x348] ss:$28 sps:$4 sm:$0xff]  }
 0x483   :  { %8134 = vmatprep.subr.bf16.mxu1 %v15225_v31  ;;  %v1045_v31 = vld [vmem:[#allocation2 + $0x1a98] sm:$0xff] }
 0x484   :  { %11440 = vmatpush1.bf16.msra.mxu0 %v16679_v32  ;;  %v16705_v32 = vld [vmem:[#allocation10 + $0x1fc] ss:$28 sps:$4 sm:$0xff]  }
 0x485   :  { %11441 = vmatprep.subr.bf16.mxu0 %v16684_v57  ;;  %8120 = vmatmul.mubr.bf16.gmra.mrb[20].mxu1 %v18376_v12  ;;  %v16688_v12 = vld [vmem:[#allocation10 + $0xe0] ss:$28 sps:$4 sm:$0xff]  }
 0x486   :  { %8135 = vmatpush1.bf16.msra.mxu1 %v15224_v58  ;;  %8162 = vmatprep.mubr.bf16.mxu1 %v18380_v3  ;;  %v1025_v3 = vld [vmem:[#allocation2 + $0x19f8] sm:$0xff] }
 0x487   :  { %7802 = vmatmul.mubr.bf16.gmra.mrb[12].mxu0 %v19170_v8  ;;  %8136 = vmatprep.subr.bf16.mxu1 %v15233_v21  ;;  %v15265_v51 = vcombine.high %v1021_v0, %v1025_v3  ;;  %v15264_v30 = vcombine.low %v1021_v0, %v1025_v3  ;;  %v1049_v57 = vld [vmem:[#allocation2 + $0x1ab8] sm:$0xff]  ;;  %v16715_v3 = vld [vmem:[#allocation10 + $0x2d8] ss:$28 sps:$4 sm:$0xff]  }
 0x488   :  { %11442 = vmatpush1.bf16.msra.mxu0 %v16682_v13  ;;  %11469 = vmatprep.mubr.bf16.mxu0 %v18560_v35  ;;  %v15289_v58 = vcombine.high %v1045_v31, %v1049_v57  ;;  %v16708_v13 = vld [vmem:[#allocation10 + $0x234] ss:$28 sps:$4 sm:$0xff]   ;;  %v1053_v21 = vld [vmem:[#allocation2 + $0x1ad8] sm:$0xff]  ;;  %v15288_v45 = vcombine.low %v1045_v31, %v1049_v57 }
 0x489   :  { %11443 = vmatprep.subr.bf16.mxu0 %v16687_v61  ;;  %v1057_v61 = vld [vmem:[#allocation2 + $0x1af8] sm:$0xff] }
 0x48a   :  { %8137 = vmatpush1.bf16.msra.mxu1 %v15232_v23  ;;  %v15297_v23 = vcombine.high %v1053_v21, %v1057_v61  ;;  %v15296_v63 = vcombine.low %v1053_v21, %v1057_v61  ;;  %v16724_v57 = vld [vmem:[#allocation10 + $0x380] ss:$28 sps:$4 sm:$0xff]   ;;  %v16727_v61 = vld [vmem:[#allocation10 + $0x3b8] ss:$28 sps:$4 sm:$0xff]  }
 0x48b   :  { %8138 = vmatprep.subr.bf16.mxu1 %v15241_v28  ;;  %v1061_v28 = vld [vmem:[#allocation2 + $0x1b18] sm:$0xff] }
 0x48c   :  { %11444 = vmatpush1.bf16.msra.mxu0 %v16685_v27  ;;  %v16711_v27 = vld [vmem:[#allocation10 + $0x26c] ss:$28 sps:$4 sm:$0xff]  }
 0x48d   :  { %11445 = vmatprep.subr.bf16.mxu0 %v16690_v46  ;;  %v1065_v46 = vld [vmem:[#allocation2 + $0x1b38] sm:$0xff] }
 0x48e   :  { %8139 = vmatpush1.bf16.msra.mxu1 %v15240_v16  ;;  %v15305_v16 = vcombine.high %v1061_v28, %v1065_v46  ;;  %v15304_v41 = vcombine.low %v1061_v28, %v1065_v46 }
 0x48f   :  { %8140 = vmatprep.subr.bf16.mxu1 %v15249_v1  ;;  %v1069_v1 = vld [vmem:[#allocation2 + $0x1b58] sm:$0xff] }
 0x490   :  { %11446 = vmatpush1.bf16.msra.mxu0 %v16688_v12  ;;  %v16714_v12 = vld [vmem:[#allocation10 + $0x2a4] ss:$28 sps:$4 sm:$0xff]  }
 0x491   :  { %11447 = vmatprep.subr.bf16.mxu0 %v16693_v55  ;;  %v1073_v55 = vld [vmem:[#allocation2 + $0x1b78] sm:$0xff] }
 0x492   :  { %8141 = vmatpush1.bf16.msra.mxu1 %v15248_v38  ;;  %v15313_v38 = vcombine.high %v1069_v1, %v1073_v55  ;;  %v15312_v0 = vcombine.low %v1069_v1, %v1073_v55  ;;  %v16738_v55 = vld [vmem:[#allocation10 + $0x464] ss:$28 sps:$4 sm:$0xff]  }
 0x493   :  { %8142 = vmatprep.subr.bf16.mxu1 %v15257_v36  ;;  %v1077_v36 = vld [vmem:[#allocation2 + $0x1b98] sm:$0xff] }
 0x494   :  { %11448 = vmatpush1.bf16.msra.mxu0 %v16691_v29  ;;  %v16717_v29 = vld [vmem:[#allocation10 + $0x2dc] ss:$28 sps:$4 sm:$0xff]  }
 0x495   :  { %11449 = vmatprep.subr.bf16.mxu0 %v16696_v9  ;;  %v1081_v9 = vld [vmem:[#allocation2 + $0x1bb8] sm:$0xff] }
 0x496   :  { %8143 = vmatpush1.bf16.msra.mxu1 %v15256_v59  ;;  %v15321_v59 = vcombine.high %v1077_v36, %v1081_v9  ;;  %v15320_v54 = vcombine.low %v1077_v36, %v1081_v9  ;;  %v16741_v36 = vld [vmem:[#allocation10 + $0x49c] ss:$28 sps:$4 sm:$0xff]   ;;  %v1141_v9 = vld [vmem:[#allocation2 + $0x1d98] sm:$0xff] }
 0x497   :  { %8144 = vmatprep.subr.bf16.mxu1 %v15265_v51  ;;  %v1085_v51 = vld [vmem:[#allocation2 + $0x1bd8] sm:$0xff] }
 0x498   :  { %11450 = vmatpush1.bf16.msra.mxu0 %v16694_v37  ;;  %v16720_v37 = vld [vmem:[#allocation10 + $0x314] ss:$28 sps:$4 sm:$0xff]  }
 0x499   :  { %11451 = vmatprep.subr.bf16.mxu0 %v16699_v33  ;;  %v1089_v33 = vld [vmem:[#allocation2 + $0x1bf8] sm:$0xff] }
 0x49a   :  { %8145 = vmatpush1.bf16.msra.mxu1 %v15264_v30  ;;  %v15329_v30 = vcombine.high %v1085_v51, %v1089_v33  ;;  %v15328_v7 = vcombine.low %v1085_v51, %v1089_v33  ;;  %v16744_v51 = vld [vmem:[#allocation10 + $0x4d4] ss:$28 sps:$4 sm:$0xff]   ;;  %v1149_v33 = vld [vmem:[#allocation2 + $0x1dd8] sm:$0xff] }
 0x49b   :  { %8146 = vmatprep.subr.bf16.mxu1 %v15273_v44  ;;  %v1093_v44 = vld [vmem:[#allocation2 + $0x1c18] sm:$0xff] }
 0x49c   :  { %11452 = vmatpush1.bf16.msra.mxu0 %v16697_v47  ;;  %v16723_v47 = vld [vmem:[#allocation10 + $0x34c] ss:$28 sps:$4 sm:$0xff]  }
 0x49d   :  { %11453 = vmatprep.subr.bf16.mxu0 %v16702_v4  ;;  %v1097_v4 = vld [vmem:[#allocation2 + $0x1c38] sm:$0xff] }
 0x49e   :  { %8147 = vmatpush1.bf16.msra.mxu1 %v15272_v50  ;;  %v15337_v50 = vcombine.high %v1093_v44, %v1097_v4  ;;  %v15336_v31 = vcombine.low %v1093_v44, %v1097_v4  ;;  %v1157_v44 = vld [vmem:[#allocation2 + $0x1e18] sm:$0xff] }
 0x49f   :  { %8148 = vmatprep.subr.bf16.mxu1 %v15281_v62  ;;  %v1101_v62 = vld [vmem:[#allocation2 + $0x1c58] sm:$0xff] }
 0x4a0   :  { %11454 = vmatpush1.bf16.msra.mxu0 %v16700_v42  ;;  %v16726_v42 = vld [vmem:[#allocation10 + $0x384] ss:$28 sps:$4 sm:$0xff]  }
 0x4a1   :  { %11455 = vmatprep.subr.bf16.mxu0 %v16705_v32  ;;  %v1105_v32 = vld [vmem:[#allocation2 + $0x1c78] sm:$0xff] }
 0x4a2   :  { %8149 = vmatpush1.bf16.msra.mxu1 %v15280_v53  ;;  %v15345_v53 = vcombine.high %v1101_v62, %v1105_v32  ;;  %v15344_v21 = vcombine.low %v1101_v62, %v1105_v32  ;;  %v1161_v4 = vld [vmem:[#allocation2 + $0x1e38] sm:$0xff] }
 0x4a3   :  { %8150 = vmatprep.subr.bf16.mxu1 %v15289_v58  ;;  %v1109_v58 = vld [vmem:[#allocation2 + $0x1c98] sm:$0xff] }
 0x4a4   :  { %11456 = vmatpush1.bf16.msra.mxu0 %v16703_v11  ;;  %v16729_v11 = vld [vmem:[#allocation10 + $0x3bc] ss:$28 sps:$4 sm:$0xff]   ;;  %v1165_v62 = vld [vmem:[#allocation2 + $0x1e58] sm:$0xff] }
 0x4a5   :  { %11457 = vmatprep.subr.bf16.mxu0 %v16708_v13  ;;  %v1113_v13 = vld [vmem:[#allocation2 + $0x1cb8] sm:$0xff] }
 0x4a6   :  { %8151 = vmatpush1.bf16.msra.mxu1 %v15288_v45  ;;  %v15353_v45 = vcombine.high %v1109_v58, %v1113_v13  ;;  %v15352_v28 = vcombine.low %v1109_v58, %v1113_v13  ;;  %v1169_v32 = vld [vmem:[#allocation2 + $0x1e78] sm:$0xff] }
 0x4a7   :  { %8152 = vmatprep.subr.bf16.mxu1 %v15297_v23  ;;  %v1117_v23 = vld [vmem:[#allocation2 + $0x1cd8] sm:$0xff] }
 0x4a8   :  { %11458 = vmatpush1.bf16.msra.mxu0 %v16706_v19  ;;  %v16732_v19 = vld [vmem:[#allocation10 + $0x3f4] ss:$28 sps:$4 sm:$0xff]   ;;  %v1173_v58 = vld [vmem:[#allocation2 + $0x1e98] sm:$0xff] }
 0x4a9   :  { %11459 = vmatprep.subr.bf16.mxu0 %v16711_v27  ;;  %v1121_v27 = vld [vmem:[#allocation2 + $0x1cf8] sm:$0xff] }
 0x4aa   :  { %8153 = vmatpush1.bf16.msra.mxu1 %v15296_v63  ;;  %v15361_v46 = vcombine.high %v1117_v23, %v1121_v27  ;;  %v16735_v63 = vld [vmem:[#allocation10 + $0x42c] ss:$28 sps:$4 sm:$0xff]   ;;  %v1177_v13 = vld [vmem:[#allocation2 + $0x1eb8] sm:$0xff] }
 0x4ab   :  { %8154 = vmatprep.subr.bf16.mxu1 %v15305_v16  ;;  %v1129_v16 = vld [vmem:[#allocation2 + $0x1d38] sm:$0xff] }
 0x4ac   :  { %11460 = vmatpush1.bf16.msra.mxu0 %v16709_v18  ;;  %v1125_v18 = vld [vmem:[#allocation2 + $0x1d18] sm:$0xff] }
 0x4ad   :  { %11461 = vmatprep.subr.bf16.mxu0 %v16714_v12  ;;  %v15360_v12 = vcombine.low %v1117_v23, %v1121_v27  ;;  %v15369_v1 = vcombine.high %v1125_v18, %v1129_v16  ;;  %v1181_v23 = vld [vmem:[#allocation2 + $0x1ed8] sm:$0xff] }
 0x4ae   :  { %8155 = vmatpush1.bf16.msra.mxu1 %v15304_v41  ;;  %v1133_v41 = vld [vmem:[#allocation2 + $0x1d58] sm:$0xff] }
 0x4af   :  { %8156 = vmatprep.subr.bf16.mxu1 %v15313_v38  ;;  %v15368_v38 = vcombine.low %v1125_v18, %v1129_v16  ;;  %v1185_v27 = vld [vmem:[#allocation2 + $0x1ef8] sm:$0xff] }
 0x4b0   :  { %11462 = vmatpush1.bf16.msra.mxu0 %v16712_v26  ;;  %v1137_v26 = vld [vmem:[#allocation2 + $0x1d78] sm:$0xff] }
 0x4b1   :  { %11463 = vmatprep.subr.bf16.mxu0 %v16717_v29  ;;  %v15377_v29 = vcombine.high %v1133_v41, %v1137_v26  ;;  %v1189_v18 = vld [vmem:[#allocation2 + $0x1f18] sm:$0xff] }
 0x4b2   :  { %8157 = vmatpush1.bf16.msra.mxu1 %v15312_v0  ;;  %v1145_v0 = vld [vmem:[#allocation2 + $0x1db8] sm:$0xff] }
 0x4b3   :  { %8158 = vmatprep.subr.bf16.mxu1 %v15321_v59  ;;  %v16739_v59 = vld [vmem:[#allocation10 + $0x498] ss:$28 sps:$4 sm:$0xff]   ;;  %v1193_v16 = vld [vmem:[#allocation2 + $0x1f38] sm:$0xff] }
 0x4b4   :  { %11464 = vmatpush1.bf16.msra.mxu0 %v16715_v3  ;;  %v15376_v3 = vcombine.low %v1133_v41, %v1137_v26  ;;  %v1197_v41 = vld [vmem:[#allocation2 + $0x1f58] sm:$0xff] }
 0x4b5   :  { %11465 = vmatprep.subr.bf16.mxu0 %v16720_v37  ;;  %v15385_v37 = vcombine.high %v1141_v9, %v1145_v0  ;;  %v1201_v26 = vld [vmem:[#allocation2 + $0x1f78] sm:$0xff] }
 0x4b6   :  { %8159 = vmatpush1.bf16.msra.mxu1 %v15320_v54  ;;  %v15384_v54 = vcombine.low %v1141_v9, %v1145_v0  ;;  %v1205_v9 = vld [vmem:[#allocation2 + $0x1f98] sm:$0xff] }
 0x4b7   :  { %8160 = vmatprep.subr.bf16.mxu1 %v15329_v30  ;;  %v1209_v0 = vld [vmem:[#allocation2 + $0x1fb8] sm:$0xff] }
 0x4b8   :  { %11466 = vmatpush1.bf16.msra.mxu0 %v16718_v60  ;;  %v16742_v60 = vld [vmem:[#allocation10 + $0x4d0] ss:$28 sps:$4 sm:$0xff]  }
 0x4b9   :  { %11467 = vmatprep.subr.bf16.mxu0 %v16723_v47  ;;  %v16747_v47 = vld [vmem:[#allocation10 + $0x50c] ss:$28 sps:$4 sm:$0xff]  }
 0x4ba   :  { %8161 = vmatpush1.bf16.msra.mxu1 %v15328_v7 }
 0x4bb   :  { %8183 = vmatprep.subr.bf16.mxu1 %v15337_v50  ;;  %v15401_v50 = vcombine.high %v1157_v44, %v1161_v4 }
 0x4bc   :  { %11468 = vmatpush1.bf16.msra.mxu0 %v16721_v2  ;;  %v16745_v2 = vld [vmem:[#allocation10 + $0x508] ss:$28 sps:$4 sm:$0xff]  }
 0x4bd   :  { %11490 = vmatprep.subr.bf16.mxu0 %v16726_v42  ;;  %8163 = vmatmul.mubr.bf16.vlgmr.msra.gmra.mrb[16].mxu1 %v18394_v34  ;;  %v16730_v34 = vld [vmem:[#allocation10 + $0x3f0] ss:$28 sps:$4 sm:$0xff]   ;;  %v16750_v42 = vld [vmem:[#allocation10 + $0x544] ss:$28 sps:$4 sm:$0xff]  }
 0x4be   :  { %8184 = vmatpush1.bf16.msra.mxu1 %v15336_v31  ;;  %8172 = vmatprep.mubr.bf16.mxu1 %v19165_v49  ;;  %v16733_v49 = vld [vmem:[#allocation10 + $0x428] ss:$28 sps:$4 sm:$0xff]   ;;  %v15400_v31 = vcombine.low %v1157_v44, %v1161_v4 }
 0x4bf   :  { %11470 = vmatmul.mubr.bf16.vlgmr.msra.gmra.mrb[16].mxu0 %v18562_v39  ;;  %8185 = vmatprep.subr.bf16.mxu1 %v15345_v53  ;;  %v15409_v53 = vcombine.high %v1165_v62, %v1169_v32  ;;  %v16769_v4 = vld [vmem:[#allocation10 + $0x6c8] ss:$28 sps:$4 sm:$0xff]  }
 0x4c0   :  { %11479 = vmatprep.mubr.bf16.mxu0 %v18566_v24  ;;  %11491 = vmatpush1.bf16.msra.mxu0 %v16724_v57  ;;  %v16748_v57 = vld [vmem:[#allocation10 + $0x540] ss:$28 sps:$4 sm:$0xff]  }
 0x4c1   :  { %11492 = vmatprep.subr.bf16.mxu0 %v16729_v11  ;;  %v16753_v11 = vld [vmem:[#allocation10 + $0x57c] ss:$28 sps:$4 sm:$0xff]  }
 0x4c2   :  { %8186 = vmatpush1.bf16.msra.mxu1 %v15344_v21  ;;  %v15408_v21 = vcombine.low %v1165_v62, %v1169_v32  ;;  %v16829_v62 = vld [vmem:[#allocation10 + $0x700] ss:$28 sps:$4 sm:$0xff]  }
 0x4c3   :  { %8187 = vmatprep.subr.bf16.mxu1 %v15353_v45  ;;  %v15417_v45 = vcombine.high %v1173_v58, %v1177_v13  ;;  %v16837_v32 = vld [vmem:[#allocation10 + $0x73c] ss:$28 sps:$4 sm:$0xff]  }
 0x4c4   :  { %11493 = vmatpush1.bf16.msra.mxu0 %v16727_v61  ;;  %v16751_v61 = vld [vmem:[#allocation10 + $0x578] ss:$28 sps:$4 sm:$0xff]  }
 0x4c5   :  { %11494 = vmatprep.subr.bf16.mxu0 %v16732_v19  ;;  %8173 = vmatmul.mubr.bf16.gmra.mrb[20].mxu1 %v19166_v17  ;;  %v16736_v17 = vld [vmem:[#allocation10 + $0x460] ss:$28 sps:$4 sm:$0xff]   ;;  %v16756_v19 = vld [vmem:[#allocation10 + $0x5b4] ss:$28 sps:$4 sm:$0xff]  }
 0x4c6   :  { %8188 = vmatpush1.bf16.msra.mxu1 %v15352_v28  ;;  %8215 = vmatprep.mubr.bf16.mxu1 %v19167_v52  ;;  %v1153_v52 = vld [vmem:[#allocation2 + $0x1df8] sm:$0xff]  ;;  %v15416_v28 = vcombine.low %v1173_v58, %v1177_v13  ;;  %v16778_v58 = vld [vmem:[#allocation10 + $0x78] ss:$28 sps:$4 sm:$0xff]  }
 0x4c7   :  { %11480 = vmatmul.mubr.bf16.gmra.mrb[20].mxu0 %v18568_v48  ;;  %8189 = vmatprep.subr.bf16.mxu1 %v15361_v46  ;;  %v15393_v30 = vcombine.high %v1149_v33, %v1153_v52  ;;  %v15392_v7 = vcombine.low %v1149_v33, %v1153_v52  ;;  %v15425_v46 = vcombine.high %v1181_v23, %v1185_v27  ;;  %v1213_v33 = vld [vmem:[#allocation2 + $0x1fd8] sm:$0xff]  ;;  %v16783_v13 = vld [vmem:[#allocation10 + $0xb4] ss:$28 sps:$4 sm:$0xff]  }
 0x4c8   :  { %11495 = vmatpush1.bf16.msra.mxu0 %v16730_v34  ;;  %11522 = vmatprep.mubr.bf16.mxu0 %v18659_v22  ;;  %v16754_v34 = vld [vmem:[#allocation10 + $0x5b0] ss:$28 sps:$4 sm:$0xff]   ;;  %v1217_v52 = vld [vmem:[#allocation2 + $0x1ff8] sm:$0xff] }
 0x4c9   :  { %11496 = vmatprep.subr.bf16.mxu0 %v16735_v63  ;;  %v16759_v63 = vld [vmem:[#allocation10 + $0x5ec] ss:$28 sps:$4 sm:$0xff]   ;;  %v15456_v44 = vcombine.low %v1213_v33, %v1217_v52 }
 0x4ca   :  { %8190 = vmatpush1.bf16.msra.mxu1 %v15360_v12  ;;  %v15424_v12 = vcombine.low %v1181_v23, %v1185_v27  ;;  %v16784_v23 = vld [vmem:[#allocation10 + $0xe8] ss:$28 sps:$4 sm:$0xff]  }
 0x4cb   :  { %8191 = vmatprep.subr.bf16.mxu1 %v15369_v1  ;;  %v15433_v1 = vcombine.high %v1189_v18, %v1193_v16  ;;  %v16789_v27 = vld [vmem:[#allocation10 + $0x124] ss:$28 sps:$4 sm:$0xff]  }
 0x4cc   :  { %11497 = vmatpush1.bf16.msra.mxu0 %v16733_v49  ;;  %v16757_v49 = vld [vmem:[#allocation10 + $0x5e8] ss:$28 sps:$4 sm:$0xff]  }
 0x4cd   :  { %11498 = vmatprep.subr.bf16.mxu0 %v16738_v55  ;;  %v16762_v55 = vld [vmem:[#allocation10 + $0x624] ss:$28 sps:$4 sm:$0xff]  }
 0x4ce   :  { %8192 = vmatpush1.bf16.msra.mxu1 %v15368_v38  ;;  %v15432_v38 = vcombine.low %v1189_v18, %v1193_v16  ;;  %v16867_v18 = vld [vmem:[#allocation10 + $0x854] ss:$28 sps:$4 sm:$0xff]  }
 0x4cf   :  { %8193 = vmatprep.subr.bf16.mxu1 %v15377_v29  ;;  %v15441_v29 = vcombine.high %v1197_v41, %v1201_v26  ;;  %v16790_v16 = vld [vmem:[#allocation10 + $0x158] ss:$28 sps:$4 sm:$0xff]  }
 0x4d0   :  { %11499 = vmatpush1.bf16.msra.mxu0 %v16736_v17  ;;  %v16760_v17 = vld [vmem:[#allocation10 + $0x620] ss:$28 sps:$4 sm:$0xff]  }
 0x4d1   :  { %11500 = vmatprep.subr.bf16.mxu0 %v16741_v36  ;;  %v16765_v36 = vld [vmem:[#allocation10 + $0x65c] ss:$28 sps:$4 sm:$0xff]  }
 0x4d2   :  { %8194 = vmatpush1.bf16.msra.mxu1 %v15376_v3  ;;  %v15440_v3 = vcombine.low %v1197_v41, %v1201_v26  ;;  %v16798_v41 = vld [vmem:[#allocation10 + $0x1cc] ss:$28 sps:$4 sm:$0xff]  }
 0x4d3   :  { %8195 = vmatprep.subr.bf16.mxu1 %v15385_v37  ;;  %v15449_v37 = vcombine.high %v1205_v9, %v1209_v0  ;;  %v16871_v26 = vld [vmem:[#allocation10 + $0x888] ss:$28 sps:$4 sm:$0xff]  }
 0x4d4   :  { %11501 = vmatpush1.bf16.msra.mxu0 %v16739_v59  ;;  %v16763_v59 = vld [vmem:[#allocation10 + $0x658] ss:$28 sps:$4 sm:$0xff]  }
 0x4d5   :  { %11502 = vmatprep.subr.bf16.mxu0 %v16744_v51  ;;  %v16768_v51 = vld [vmem:[#allocation10 + $0x694] ss:$28 sps:$4 sm:$0xff]  }
 0x4d6   :  { %8196 = vmatpush1.bf16.msra.mxu1 %v15384_v54  ;;  %v15448_v54 = vcombine.low %v1205_v9, %v1209_v0  ;;  %v16885_v9 = vld [vmem:[#allocation10 + $0x8fc] ss:$28 sps:$4 sm:$0xff]  }
 0x4d7   :  { %8197 = vmatprep.subr.bf16.mxu1 %v15393_v30  ;;  %v15457_v30 = vcombine.high %v1213_v33, %v1217_v52  ;;  %v16799_v0 = vld [vmem:[#allocation10 + $0x200] ss:$28 sps:$4 sm:$0xff]   ;;  %v16807_v33 = vld [vmem:[#allocation10 + $0x274] ss:$28 sps:$4 sm:$0xff]  }
 0x4d8   :  { %11503 = vmatpush1.bf16.msra.mxu0 %v16742_v60  ;;  %v16766_v60 = vld [vmem:[#allocation10 + $0x690] ss:$28 sps:$4 sm:$0xff]  }
 0x4d9   :  { %11504 = vmatprep.subr.bf16.mxu0 %v16747_v47  ;;  %v16771_v47 = vld [vmem:[#allocation10 + $0x6cc] ss:$28 sps:$4 sm:$0xff]  }
 0x4da   :  { %8198 = vmatpush1.bf16.msra.mxu1 %v15392_v7  ;;  %v16774_v7 = vld [vmem:[#allocation10 + $0xc] ss:$28 sps:$4 sm:$0xff]  }
 0x4db   :  { %8199 = vmatprep.subr.bf16.mxu1 %v15401_v50  ;;  %v16772_v50 = vld [vmem:[#allocation10 + $0x8] ss:$28 sps:$4 sm:$0xff]   ;;  %v16889_v52 = vld [vmem:[#allocation10 + $0x930] ss:$28 sps:$4 sm:$0xff]  }
 0x4dc   :  { %11505 = vmatpush1.bf16.msra.mxu0 %v16745_v2  ;;  %v16831_v2 = vld [vmem:[#allocation10 + $0x704] ss:$28 sps:$4 sm:$0xff]  }
 0x4dd   :  { %11506 = vmatprep.subr.bf16.mxu0 %v16750_v42  ;;  %v16777_v42 = vld [vmem:[#allocation10 + $0x44] ss:$28 sps:$4 sm:$0xff]  }
 0x4de   :  { %8200 = vmatpush1.bf16.msra.mxu1 %v15400_v31  ;;  %v16775_v31 = vld [vmem:[#allocation10 + $0x40] ss:$28 sps:$4 sm:$0xff]  }
 0x4df   :  { %8201 = vmatprep.subr.bf16.mxu1 %v15409_v53  ;;  %v16835_v53 = vld [vmem:[#allocation10 + $0x738] ss:$28 sps:$4 sm:$0xff]  }
 0x4e0   :  { %11507 = vmatpush1.bf16.msra.mxu0 %v16748_v57  ;;  %v16780_v57 = vld [vmem:[#allocation10 + $0x7c] ss:$28 sps:$4 sm:$0xff]  }
 0x4e1   :  { %11508 = vmatprep.subr.bf16.mxu0 %v16753_v11  ;;  %v16843_v11 = vld [vmem:[#allocation10 + $0x774] ss:$28 sps:$4 sm:$0xff]  }
 0x4e2   :  { %8202 = vmatpush1.bf16.msra.mxu1 %v15408_v21  ;;  %v16849_v21 = vld [vmem:[#allocation10 + $0x7ac] ss:$28 sps:$4 sm:$0xff]  }
 0x4e3   :  { %8203 = vmatprep.subr.bf16.mxu1 %v15417_v45  ;;  %v16847_v45 = vld [vmem:[#allocation10 + $0x7a8] ss:$28 sps:$4 sm:$0xff]  }
 0x4e4   :  { %11509 = vmatpush1.bf16.msra.mxu0 %v16751_v61  ;;  %v16781_v61 = vld [vmem:[#allocation10 + $0xb0] ss:$28 sps:$4 sm:$0xff]  }
 0x4e5   :  { %11510 = vmatprep.subr.bf16.mxu0 %v16756_v19  ;;  %v16855_v19 = vld [vmem:[#allocation10 + $0x7e4] ss:$28 sps:$4 sm:$0xff]  }
 0x4e6   :  { %8204 = vmatpush1.bf16.msra.mxu1 %v15416_v28  ;;  %v16861_v28 = vld [vmem:[#allocation10 + $0x81c] ss:$28 sps:$4 sm:$0xff]  }
 0x4e7   :  { %8205 = vmatprep.subr.bf16.mxu1 %v15425_v46  ;;  %v16792_v46 = vld [vmem:[#allocation10 + $0x15c] ss:$28 sps:$4 sm:$0xff]  }
 0x4e8   :  { %11511 = vmatpush1.bf16.msra.mxu0 %v16754_v34  ;;  %v16787_v34 = vld [vmem:[#allocation10 + $0x120] ss:$28 sps:$4 sm:$0xff]  }
 0x4e9   :  { %11512 = vmatprep.subr.bf16.mxu0 %v16759_v63  ;;  %v16859_v63 = vld [vmem:[#allocation10 + $0x818] ss:$28 sps:$4 sm:$0xff]  }
 0x4ea   :  { %8206 = vmatpush1.bf16.msra.mxu1 %v15424_v12  ;;  %v16795_v12 = vld [vmem:[#allocation10 + $0x194] ss:$28 sps:$4 sm:$0xff]  }
 0x4eb   :  { %8207 = vmatprep.subr.bf16.mxu1 %v15433_v1  ;;  %v16873_v1 = vld [vmem:[#allocation10 + $0x88c] ss:$28 sps:$4 sm:$0xff]  }
 0x4ec   :  { %11513 = vmatpush1.bf16.msra.mxu0 %v16757_v49  ;;  %v16865_v49 = vld [vmem:[#allocation10 + $0x850] ss:$28 sps:$4 sm:$0xff]  }
 0x4ed   :  { %11514 = vmatprep.subr.bf16.mxu0 %v16762_v55  ;;  %v16793_v55 = vld [vmem:[#allocation10 + $0x190] ss:$28 sps:$4 sm:$0xff]  }
 0x4ee   :  { %8208 = vmatpush1.bf16.msra.mxu1 %v15432_v38  ;;  %v16879_v38 = vld [vmem:[#allocation10 + $0x8c4] ss:$28 sps:$4 sm:$0xff]  }
 0x4ef   :  { %8209 = vmatprep.subr.bf16.mxu1 %v15441_v29  ;;  %v16801_v29 = vld [vmem:[#allocation10 + $0x204] ss:$28 sps:$4 sm:$0xff]  }
 0x4f0   :  { %11515 = vmatpush1.bf16.msra.mxu0 %v16760_v17  ;;  %v16796_v17 = vld [vmem:[#allocation10 + $0x1c8] ss:$28 sps:$4 sm:$0xff]  }
 0x4f1   :  { %11516 = vmatprep.subr.bf16.mxu0 %v16765_v36  ;;  %v16877_v36 = vld [vmem:[#allocation10 + $0x8c0] ss:$28 sps:$4 sm:$0xff]  }
 0x4f2   :  { %8210 = vmatpush1.bf16.msra.mxu1 %v15440_v3  ;;  %v16804_v3 = vld [vmem:[#allocation10 + $0x23c] ss:$28 sps:$4 sm:$0xff]  }
 0x4f3   :  { %8211 = vmatprep.subr.bf16.mxu1 %v15449_v37  ;;  %v16891_v37 = vld [vmem:[#allocation10 + $0x934] ss:$28 sps:$4 sm:$0xff]  }
 0x4f4   :  { %11517 = vmatpush1.bf16.msra.mxu0 %v16763_v59  ;;  %v16883_v59 = vld [vmem:[#allocation10 + $0x8f8] ss:$28 sps:$4 sm:$0xff]  }
 0x4f5   :  { %11518 = vmatprep.subr.bf16.mxu0 %v16768_v51  ;;  %v16802_v51 = vld [vmem:[#allocation10 + $0x238] ss:$28 sps:$4 sm:$0xff]  }
 0x4f6   :  { %8212 = vmatpush1.bf16.msra.mxu1 %v15448_v54  ;;  %v16897_v54 = vld [vmem:[#allocation10 + $0x96c] ss:$28 sps:$4 sm:$0xff]  }
 0x4f7   :  { %8213 = vmatprep.subr.bf16.mxu1 %v15457_v30  ;;  %v16810_v30 = vld [vmem:[#allocation10 + $0x2ac] ss:$28 sps:$4 sm:$0xff]  }
 0x4f8   :  { %11519 = vmatpush1.bf16.msra.mxu0 %v16766_v60  ;;  %v16805_v60 = vld [vmem:[#allocation10 + $0x270] ss:$28 sps:$4 sm:$0xff]  }
 0x4f9   :  { %11520 = vmatprep.subr.bf16.mxu0 %v16771_v47  ;;  %v16895_v47 = vld [vmem:[#allocation10 + $0x968] ss:$28 sps:$4 sm:$0xff]  }
 0x4fa   :  { %8214 = vmatpush1.bf16.msra.mxu1 %v15456_v44  ;;  %v16903_v44 = vld [vmem:[#allocation10 + $0x9a4] ss:$28 sps:$4 sm:$0xff]  }
 0x4fb   :  { %11649 = vmatprep.subr.bf16.mxu1 %v16774_v7  ;;  %v16813_v7 = vld [vmem:[#allocation10 + $0x2e4] ss:$28 sps:$4 sm:$0xff]  }
 0x4fc   :  { %11521 = vmatpush1.bf16.msra.mxu0 %v16769_v4  ;;  %v16808_v4 = vld [vmem:[#allocation10 + $0x2a8] ss:$28 sps:$4 sm:$0xff]  }
 0x4fd   :  { %11543 = vmatprep.subr.bf16.mxu0 %v16831_v2  ;;  %8216 = vmatmul.mubr.bf16.vlgmr.msra.gmra.mrb[16].mxu1 %v19168_v6  ;;  %v16841_v6 = vld [vmem:[#allocation10 + $0x770] ss:$28 sps:$4 sm:$0xff]   ;;  %v16901_v2 = vld [vmem:[#allocation10 + $0x9a0] ss:$28 sps:$4 sm:$0xff]  }
 0x4fe   :  { %11650 = vmatpush1.bf16.msra.mxu1 %v16772_v50  ;;  %8225 = vmatprep.mubr.bf16.mxu1 %v19169_v15  ;;  %v16786_v15 = vld [vmem:[#allocation10 + $0xec] ss:$28 sps:$4 sm:$0xff]   ;;  %v16909_v50 = vld [vmem:[#allocation10 + $0x9dc] ss:$28 sps:$4 sm:$0xff]  }
 0x4ff   :  { %11523 = vmatmul.mubr.bf16.vlgmr.msra.gmra.mrb[16].mxu0 %v18661_v5  ;;  %11651 = vmatprep.subr.bf16.mxu1 %v16777_v42  ;;  %v16811_v42 = vld [vmem:[#allocation10 + $0x2e0] ss:$28 sps:$4 sm:$0xff]  }
 0x500   :  { %11532 = vmatprep.mubr.bf16.mxu0 %v18667_v25  ;;  %11544 = vmatpush1.bf16.msra.mxu0 %v16829_v62  ;;  %v16816_v62 = vld [vmem:[#allocation10 + $0x31c] ss:$28 sps:$4 sm:$0xff]  }
 0x501   :  { %11545 = vmatprep.subr.bf16.mxu0 %v16837_v32  ;;  %v16907_v32 = vld [vmem:[#allocation10 + $0x9d8] ss:$28 sps:$4 sm:$0xff]  }
 0x502   :  { %11652 = vmatpush1.bf16.msra.mxu1 %v16775_v31  ;;  %v16915_v31 = vld [vmem:[#allocation10 + $0xa14] ss:$28 sps:$4 sm:$0xff]  }
 0x503   :  { %11653 = vmatprep.subr.bf16.mxu1 %v16780_v57  ;;  %v16814_v57 = vld [vmem:[#allocation10 + $0x318] ss:$28 sps:$4 sm:$0xff]  }
 0x504   :  { %11546 = vmatpush1.bf16.msra.mxu0 %v16835_v53  ;;  %v16819_v53 = vld [vmem:[#allocation10 + $0x354] ss:$28 sps:$4 sm:$0xff]  }
 0x505   :  { %8226 = vmatmul.mubr.bf16.gmra.mrb[20].mxu1 %v19170_v8  ;;  %11547 = vmatprep.subr.bf16.mxu0 %v16843_v11  ;;  %v16853_v8 = vld [vmem:[#allocation10 + $0x7e0] ss:$28 sps:$4 sm:$0xff]   ;;  %v16913_v11 = vld [vmem:[#allocation10 + $0xa10] ss:$28 sps:$4 sm:$0xff]  }
 0x506   :  { %11654 = vmatpush1.bf16.msra.mxu1 %v16778_v58  ;;  %11681 = vmatprep.mubr.bf16.mxu1 %v18560_v35  ;;  %v16921_v58 = vld [vmem:[#allocation10 + $0xa4c] ss:$28 sps:$4 sm:$0xff]  }
 0x507   :  { %11533 = vmatmul.mubr.bf16.gmra.mrb[20].mxu0 %v18670_v56  ;;  %11655 = vmatprep.subr.bf16.mxu1 %v16783_v13  ;;  %v16817_v13 = vld [vmem:[#allocation10 + $0x350] ss:$28 sps:$4 sm:$0xff]  }
 0x508   :  { %11548 = vmatpush1.bf16.msra.mxu0 %v16841_v6  ;;  %v16822_v6 = vld [vmem:[#allocation10 + $0x38c] ss:$28 sps:$4 sm:$0xff]  }
 0x509   :  { %11549 = vmatprep.subr.bf16.mxu0 %v16849_v21  ;;  %v16919_v21 = vld [vmem:[#allocation10 + $0xa48] ss:$28 sps:$4 sm:$0xff]  }
 0x50a   :  { %11656 = vmatpush1.bf16.msra.mxu1 %v16781_v61  ;;  %v16820_v61 = vld [vmem:[#allocation10 + $0x388] ss:$28 sps:$4 sm:$0xff]  }
 0x50b   :  { %11657 = vmatprep.subr.bf16.mxu1 %v16786_v15  ;;  %v16825_v15 = vld [vmem:[#allocation10 + $0x3c4] ss:$28 sps:$4 sm:$0xff]  }
 0x50c   :  { %11550 = vmatpush1.bf16.msra.mxu0 %v16847_v45  ;;  %v16823_v45 = vld [vmem:[#allocation10 + $0x3c0] ss:$28 sps:$4 sm:$0xff]  }
 0x50d   :  { %11551 = vmatprep.subr.bf16.mxu0 %v16855_v19  ;;  %v16966_v19 = vld [vmem:[#allocation10 + $0xa84] ss:$28 sps:$4 sm:$0xff]  }
 0x50e   :  { %11658 = vmatpush1.bf16.msra.mxu1 %v16784_v23  ;;  %v16828_v23 = vld [vmem:[#allocation10 + $0x3fc] ss:$28 sps:$4 sm:$0xff]  }
 0x50f   :  { %11659 = vmatprep.subr.bf16.mxu1 %v16789_v27  ;;  %v16826_v27 = vld [vmem:[#allocation10 + $0x3f8] ss:$28 sps:$4 sm:$0xff]  }
 0x510   :  { %11552 = vmatpush1.bf16.msra.mxu0 %v16853_v8  ;;  %v16834_v8 = vld [vmem:[#allocation10 + $0x434] ss:$28 sps:$4 sm:$0xff]  }
 0x511   :  { %11553 = vmatprep.subr.bf16.mxu0 %v16861_v28  ;;  %v16832_v28 = vld [vmem:[#allocation10 + $0x430] ss:$28 sps:$4 sm:$0xff]  }
 0x512   :  { %11660 = vmatpush1.bf16.msra.mxu1 %v16787_v34  ;;  %v16840_v34 = vld [vmem:[#allocation10 + $0x46c] ss:$28 sps:$4 sm:$0xff]  }
 0x513   :  { %11661 = vmatprep.subr.bf16.mxu1 %v16792_v46  ;;  %v16838_v46 = vld [vmem:[#allocation10 + $0x468] ss:$28 sps:$4 sm:$0xff]  }
 0x514   :  { %11554 = vmatpush1.bf16.msra.mxu0 %v16859_v63  ;;  %v16846_v63 = vld [vmem:[#allocation10 + $0x4a4] ss:$28 sps:$4 sm:$0xff]  }
 0x515   :  { %11555 = vmatprep.subr.bf16.mxu0 %v16867_v18  ;;  %v18708_v18 = vsub.s32 4, %v18464_v20 }
 0x516   :  { %11662 = vmatpush1.bf16.msra.mxu1 %v16790_v16  ;;  %v18711_v16 = vsub.s32 5, %v18464_v20 }
 0x517   :  { %11663 = vmatprep.subr.bf16.mxu1 %v16795_v12  ;;  %v16844_v12 = vld [vmem:[#allocation10 + $0x4a0] ss:$28 sps:$4 sm:$0xff]  }
 0x518   :  { %11556 = vmatpush1.bf16.msra.mxu0 %v16865_v49  ;;  %v16852_v49 = vld [vmem:[#allocation10 + $0x4dc] ss:$28 sps:$4 sm:$0xff]  }
 0x519   :  { %11557 = vmatprep.subr.bf16.mxu0 %v16873_v1  ;;  %v18713_v1 = vld [vmem:[#allocation5] sm:$0xff] }
 0x51a   :  { %11664 = vmatpush1.bf16.msra.mxu1 %v16793_v55  ;;  %v1239_v55 = vrot.slane %v18713_v1, %v18708_v18 }
 0x51b   :  { %11665 = vmatprep.subr.bf16.mxu1 %v16798_v41 }
 0x51c   :  { %11558 = vmatpush1.bf16.msra.mxu0 %v16871_v26  ;;  %v1243_v26 = vrot.slane %v18713_v1, %v18711_v16 }
 0x51d   :  { %11559 = vmatprep.subr.bf16.mxu0 %v16879_v38 }
 0x51e   :  { %11666 = vmatpush1.bf16.msra.mxu1 %v16796_v17  ;;  %v16850_v17 = vld [vmem:[#allocation10 + $0x4d8] ss:$28 sps:$4 sm:$0xff]  }
 0x51f   :  { %11667 = vmatprep.subr.bf16.mxu1 %v16801_v29 }
 0x520   :  { %11560 = vmatpush1.bf16.msra.mxu0 %v16877_v36  ;;  %v16858_v36 = vld [vmem:[#allocation10 + $0x514] ss:$28 sps:$4 sm:$0xff]  }
 0x521   :  { %11561 = vmatprep.subr.bf16.mxu0 %v16885_v9 }
 0x522   :  { %11668 = vmatpush1.bf16.msra.mxu1 %v16799_v0 }
 0x523   :  { %11669 = vmatprep.subr.bf16.mxu1 %v16804_v3 }
 0x524   :  { %11562 = vmatpush1.bf16.msra.mxu0 %v16883_v59 }
 0x525   :  { %11563 = vmatprep.subr.bf16.mxu0 %v16891_v37 }
 0x526   :  { %11670 = vmatpush1.bf16.msra.mxu1 %v16802_v51 }
 0x527   :  { %11671 = vmatprep.subr.bf16.mxu1 %v16807_v33  ;;  %v16856_v33 = vld [vmem:[#allocation10 + $0x510] ss:$28 sps:$4 sm:$0xff]  }
 0x528   :  { %11564 = vmatpush1.bf16.msra.mxu0 %v16889_v52 }
 0x529   :  { %11565 = vmatprep.subr.bf16.mxu0 %v16897_v54  ;;  %v16864_v54 = vld [vmem:[#allocation10 + $0x54c] ss:$28 sps:$4 sm:$0xff]  }
 0x52a   :  { %11672 = vmatpush1.bf16.msra.mxu1 %v16805_v60 }
 0x52b   :  { %11673 = vmatprep.subr.bf16.mxu1 %v16810_v30 }
 0x52c   :  { %11566 = vmatpush1.bf16.msra.mxu0 %v16895_v47 }
 0x52d   :  { %11567 = vmatprep.subr.bf16.mxu0 %v16903_v44  ;;  %v16862_v44 = vld [vmem:[#allocation10 + $0x548] ss:$28 sps:$4 sm:$0xff]  }
 0x52e   :  { %11674 = vmatpush1.bf16.msra.mxu1 %v16808_v4 }
 0x52f   :  { %11675 = vmatprep.subr.bf16.mxu1 %v16813_v7 }
 0x530   :  { %11568 = vmatpush1.bf16.msra.mxu0 %v16901_v2  ;;  %v16870_v2 = vld [vmem:[#allocation10 + $0x584] ss:$28 sps:$4 sm:$0xff]  }
 0x531   :  { %11569 = vmatprep.subr.bf16.mxu0 %v16909_v50 }
 0x532   :  { %11676 = vmatpush1.bf16.msra.mxu1 %v16811_v42 }
 0x533   :  { %11677 = vmatprep.subr.bf16.mxu1 %v16816_v62 }
 0x534   :  { %11570 = vmatpush1.bf16.msra.mxu0 %v16907_v32 }
 0x535   :  { %11571 = vmatprep.subr.bf16.mxu0 %v16915_v31 }
 0x536   :  { %11678 = vmatpush1.bf16.msra.mxu1 %v16814_v57 }
 0x537   :  { %11679 = vmatprep.subr.bf16.mxu1 %v16819_v53  ;;  %v16868_v53 = vld [vmem:[#allocation10 + $0x580] ss:$28 sps:$4 sm:$0xff]  }
 0x538   :  { %11572 = vmatpush1.bf16.msra.mxu0 %v16913_v11 }
 0x539   :  { %11573 = vmatprep.subr.bf16.mxu0 %v16921_v58  ;;  %v16876_v58 = vld [vmem:[#allocation10 + $0x5bc] ss:$28 sps:$4 sm:$0xff]  }
 0x53a   :  { %11680 = vmatpush1.bf16.msra.mxu1 %v16817_v13 }
 0x53b   :  { %11702 = vmatprep.subr.bf16.mxu1 %v16822_v6 }
 0x53c   :  { %11574 = vmatpush1.bf16.msra.mxu0 %v16919_v21 }
 0x53d   :  { %11682 = vmatmul.mubr.bf16.vlgmr.msra.gmra.mrb[24].mxu1 %v18562_v39  ;;  %11596 = vmatprep.subr.bf16.mxu0 %v16966_v19  ;;  %v16874_v19 = vld [vmem:[#allocation10 + $0x5b8] ss:$28 sps:$4 sm:$0xff]  }
 0x53e   :  { %11691 = vmatprep.mubr.bf16.mxu1 %v18566_v24  ;;  %11703 = vmatpush1.bf16.msra.mxu1 %v16820_v61 }
 0x53f   :  { %11704 = vmatprep.subr.bf16.mxu1 %v16825_v15 }
 0x542   :  { %11705 = vmatpush1.bf16.msra.mxu1 %v16823_v45 }
 0x543   :  { %11706 = vmatprep.subr.bf16.mxu1 %v16828_v23 }
 0x545   :  { %11692 = vmatmul.mubr.bf16.gmra.mrb[28].mxu1 %v18568_v48 }
 0x546   :  { %11707 = vmatpush1.bf16.msra.mxu1 %v16826_v27  ;;  %11734 = vmatprep.mubr.bf16.mxu1 %v18659_v22 }
 0x547   :  { %11708 = vmatprep.subr.bf16.mxu1 %v16834_v8 }
 0x54a   :  { %11709 = vmatpush1.bf16.msra.mxu1 %v16832_v28 }
 0x54b   :  { %11710 = vmatprep.subr.bf16.mxu1 %v16840_v34  ;;  %v16882_v34 = vld [vmem:[#allocation10 + $0x5f4] ss:$28 sps:$4 sm:$0xff]  }
 0x54e   :  { %11711 = vmatpush1.bf16.msra.mxu1 %v16838_v46 }
 0x54f   :  { %11712 = vmatprep.subr.bf16.mxu1 %v16846_v63 }
 0x552   :  { %v7793_v41 = vpop.f32.mrb[8].mxu0  ;;  %11713 = vmatpush1.bf16.msra.mxu1 %v16844_v12 }
 0x553   :  { %v7795_v38 = vpop.f32.mrb[9].mxu0  ;;  %11714 = vmatprep.subr.bf16.mxu1 %v16852_v49  ;;  %v16266_v9 = vadd.f32 %v7793_v41, %v1239_v55 }
 0x554   :  { %v7797_v29 = vpop.f32.mrb[10].mxu0  ;;  %v16267_v59 = vadd.f32 %v7795_v38, %v1243_v26 }
 0x555   :  { %v16268_v0 = vadd.f32 %v7797_v29, %v1239_v55  ;;  %v7799_v3 = vpop.f32.mrb[11].mxu0  ;;  %v16888_v29 = vld [vmem:[#allocation10 + $0x62c] ss:$28 sps:$4 sm:$0xff]  }
 0x556   :  { %v16269_v37 = vadd.f32 %v7799_v3, %v1243_v26  ;;  %11715 = vmatpush1.bf16.msra.mxu1 %v16850_v17 }
 0x557   :  { %v8240_v51 = vadd.f32 %v16268_v0, %v16266_v9  ;;  %11716 = vmatprep.subr.bf16.mxu1 %v16858_v36 }
 0x558   :  { %v8241_v52 = vadd.f32 %v16269_v37, %v16267_v59 }
 0x55a   :  { %v7803_v60 = vpop.f32.mrb[12].mxu0  ;;  %11717 = vmatpush1.bf16.msra.mxu1 %v16856_v33  ;;  %v16894_v33 = vld [vmem:[#allocation10 + $0x664] ss:$28 sps:$4 sm:$0xff]  }
 0x55b   :  { %v16270_v30 = vadd.f32 %v7803_v60, %v1239_v55  ;;  %v7805_v47 = vpop.f32.mrb[13].mxu0  ;;  %11718 = vmatprep.subr.bf16.mxu1 %v16864_v54 }
 0x55c   :  { %v16271_v4 = vadd.f32 %v7805_v47, %v1243_v26  ;;  %v7807_v7 = vpop.f32.mrb[14].mxu0 }
 0x55d   :  { %v8248_v50 = vadd.f32 %v16270_v30, %v8240_v51  ;;  %v16272_v42 = vadd.f32 %v7807_v7, %v1239_v55  ;;  %v7809_v62 = vpop.f32.mrb[15].mxu0  ;;  %v16906_v7 = vld [vmem:[#allocation10 + $0x6d4] ss:$28 sps:$4 sm:$0xff]  }
 0x55e   :  { %v8249_v32 = vadd.f32 %v16271_v4, %v8241_v52  ;;  %v16273_v31 = vadd.f32 %v7809_v62, %v1243_v26  ;;  %11719 = vmatpush1.bf16.msra.mxu1 %v16862_v44  ;;  %v16880_v26 = vld [vmem:[#allocation10 + $0x5f0] ss:$28 sps:$4 sm:$0xff]   ;;  %v16900_v44 = vld [vmem:[#allocation10 + $0x69c] ss:$28 sps:$4 sm:$0xff]  }
 0x55f   :  { %v8256_v57 = vadd.f32 %v16272_v42, %v8248_v50  ;;  %11720 = vmatprep.subr.bf16.mxu1 %v16870_v2  ;;  %v16904_v2 = vld [vmem:[#allocation10 + $0x6d0] ss:$28 sps:$4 sm:$0xff]  }
 0x560   :  { %v8257_v11 = vadd.f32 %v16273_v31, %v8249_v32  ;;  %v18747_v50 = vld [vmem:[#allocation7] sm:$0xff]  ;;  %v16912_v62 = vld [vmem:[#allocation10 + $0x70c] ss:$28 sps:$4 sm:$0xff]  }
 0x561   :  { %v8264_v13 = vmul.f32 0.25, %v8256_v57  ;;  %v8405_v32 = vrot.slane %v18747_v50, %v18711_v16  ;;  %v16910_v57 = vld [vmem:[#allocation10 + $0x708] ss:$28 sps:$4 sm:$0xff]  }
 0x562   :  { %v8265_v6 = vmul.f32 0.25, %v8257_v11  ;;  %11721 = vmatpush1.bf16.msra.mxu1 %v16868_v53 }
 0x563   :  { %v18719_v21 = vsub.f32 %v16266_v9, %v8264_v13  ;;  %v18721_v61 = vsub.f32 %v16268_v0, %v8264_v13  ;;  %v18723_v15 = vsub.f32 %v16270_v30, %v8264_v13  ;;  %v18725_v45 = vsub.f32 %v16272_v42, %v8264_v13  ;;  %11722 = vmatprep.subr.bf16.mxu1 %v16876_v58  ;;  %v16892_v30 = vld [vmem:[#allocation10 + $0x660] ss:$28 sps:$4 sm:$0xff]  }
 0x564   :  { %v18727_v23 = vsub.f32 %v16267_v59, %v8265_v6  ;;  %v18729_v27 = vsub.f32 %v16269_v37, %v8265_v6  ;;  %v18731_v8 = vsub.f32 %v16271_v4, %v8265_v6  ;;  %v8297_v28 = vsub.f32 %v16273_v31, %v8265_v6  ;;  %v16886_v37 = vld [vmem:[#allocation10 + $0x628] ss:$28 sps:$4 sm:$0xff]   ;;  %v16898_v4 = vld [vmem:[#allocation10 + $0x698] ss:$28 sps:$4 sm:$0xff]  }
 0x565   :  { %v8304_v46 = vmul.f32 %v18719_v21, %v18719_v21  ;;  %v8312_v63 = vmul.f32 %v18721_v61, %v18721_v61  ;;  %v8328_v41 = vmul.f32 %v18723_v15, %v18723_v15  ;;  %v8344_v9 = vmul.f32 %v18725_v45, %v18725_v45  ;;  %v18753_v58 = vld [vmem:[#allocation8] sm:$0xff]  ;;  %v16918_v6 = vld [vmem:[#allocation10 + $0x744] ss:$28 sps:$4 sm:$0xff]  }
 0x566   :  { %v8305_v12 = vmul.f32 %v18727_v23, %v18727_v23  ;;  %v8313_v49 = vmul.f32 %v18729_v27, %v18729_v27  ;;  %11723 = vmatpush1.bf16.msra.mxu1 %v16874_v19  ;;  %v8329_v17 = vmul.f32 %v18731_v8, %v18731_v8  ;;  %v8345_v3 = vmul.f32 %v8297_v28, %v8297_v28 }
 0x567   :  { %v8320_v55 = vadd.f32 %v8312_v63, %v8304_v46  ;;  %11724 = vmatprep.subr.bf16.mxu1 %v16882_v34  ;;  %v8401_v42 = vrot.slane %v18747_v50, %v18708_v18  ;;  %v8459_v13 = vrot.slane %v18753_v58, %v18708_v18  ;;  %v8463_v34 = vrot.slane %v18753_v58, %v18711_v16 }
 0x568   :  { %v8321_v38 = vadd.f32 %v8313_v49, %v8305_v12 }
 0x569   :  { %v8336_v36 = vadd.f32 %v8328_v41, %v8320_v55  ;;  %v16916_v41 = vld [vmem:[#allocation10 + $0x740] ss:$28 sps:$4 sm:$0xff]  }
 0x56a   :  { %v8337_v0 = vadd.f32 %v8329_v17, %v8321_v38  ;;  %11725 = vmatpush1.bf16.msra.mxu1 %v16880_v26 }
 0x56b   :  { %v8352_v59 = vadd.f32 %v8344_v9, %v8336_v36  ;;  %11726 = vmatprep.subr.bf16.mxu1 %v16888_v29 }
 0x56c   :  { %v8353_v51 = vadd.f32 %v8345_v3, %v8337_v0 }
 0x56d   :  { %v8360_v52 = vmul.f32 0.25, %v8352_v59 }
 0x56e   :  { %v8361_v54 = vmul.f32 0.25, %v8353_v51  ;;  %11727 = vmatpush1.bf16.msra.mxu1 %v16886_v37 }
 0x56f   :  { %v8368_v60 = vadd.f32 1e-05, %v8360_v52  ;;  %11728 = vmatprep.subr.bf16.mxu1 %v16894_v33 }
 0x570   :  { %v8369_v47 = vadd.f32 1e-05, %v8361_v54 }
 0x571   :  { %17660 = vrsqrt.f32 %v8368_v60 }
 0x572   :  { %17662 = vrsqrt.f32 %v8369_v47  ;;  %11729 = vmatpush1.bf16.msra.mxu1 %v16892_v30 }
 0x573   :  { %11730 = vmatprep.subr.bf16.mxu1 %v16900_v44 }
 0x576   :  { %11731 = vmatpush1.bf16.msra.mxu1 %v16898_v4  ;;  %v16964_v4 = vld [vmem:[#allocation10 + $0xa80] ss:$28 sps:$4 sm:$0xff]  }
 0x577   :  { %11732 = vmatprep.subr.bf16.mxu1 %v16906_v7  ;;  %v16925_v7 = vld [vmem:[#allocation10 + $0x7b0] ss:$28 sps:$4 sm:$0xff]  }
 0x57a   :  { %11733 = vmatpush1.bf16.msra.mxu1 %v16904_v2  ;;  %v16972_v2 = vld [vmem:[#allocation10 + $0xabc] ss:$28 sps:$4 sm:$0xff]  }
 0x57b   :  { %v17661_v31 = vpop.eup %17660  ;;  %11755 = vmatprep.subr.bf16.mxu1 %v16912_v62  ;;  %v16970_v62 = vld [vmem:[#allocation10 + $0xab8] ss:$28 sps:$4 sm:$0xff]  }
 0x57c   :  { %v17663_v53 = vpop.eup %17662  ;;  %v8426_v11 = vmul.f32 %v17661_v31, %v8401_v42  ;;  %v16930_v42 = vld [vmem:[#allocation10 + $0x7ec] ss:$28 sps:$4 sm:$0xff]   ;;  %v16978_v31 = vld [vmem:[#allocation10 + $0xaf4] ss:$28 sps:$4 sm:$0xff]  }
 0x57d   :  { %v8427_v19 = vmul.f32 %v17663_v53, %v8405_v32  ;;  %11735 = vmatmul.mubr.bf16.vlgmr.msra.gmra.mrb[24].mxu1 %v18661_v5  ;;  %v16928_v32 = vld [vmem:[#allocation10 + $0x7e8] ss:$28 sps:$4 sm:$0xff]   ;;  %v16976_v53 = vld [vmem:[#allocation10 + $0xaf0] ss:$28 sps:$4 sm:$0xff]  }
 0x57e   :  { %v8434_v46 = vmul.f32 %v8426_v11, %v18719_v21  ;;  %v8500_v63 = vmul.f32 %v8426_v11, %v18721_v61  ;;  %v8548_v12 = vmul.f32 %v8426_v11, %v18725_v45  ;;  %v8524_v49 = vmul.f32 %v8426_v11, %v18723_v15  ;;  %11744 = vmatprep.mubr.bf16.mxu1 %v18667_v25  ;;  %v16924_v21 = vld [vmem:[#allocation10 + $0x77c] ss:$28 sps:$4 sm:$0xff]  }
 0x57f   :  { %v8549_v55 = vmul.f32 %v8427_v19, %v8297_v28  ;;  %11756 = vmatpush1.bf16.msra.mxu1 %v16910_v57  ;;  %v8435_v26 = vmul.f32 %v8427_v19, %v18727_v23  ;;  %v8501_v38 = vmul.f32 %v8427_v19, %v18729_v27  ;;  %v8525_v45 = vmul.f32 %v8427_v19, %v18731_v8  ;;  %v16922_v27 = vld [vmem:[#allocation10 + $0x778] ss:$28 sps:$4 sm:$0xff]   ;;  %v16933_v57 = vld [vmem:[#allocation10 + $0x824] ss:$28 sps:$4 sm:$0xff]  }
 0x580   :  { %v8556_v17 = vadd.f32 %v8548_v12, %v8459_v13  ;;  %11757 = vmatprep.subr.bf16.mxu1 %v16918_v6  ;;  %v8484_v29 = vadd.f32 %v8459_v13, %v8434_v46  ;;  %v8508_v61 = vadd.f32 %v8500_v63, %v8459_v13  ;;  %v8532_v15 = vadd.f32 %v8524_v49, %v8459_v13  ;;  %v16927_v8 = vld [vmem:[#allocation10 + $0x7b4] ss:$28 sps:$4 sm:$0xff]   ;;  %v16931_v11 = vld [vmem:[#allocation10 + $0x820] ss:$28 sps:$4 sm:$0xff]   ;;  %v16984_v13 = vld [vmem:[#allocation10 + $0xb2c] ss:$28 sps:$4 sm:$0xff]  }
 0x581   :  { %v8557_v36 = vadd.f32 %v8549_v55, %v8463_v34  ;;  %v8485_v9 = vadd.f32 %v8463_v34, %v8435_v26  ;;  %v8509_v0 = vadd.f32 %v8501_v38, %v8463_v34  ;;  %v8533_v37 = vadd.f32 %v8525_v45, %v8463_v34  ;;  %v16936_v6 = vld [vmem:[#allocation10 + $0x85c] ss:$28 sps:$4 sm:$0xff]   ;;  %v16982_v19 = vld [vmem:[#allocation10 + $0xb28] ss:$28 sps:$4 sm:$0xff]   ;;  %v16939_v63 = vld [vmem:[#allocation10 + $0x894] ss:$28 sps:$4 sm:$0xff]  }
 0x582   :  { %v8564_v28 = vmax.f32 %v8556_v17, 0.0  ;;  %v8492_v3 = vmax.f32 %v8484_v29, 0.0  ;;  %v8516_v59 = vmax.f32 %v8508_v61, 0.0  ;;  %v8540_v52 = vmax.f32 %v8532_v15, 0.0  ;;  %v16934_v34 = vld [vmem:[#allocation10 + $0x858] ss:$28 sps:$4 sm:$0xff]  }
 0x583   :  { %v8565_v51 = vmax.f32 %v8557_v36, 0.0  ;;  %11758 = vmatpush1.bf16.msra.mxu1 %v16916_v41  ;;  %v8493_v23 = vmax.f32 %v8485_v9, 0.0  ;;  %v8517_v33 = vmax.f32 %v8509_v0, 0.0  ;;  %v8541_v60 = vmax.f32 %v8533_v37, 0.0  ;;  %v16990_v46 = vld [vmem:[#allocation10 + $0xb64] ss:$28 sps:$4 sm:$0xff]  }
 0x584   :  { %11759 = vmatprep.subr.bf16.mxu1 %v16924_v21  ;;  %v18768_v54 = vpack.c.bf16 %v8516_v59, %v8492_v3  ;;  %v18772_v47 = vpack.c.bf16 %v8564_v28, %v8540_v52  ;;  %v16988_v12 = vld [vmem:[#allocation10 + $0xb60] ss:$28 sps:$4 sm:$0xff]   ;;  %v16937_v49 = vld [vmem:[#allocation10 + $0x890] ss:$28 sps:$4 sm:$0xff]   ;;  %v16994_v26 = vld [vmem:[#allocation10 + $0xb98] ss:$28 sps:$4 sm:$0xff]  }
 0x585   :  { %v18770_v30 = vpack.c.bf16 %v8517_v33, %v8493_v23  ;;  %11745 = vmatmul.mubr.bf16.gmra.mrb[28].mxu1 %v18670_v56  ;;  %v18775_v44 = vpack.c.bf16 %v8565_v51, %v8541_v60  ;;  %v16996_v55 = vld [vmem:[#allocation10 + $0xb9c] ss:$28 sps:$4 sm:$0xff]   ;;  %v16942_v41 = vld [vmem:[#allocation10 + $0x8cc] ss:$28 sps:$4 sm:$0xff]   ;;  %v17002_v17 = vld [vmem:[#allocation10 + $0xbd4] ss:$28 sps:$4 sm:$0xff]  }
 0x586   :  { %v16940_v38 = vld [vmem:[#allocation10 + $0x8c8] ss:$28 sps:$4 sm:$0xff]   ;;  %v17000_v29 = vld [vmem:[#allocation10 + $0xbd0] ss:$28 sps:$4 sm:$0xff]   ;;  %v16943_v61 = vld [vmem:[#allocation10 + $0x900] ss:$28 sps:$4 sm:$0xff]  }
 0x587   :  { %11575 = vmatprep.mubr.bf16.mxu0 %v18770_v30  ;;  %11760 = vmatpush1.bf16.msra.mxu1 %v16922_v27  ;;  %v16945_v21 = vld [vmem:[#allocation10 + $0x904] ss:$28 sps:$4 sm:$0xff]   ;;  %v17008_v45 = vld [vmem:[#allocation10 + $0xc0c] ss:$28 sps:$4 sm:$0xff]   ;;  %v16948_v36 = vld [vmem:[#allocation10 + $0x93c] ss:$28 sps:$4 sm:$0xff]  }
 0x588   :  { %11576 = vmatmul.mubr.bf16.vlgmr.msra.gmra.mrb[16].mxu0 %v18768_v54  ;;  %11787 = vmatprep.mubr.bf16.mxu1 %v18770_v30  ;;  %v17006_v9 = vld [vmem:[#allocation10 + $0xc08] ss:$28 sps:$4 sm:$0xff]   ;;  %v16946_v0 = vld [vmem:[#allocation10 + $0x938] ss:$28 sps:$4 sm:$0xff]   ;;  %v17012_v3 = vld [vmem:[#allocation10 + $0xc40] ss:$28 sps:$4 sm:$0xff]  }
 0x589   :  { %11585 = vmatprep.mubr.bf16.mxu0 %v18775_v44  ;;  %11761 = vmatprep.subr.bf16.mxu1 %v16927_v8  ;;  %v17014_v15 = vld [vmem:[#allocation10 + $0xc44] ss:$28 sps:$4 sm:$0xff]   ;;  %v16951_v28 = vld [vmem:[#allocation10 + $0x974] ss:$28 sps:$4 sm:$0xff]   ;;  %v17020_v37 = vld [vmem:[#allocation10 + $0xc7c] ss:$28 sps:$4 sm:$0xff]  }
 0x58a   :  { %11597 = vmatpush1.bf16.msra.mxu0 %v16964_v4  ;;  %v16949_v59 = vld [vmem:[#allocation10 + $0x970] ss:$28 sps:$4 sm:$0xff]   ;;  %v17018_v23 = vld [vmem:[#allocation10 + $0xc78] ss:$28 sps:$4 sm:$0xff]   ;;  %v16952_v33 = vld [vmem:[#allocation10 + $0x9a8] ss:$28 sps:$4 sm:$0xff]  }
 0x58b   :  { %11762 = vmatpush1.bf16.msra.mxu1 %v16925_v7  ;;  %11598 = vmatprep.subr.bf16.mxu0 %v16972_v2  ;;  %v16954_v51 = vld [vmem:[#allocation10 + $0x9ac] ss:$28 sps:$4 sm:$0xff]   ;;  %v17026_v27 = vld [vmem:[#allocation10 + $0xcb4] ss:$28 sps:$4 sm:$0xff]   ;;  %v16957_v52 = vld [vmem:[#allocation10 + $0x9e4] ss:$28 sps:$4 sm:$0xff]  }
 0x58c   :  { %11763 = vmatprep.subr.bf16.mxu1 %v16930_v42  ;;  %v17024_v60 = vld [vmem:[#allocation10 + $0xcb0] ss:$28 sps:$4 sm:$0xff]   ;;  %v16955_v8 = vld [vmem:[#allocation10 + $0x9e0] ss:$28 sps:$4 sm:$0xff]   ;;  %v17030_v2 = vld [vmem:[#allocation10 + $0xce8] ss:$28 sps:$4 sm:$0xff]  }
 0x58d   :  { %v17032_v4 = vld [vmem:[#allocation10 + $0xcec] ss:$28 sps:$4 sm:$0xff]   ;;  %v16960_v7 = vld [vmem:[#allocation10 + $0xa1c] ss:$28 sps:$4 sm:$0xff]  }
 0x58e   :  { %11599 = vmatpush1.bf16.msra.mxu0 %v16970_v62  ;;  %v16958_v42 = vld [vmem:[#allocation10 + $0xa18] ss:$28 sps:$4 sm:$0xff]   ;;  %v17038_v62 = vld [vmem:[#allocation10 + $0xd24] ss:$28 sps:$4 sm:$0xff]  }
 0x58f   :  { %11764 = vmatpush1.bf16.msra.mxu1 %v16928_v32  ;;  %11600 = vmatprep.subr.bf16.mxu0 %v16978_v31  ;;  %v16963_v32 = vld [vmem:[#allocation10 + $0xa54] ss:$28 sps:$4 sm:$0xff]   ;;  %v17036_v31 = vld [vmem:[#allocation10 + $0xd20] ss:$28 sps:$4 sm:$0xff]  }
 0x590   :  { %11586 = vmatmul.mubr.bf16.gmra.mrb[20].mxu0 %v18772_v47  ;;  %11765 = vmatprep.subr.bf16.mxu1 %v16933_v57  ;;  %v16961_v57 = vld [vmem:[#allocation10 + $0xa50] ss:$28 sps:$4 sm:$0xff]  }
 0x592   :  { %11601 = vmatpush1.bf16.msra.mxu0 %v16976_v53  ;;  %v17044_v53 = vld [vmem:[#allocation10 + $0xd5c] ss:$28 sps:$4 sm:$0xff]  }
 0x593   :  { %11766 = vmatpush1.bf16.msra.mxu1 %v16931_v11  ;;  %11602 = vmatprep.subr.bf16.mxu0 %v16984_v13  ;;  %v16969_v11 = vld [vmem:[#allocation10 + $0xa8c] ss:$28 sps:$4 sm:$0xff]   ;;  %v17042_v13 = vld [vmem:[#allocation10 + $0xd58] ss:$28 sps:$4 sm:$0xff]  }
 0x594   :  { %11767 = vmatprep.subr.bf16.mxu1 %v16936_v6  ;;  %v16967_v6 = vld [vmem:[#allocation10 + $0xa88] ss:$28 sps:$4 sm:$0xff]  }
 0x596   :  { %11603 = vmatpush1.bf16.msra.mxu0 %v16982_v19  ;;  %v16975_v19 = vld [vmem:[#allocation10 + $0xac4] ss:$28 sps:$4 sm:$0xff]  }
 0x597   :  { %11768 = vmatpush1.bf16.msra.mxu1 %v16934_v34  ;;  %11604 = vmatprep.subr.bf16.mxu0 %v16990_v46  ;;  %v17050_v34 = vld [vmem:[#allocation10 + $0xd94] ss:$28 sps:$4 sm:$0xff]  }
 0x598   :  { %11769 = vmatprep.subr.bf16.mxu1 %v16939_v63  ;;  %v17048_v46 = vld [vmem:[#allocation10 + $0xd90] ss:$28 sps:$4 sm:$0xff]   ;;  %v16973_v63 = vld [vmem:[#allocation10 + $0xac0] ss:$28 sps:$4 sm:$0xff]  }
 0x59a   :  { %11605 = vmatpush1.bf16.msra.mxu0 %v16988_v12  ;;  %v17056_v12 = vld [vmem:[#allocation10 + $0xdcc] ss:$28 sps:$4 sm:$0xff]  }
 0x59b   :  { %11770 = vmatpush1.bf16.msra.mxu1 %v16937_v49  ;;  %11606 = vmatprep.subr.bf16.mxu0 %v16996_v55  ;;  %v16981_v49 = vld [vmem:[#allocation10 + $0xafc] ss:$28 sps:$4 sm:$0xff]   ;;  %v17054_v55 = vld [vmem:[#allocation10 + $0xdc8] ss:$28 sps:$4 sm:$0xff]  }
 0x59c   :  { %11771 = vmatprep.subr.bf16.mxu1 %v16942_v41  ;;  %v16979_v41 = vld [vmem:[#allocation10 + $0xaf8] ss:$28 sps:$4 sm:$0xff]  }
 0x59e   :  { %11607 = vmatpush1.bf16.msra.mxu0 %v16994_v26  ;;  %v17062_v26 = vld [vmem:[#allocation10 + $0x14] ss:$28 sps:$4 sm:$0xff]  }
 0x59f   :  { %11772 = vmatpush1.bf16.msra.mxu1 %v16940_v38  ;;  %11608 = vmatprep.subr.bf16.mxu0 %v17002_v17  ;;  %v16987_v38 = vld [vmem:[#allocation10 + $0xb34] ss:$28 sps:$4 sm:$0xff]  }
 0x5a0   :  { %11773 = vmatprep.subr.bf16.mxu1 %v16945_v21  ;;  %v16985_v17 = vld [vmem:[#allocation10 + $0xb30] ss:$28 sps:$4 sm:$0xff]  }
 0x5a1   :  { %v16993_v21 = vld [vmem:[#allocation10 + $0xb6c] ss:$28 sps:$4 sm:$0xff]  }
 0x5a2   :  { %11609 = vmatpush1.bf16.msra.mxu0 %v17000_v29  ;;  %v16991_v29 = vld [vmem:[#allocation10 + $0xb68] ss:$28 sps:$4 sm:$0xff]  }
 0x5a3   :  { %11774 = vmatpush1.bf16.msra.mxu1 %v16943_v61  ;;  %11610 = vmatprep.subr.bf16.mxu0 %v17008_v45  ;;  %v18786_v61 = vsub.s32 6, %v18464_v20  ;;  %v16999_v45 = vld [vmem:[#allocation10 + $0xba4] ss:$28 sps:$4 sm:$0xff]  }
 0x5a4   :  { %11775 = vmatprep.subr.bf16.mxu1 %v16948_v36  ;;  %v18789_v36 = vsub.s32 7, %v18464_v20  ;;  %v17011_v20 = vld [vmem:[#allocation10 + $0xc14] ss:$28 sps:$4 sm:$0xff]  }
 0x5a6   :  { %11611 = vmatpush1.bf16.msra.mxu0 %v17006_v9  ;;  %v16997_v9 = vld [vmem:[#allocation10 + $0xba0] ss:$28 sps:$4 sm:$0xff]  }
 0x5a7   :  { %11776 = vmatpush1.bf16.msra.mxu1 %v16946_v0  ;;  %11612 = vmatprep.subr.bf16.mxu0 %v17014_v15  ;;  %v1247_v0 = vrot.slane %v18713_v1, %v18786_v61  ;;  %v17005_v15 = vld [vmem:[#allocation10 + $0xbdc] ss:$28 sps:$4 sm:$0xff]  }
 0x5a8   :  { %11777 = vmatprep.subr.bf16.mxu1 %v16951_v28 }
 0x5aa   :  { %11613 = vmatpush1.bf16.msra.mxu0 %v17012_v3  ;;  %v1251_v3 = vrot.slane %v18713_v1, %v18789_v36 }
 0x5ab   :  { %11778 = vmatpush1.bf16.msra.mxu1 %v16949_v59  ;;  %11614 = vmatprep.subr.bf16.mxu0 %v17020_v37 }
 0x5ac   :  { %11779 = vmatprep.subr.bf16.mxu1 %v16954_v51  ;;  %v17003_v51 = vld [vmem:[#allocation10 + $0xbd8] ss:$28 sps:$4 sm:$0xff]  }
 0x5ae   :  { %11615 = vmatpush1.bf16.msra.mxu0 %v17018_v23 }
 0x5af   :  { %11780 = vmatpush1.bf16.msra.mxu1 %v16952_v33  ;;  %11616 = vmatprep.subr.bf16.mxu0 %v17026_v27 }
 0x5b0   :  { %11781 = vmatprep.subr.bf16.mxu1 %v16957_v52 }
 0x5b2   :  { %11617 = vmatpush1.bf16.msra.mxu0 %v17024_v60 }
 0x5b3   :  { %11782 = vmatpush1.bf16.msra.mxu1 %v16955_v8  ;;  %11618 = vmatprep.subr.bf16.mxu0 %v17032_v4 }
 0x5b4   :  { %11783 = vmatprep.subr.bf16.mxu1 %v16960_v7  ;;  %v17009_v7 = vld [vmem:[#allocation10 + $0xc10] ss:$28 sps:$4 sm:$0xff]  }
 0x5b6   :  { %11619 = vmatpush1.bf16.msra.mxu0 %v17030_v2  ;;  %v17017_v2 = vld [vmem:[#allocation10 + $0xc4c] ss:$28 sps:$4 sm:$0xff]  }
 0x5b7   :  { %11784 = vmatpush1.bf16.msra.mxu1 %v16958_v42  ;;  %11620 = vmatprep.subr.bf16.mxu0 %v17038_v62 }
 0x5b8   :  { %11785 = vmatprep.subr.bf16.mxu1 %v16963_v32 }
 0x5ba   :  { %11621 = vmatpush1.bf16.msra.mxu0 %v17036_v31 }
 0x5bb   :  { %11786 = vmatpush1.bf16.msra.mxu1 %v16961_v57  ;;  %11622 = vmatprep.subr.bf16.mxu0 %v17044_v53  ;;  %v17015_v57 = vld [vmem:[#allocation10 + $0xc48] ss:$28 sps:$4 sm:$0xff]  }
 0x5bc   :  { %11808 = vmatprep.subr.bf16.mxu1 %v16969_v11 }
 0x5be   :  { %11788 = vmatmul.mubr.bf16.vlgmr.msra.gmra.mrb[24].mxu1 %v18768_v54  ;;  %11623 = vmatpush1.bf16.msra.mxu0 %v17042_v13 }
 0x5bf   :  { %11797 = vmatprep.mubr.bf16.mxu1 %v18775_v44  ;;  %11809 = vmatpush1.bf16.msra.mxu1 %v16967_v6  ;;  %v17023_v6 = vld [vmem:[#allocation10 + $0xc84] ss:$28 sps:$4 sm:$0xff]  }
 0x5c0   :  { %11810 = vmatprep.subr.bf16.mxu1 %v16975_v19  ;;  %11624 = vmatprep.subr.bf16.mxu0 %v17050_v34 }
 0x5c2   :  { %11625 = vmatpush1.bf16.msra.mxu0 %v17048_v46 }
 0x5c3   :  { %11811 = vmatpush1.bf16.msra.mxu1 %v16973_v63  ;;  %11626 = vmatprep.subr.bf16.mxu0 %v17056_v12  ;;  %v17021_v12 = vld [vmem:[#allocation10 + $0xc80] ss:$28 sps:$4 sm:$0xff]  }
 0x5c4   :  { %11812 = vmatprep.subr.bf16.mxu1 %v16981_v49 }
 0x5c6   :  { %11798 = vmatmul.mubr.bf16.gmra.mrb[28].mxu1 %v18772_v47  ;;  %11627 = vmatpush1.bf16.msra.mxu0 %v17054_v55  ;;  %v17029_v55 = vld [vmem:[#allocation10 + $0xcbc] ss:$28 sps:$4 sm:$0xff]  }
 0x5c7   :  { %11813 = vmatpush1.bf16.msra.mxu1 %v16979_v41  ;;  %11861 = vmatprep.subr.bf16.mxu0 %v17062_v26 }
 0x5c8   :  { %11814 = vmatprep.subr.bf16.mxu1 %v16987_v38 }
 0x5cb   :  { %11815 = vmatpush1.bf16.msra.mxu1 %v16985_v17 }
 0x5cc   :  { %11816 = vmatprep.subr.bf16.mxu1 %v16993_v21 }
 0x5cf   :  { %11817 = vmatpush1.bf16.msra.mxu1 %v16991_v29 }
 0x5d0   :  { %11818 = vmatprep.subr.bf16.mxu1 %v16999_v45  ;;  %v8217_v28 = vpop.f32.mrb[16].mxu1 }
 0x5d1   :  { %v8219_v59 = vpop.f32.mrb[17].mxu1  ;;  %v16274_v23 = vadd.f32 %v8217_v28, %v1247_v0 }
 0x5d2   :  { %v8221_v37 = vpop.f32.mrb[18].mxu1  ;;  %v16275_v52 = vadd.f32 %v8219_v59, %v1251_v3  ;;  %v17035_v59 = vld [vmem:[#allocation10 + $0xcf4] ss:$28 sps:$4 sm:$0xff]  }
 0x5d3   :  { %11819 = vmatpush1.bf16.msra.mxu1 %v16997_v9  ;;  %v16276_v33 = vadd.f32 %v8221_v37, %v1247_v0  ;;  %v8223_v27 = vpop.f32.mrb[19].mxu1 }
 0x5d4   :  { %11820 = vmatprep.subr.bf16.mxu1 %v17005_v15  ;;  %v16277_v60 = vadd.f32 %v8223_v27, %v1251_v3  ;;  %v17027_v15 = vld [vmem:[#allocation10 + $0xcb8] ss:$28 sps:$4 sm:$0xff]  }
 0x5d5   :  { %v8242_v8 = vadd.f32 %v16276_v33, %v16274_v23 }
 0x5d6   :  { %v8243_v4 = vadd.f32 %v16277_v60, %v16275_v52 }
 0x5d7   :  { %11821 = vmatpush1.bf16.msra.mxu1 %v17003_v51 }
 0x5d8   :  { %11822 = vmatprep.subr.bf16.mxu1 %v17011_v20  ;;  %v8227_v42 = vpop.f32.mrb[20].mxu1 }
 0x5d9   :  { %v16278_v62 = vadd.f32 %v8227_v42, %v1247_v0  ;;  %v8229_v1 = vpop.f32.mrb[21].mxu1 }
 0x5da   :  { %v16279_v32 = vadd.f32 %v8229_v1, %v1251_v3  ;;  %v8231_v31 = vpop.f32.mrb[22].mxu1  ;;  %v17039_v1 = vld [vmem:[#allocation10 + $0xd28] ss:$28 sps:$4 sm:$0xff]  }
 0x5db   :  { %11823 = vmatpush1.bf16.msra.mxu1 %v17009_v7  ;;  %v8250_v53 = vadd.f32 %v16278_v62, %v8242_v8  ;;  %v16280_v11 = vadd.f32 %v8231_v31, %v1247_v0  ;;  %v8233_v13 = vpop.f32.mrb[23].mxu1  ;;  %v17047_v31 = vld [vmem:[#allocation10 + $0xd64] ss:$28 sps:$4 sm:$0xff]  }
 0x5dc   :  { %11824 = vmatprep.subr.bf16.mxu1 %v17017_v2  ;;  %v8251_v19 = vadd.f32 %v16279_v32, %v8243_v4  ;;  %v16281_v34 = vadd.f32 %v8233_v13, %v1251_v3  ;;  %v17041_v4 = vld [vmem:[#allocation10 + $0xd2c] ss:$28 sps:$4 sm:$0xff]   ;;  %v17045_v13 = vld [vmem:[#allocation10 + $0xd60] ss:$28 sps:$4 sm:$0xff]  }
 0x5dd   :  { %v8258_v46 = vadd.f32 %v16280_v11, %v8250_v53 }
 0x5de   :  { %v8259_v63 = vadd.f32 %v16281_v34, %v8251_v19  ;;  %v17051_v19 = vld [vmem:[#allocation10 + $0xd98] ss:$28 sps:$4 sm:$0xff]  }
 0x5df   :  { %11825 = vmatpush1.bf16.msra.mxu1 %v17015_v57  ;;  %v8266_v49 = vmul.f32 0.25, %v8258_v46  ;;  %v8409_v46 = vrot.slane %v18747_v50, %v18786_v61 }
 0x5e0   :  { %11826 = vmatprep.subr.bf16.mxu1 %v17023_v6  ;;  %v8267_v41 = vmul.f32 0.25, %v8259_v63  ;;  %v17053_v6 = vld [vmem:[#allocation10 + $0xd9c] ss:$28 sps:$4 sm:$0xff]   ;;  %v17057_v63 = vld [vmem:[#allocation10 + $0xdd0] ss:$28 sps:$4 sm:$0xff]  }
 0x5e1   :  { %v8274_v26 = vsub.f32 %v16274_v23, %v8266_v49  ;;  %v8282_v38 = vsub.f32 %v16276_v33, %v8266_v49  ;;  %v18795_v17 = vsub.f32 %v16278_v62, %v8266_v49  ;;  %v8298_v21 = vsub.f32 %v16280_v11, %v8266_v49  ;;  %v17063_v49 = vld [vmem:[#allocation10 + $0x1d8] ss:$28 sps:$4 sm:$0xff]  }
 0x5e2   :  { %v18797_v29 = vsub.f32 %v16275_v52, %v8267_v41  ;;  %v18799_v45 = vsub.f32 %v16277_v60, %v8267_v41  ;;  %v18801_v9 = vsub.f32 %v16279_v32, %v8267_v41  ;;  %v8299_v0 = vsub.f32 %v16281_v34, %v8267_v41  ;;  %v17033_v52 = vld [vmem:[#allocation10 + $0xcf0] ss:$28 sps:$4 sm:$0xff]  }
 0x5e3   :  { %11827 = vmatpush1.bf16.msra.mxu1 %v17021_v12  ;;  %v8306_v28 = vmul.f32 %v8274_v26, %v8274_v26  ;;  %v8314_v3 = vmul.f32 %v8282_v38, %v8282_v38  ;;  %v8330_v33 = vmul.f32 %v18795_v17, %v18795_v17  ;;  %v8346_v8 = vmul.f32 %v8298_v21, %v8298_v21  ;;  %v17059_v34 = vld [vmem:[#allocation10 + $0xdd4] ss:$28 sps:$4 sm:$0xff]  }
 0x5e4   :  { %11828 = vmatprep.subr.bf16.mxu1 %v17029_v55  ;;  %v8307_v37 = vmul.f32 %v18797_v29, %v18797_v29  ;;  %v8315_v51 = vmul.f32 %v18799_v45, %v18799_v45  ;;  %v8331_v20 = vmul.f32 %v18801_v9, %v18801_v9  ;;  %v8347_v2 = vmul.f32 %v8299_v0, %v8299_v0 }
 0x5e5   :  { %v8322_v23 = vadd.f32 %v8314_v3, %v8306_v28  ;;  %v8413_v12 = vrot.slane %v18747_v50, %v18789_v36  ;;  %v8467_v28 = vrot.slane %v18753_v58, %v18786_v61 }
 0x5e6   :  { %v8323_v27 = vadd.f32 %v8315_v51, %v8307_v37 }
 0x5e7   :  { %11829 = vmatpush1.bf16.msra.mxu1 %v17027_v15  ;;  %v8338_v60 = vadd.f32 %v8330_v33, %v8322_v23 }
 0x5e8   :  { %11830 = vmatprep.subr.bf16.mxu1 %v17035_v59  ;;  %v8339_v7 = vadd.f32 %v8331_v20, %v8323_v27  ;;  %v8471_v59 = vrot.slane %v18753_v58, %v18789_v36 }
 0x5e9   :  { %v8354_v42 = vadd.f32 %v8346_v8, %v8338_v60 }
 0x5ea   :  { %v8355_v62 = vadd.f32 %v8347_v2, %v8339_v7 }
 0x5eb   :  { %11831 = vmatpush1.bf16.msra.mxu1 %v17033_v52  ;;  %v8362_v32 = vmul.f32 0.25, %v8354_v42 }
 0x5ec   :  { %11832 = vmatprep.subr.bf16.mxu1 %v17041_v4  ;;  %v8363_v57 = vmul.f32 0.25, %v8355_v62 }
 0x5ed   :  { %v8370_v53 = vadd.f32 1e-05, %v8362_v32 }
 0x5ee   :  { %v8371_v11 = vadd.f32 1e-05, %v8363_v57  ;;  %v17064_v57 = vld [vmem:[#allocation10 + $0x18] ss:$28 sps:$4 sm:$0xff]  }
 0x5ef   :  { %11833 = vmatpush1.bf16.msra.mxu1 %v17039_v1  ;;  %17664 = vrsqrt.f32 %v8370_v53 }
 0x5f0   :  { %11834 = vmatprep.subr.bf16.mxu1 %v17047_v31  ;;  %17666 = vrsqrt.f32 %v8371_v11  ;;  %v17060_v31 = vld [vmem:[#allocation10 + $0x10] ss:$28 sps:$4 sm:$0xff]  }
 0x5f1   :  { %v17067_v11 = vld [vmem:[#allocation10 + $0x4c] ss:$28 sps:$4 sm:$0xff]  }
 0x5f3   :  { %11835 = vmatpush1.bf16.msra.mxu1 %v17045_v13  ;;  %v17068_v13 = vld [vmem:[#allocation10 + $0x210] ss:$28 sps:$4 sm:$0xff]  }
 0x5f4   :  { %11836 = vmatprep.subr.bf16.mxu1 %v17053_v6  ;;  %v17065_v6 = vld [vmem:[#allocation10 + $0x48] ss:$28 sps:$4 sm:$0xff]  }
 0x5f7   :  { %11837 = vmatpush1.bf16.msra.mxu1 %v17051_v19  ;;  %v17069_v19 = vld [vmem:[#allocation10 + $0x50] ss:$28 sps:$4 sm:$0xff]  }
 0x5f8   :  { %11838 = vmatprep.subr.bf16.mxu1 %v17059_v34  ;;  %v17072_v34 = vld [vmem:[#allocation10 + $0x84] ss:$28 sps:$4 sm:$0xff]  }
 0x5f9   :  { %v17665_v55 = vpop.eup %17664 }
 0x5fa   :  { %v17667_v41 = vpop.eup %17666  ;;  %v8428_v15 = vmul.f32 %v17665_v55, %v8409_v46  ;;  %v17073_v46 = vld [vmem:[#allocation10 + $0x248] ss:$28 sps:$4 sm:$0xff]   ;;  %v17078_v55 = vld [vmem:[#allocation10 + $0x280] ss:$28 sps:$4 sm:$0xff]  }
 0x5fb   :  { %11839 = vmatpush1.bf16.msra.mxu1 %v17057_v63  ;;  %v8429_v3 = vmul.f32 %v17667_v41, %v8413_v12  ;;  %v17070_v63 = vld [vmem:[#allocation10 + $0x80] ss:$28 sps:$4 sm:$0xff]   ;;  %v17074_v12 = vld [vmem:[#allocation10 + $0x88] ss:$28 sps:$4 sm:$0xff]   ;;  %v17075_v41 = vld [vmem:[#allocation10 + $0xb8] ss:$28 sps:$4 sm:$0xff]  }
 0x5fc   :  { %16130 = vmatprep.subr.bf16.mxu1 %v17063_v49  ;;  %v8436_v37 = vmul.f32 %v8428_v15, %v8274_v26  ;;  %v8502_v51 = vmul.f32 %v8428_v15, %v8282_v38  ;;  %v8550_v23 = vmul.f32 %v8428_v15, %v8298_v21  ;;  %v8526_v33 = vmul.f32 %v8428_v15, %v18795_v17  ;;  %v17077_v49 = vld [vmem:[#allocation10 + $0xbc] ss:$28 sps:$4 sm:$0xff]  }
 0x5fd   :  { %v8551_v50 = vmul.f32 %v8429_v3, %v8299_v0  ;;  %v8437_v27 = vmul.f32 %v8429_v3, %v18797_v29  ;;  %v8503_v20 = vmul.f32 %v8429_v3, %v18799_v45  ;;  %v8527_v52 = vmul.f32 %v8429_v3, %v18801_v9  ;;  %v17079_v15 = vld [vmem:[#allocation10 + $0xc0] ss:$28 sps:$4 sm:$0xff]   ;;  %v17083_v3 = vld [vmem:[#allocation10 + $0x2b8] ss:$28 sps:$4 sm:$0xff]  }
 0x5fe   :  { %v8558_v60 = vadd.f32 %v8550_v23, %v8467_v28  ;;  %v8486_v8 = vadd.f32 %v8467_v28, %v8436_v37  ;;  %v8510_v4 = vadd.f32 %v8502_v51, %v8467_v28  ;;  %v8534_v7 = vadd.f32 %v8526_v33, %v8467_v28  ;;  %v17082_v28 = vld [vmem:[#allocation10 + $0xf4] ss:$28 sps:$4 sm:$0xff]   ;;  %v17087_v51 = vld [vmem:[#allocation10 + $0x12c] ss:$28 sps:$4 sm:$0xff]  }
 0x5ff   :  { %v8559_v2 = vadd.f32 %v8551_v50, %v8471_v59  ;;  %v8487_v42 = vadd.f32 %v8471_v59, %v8437_v27  ;;  %v8511_v58 = vadd.f32 %v8503_v20, %v8471_v59  ;;  %v8535_v36 = vadd.f32 %v8527_v52, %v8471_v59  ;;  %v17080_v59 = vld [vmem:[#allocation10 + $0xf0] ss:$28 sps:$4 sm:$0xff]   ;;  %v17084_v37 = vld [vmem:[#allocation10 + $0xf8] ss:$28 sps:$4 sm:$0xff]   ;;  %v17085_v33 = vld [vmem:[#allocation10 + $0x128] ss:$28 sps:$4 sm:$0xff]  }
 0x600   :  { %v8566_v26 = vmax.f32 %v8558_v60, 0.0  ;;  %v8494_v38 = vmax.f32 %v8486_v8, 0.0  ;;  %v8518_v21 = vmax.f32 %v8510_v4, 0.0  ;;  %v8542_v62 = vmax.f32 %v8534_v7, 0.0  ;;  %v17088_v23 = vld [vmem:[#allocation10 + $0x2f0] ss:$28 sps:$4 sm:$0xff]  }
 0x601   :  { %v8567_v17 = vmax.f32 %v8559_v2, 0.0  ;;  %v8495_v0 = vmax.f32 %v8487_v42, 0.0  ;;  %v8519_v1 = vmax.f32 %v8511_v58, 0.0  ;;  %v8543_v29 = vmax.f32 %v8535_v36, 0.0  ;;  %v17089_v50 = vld [vmem:[#allocation10 + $0x130] ss:$28 sps:$4 sm:$0xff]  }
 0x602   :  { %v18823_v32 = vpack.c.bf16 %v8518_v21, %v8494_v38  ;;  %v18825_v45 = vpack.c.bf16 %v8566_v26, %v8542_v62  ;;  %v17092_v27 = vld [vmem:[#allocation10 + $0x164] ss:$28 sps:$4 sm:$0xff]   ;;  %v17097_v60 = vld [vmem:[#allocation10 + $0x19c] ss:$28 sps:$4 sm:$0xff]   ;;  %v17102_v2 = vld [vmem:[#allocation10 + $0x1d4] ss:$28 sps:$4 sm:$0xff]  }
 0x603   :  { %v18827_v9 = vpack.c.bf16 %v8519_v1, %v8495_v0  ;;  %v18829_v53 = vpack.c.bf16 %v8567_v17, %v8543_v29  ;;  %v17090_v20 = vld [vmem:[#allocation10 + $0x160] ss:$28 sps:$4 sm:$0xff]   ;;  %v17094_v52 = vld [vmem:[#allocation10 + $0x168] ss:$28 sps:$4 sm:$0xff]   ;;  %v17095_v4 = vld [vmem:[#allocation10 + $0x198] ss:$28 sps:$4 sm:$0xff]  }
 0x604   :  { %v17098_v8 = vld [vmem:[#allocation10 + $0x360] ss:$28 sps:$4 sm:$0xff]   ;;  %v17103_v42 = vld [vmem:[#allocation10 + $0x558] ss:$28 sps:$4 sm:$0xff]   ;;  %v17100_v58 = vld [vmem:[#allocation10 + $0x1d0] ss:$28 sps:$4 sm:$0xff]  }
 0x605   :  { %11628 = vmatprep.mubr.bf16.mxu0 %v18827_v9  ;;  %11840 = vmatprep.mubr.bf16.mxu1 %v18827_v9  ;;  %v17099_v7 = vld [vmem:[#allocation10 + $0x1a0] ss:$28 sps:$4 sm:$0xff]   ;;  %v17104_v36 = vld [vmem:[#allocation10 + $0x398] ss:$28 sps:$4 sm:$0xff]   ;;  %v17107_v26 = vld [vmem:[#allocation10 + $0x20c] ss:$28 sps:$4 sm:$0xff]  }
 0x606   :  { %11629 = vmatmul.mubr.bf16.vlgmr.msra.gmra.mrb[16].mxu0 %v18823_v32  ;;  %11841 = vmatmul.mubr.bf16.vlgmr.msra.gmra.mrb[24].mxu1 %v18823_v32  ;;  %v17108_v38 = vld [vmem:[#allocation10 + $0x590] ss:$28 sps:$4 sm:$0xff]   ;;  %v17105_v21 = vld [vmem:[#allocation10 + $0x208] ss:$28 sps:$4 sm:$0xff]   ;;  %v17110_v1 = vld [vmem:[#allocation10 + $0x240] ss:$28 sps:$4 sm:$0xff]  }
 0x607   :  { %11862 = vmatpush1.bf16.msra.mxu0 %v17060_v31  ;;  %16131 = vmatpush3.bf16.msra.mxu1 %v17064_v57  ;;  %v17109_v62 = vld [vmem:[#allocation10 + $0x3d0] ss:$28 sps:$4 sm:$0xff]   ;;  %v17112_v17 = vld [vmem:[#allocation10 + $0x244] ss:$28 sps:$4 sm:$0xff]   ;;  %v17117_v31 = vld [vmem:[#allocation10 + $0x27c] ss:$28 sps:$4 sm:$0xff]  }
 0x608   :  { %11638 = vmatprep.mubr.bf16.mxu0 %v18829_v53  ;;  %11850 = vmatprep.mubr.bf16.mxu1 %v18829_v53  ;;  %v17113_v0 = vld [vmem:[#allocation10 + $0x5c8] ss:$28 sps:$4 sm:$0xff]   ;;  %v17118_v57 = vld [vmem:[#allocation10 + $0x600] ss:$28 sps:$4 sm:$0xff]  }
 0x609   :  { %11863 = vmatprep.subr.bf16.mxu0 %v17067_v11  ;;  %16132 = vmatprep.subr.bf16.mxu1 %v17068_v13  ;;  %v17114_v29 = vld [vmem:[#allocation10 + $0x408] ss:$28 sps:$4 sm:$0xff]   ;;  %v17115_v11 = vld [vmem:[#allocation10 + $0x278] ss:$28 sps:$4 sm:$0xff]   ;;  %v17119_v13 = vld [vmem:[#allocation10 + $0x440] ss:$28 sps:$4 sm:$0xff]  }
 0x60b   :  { %11864 = vmatpush1.bf16.msra.mxu0 %v17065_v6  ;;  %16133 = vmatpush3.bf16.msra.mxu1 %v17069_v19  ;;  %v17122_v6 = vld [vmem:[#allocation10 + $0x2b4] ss:$28 sps:$4 sm:$0xff]  }
 0x60c   :  { %11865 = vmatprep.subr.bf16.mxu0 %v17072_v34  ;;  %16134 = vmatprep.subr.bf16.mxu1 %v17073_v46  ;;  %v17123_v19 = vld [vmem:[#allocation10 + $0x638] ss:$28 sps:$4 sm:$0xff]   ;;  %v17120_v34 = vld [vmem:[#allocation10 + $0x2b0] ss:$28 sps:$4 sm:$0xff]  }
 0x60d   :  { %v17124_v46 = vld [vmem:[#allocation10 + $0x478] ss:$28 sps:$4 sm:$0xff]  }
 0x60e   :  { %11639 = vmatmul.mubr.bf16.gmra.mrb[20].mxu0 %v18825_v45  ;;  %11851 = vmatmul.mubr.bf16.gmra.mrb[28].mxu1 %v18825_v45 }
 0x60f   :  { %11866 = vmatpush1.bf16.msra.mxu0 %v17070_v63  ;;  %16135 = vmatpush3.bf16.msra.mxu1 %v17074_v12  ;;  %v17127_v63 = vld [vmem:[#allocation10 + $0x2ec] ss:$28 sps:$4 sm:$0xff]  }
 0x610   :  { %11893 = vmatprep.mubr.bf16.mxu0 %v18560_v35  ;;  %12105 = vmatprep.mubr.bf16.mxu1 %v18560_v35  ;;  %v17093_v35 = vld [vmem:[#allocation10 + $0x328] ss:$28 sps:$4 sm:$0xff]   ;;  %v17128_v12 = vld [vmem:[#allocation10 + $0x670] ss:$28 sps:$4 sm:$0xff]  }
 0x611   :  { %11867 = vmatprep.subr.bf16.mxu0 %v17077_v49  ;;  %16136 = vmatprep.subr.bf16.mxu1 %v17078_v55  ;;  %v17125_v49 = vld [vmem:[#allocation10 + $0x2e8] ss:$28 sps:$4 sm:$0xff]   ;;  %v17129_v55 = vld [vmem:[#allocation10 + $0x4b0] ss:$28 sps:$4 sm:$0xff]  }
 0x613   :  { %11868 = vmatpush1.bf16.msra.mxu0 %v17075_v41  ;;  %16137 = vmatpush3.bf16.msra.mxu1 %v17079_v15  ;;  %v17132_v41 = vld [vmem:[#allocation10 + $0x324] ss:$28 sps:$4 sm:$0xff]  }
 0x614   :  { %11869 = vmatprep.subr.bf16.mxu0 %v17082_v28  ;;  %16138 = vmatprep.subr.bf16.mxu1 %v17083_v3  ;;  %v17133_v15 = vld [vmem:[#allocation10 + $0x6a8] ss:$28 sps:$4 sm:$0xff]   ;;  %v17130_v28 = vld [vmem:[#allocation10 + $0x320] ss:$28 sps:$4 sm:$0xff]  }
 0x615   :  { %v17134_v3 = vld [vmem:[#allocation10 + $0x4e8] ss:$28 sps:$4 sm:$0xff]  }
 0x617   :  { %11870 = vmatpush1.bf16.msra.mxu0 %v17080_v59  ;;  %16139 = vmatpush3.bf16.msra.mxu1 %v17084_v37  ;;  %v17137_v59 = vld [vmem:[#allocation10 + $0x35c] ss:$28 sps:$4 sm:$0xff]  }
 0x618   :  { %11871 = vmatprep.subr.bf16.mxu0 %v17087_v51  ;;  %16140 = vmatprep.subr.bf16.mxu1 %v17088_v23  ;;  %v17138_v37 = vld [vmem:[#allocation10 + $0x6e0] ss:$28 sps:$4 sm:$0xff]   ;;  %v17135_v51 = vld [vmem:[#allocation10 + $0x358] ss:$28 sps:$4 sm:$0xff]  }
 0x619   :  { %v17139_v23 = vld [vmem:[#allocation10 + $0x520] ss:$28 sps:$4 sm:$0xff]  }
 0x61b   :  { %11872 = vmatpush1.bf16.msra.mxu0 %v17085_v33  ;;  %16141 = vmatpush3.bf16.msra.mxu1 %v17089_v50  ;;  %v17142_v33 = vld [vmem:[#allocation10 + $0x394] ss:$28 sps:$4 sm:$0xff]  }
 0x61c   :  { %11873 = vmatprep.subr.bf16.mxu0 %v17092_v27  ;;  %16142 = vmatprep.subr.bf16.mxu1 %v17093_v35  ;;  %v17143_v50 = vld [vmem:[#allocation10 + $0x8d8] ss:$28 sps:$4 sm:$0xff]   ;;  %v17140_v27 = vld [vmem:[#allocation10 + $0x390] ss:$28 sps:$4 sm:$0xff]  }
 0x61d   :  { %v17144_v35 = vld [vmem:[#allocation10 + $0x718] ss:$28 sps:$4 sm:$0xff]  }
 0x61f   :  { %11874 = vmatpush1.bf16.msra.mxu0 %v17090_v20  ;;  %16143 = vmatpush3.bf16.msra.mxu1 %v17094_v52  ;;  %v17147_v20 = vld [vmem:[#allocation10 + $0x3cc] ss:$28 sps:$4 sm:$0xff]  }
 0x620   :  { %11875 = vmatprep.subr.bf16.mxu0 %v17097_v60  ;;  %16144 = vmatprep.subr.bf16.mxu1 %v17098_v8  ;;  %v17148_v52 = vld [vmem:[#allocation10 + $0x910] ss:$28 sps:$4 sm:$0xff]   ;;  %v17145_v60 = vld [vmem:[#allocation10 + $0x3c8] ss:$28 sps:$4 sm:$0xff]  }
 0x621   :  { %v17149_v8 = vld [vmem:[#allocation10 + $0x750] ss:$28 sps:$4 sm:$0xff]  }
 0x623   :  { %11876 = vmatpush1.bf16.msra.mxu0 %v17095_v4  ;;  %16145 = vmatpush3.bf16.msra.mxu1 %v17099_v7  ;;  %v17152_v4 = vld [vmem:[#allocation10 + $0x404] ss:$28 sps:$4 sm:$0xff]  }
 0x624   :  { %11877 = vmatprep.subr.bf16.mxu0 %v17102_v2  ;;  %16158 = vmatprep.subr.bf16.mxu1 %v17103_v42  ;;  %v17153_v7 = vld [vmem:[#allocation10 + $0x948] ss:$28 sps:$4 sm:$0xff]   ;;  %v17150_v2 = vld [vmem:[#allocation10 + $0x400] ss:$28 sps:$4 sm:$0xff]  }
 0x625   :  { %v17157_v42 = vld [vmem:[#allocation10 + $0x43c] ss:$28 sps:$4 sm:$0xff]  }
 0x626   :  { %12106 = vmatmul.mubr.bf16.vlgmr.msra.gmra.mrb[32].mxu1 %v18562_v39 }
 0x627   :  { %11878 = vmatpush1.bf16.msra.mxu0 %v17100_v58  ;;  %12113 = vmatprep.mubr.bf16.mxu1 %v18566_v24  ;;  %v17155_v58 = vld [vmem:[#allocation10 + $0x438] ss:$28 sps:$4 sm:$0xff]  }
 0x628   :  { %16159 = vmatpush3.bf16.msra.mxu1 %v17104_v36  ;;  %11879 = vmatprep.subr.bf16.mxu0 %v17107_v26  ;;  %v17159_v36 = vld [vmem:[#allocation10 + $0x7c0] ss:$28 sps:$4 sm:$0xff]   ;;  %v17162_v26 = vld [vmem:[#allocation10 + $0x474] ss:$28 sps:$4 sm:$0xff]  }
 0x629   :  { %16160 = vmatprep.subr.bf16.mxu1 %v17108_v38  ;;  %v17163_v38 = vld [vmem:[#allocation10 + $0x9b8] ss:$28 sps:$4 sm:$0xff]  }
 0x62b   :  { %11880 = vmatpush1.bf16.msra.mxu0 %v17105_v21  ;;  %v17160_v21 = vld [vmem:[#allocation10 + $0x470] ss:$28 sps:$4 sm:$0xff]  }
 0x62c   :  { %16161 = vmatpush3.bf16.msra.mxu1 %v17109_v62  ;;  %11881 = vmatprep.subr.bf16.mxu0 %v17112_v17  ;;  %v17167_v62 = vld [vmem:[#allocation10 + $0x4ac] ss:$28 sps:$4 sm:$0xff]  }
 0x62d   :  { %16162 = vmatprep.subr.bf16.mxu1 %v17113_v0  ;;  %v17168_v17 = vld [vmem:[#allocation10 + $0x9f0] ss:$28 sps:$4 sm:$0xff]  }
 0x62e   :  { %12114 = vmatmul.mubr.bf16.gmra.mrb[36].mxu1 %v18568_v48  ;;  %v17169_v0 = vld [vmem:[#allocation10 + $0x830] ss:$28 sps:$4 sm:$0xff]  }
 0x62f   :  { %11882 = vmatpush1.bf16.msra.mxu0 %v17110_v1  ;;  %12154 = vmatprep.mubr.bf16.mxu1 %v18659_v22  ;;  %v17172_v1 = vld [vmem:[#allocation10 + $0x4e4] ss:$28 sps:$4 sm:$0xff]  }
 0x630   :  { %16163 = vmatpush3.bf16.msra.mxu1 %v17114_v29  ;;  %11883 = vmatprep.subr.bf16.mxu0 %v17117_v31  ;;  %v17173_v29 = vld [vmem:[#allocation10 + $0xa28] ss:$28 sps:$4 sm:$0xff]   ;;  %v17170_v31 = vld [vmem:[#allocation10 + $0x4e0] ss:$28 sps:$4 sm:$0xff]  }
 0x631   :  { %16164 = vmatprep.subr.bf16.mxu1 %v17118_v57  ;;  %v17174_v57 = vld [vmem:[#allocation10 + $0x868] ss:$28 sps:$4 sm:$0xff]  }
 0x633   :  { %11884 = vmatpush1.bf16.msra.mxu0 %v17115_v11  ;;  %v17177_v11 = vld [vmem:[#allocation10 + $0x51c] ss:$28 sps:$4 sm:$0xff]  }
 0x634   :  { %16165 = vmatpush3.bf16.msra.mxu1 %v17119_v13  ;;  %11885 = vmatprep.subr.bf16.mxu0 %v17122_v6  ;;  %v17178_v13 = vld [vmem:[#allocation10 + $0xa60] ss:$28 sps:$4 sm:$0xff]   ;;  %v17175_v6 = vld [vmem:[#allocation10 + $0x518] ss:$28 sps:$4 sm:$0xff]  }
 0x635   :  { %16166 = vmatprep.subr.bf16.mxu1 %v17123_v19  ;;  %v17179_v19 = vld [vmem:[#allocation10 + $0x8a0] ss:$28 sps:$4 sm:$0xff]  }
 0x637   :  { %11886 = vmatpush1.bf16.msra.mxu0 %v17120_v34  ;;  %v17182_v34 = vld [vmem:[#allocation10 + $0x554] ss:$28 sps:$4 sm:$0xff]  }
 0x638   :  { %16167 = vmatpush3.bf16.msra.mxu1 %v17124_v46  ;;  %11887 = vmatprep.subr.bf16.mxu0 %v17127_v63  ;;  %v17183_v46 = vld [vmem:[#allocation10 + $0xc58] ss:$28 sps:$4 sm:$0xff]   ;;  %v17180_v63 = vld [vmem:[#allocation10 + $0x550] ss:$28 sps:$4 sm:$0xff]  }
 0x639   :  { %16168 = vmatprep.subr.bf16.mxu1 %v17128_v12  ;;  %v17184_v12 = vld [vmem:[#allocation10 + $0xa98] ss:$28 sps:$4 sm:$0xff]  }
 0x63b   :  { %11888 = vmatpush1.bf16.msra.mxu0 %v17125_v49  ;;  %v17187_v49 = vld [vmem:[#allocation10 + $0x58c] ss:$28 sps:$4 sm:$0xff]  }
 0x63c   :  { %16169 = vmatpush3.bf16.msra.mxu1 %v17129_v55  ;;  %11889 = vmatprep.subr.bf16.mxu0 %v17132_v41  ;;  %v17188_v55 = vld [vmem:[#allocation10 + $0xc90] ss:$28 sps:$4 sm:$0xff]   ;;  %v17185_v41 = vld [vmem:[#allocation10 + $0x588] ss:$28 sps:$4 sm:$0xff]  }
 0x63d   :  { %16170 = vmatprep.subr.bf16.mxu1 %v17133_v15  ;;  %v17189_v15 = vld [vmem:[#allocation10 + $0xad0] ss:$28 sps:$4 sm:$0xff]  }
 0x63f   :  { %11890 = vmatpush1.bf16.msra.mxu0 %v17130_v28  ;;  %v17192_v28 = vld [vmem:[#allocation10 + $0x5c4] ss:$28 sps:$4 sm:$0xff]  }
 0x640   :  { %16171 = vmatpush3.bf16.msra.mxu1 %v17134_v3  ;;  %11891 = vmatprep.subr.bf16.mxu0 %v17137_v59  ;;  %v17193_v3 = vld [vmem:[#allocation10 + $0xcc8] ss:$28 sps:$4 sm:$0xff]   ;;  %v17190_v59 = vld [vmem:[#allocation10 + $0x5c0] ss:$28 sps:$4 sm:$0xff]  }
 0x641   :  { %16172 = vmatprep.subr.bf16.mxu1 %v17138_v37  ;;  %v17194_v37 = vld [vmem:[#allocation10 + $0xb08] ss:$28 sps:$4 sm:$0xff]  }
 0x643   :  { %11892 = vmatpush1.bf16.msra.mxu0 %v17135_v51  ;;  %v17197_v51 = vld [vmem:[#allocation10 + $0x5fc] ss:$28 sps:$4 sm:$0xff]  }
 0x644   :  { %16173 = vmatpush3.bf16.msra.mxu1 %v17139_v23  ;;  %11914 = vmatprep.subr.bf16.mxu0 %v17142_v33  ;;  %v17198_v23 = vld [vmem:[#allocation10 + $0xd00] ss:$28 sps:$4 sm:$0xff]   ;;  %v17195_v33 = vld [vmem:[#allocation10 + $0x5f8] ss:$28 sps:$4 sm:$0xff]  }
 0x645   :  { %16186 = vmatprep.subr.bf16.mxu1 %v17143_v50  ;;  %v17199_v50 = vld [vmem:[#allocation10 + $0xb40] ss:$28 sps:$4 sm:$0xff]  }
 0x646   :  { %11894 = vmatmul.mubr.bf16.vlgmr.msra.gmra.mrb[24].mxu0 %v18562_v39  ;;  %v17154_v39 = vld [vmem:[#allocation10 + $0x788] ss:$28 sps:$4 sm:$0xff]  }
 0x647   :  { %12155 = vmatmul.mubr.bf16.vlgmr.msra.gmra.mrb[40].mxu1 %v18661_v5  ;;  %11903 = vmatprep.mubr.bf16.mxu0 %v18566_v24  ;;  %v17158_v24 = vld [vmem:[#allocation10 + $0x980] ss:$28 sps:$4 sm:$0xff]  }
 0x648   :  { %11915 = vmatpush1.bf16.msra.mxu0 %v17140_v27  ;;  %12162 = vmatprep.mubr.bf16.mxu1 %v18667_v25  ;;  %v17202_v27 = vld [vmem:[#allocation10 + $0x634] ss:$28 sps:$4 sm:$0xff]  }
 0x649   :  { %16187 = vmatpush3.bf16.msra.mxu1 %v17144_v35  ;;  %11916 = vmatprep.subr.bf16.mxu0 %v17147_v20  ;;  %v17203_v35 = vld [vmem:[#allocation10 + $0xd38] ss:$28 sps:$4 sm:$0xff]   ;;  %v17200_v20 = vld [vmem:[#allocation10 + $0x630] ss:$28 sps:$4 sm:$0xff]  }
 0x64a   :  { %16188 = vmatprep.subr.bf16.mxu1 %v17148_v52  ;;  %v17204_v52 = vld [vmem:[#allocation10 + $0xb78] ss:$28 sps:$4 sm:$0xff]  }
 0x64c   :  { %11917 = vmatpush1.bf16.msra.mxu0 %v17145_v60  ;;  %v17207_v60 = vld [vmem:[#allocation10 + $0x66c] ss:$28 sps:$4 sm:$0xff]  }
 0x64d   :  { %16189 = vmatpush3.bf16.msra.mxu1 %v17149_v8  ;;  %11918 = vmatprep.subr.bf16.mxu0 %v17152_v4  ;;  %v17208_v8 = vld [vmem:[#allocation10 + $0xd70] ss:$28 sps:$4 sm:$0xff]   ;;  %v17205_v4 = vld [vmem:[#allocation10 + $0x668] ss:$28 sps:$4 sm:$0xff]  }
 0x64e   :  { %11904 = vmatmul.mubr.bf16.gmra.mrb[28].mxu0 %v18568_v48  ;;  %16190 = vmatprep.subr.bf16.mxu1 %v17153_v7  ;;  %v17164_v48 = vld [vmem:[#allocation10 + $0x7f8] ss:$28 sps:$4 sm:$0xff]   ;;  %v17209_v7 = vld [vmem:[#allocation10 + $0xbb0] ss:$28 sps:$4 sm:$0xff]  }
 0x64f   :  { %12163 = vmatmul.mubr.bf16.gmra.mrb[44].mxu1 %v18670_v56  ;;  %11946 = vmatprep.mubr.bf16.mxu0 %v18659_v22  ;;  %v17165_v22 = vld [vmem:[#allocation10 + $0x4a8] ss:$28 sps:$4 sm:$0xff]  }
 0x650   :  { %11919 = vmatpush1.bf16.msra.mxu0 %v17150_v2  ;;  %12203 = vmatprep.mubr.bf16.mxu1 %v18770_v30  ;;  %v17212_v2 = vld [vmem:[#allocation10 + $0x6a4] ss:$28 sps:$4 sm:$0xff]  }
 0x651   :  { %16191 = vmatpush3.bf16.msra.mxu1 %v17154_v39  ;;  %11920 = vmatprep.subr.bf16.mxu0 %v17157_v42  ;;  %v17213_v39 = vld [vmem:[#allocation10 + $0xda8] ss:$28 sps:$4 sm:$0xff]   ;;  %v17210_v42 = vld [vmem:[#allocation10 + $0x6a0] ss:$28 sps:$4 sm:$0xff]  }
 0x652   :  { %16192 = vmatprep.subr.bf16.mxu1 %v17158_v24  ;;  %v17214_v24 = vld [vmem:[#allocation10 + $0xbe8] ss:$28 sps:$4 sm:$0xff]  }
 0x654   :  { %11921 = vmatpush1.bf16.msra.mxu0 %v17155_v58  ;;  %v17217_v58 = vld [vmem:[#allocation10 + $0x6dc] ss:$28 sps:$4 sm:$0xff]  }
 0x655   :  { %16193 = vmatpush3.bf16.msra.mxu1 %v17159_v36  ;;  %11922 = vmatprep.subr.bf16.mxu0 %v17162_v26  ;;  %v17218_v36 = vld [vmem:[#allocation10 + $0xde0] ss:$28 sps:$4 sm:$0xff]   ;;  %v17215_v26 = vld [vmem:[#allocation10 + $0x6d8] ss:$28 sps:$4 sm:$0xff]  }
 0x656   :  { %16194 = vmatprep.subr.bf16.mxu1 %v17163_v38  ;;  %v17219_v38 = vld [vmem:[#allocation10 + $0xc20] ss:$28 sps:$4 sm:$0xff]  }
 0x658   :  { %11923 = vmatpush1.bf16.msra.mxu0 %v17160_v21  ;;  %v17222_v21 = vld [vmem:[#allocation10 + $0x714] ss:$28 sps:$4 sm:$0xff]  }
 0x659   :  { %16195 = vmatpush3.bf16.msra.mxu1 %v17164_v48  ;;  %11924 = vmatprep.subr.bf16.mxu0 %v17167_v62  ;;  %v17279_v48 = vld [vmem:[#allocation16 + $0x4] ss:$16 sps:$4 sm:$0xff]  }
 0x65a   :  { %16196 = vmatprep.subr.bf16.mxu1 %v17168_v17  ;;  %v17220_v62 = vld [vmem:[#allocation10 + $0x710] ss:$28 sps:$4 sm:$0xff]  }
 0x65b   :  { %v17225_v17 = vld [vmem:[#allocation10 + $0x74c] ss:$28 sps:$4 sm:$0xff]  }
 0x65c   :  { %11925 = vmatpush1.bf16.msra.mxu0 %v17165_v22  ;;  %v17277_v22 = vld [vmem:[#allocation16] ss:$16 sps:$4 sm:$0xff]  }
 0x65d   :  { %16197 = vmatpush3.bf16.msra.mxu1 %v17169_v0  ;;  %11926 = vmatprep.subr.bf16.mxu0 %v17172_v1  ;;  %v17285_v0 = vld [vmem:[#allocation16 + $0x24] ss:$16 sps:$4 sm:$0xff]   ;;  %v17223_v1 = vld [vmem:[#allocation10 + $0x748] ss:$28 sps:$4 sm:$0xff]  }
 0x65e   :  { %16198 = vmatprep.subr.bf16.mxu1 %v17173_v29  ;;  %v17228_v29 = vld [vmem:[#allocation10 + $0x784] ss:$28 sps:$4 sm:$0xff]  }
 0x660   :  { %11927 = vmatpush1.bf16.msra.mxu0 %v17170_v31  ;;  %v17283_v31 = vld [vmem:[#allocation16 + $0x20] ss:$16 sps:$4 sm:$0xff]  }
 0x661   :  { %16199 = vmatpush3.bf16.msra.mxu1 %v17174_v57  ;;  %11928 = vmatprep.subr.bf16.mxu0 %v17177_v11  ;;  %v17291_v57 = vld [vmem:[#allocation16 + $0x44] ss:$16 sps:$4 sm:$0xff]  }
 0x662   :  { %16200 = vmatprep.subr.bf16.mxu1 %v17178_v13  ;;  %v17226_v11 = vld [vmem:[#allocation10 + $0x780] ss:$28 sps:$4 sm:$0xff]  }
 0x663   :  { %v17231_v13 = vld [vmem:[#allocation10 + $0x7bc] ss:$28 sps:$4 sm:$0xff]  }
 0x664   :  { %11929 = vmatpush1.bf16.msra.mxu0 %v17175_v6  ;;  %v17229_v6 = vld [vmem:[#allocation10 + $0x7b8] ss:$28 sps:$4 sm:$0xff]  }
 0x665   :  { %16201 = vmatpush3.bf16.msra.mxu1 %v17179_v19  ;;  %11930 = vmatprep.subr.bf16.mxu0 %v17182_v34  ;;  %v17234_v19 = vld [vmem:[#allocation10 + $0x7f4] ss:$28 sps:$4 sm:$0xff]   ;;  %v17295_v34 = vld [vmem:[#allocation16 + $0x60] ss:$16 sps:$4 sm:$0xff]  }
 0x666   :  { %16214 = vmatprep.subr.bf16.mxu1 %v17183_v46  ;;  %v17303_v46 = vld [vmem:[#allocation16 + $0x84] ss:$16 sps:$4 sm:$0xff]  }
 0x668   :  { %12204 = vmatmul.mubr.bf16.vlgmr.msra.gmra.mrb[48].mxu1 %v18768_v54  ;;  %11931 = vmatpush1.bf16.msra.mxu0 %v17180_v63  ;;  %v17232_v63 = vld [vmem:[#allocation10 + $0x7f0] ss:$28 sps:$4 sm:$0xff]  }
 0x669   :  { %12211 = vmatprep.mubr.bf16.mxu1 %v18775_v44  ;;  %16215 = vmatpush3.bf16.msra.mxu1 %v17184_v12  ;;  %v17237_v12 = vld [vmem:[#allocation10 + $0x82c] ss:$28 sps:$4 sm:$0xff]  }
 0x66a   :  { %11932 = vmatprep.subr.bf16.mxu0 %v17187_v49  ;;  %16216 = vmatprep.subr.bf16.mxu1 %v17188_v55  ;;  %v17309_v49 = vld [vmem:[#allocation16 + $0xa4] ss:$16 sps:$4 sm:$0xff]   ;;  %v17235_v55 = vld [vmem:[#allocation10 + $0x828] ss:$28 sps:$4 sm:$0xff]  }
 0x66c   :  { %11933 = vmatpush1.bf16.msra.mxu0 %v17185_v41  ;;  %v17307_v41 = vld [vmem:[#allocation16 + $0xa0] ss:$16 sps:$4 sm:$0xff]  }
 0x66d   :  { %16217 = vmatpush3.bf16.msra.mxu1 %v17189_v15  ;;  %11934 = vmatprep.subr.bf16.mxu0 %v17192_v28  ;;  %v17315_v15 = vld [vmem:[#allocation16 + $0xc4] ss:$16 sps:$4 sm:$0xff]  }
 0x66e   :  { %16218 = vmatprep.subr.bf16.mxu1 %v17193_v3  ;;  %v17238_v28 = vld [vmem:[#allocation10 + $0x860] ss:$28 sps:$4 sm:$0xff]  }
 0x66f   :  { %v17243_v3 = vld [vmem:[#allocation10 + $0x89c] ss:$28 sps:$4 sm:$0xff]  }
 0x670   :  { %12212 = vmatmul.mubr.bf16.gmra.mrb[52].mxu1 %v18772_v47  ;;  %11935 = vmatpush1.bf16.msra.mxu0 %v17190_v59  ;;  %v17313_v59 = vld [vmem:[#allocation16 + $0xc0] ss:$16 sps:$4 sm:$0xff]  }
 0x671   :  { %16219 = vmatpush3.bf16.msra.mxu1 %v17194_v37  ;;  %12252 = vmatprep.mubr.bf16.mxu1 %v18827_v9  ;;  %v17321_v37 = vld [vmem:[#allocation16 + $0xe4] ss:$16 sps:$4 sm:$0xff]  }
 0x672   :  { %11936 = vmatprep.subr.bf16.mxu0 %v17197_v51  ;;  %16220 = vmatprep.subr.bf16.mxu1 %v17198_v23  ;;  %v17241_v51 = vld [vmem:[#allocation10 + $0x898] ss:$28 sps:$4 sm:$0xff]  }
 0x673   :  { %v17246_v23 = vld [vmem:[#allocation10 + $0x8d4] ss:$28 sps:$4 sm:$0xff]  }
 0x674   :  { %11937 = vmatpush1.bf16.msra.mxu0 %v17195_v33  ;;  %v17319_v33 = vld [vmem:[#allocation16 + $0xe0] ss:$16 sps:$4 sm:$0xff]  }
 0x675   :  { %16221 = vmatpush3.bf16.msra.mxu1 %v17199_v50  ;;  %11938 = vmatprep.subr.bf16.mxu0 %v17202_v27  ;;  %v17327_v50 = vld [vmem:[#allocation16 + $0x104] ss:$16 sps:$4 sm:$0xff]  }
 0x676   :  { %16222 = vmatprep.subr.bf16.mxu1 %v17203_v35  ;;  %v17244_v27 = vld [vmem:[#allocation10 + $0x8d0] ss:$28 sps:$4 sm:$0xff]  }
 0x677   :  { %v17249_v35 = vld [vmem:[#allocation10 + $0x90c] ss:$28 sps:$4 sm:$0xff]  }
 0x678   :  { %11939 = vmatpush1.bf16.msra.mxu0 %v17200_v20  ;;  %v17325_v20 = vld [vmem:[#allocation16 + $0x100] ss:$16 sps:$4 sm:$0xff]  }
 0x679   :  { %16223 = vmatpush3.bf16.msra.mxu1 %v17204_v52  ;;  %11940 = vmatprep.subr.bf16.mxu0 %v17207_v60  ;;  %v17333_v52 = vld [vmem:[#allocation16 + $0x124] ss:$16 sps:$4 sm:$0xff]   ;;  %v17247_v60 = vld [vmem:[#allocation10 + $0x908] ss:$28 sps:$4 sm:$0xff]  }
 0x67a   :  { %16224 = vmatprep.subr.bf16.mxu1 %v17208_v8  ;;  %v17252_v8 = vld [vmem:[#allocation10 + $0x944] ss:$28 sps:$4 sm:$0xff]  }
 0x67c   :  { %11941 = vmatpush1.bf16.msra.mxu0 %v17205_v4  ;;  %v17331_v4 = vld [vmem:[#allocation16 + $0x120] ss:$16 sps:$4 sm:$0xff]  }
 0x67d   :  { %16225 = vmatpush3.bf16.msra.mxu1 %v17209_v7  ;;  %11942 = vmatprep.subr.bf16.mxu0 %v17212_v2  ;;  %v17339_v7 = vld [vmem:[#allocation16 + $0x144] ss:$16 sps:$4 sm:$0xff]  }
 0x67e   :  { %16226 = vmatprep.subr.bf16.mxu1 %v17213_v39  ;;  %v17250_v2 = vld [vmem:[#allocation10 + $0x940] ss:$28 sps:$4 sm:$0xff]  }
 0x67f   :  { %v17255_v39 = vld [vmem:[#allocation10 + $0x97c] ss:$28 sps:$4 sm:$0xff]  }
 0x680   :  { %11943 = vmatpush1.bf16.msra.mxu0 %v17210_v42  ;;  %v17337_v42 = vld [vmem:[#allocation16 + $0x140] ss:$16 sps:$4 sm:$0xff]  }
 0x681   :  { %16227 = vmatpush3.bf16.msra.mxu1 %v17214_v24  ;;  %11944 = vmatprep.subr.bf16.mxu0 %v17217_v58  ;;  %v17345_v24 = vld [vmem:[#allocation16 + $0x164] ss:$16 sps:$4 sm:$0xff]   ;;  %v17253_v58 = vld [vmem:[#allocation10 + $0x978] ss:$28 sps:$4 sm:$0xff]  }
 0x682   :  { %16228 = vmatprep.subr.bf16.mxu1 %v17218_v36  ;;  %v17258_v36 = vld [vmem:[#allocation10 + $0x9b4] ss:$28 sps:$4 sm:$0xff]  }
 0x684   :  { %11945 = vmatpush1.bf16.msra.mxu0 %v17215_v26  ;;  %v17343_v26 = vld [vmem:[#allocation16 + $0x160] ss:$16 sps:$4 sm:$0xff]  }
 0x685   :  { %16229 = vmatpush3.bf16.msra.mxu1 %v17219_v38  ;;  %11967 = vmatprep.subr.bf16.mxu0 %v17222_v21  ;;  %v17351_v38 = vld [vmem:[#allocation16 + $0x184] ss:$16 sps:$4 sm:$0xff]  }
 0x686   :  { %13940 = vmatprep.subr.bf16.mxu1 %v17279_v48  ;;  %v17256_v21 = vld [vmem:[#allocation10 + $0x9b0] ss:$28 sps:$4 sm:$0xff]  }
 0x687   :  { %11947 = vmatmul.mubr.bf16.vlgmr.msra.gmra.mrb[24].mxu0 %v18661_v5  ;;  %v17289_v5 = vld [vmem:[#allocation16 + $0x40] ss:$16 sps:$4 sm:$0xff]  }
 0x688   :  { %12253 = vmatmul.mubr.bf16.vlgmr.msra.gmra.mrb[56].mxu1 %v18823_v32  ;;  %11956 = vmatprep.mubr.bf16.mxu0 %v18667_v25  ;;  %v17297_v25 = vld [vmem:[#allocation16 + $0x64] ss:$16 sps:$4 sm:$0xff]  }
 0x689   :  { %11968 = vmatpush1.bf16.msra.mxu0 %v17220_v62  ;;  %12260 = vmatprep.mubr.bf16.mxu1 %v18829_v53  ;;  %v17261_v48 = vld [vmem:[#allocation10 + $0x9ec] ss:$28 sps:$4 sm:$0xff]  }
 0x68a   :  { %11969 = vmatprep.subr.bf16.mxu0 %v17225_v17  ;;  %13941 = vmatpush1.bf16.msra.mxu1 %v17277_v22  ;;  %v17349_v62 = vld [vmem:[#allocation16 + $0x180] ss:$16 sps:$4 sm:$0xff]   ;;  %v17357_v17 = vld [vmem:[#allocation16 + $0x1a4] ss:$16 sps:$4 sm:$0xff]  }
 0x68b   :  { %13942 = vmatprep.subr.bf16.mxu1 %v17285_v0  ;;  %v17259_v22 = vld [vmem:[#allocation10 + $0x9e8] ss:$28 sps:$4 sm:$0xff]  }
 0x68c   :  { %v17264_v0 = vld [vmem:[#allocation10 + $0xa24] ss:$28 sps:$4 sm:$0xff]  }
 0x68d   :  { %11970 = vmatpush1.bf16.msra.mxu0 %v17223_v1  ;;  %v17355_v1 = vld [vmem:[#allocation16 + $0x1a0] ss:$16 sps:$4 sm:$0xff]  }
 0x68e   :  { %11971 = vmatprep.subr.bf16.mxu0 %v17228_v29  ;;  %13943 = vmatpush1.bf16.msra.mxu1 %v17283_v31  ;;  %v17363_v29 = vld [vmem:[#allocation16 + $0x1c4] ss:$16 sps:$4 sm:$0xff]  }
 0x68f   :  { %11957 = vmatmul.mubr.bf16.gmra.mrb[28].mxu0 %v18670_v56  ;;  %13944 = vmatprep.subr.bf16.mxu1 %v17291_v57  ;;  %v17301_v56 = vld [vmem:[#allocation16 + $0x80] ss:$16 sps:$4 sm:$0xff]   ;;  %v17262_v31 = vld [vmem:[#allocation10 + $0xa20] ss:$28 sps:$4 sm:$0xff]  }
 0x690   :  { %12261 = vmatmul.mubr.bf16.gmra.mrb[60].mxu1 %v18825_v45  ;;  %11999 = vmatprep.mubr.bf16.mxu0 %v18770_v30  ;;  %v17240_v30 = vld [vmem:[#allocation10 + $0x864] ss:$28 sps:$4 sm:$0xff]   ;;  %v17267_v57 = vld [vmem:[#allocation10 + $0xa5c] ss:$28 sps:$4 sm:$0xff]  }
 0x691   :  { %11972 = vmatpush1.bf16.msra.mxu0 %v17226_v11  ;;  %v17361_v11 = vld [vmem:[#allocation16 + $0x1c0] ss:$16 sps:$4 sm:$0xff]  }
 0x692   :  { %11973 = vmatprep.subr.bf16.mxu0 %v17231_v13  ;;  %13945 = vmatpush1.bf16.msra.mxu1 %v17289_v5  ;;  %v17369_v13 = vld [vmem:[#allocation16 + $0x1e4] ss:$16 sps:$4 sm:$0xff]   ;;  %v17265_v5 = vld [vmem:[#allocation10 + $0xa58] ss:$28 sps:$4 sm:$0xff]  }
 0x693   :  { %13946 = vmatprep.subr.bf16.mxu1 %v17297_v25  ;;  %v17270_v25 = vld [vmem:[#allocation10 + $0xa94] ss:$28 sps:$4 sm:$0xff]  }
 0x695   :  { %11974 = vmatpush1.bf16.msra.mxu0 %v17229_v6  ;;  %v17367_v6 = vld [vmem:[#allocation16 + $0x1e0] ss:$16 sps:$4 sm:$0xff]  }
 0x696   :  { %11975 = vmatprep.subr.bf16.mxu0 %v17234_v19  ;;  %13947 = vmatpush1.bf16.msra.mxu1 %v17295_v34  ;;  %v17375_v19 = vld [vmem:[#allocation16 + $0x204] ss:$16 sps:$4 sm:$0xff]  }
 0x697   :  { %13948 = vmatprep.subr.bf16.mxu1 %v17303_v46  ;;  %v17268_v34 = vld [vmem:[#allocation10 + $0xa90] ss:$28 sps:$4 sm:$0xff]  }
 0x698   :  { %v17273_v46 = vld [vmem:[#allocation10 + $0xacc] ss:$28 sps:$4 sm:$0xff]  }
 0x699   :  { %11976 = vmatpush1.bf16.msra.mxu0 %v17232_v63  ;;  %v17271_v63 = vld [vmem:[#allocation10 + $0xac8] ss:$28 sps:$4 sm:$0xff]  }
 0x69a   :  { %11977 = vmatprep.subr.bf16.mxu0 %v17237_v12  ;;  %13949 = vmatpush1.bf16.msra.mxu1 %v17301_v56  ;;  %v17276_v12 = vld [vmem:[#allocation10 + $0xb04] ss:$28 sps:$4 sm:$0xff]  }
 0x69b   :  { %13950 = vmatprep.subr.bf16.mxu1 %v17309_v49  ;;  %v17274_v56 = vld [vmem:[#allocation10 + $0xb00] ss:$28 sps:$4 sm:$0xff]  }
 0x69c   :  { %v17282_v49 = vld [vmem:[#allocation10 + $0xb3c] ss:$28 sps:$4 sm:$0xff]  }
 0x69d   :  { %11978 = vmatpush1.bf16.msra.mxu0 %v17235_v55  ;;  %v17280_v55 = vld [vmem:[#allocation10 + $0xb38] ss:$28 sps:$4 sm:$0xff]  }
 0x69e   :  { %11979 = vmatprep.subr.bf16.mxu0 %v17240_v30  ;;  %13951 = vmatpush1.bf16.msra.mxu1 %v17307_v41  ;;  %v17288_v30 = vld [vmem:[#allocation10 + $0xb74] ss:$28 sps:$4 sm:$0xff]   ;;  %v18868_v41 = vld [vmem:[#allocation11] sm:$0xff] }
 0x69f   :  { %13952 = vmatprep.subr.bf16.mxu1 %v17315_v15  ;;  %v9101_v15 = vrot.slane %v18868_v41, %v18469_v14 }
 0x6a1   :  { %11980 = vmatpush1.bf16.msra.mxu0 %v17238_v28  ;;  %v9109_v28 = vrot.slane %v18868_v41, %v18579_v40 }
 0x6a2   :  { %11981 = vmatprep.subr.bf16.mxu0 %v17243_v3  ;;  %13953 = vmatpush1.bf16.msra.mxu1 %v17313_v59  ;;  %v17292_v59 = vld [vmem:[#allocation10 + $0xba8] ss:$28 sps:$4 sm:$0xff]  }
 0x6a3   :  { %13954 = vmatprep.subr.bf16.mxu1 %v17321_v37  ;;  %v9113_v37 = vrot.slane %v18868_v41, %v18582_v10 }
 0x6a5   :  { %11982 = vmatpush1.bf16.msra.mxu0 %v17241_v51 }
 0x6a6   :  { %11983 = vmatprep.subr.bf16.mxu0 %v17246_v23  ;;  %13955 = vmatpush1.bf16.msra.mxu1 %v17319_v33  ;;  %v17300_v33 = vld [vmem:[#allocation10 + $0xbe4] ss:$28 sps:$4 sm:$0xff]  }
 0x6a7   :  { %13956 = vmatprep.subr.bf16.mxu1 %v17327_v50 }
 0x6a9   :  { %11984 = vmatpush1.bf16.msra.mxu0 %v17244_v27 }
 0x6aa   :  { %11985 = vmatprep.subr.bf16.mxu0 %v17249_v35  ;;  %13957 = vmatpush1.bf16.msra.mxu1 %v17325_v20 }
 0x6ab   :  { %13958 = vmatprep.subr.bf16.mxu1 %v17333_v52 }
 0x6ad   :  { %11986 = vmatpush1.bf16.msra.mxu0 %v17247_v60 }
 0x6ae   :  { %11987 = vmatprep.subr.bf16.mxu0 %v17252_v8  ;;  %13959 = vmatpush1.bf16.msra.mxu1 %v17331_v4 }
 0x6af   :  { %13960 = vmatprep.subr.bf16.mxu1 %v17339_v7 }
 0x6b1   :  { %11988 = vmatpush1.bf16.msra.mxu0 %v17250_v2 }
 0x6b2   :  { %11989 = vmatprep.subr.bf16.mxu0 %v17255_v39  ;;  %13961 = vmatpush1.bf16.msra.mxu1 %v17337_v42 }
 0x6b3   :  { %13962 = vmatprep.subr.bf16.mxu1 %v17345_v24  ;;  %v17298_v24 = vld [vmem:[#allocation10 + $0xbe0] ss:$28 sps:$4 sm:$0xff]  }
 0x6b5   :  { %11990 = vmatpush1.bf16.msra.mxu0 %v17253_v58 }
 0x6b6   :  { %11991 = vmatprep.subr.bf16.mxu0 %v17258_v36  ;;  %13963 = vmatpush1.bf16.msra.mxu1 %v17343_v26  ;;  %v17306_v26 = vld [vmem:[#allocation10 + $0xc1c] ss:$28 sps:$4 sm:$0xff]  }
 0x6b7   :  { %13964 = vmatprep.subr.bf16.mxu1 %v17351_v38 }
 0x6b9   :  { %11992 = vmatpush1.bf16.msra.mxu0 %v17256_v21 }
 0x6ba   :  { %11993 = vmatprep.subr.bf16.mxu0 %v17261_v48  ;;  %13965 = vmatpush1.bf16.msra.mxu1 %v17349_v62 }
 0x6bb   :  { %13966 = vmatprep.subr.bf16.mxu1 %v17357_v17  ;;  %v17304_v17 = vld [vmem:[#allocation10 + $0xc18] ss:$28 sps:$4 sm:$0xff]  }
 0x6bd   :  { %11994 = vmatpush1.bf16.msra.mxu0 %v17259_v22 }
 0x6be   :  { %11995 = vmatprep.subr.bf16.mxu0 %v17264_v0  ;;  %13967 = vmatpush1.bf16.msra.mxu1 %v17355_v1 }
 0x6bf   :  { %13968 = vmatprep.subr.bf16.mxu1 %v17363_v29 }
 0x6c1   :  { %11996 = vmatpush1.bf16.msra.mxu0 %v17262_v31  ;;  %v17312_v31 = vld [vmem:[#allocation10 + $0xc54] ss:$28 sps:$4 sm:$0xff]  }
 0x6c2   :  { %11997 = vmatprep.subr.bf16.mxu0 %v17267_v57  ;;  %13969 = vmatpush1.bf16.msra.mxu1 %v17361_v11 }
 0x6c3   :  { %13970 = vmatprep.subr.bf16.mxu1 %v17369_v13 }
 0x6c5   :  { %11998 = vmatpush1.bf16.msra.mxu0 %v17265_v5 }
 0x6c6   :  { %12020 = vmatprep.subr.bf16.mxu0 %v17270_v25  ;;  %13971 = vmatpush1.bf16.msra.mxu1 %v17367_v6 }
 0x6c7   :  { %13993 = vmatprep.subr.bf16.mxu1 %v17375_v19 }
 0x6c8   :  { %12000 = vmatmul.mubr.bf16.vlgmr.msra.gmra.mrb[24].mxu0 %v18768_v54  ;;  %v17286_v54 = vld [vmem:[#allocation10 + $0xb70] ss:$28 sps:$4 sm:$0xff]  }
 0x6c9   :  { %12009 = vmatprep.mubr.bf16.mxu0 %v18775_v44  ;;  %12021 = vmatpush1.bf16.msra.mxu0 %v17268_v34  ;;  %v17294_v44 = vld [vmem:[#allocation10 + $0xbac] ss:$28 sps:$4 sm:$0xff]  }
 0x6ca   :  { %12022 = vmatprep.subr.bf16.mxu0 %v17273_v46 }
 0x6cd   :  { %12023 = vmatpush1.bf16.msra.mxu0 %v17271_v63 }
 0x6ce   :  { %12024 = vmatprep.subr.bf16.mxu0 %v17276_v12 }
 0x6d0   :  { %12010 = vmatmul.mubr.bf16.gmra.mrb[28].mxu0 %v18772_v47 }
 0x6d1   :  { %12025 = vmatpush1.bf16.msra.mxu0 %v17274_v56  ;;  %12052 = vmatprep.mubr.bf16.mxu0 %v18827_v9  ;;  %v9105_v9 = vrot.slane %v18868_v41, %v18473_v43 }
 0x6d2   :  { %12026 = vmatprep.subr.bf16.mxu0 %v17282_v49 }
 0x6d5   :  { %12027 = vmatpush1.bf16.msra.mxu0 %v17280_v55 }
 0x6d6   :  { %12028 = vmatprep.subr.bf16.mxu0 %v17288_v30  ;;  %v17310_v30 = vld [vmem:[#allocation10 + $0xc50] ss:$28 sps:$4 sm:$0xff]  }
 0x6d9   :  { %12029 = vmatpush1.bf16.msra.mxu0 %v17286_v54  ;;  %v11630_v47 = vpop.f32.mrb[16].mxu0  ;;  %v11842_v3 = vpop.f32.mrb[24].mxu1 }
 0x6da   :  { %12030 = vmatprep.subr.bf16.mxu0 %v17294_v44  ;;  %v11632_v51 = vpop.f32.mrb[17].mxu0  ;;  %v11844_v23 = vpop.f32.mrb[25].mxu1  ;;  %v16282_v35 = vadd.f32 %v11630_v47, %v9101_v15  ;;  %v16290_v20 = vadd.f32 %v11842_v3, %v9109_v28  ;;  %v17318_v47 = vld [vmem:[#allocation10 + $0xc8c] ss:$28 sps:$4 sm:$0xff]  }
 0x6db   :  { %v11634_v50 = vpop.f32.mrb[18].mxu0  ;;  %v11846_v27 = vpop.f32.mrb[26].mxu1  ;;  %v18878_v7 = vadd.f32 %v11632_v51, %v9105_v9  ;;  %v18880_v2 = vadd.f32 %v11844_v23, %v9113_v37 }
 0x6dc   :  { %v16284_v52 = vadd.f32 %v11634_v50, %v9101_v15  ;;  %v16292_v60 = vadd.f32 %v11846_v27, %v9109_v28  ;;  %v11636_v8 = vpop.f32.mrb[19].mxu0  ;;  %v11848_v4 = vpop.f32.mrb[27].mxu1 }
 0x6dd   :  { %12031 = vmatpush1.bf16.msra.mxu0 %v17292_v59  ;;  %v18882_v39 = vadd.f32 %v11636_v8, %v9105_v9  ;;  %v18884_v42 = vadd.f32 %v11848_v4, %v9113_v37 }
 0x6de   :  { %v12269_v58 = vadd.f32 %v16284_v52, %v16282_v35  ;;  %v12271_v36 = vadd.f32 %v16292_v60, %v16290_v20  ;;  %12032 = vmatprep.subr.bf16.mxu0 %v17300_v33 }
 0x6df   :  { %v12270_v38 = vadd.f32 %v18882_v39, %v18878_v7  ;;  %v12272_v21 = vadd.f32 %v18884_v42, %v18880_v2 }
 0x6e1   :  { %12033 = vmatpush1.bf16.msra.mxu0 %v17298_v24  ;;  %v11640_v48 = vpop.f32.mrb[20].mxu0  ;;  %v11852_v62 = vpop.f32.mrb[28].mxu1 }
 0x6e2   :  { %v16286_v22 = vadd.f32 %v11640_v48, %v9101_v15  ;;  %v16294_v0 = vadd.f32 %v11852_v62, %v9109_v28  ;;  %12034 = vmatprep.subr.bf16.mxu0 %v17306_v26  ;;  %v11642_v1 = vpop.f32.mrb[21].mxu0  ;;  %v11854_v29 = vpop.f32.mrb[29].mxu1  ;;  %v17322_v48 = vld [vmem:[#allocation10 + $0xcc0] ss:$28 sps:$4 sm:$0xff]  }
 0x6e3   :  { %v16287_v57 = vadd.f32 %v11642_v1, %v9105_v9  ;;  %v16295_v11 = vadd.f32 %v11854_v29, %v9113_v37  ;;  %v11644_v13 = vpop.f32.mrb[22].mxu0  ;;  %v11856_v5 = vpop.f32.mrb[30].mxu1  ;;  %v17330_v1 = vld [vmem:[#allocation10 + $0xcfc] ss:$28 sps:$4 sm:$0xff]  }
 0x6e4   :  { %v12276_v25 = vadd.f32 %v16286_v22, %v12269_v58  ;;  %v12278_v6 = vadd.f32 %v16294_v0, %v12271_v36  ;;  %v16288_v19 = vadd.f32 %v11644_v13, %v9101_v15  ;;  %v16296_v34 = vadd.f32 %v11856_v5, %v9109_v28  ;;  %v11646_v46 = vpop.f32.mrb[23].mxu0  ;;  %v11858_v63 = vpop.f32.mrb[31].mxu1  ;;  %v17316_v15 = vld [vmem:[#allocation10 + $0xc88] ss:$28 sps:$4 sm:$0xff]  }
 0x6e5   :  { %v12277_v12 = vadd.f32 %v16287_v57, %v12270_v38  ;;  %v12279_v56 = vadd.f32 %v16295_v11, %v12272_v21  ;;  %12035 = vmatpush1.bf16.msra.mxu0 %v17304_v17  ;;  %v16289_v49 = vadd.f32 %v11646_v46, %v9105_v9  ;;  %v16297_v55 = vadd.f32 %v11858_v63, %v9113_v37  ;;  %v17324_v37 = vld [vmem:[#allocation10 + $0xcc4] ss:$28 sps:$4 sm:$0xff]  }
 0x6e6   :  { %v12283_v54 = vadd.f32 %v16288_v19, %v12276_v25  ;;  %v12285_v44 = vadd.f32 %v16296_v34, %v12278_v6  ;;  %12036 = vmatprep.subr.bf16.mxu0 %v17312_v31 }
 0x6e7   :  { %v12284_v3 = vadd.f32 %v16289_v49, %v12277_v12  ;;  %v12286_v59 = vadd.f32 %v16297_v55, %v12279_v56 }
 0x6e8   :  { %v12290_v51 = vmul.f32 0.25, %v12283_v54  ;;  %v12292_v23 = vmul.f32 0.25, %v12285_v44 }
 0x6e9   :  { %v12291_v33 = vmul.f32 0.25, %v12284_v3  ;;  %v12293_v50 = vmul.f32 0.25, %v12286_v59  ;;  %12037 = vmatpush1.bf16.msra.mxu0 %v17310_v30  ;;  %v17334_v59 = vld [vmem:[#allocation10 + $0xd30] ss:$28 sps:$4 sm:$0xff]  }
 0x6ea   :  { %v18890_v28 = vsub.f32 %v16282_v35, %v12290_v51  ;;  %v18892_v27 = vsub.f32 %v16284_v52, %v12290_v51  ;;  %v18894_v8 = vsub.f32 %v16286_v22, %v12290_v51  ;;  %v18896_v9 = vsub.f32 %v16288_v19, %v12290_v51  ;;  %12038 = vmatprep.subr.bf16.mxu0 %v17318_v47 }
 0x6eb   :  { %v18898_v4 = vsub.f32 %v16290_v20, %v12292_v23  ;;  %v18900_v24 = vsub.f32 %v16292_v60, %v12292_v23  ;;  %v18902_v58 = vsub.f32 %v16294_v0, %v12292_v23  ;;  %v18904_v36 = vsub.f32 %v16296_v34, %v12292_v23 }
 0x6ec   :  { %v12325_v35 = vmul.f32 %v18890_v28, %v18890_v28  ;;  %v12332_v52 = vmul.f32 %v18892_v27, %v18892_v27  ;;  %v12346_v26 = vmul.f32 %v18894_v8, %v18894_v8  ;;  %v12360_v38 = vmul.f32 %v18896_v9, %v18896_v9 }
 0x6ed   :  { %v12327_v20 = vmul.f32 %v18898_v4, %v18898_v4  ;;  %v12334_v60 = vmul.f32 %v18900_v24, %v18900_v24  ;;  %v12348_v21 = vmul.f32 %v18902_v58, %v18902_v58  ;;  %12039 = vmatpush1.bf16.msra.mxu0 %v17316_v15  ;;  %v18921_v17 = vsub.f32 %v18878_v7, %v12291_v33  ;;  %v17342_v15 = vld [vmem:[#allocation10 + $0xd6c] ss:$28 sps:$4 sm:$0xff]  }
 0x6ee   :  { %v12339_v62 = vadd.f32 %v12332_v52, %v12325_v35  ;;  %v18924_v22 = vsub.f32 %v18882_v39, %v12291_v33  ;;  %v18926_v0 = vsub.f32 %v16287_v57, %v12291_v33  ;;  %12040 = vmatprep.subr.bf16.mxu0 %v17324_v37  ;;  %v18928_v31 = vsub.f32 %v16289_v49, %v12291_v33  ;;  %v17336_v49 = vld [vmem:[#allocation10 + $0xd34] ss:$28 sps:$4 sm:$0xff]  }
 0x6ef   :  { %v12341_v29 = vadd.f32 %v12334_v60, %v12327_v20  ;;  %v18931_v13 = vsub.f32 %v18880_v2, %v12293_v50  ;;  %v18934_v5 = vsub.f32 %v18884_v42, %v12293_v50  ;;  %v12362_v7 = vmul.f32 %v18904_v36, %v18904_v36  ;;  %v17328_v42 = vld [vmem:[#allocation10 + $0xcf8] ss:$28 sps:$4 sm:$0xff]  }
 0x6f0   :  { %v12353_v25 = vadd.f32 %v12346_v26, %v12339_v62  ;;  %v12326_v39 = vmul.f32 %v18921_v17, %v18921_v17  ;;  %v12333_v57 = vmul.f32 %v18924_v22, %v18924_v22  ;;  %v12347_v19 = vmul.f32 %v18926_v0, %v18926_v0 }
 0x6f1   :  { %v12355_v6 = vadd.f32 %v12348_v21, %v12341_v29  ;;  %v18944_v34 = vsub.f32 %v16295_v11, %v12293_v50  ;;  %v18946_v2 = vsub.f32 %v16297_v55, %v12293_v50  ;;  %12041 = vmatpush1.bf16.msra.mxu0 %v17322_v48  ;;  %v12328_v12 = vmul.f32 %v18931_v13, %v18931_v13  ;;  %v17348_v48 = vld [vmem:[#allocation10 + $0xda4] ss:$28 sps:$4 sm:$0xff]   ;;  %v18960_v29 = vld [vmem:[#allocation13] sm:$0xff] }
 0x6f2   :  { %v12367_v46 = vadd.f32 %v12360_v38, %v12353_v25  ;;  %v12340_v63 = vadd.f32 %v12333_v57, %v12326_v39  ;;  %v12335_v56 = vmul.f32 %v18934_v5, %v18934_v5  ;;  %12042 = vmatprep.subr.bf16.mxu0 %v17330_v1  ;;  %v12361_v54 = vmul.f32 %v18928_v31, %v18928_v31  ;;  %v17340_v38 = vld [vmem:[#allocation10 + $0xd68] ss:$28 sps:$4 sm:$0xff]   ;;  %v17346_v57 = vld [vmem:[#allocation10 + $0xda0] ss:$28 sps:$4 sm:$0xff]  }
 0x6f3   :  { %v12369_v30 = vadd.f32 %v12362_v7, %v12355_v6  ;;  %v12349_v47 = vmul.f32 %v18944_v34, %v18944_v34  ;;  %v12363_v50 = vmul.f32 %v18946_v2, %v18946_v2  ;;  %v17354_v6 = vld [vmem:[#allocation10 + $0xddc] ss:$28 sps:$4 sm:$0xff]  }
 0x6f4   :  { %v12374_v11 = vmul.f32 0.25, %v12367_v46  ;;  %v12354_v44 = vadd.f32 %v12347_v19, %v12340_v63  ;;  %v12342_v55 = vadd.f32 %v12335_v56, %v12328_v12  ;;  %v12400_v19 = vrot.slane %v18960_v29, %v18469_v14  ;;  %v18968_v46 = vld [vmem:[#allocation14] sm:$0xff] }
 0x6f5   :  { %v12376_v3 = vmul.f32 0.25, %v12369_v30  ;;  %12043 = vmatpush1.bf16.msra.mxu0 %v17328_v42  ;;  %v12408_v42 = vrot.slane %v18960_v29, %v18579_v40  ;;  %v17352_v12 = vld [vmem:[#allocation10 + $0xdd8] ss:$28 sps:$4 sm:$0xff]  }
 0x6f6   :  { %v12381_v51 = vadd.f32 1e-05, %v12374_v11  ;;  %v12368_v23 = vadd.f32 %v12361_v54, %v12354_v44  ;;  %v12356_v33 = vadd.f32 %v12349_v47, %v12342_v55  ;;  %12044 = vmatprep.subr.bf16.mxu0 %v17336_v49  ;;  %v17360_v30 = vld [vmem:[#allocation16 + $0xc] ss:$16 sps:$4 sm:$0xff]   ;;  %v12404_v44 = vrot.slane %v18960_v29, %v18473_v43 }
 0x6f7   :  { %v12383_v37 = vadd.f32 1e-05, %v12376_v3  ;;  %v12451_v3 = vrot.slane %v18968_v46, %v18469_v14 }
 0x6f8   :  { %17668 = vrsqrt.f32 %v12381_v51  ;;  %v12375_v35 = vmul.f32 0.25, %v12368_v23  ;;  %v12370_v52 = vadd.f32 %v12363_v50, %v12356_v33  ;;  %v12412_v51 = vrot.slane %v18960_v29, %v18582_v10 }
 0x6f9   :  { %17670 = vrsqrt.f32 %v12383_v37  ;;  %12045 = vmatpush1.bf16.msra.mxu0 %v17334_v59  ;;  %v16146_v26 = vpop.f32.mrb[32].mxu1  ;;  %v18982_v33 = vrot.slane %v18968_v46, %v18579_v40 }
 0x6fa   :  { %v12382_v20 = vadd.f32 1e-05, %v12375_v35  ;;  %v12377_v60 = vmul.f32 0.25, %v12370_v52  ;;  %12046 = vmatprep.subr.bf16.mxu0 %v17342_v15  ;;  %v16147_v21 = vpop.f32.mrb[33].mxu1  ;;  %v17358_v35 = vld [vmem:[#allocation16 + $0x8] ss:$16 sps:$4 sm:$0xff]   ;;  %v12455_v52 = vrot.slane %v18968_v46, %v18473_v43 }
 0x6fb   :  { %v18958_v62 = vadd.f32 %v16147_v21, %v16146_v26  ;;  %v16149_v1 = vpop.f32.mrb[34].mxu1 }
 0x6fc   :  { %17672 = vrsqrt.f32 %v12382_v20  ;;  %v12384_v25 = vadd.f32 1e-05, %v12377_v60  ;;  %v16150_v7 = vpop.f32.mrb[35].mxu1 }
 0x6fd   :  { %12047 = vmatpush1.bf16.msra.mxu0 %v17340_v38  ;;  %v18962_v39 = vadd.f32 %v16150_v7, %v16149_v1 }
 0x6fe   :  { %17674 = vrsqrt.f32 %v12384_v25  ;;  %12048 = vmatprep.subr.bf16.mxu0 %v17348_v48 }
 0x701   :  { %12049 = vmatpush1.bf16.msra.mxu0 %v17346_v57  ;;  %v16152_v63 = vpop.f32.mrb[36].mxu1 }
 0x702   :  { %v17669_v56 = vpop.eup %17668  ;;  %12050 = vmatprep.subr.bf16.mxu0 %v17354_v6  ;;  %v16153_v49 = vpop.f32.mrb[37].mxu1 }
 0x703   :  { %v17671_v54 = vpop.eup %17670  ;;  %v12432_v11 = vmul.f32 %v17669_v56, %v12400_v19  ;;  %v18972_v55 = vadd.f32 %v16153_v49, %v16152_v63  ;;  %v16155_v47 = vpop.f32.mrb[38].mxu1  ;;  %v17364_v19 = vld [vmem:[#allocation16 + $0x28] ss:$16 sps:$4 sm:$0xff]  }
 0x704   :  { %v18976_v59 = vmul.f32 %v17671_v54, %v12408_v42  ;;  %v16156_v23 = vpop.f32.mrb[39].mxu1 }
 0x705   :  { %v12439_v50 = vmul.f32 %v12432_v11, %v18890_v28  ;;  %v12497_v15 = vmul.f32 %v12432_v11, %v18892_v27  ;;  %v12539_v37 = vmul.f32 %v12432_v11, %v18896_v9  ;;  %12051 = vmatpush1.bf16.msra.mxu0 %v17352_v12  ;;  %v18997_v28 = vadd.f32 %v16156_v23, %v16155_v47  ;;  %v17366_v27 = vld [vmem:[#allocation16 + $0x2c] ss:$16 sps:$4 sm:$0xff]  }
 0x706   :  { %v17673_v26 = vpop.eup %17672  ;;  %v12441_v38 = vmul.f32 %v18976_v59, %v18898_v4  ;;  %v12499_v20 = vmul.f32 %v18976_v59, %v18900_v24  ;;  %v18995_v60 = vmul.f32 %v18976_v59, %v18904_v36  ;;  %14152 = vmatprep.subr.bf16.mxu0 %v17360_v30  ;;  %v12518_v1 = vmul.f32 %v12432_v11, %v18894_v8 }
 0x707   :  { %v12433_v9 = vmul.f32 %v17673_v26, %v12404_v44  ;;  %v12483_v21 = vadd.f32 %v12451_v3, %v12439_v50  ;;  %v12504_v48 = vadd.f32 %v12497_v15, %v12451_v3  ;;  %v12546_v4 = vadd.f32 %v12539_v37, %v12451_v3 }
 0x708   :  { %v17675_v25 = vpop.eup %17674  ;;  %12053 = vmatmul.mubr.bf16.vlgmr.msra.gmra.mrb[24].mxu0 %v18823_v32  ;;  %v12463_v24 = vrot.slane %v18968_v46, %v18582_v10  ;;  %v12485_v7 = vadd.f32 %v18982_v33, %v12441_v38  ;;  %v12506_v36 = vadd.f32 %v12499_v20, %v18982_v33  ;;  %v17372_v32 = vld [vmem:[#allocation16 + $0x4c] ss:$16 sps:$4 sm:$0xff]   ;;  %v12525_v49 = vadd.f32 %v12518_v1, %v12451_v3  ;;  %v17381_v1 = vld [vmem:[#allocation16 + $0x224] ss:$16 sps:$4 sm:$0xff]  }
 0x709   :  { %v12540_v57 = vmul.f32 %v12433_v9, %v18928_v31  ;;  %v12435_v6 = vmul.f32 %v17675_v25, %v12412_v51  ;;  %12062 = vmatprep.mubr.bf16.mxu0 %v18829_v53  ;;  %14153 = vmatpush1.bf16.msra.mxu0 %v17358_v35  ;;  %v12440_v8 = vmul.f32 %v12433_v9, %v18921_v17  ;;  %v12490_v42 = vmax.f32 %v12483_v21, 0.0  ;;  %v17370_v17 = vld [vmem:[#allocation16 + $0x48] ss:$16 sps:$4 sm:$0xff]   ;;  %v17378_v35 = vld [vmem:[#allocation16 + $0x6c] ss:$16 sps:$4 sm:$0xff]  }
 0x70a   :  { %14154 = vmatprep.subr.bf16.mxu0 %v17366_v27  ;;  %v12498_v63 = vmul.f32 %v12433_v9, %v18924_v22  ;;  %v12511_v12 = vmax.f32 %v12504_v48, 0.0  ;;  %v12519_v56 = vmul.f32 %v12433_v9, %v18926_v0  ;;  %v12553_v11 = vmax.f32 %v12546_v4, 0.0  ;;  %v17373_v9 = vld [vmem:[#allocation16 + $0x200] ss:$16 sps:$4 sm:$0xff]   ;;  %v17376_v48 = vld [vmem:[#allocation16 + $0x68] ss:$16 sps:$4 sm:$0xff]  }
 0x70b   :  { %v12542_v30 = vmul.f32 %v12435_v6, %v18946_v2  ;;  %v12484_v54 = vadd.f32 %v12455_v52, %v12440_v8  ;;  %v12547_v31 = vadd.f32 %v12540_v57, %v12455_v52  ;;  %v12532_v51 = vmax.f32 %v12525_v49, 0.0  ;;  %v17388_v49 = vld [vmem:[#allocation16 + $0xa8] ss:$16 sps:$4 sm:$0xff]  }
 0x70c   :  { %v12505_v44 = vadd.f32 %v12498_v63, %v12455_v52  ;;  %v19011_v53 = vpack.c.bf16 %v12511_v12, %v12490_v42  ;;  %v12526_v47 = vadd.f32 %v12519_v56, %v12455_v52  ;;  %v12442_v22 = vmul.f32 %v12435_v6, %v18931_v13  ;;  %v17382_v42 = vld [vmem:[#allocation16 + $0x88] ss:$16 sps:$4 sm:$0xff]   ;;  %v17385_v56 = vld [vmem:[#allocation16 + $0x240] ss:$16 sps:$4 sm:$0xff]  }
 0x70d   :  { %14155 = vmatpush1.bf16.msra.mxu0 %v17364_v19  ;;  %v12491_v23 = vmax.f32 %v12484_v54, 0.0  ;;  %v12554_v50 = vmax.f32 %v12547_v31, 0.0  ;;  %v12500_v15 = vmul.f32 %v12435_v6, %v18934_v5  ;;  %v19015_v2 = vpack.c.bf16 %v12553_v11, %v12532_v51  ;;  %v17379_v19 = vld [vmem:[#allocation16 + $0x220] ss:$16 sps:$4 sm:$0xff]   ;;  %v17396_v31 = vld [vmem:[#allocation16 + $0xcc] ss:$16 sps:$4 sm:$0xff]  }
 0x70e   :  { %14156 = vmatprep.subr.bf16.mxu0 %v17372_v32  ;;  %v12512_v0 = vmax.f32 %v12505_v44, 0.0  ;;  %v12533_v3 = vmax.f32 %v12526_v47, 0.0  ;;  %v12492_v37 = vmax.f32 %v12485_v7, 0.0  ;;  %v12486_v26 = vadd.f32 %v12463_v24, %v12442_v22  ;;  %v17387_v32 = vld [vmem:[#allocation16 + $0x244] ss:$16 sps:$4 sm:$0xff]  }
 0x70f   :  { %v12507_v38 = vadd.f32 %v12500_v15, %v12463_v24  ;;  %v12513_v20 = vmax.f32 %v12506_v36, 0.0  ;;  %v12521_v52 = vmul.f32 %v12435_v6, %v18944_v34  ;;  %v12549_v13 = vadd.f32 %v12542_v30, %v12463_v24  ;;  %v17384_v34 = vld [vmem:[#allocation16 + $0x8c] ss:$16 sps:$4 sm:$0xff]   ;;  %v17393_v30 = vld [vmem:[#allocation16 + $0x264] ss:$16 sps:$4 sm:$0xff]  }
 0x710   :  { %12063 = vmatmul.mubr.bf16.gmra.mrb[28].mxu0 %v18825_v45  ;;  %v12561_v27 = vpack.c.bf16 %v12512_v0, %v12491_v23  ;;  %v19019_v21 = vpack.c.bf16 %v12554_v50, %v12533_v3  ;;  %v12520_v5 = vmul.f32 %v18976_v59, %v18902_v58  ;;  %v12493_v25 = vmax.f32 %v12486_v26, 0.0  ;;  %v17394_v23 = vld [vmem:[#allocation16 + $0xc8] ss:$16 sps:$4 sm:$0xff]   ;;  %v17399_v50 = vld [vmem:[#allocation16 + $0x284] ss:$16 sps:$4 sm:$0xff]  }
 0x711   :  { %14157 = vmatpush1.bf16.msra.mxu0 %v17370_v17  ;;  %v12514_v4 = vmax.f32 %v12507_v38, 0.0  ;;  %v19023_v7 = vpack.c.bf16 %v12513_v20, %v12492_v37  ;;  %v12528_v36 = vadd.f32 %v12521_v52, %v12463_v24  ;;  %v12556_v45 = vmax.f32 %v12549_v13, 0.0  ;;  %v17402_v3 = vld [vmem:[#allocation16 + $0xec] ss:$16 sps:$4 sm:$0xff]   ;;  %v17405_v26 = vld [vmem:[#allocation16 + $0x2a4] ss:$16 sps:$4 sm:$0xff]  }
 0x712   :  { %13972 = vmatprep.mubr.bf16.mxu1 %v12561_v27  ;;  %14184 = vmatprep.mubr.bf16.mxu0 %v12561_v27  ;;  %v12527_v57 = vadd.f32 %v12520_v5, %v18982_v33  ;;  %v12548_v6 = vadd.f32 %v18995_v60, %v18982_v33  ;;  %v17390_v33 = vld [vmem:[#allocation16 + $0xac] ss:$16 sps:$4 sm:$0xff]   ;;  %v9125_v12 = vrot.slane %v18868_v41, %v18786_v61  ;;  %v17391_v41 = vld [vmem:[#allocation16 + $0x260] ss:$16 sps:$4 sm:$0xff]  }
 0x713   :  { %13973 = vmatmul.mubr.bf16.vlgmr.msra.gmra.mrb[64].mxu1 %v19011_v53  ;;  %14158 = vmatprep.subr.bf16.mxu0 %v17378_v35  ;;  %v19029_v58 = vpack.c.bf16 %v12514_v4, %v12493_v25  ;;  %v12535_v59 = vmax.f32 %v12528_v36, 0.0  ;;  %v17400_v35 = vld [vmem:[#allocation16 + $0xe8] ss:$16 sps:$4 sm:$0xff]   ;;  %v17408_v20 = vld [vmem:[#allocation16 + $0x10c] ss:$16 sps:$4 sm:$0xff]  }
 0x714   :  { %13994 = vmatpush1.bf16.msra.mxu1 %v17373_v9  ;;  %13982 = vmatprep.mubr.bf16.mxu1 %v19019_v21  ;;  %v12534_v24 = vmax.f32 %v12527_v57, 0.0  ;;  %v12555_v8 = vmax.f32 %v12548_v6, 0.0  ;;  %v12108_v44 = vadd.f32 %v18958_v62, %v9125_v12  ;;  %v12111_v22 = vadd.f32 %v18962_v39, %v9125_v12  ;;  %v17397_v62 = vld [vmem:[#allocation16 + $0x280] ss:$16 sps:$4 sm:$0xff]   ;;  %v17412_v57 = vld [vmem:[#allocation16 + $0x128] ss:$16 sps:$4 sm:$0xff]  }
 0x715   :  { %13995 = vmatprep.subr.bf16.mxu1 %v17381_v1  ;;  %14159 = vmatpush1.bf16.msra.mxu0 %v17376_v48  ;;  %v19032_v63 = vpack.c.bf16 %v12556_v45, %v12535_v59  ;;  %v12116_v27 = vadd.f32 %v18972_v55, %v9125_v12  ;;  %v17403_v13 = vld [vmem:[#allocation16 + $0x2a0] ss:$16 sps:$4 sm:$0xff]   ;;  %v17406_v48 = vld [vmem:[#allocation16 + $0x108] ss:$16 sps:$4 sm:$0xff]   ;;  %v17411_v1 = vld [vmem:[#allocation16 + $0x2c4] ss:$16 sps:$4 sm:$0xff]   ;;  %v12119_v25 = vadd.f32 %v18997_v28, %v9125_v12 }
 0x716   :  { %14160 = vmatprep.subr.bf16.mxu0 %v17384_v34  ;;  %v19034_v60 = vpack.c.bf16 %v12555_v8, %v12534_v24  ;;  %v17414_v34 = vld [vmem:[#allocation16 + $0x12c] ss:$16 sps:$4 sm:$0xff]   ;;  %v17409_v55 = vld [vmem:[#allocation16 + $0x2c0] ss:$16 sps:$4 sm:$0xff]   ;;  %v17417_v6 = vld [vmem:[#allocation16 + $0x2e4] ss:$16 sps:$4 sm:$0xff]  }
 0x717   :  { %v17420_v59 = vld [vmem:[#allocation16 + $0x14c] ss:$16 sps:$4 sm:$0xff]   ;;  %v17418_v28 = vld [vmem:[#allocation16 + $0x148] ss:$16 sps:$4 sm:$0xff]   ;;  %v17423_v24 = vld [vmem:[#allocation16 + $0x304] ss:$16 sps:$4 sm:$0xff]  }
 0x718   :  { %13996 = vmatpush1.bf16.msra.mxu1 %v17379_v19  ;;  %v17415_v19 = vld [vmem:[#allocation16 + $0x2e0] ss:$16 sps:$4 sm:$0xff]   ;;  %v17426_v8 = vld [vmem:[#allocation16 + $0x16c] ss:$16 sps:$4 sm:$0xff]  }
 0x719   :  { %13997 = vmatprep.subr.bf16.mxu1 %v17387_v32  ;;  %14161 = vmatpush1.bf16.msra.mxu0 %v17382_v42  ;;  %v17421_v42 = vld [vmem:[#allocation16 + $0x300] ss:$16 sps:$4 sm:$0xff]   ;;  %v17424_v32 = vld [vmem:[#allocation16 + $0x168] ss:$16 sps:$4 sm:$0xff]   ;;  %v17432_v12 = vld [vmem:[#allocation16 + $0x18c] ss:$16 sps:$4 sm:$0xff]  }
 0x71a   :  { %v16174_v54 = vpop.f32.mrb[40].mxu1  ;;  %14162 = vmatprep.subr.bf16.mxu0 %v17390_v33  ;;  %v17429_v33 = vld [vmem:[#allocation16 + $0x324] ss:$16 sps:$4 sm:$0xff]  }
 0x71b   :  { %13983 = vmatmul.mubr.bf16.gmra.mrb[68].mxu1 %v19015_v2  ;;  %v16175_v11 = vpop.f32.mrb[41].mxu1 }
 0x71c   :  { %13998 = vmatpush1.bf16.msra.mxu1 %v17385_v56  ;;  %14025 = vmatprep.mubr.bf16.mxu1 %v19029_v58  ;;  %v16176_v47 = vadd.f32 %v16175_v11, %v16174_v54  ;;  %v16177_v51 = vpop.f32.mrb[42].mxu1  ;;  %v17427_v56 = vld [vmem:[#allocation16 + $0x320] ss:$16 sps:$4 sm:$0xff]   ;;  %v17438_v54 = vld [vmem:[#allocation16 + $0x1ac] ss:$16 sps:$4 sm:$0xff]  }
 0x71d   :  { %13999 = vmatprep.subr.bf16.mxu1 %v17393_v30  ;;  %14163 = vmatpush1.bf16.msra.mxu0 %v17388_v49  ;;  %v16178_v17 = vpop.f32.mrb[43].mxu1  ;;  %v17430_v49 = vld [vmem:[#allocation16 + $0x188] ss:$16 sps:$4 sm:$0xff]   ;;  %v17435_v30 = vld [vmem:[#allocation16 + $0x344] ss:$16 sps:$4 sm:$0xff]  }
 0x71e   :  { %v19042_v15 = vadd.f32 %v16176_v47, %v12108_v44  ;;  %v16179_v0 = vadd.f32 %v16178_v17, %v16177_v51  ;;  %14164 = vmatprep.subr.bf16.mxu0 %v17396_v31  ;;  %v17433_v31 = vld [vmem:[#allocation16 + $0x340] ss:$16 sps:$4 sm:$0xff]   ;;  %v17436_v11 = vld [vmem:[#allocation16 + $0x1a8] ss:$16 sps:$4 sm:$0xff]   ;;  %v17441_v44 = vld [vmem:[#allocation16 + $0x364] ss:$16 sps:$4 sm:$0xff]  }
 0x71f   :  { %v17444_v47 = vld [vmem:[#allocation16 + $0x1cc] ss:$16 sps:$4 sm:$0xff]   ;;  %v17439_v17 = vld [vmem:[#allocation16 + $0x360] ss:$16 sps:$4 sm:$0xff]  }
 0x720   :  { %v19044_v37 = vadd.f32 %v16179_v0, %v12111_v22  ;;  %14000 = vmatpush1.bf16.msra.mxu1 %v17391_v41  ;;  %v17442_v22 = vld [vmem:[#allocation16 + $0x1c8] ss:$16 sps:$4 sm:$0xff]   ;;  %v17447_v0 = vld [vmem:[#allocation16 + $0x384] ss:$16 sps:$4 sm:$0xff]  }
 0x721   :  { %14001 = vmatprep.subr.bf16.mxu1 %v17399_v50  ;;  %14165 = vmatpush1.bf16.msra.mxu0 %v17394_v23 }
 0x722   :  { %v16180_v38 = vpop.f32.mrb[44].mxu1  ;;  %14166 = vmatprep.subr.bf16.mxu0 %v17402_v3 }
 0x723   :  { %v16181_v52 = vpop.f32.mrb[45].mxu1 }
 0x724   :  { %14002 = vmatpush1.bf16.msra.mxu1 %v17397_v62  ;;  %v16182_v39 = vadd.f32 %v16181_v52, %v16180_v38  ;;  %v16183_v9 = vpop.f32.mrb[46].mxu1  ;;  %v17450_v62 = vld [vmem:[#allocation16 + $0x1ec] ss:$16 sps:$4 sm:$0xff]   ;;  %v17445_v38 = vld [vmem:[#allocation16 + $0x380] ss:$16 sps:$4 sm:$0xff]  }
 0x725   :  { %14003 = vmatprep.subr.bf16.mxu1 %v17405_v26  ;;  %14167 = vmatpush1.bf16.msra.mxu0 %v17400_v35  ;;  %v16184_v5 = vpop.f32.mrb[47].mxu1  ;;  %v17448_v52 = vld [vmem:[#allocation16 + $0x1e8] ss:$16 sps:$4 sm:$0xff]  }
 0x726   :  { %v19048_v4 = vadd.f32 %v16182_v39, %v12116_v27  ;;  %v16185_v36 = vadd.f32 %v16184_v5, %v16183_v9  ;;  %14168 = vmatprep.subr.bf16.mxu0 %v17408_v20  ;;  %v17453_v27 = vld [vmem:[#allocation16 + $0x3a4] ss:$16 sps:$4 sm:$0xff]   ;;  %v17456_v39 = vld [vmem:[#allocation16 + $0x20c] ss:$16 sps:$4 sm:$0xff]   ;;  %v17451_v5 = vld [vmem:[#allocation16 + $0x3a0] ss:$16 sps:$4 sm:$0xff]  }
 0x728   :  { %v19050_v45 = vadd.f32 %v16185_v36, %v12119_v25  ;;  %14004 = vmatpush1.bf16.msra.mxu1 %v17403_v13  ;;  %v17454_v36 = vld [vmem:[#allocation16 + $0x208] ss:$16 sps:$4 sm:$0xff]  }
 0x729   :  { %14005 = vmatprep.subr.bf16.mxu1 %v17411_v1  ;;  %14169 = vmatpush1.bf16.msra.mxu0 %v17406_v48 }
 0x72a   :  { %14170 = vmatprep.subr.bf16.mxu0 %v17414_v34 }
 0x72c   :  { %14006 = vmatpush1.bf16.msra.mxu1 %v17409_v55  ;;  %v17462_v55 = vld [vmem:[#allocation16 + $0x22c] ss:$16 sps:$4 sm:$0xff]  }
 0x72d   :  { %14007 = vmatprep.subr.bf16.mxu1 %v17417_v6  ;;  %14171 = vmatpush1.bf16.msra.mxu0 %v17412_v57  ;;  %v17457_v57 = vld [vmem:[#allocation16 + $0x3c0] ss:$16 sps:$4 sm:$0xff]  }
 0x72e   :  { %14172 = vmatprep.subr.bf16.mxu0 %v17420_v59  ;;  %v17465_v59 = vld [vmem:[#allocation16 + $0x3e4] ss:$16 sps:$4 sm:$0xff]  }
 0x730   :  { %14008 = vmatpush1.bf16.msra.mxu1 %v17415_v19  ;;  %v17460_v19 = vld [vmem:[#allocation16 + $0x228] ss:$16 sps:$4 sm:$0xff]  }
 0x731   :  { %14009 = vmatprep.subr.bf16.mxu1 %v17423_v24  ;;  %14173 = vmatpush1.bf16.msra.mxu0 %v17418_v28  ;;  %v17468_v28 = vld [vmem:[#allocation16 + $0x24c] ss:$16 sps:$4 sm:$0xff]   ;;  %v17510_v24 = vld [vmem:[#allocation16 + $0x404] ss:$16 sps:$4 sm:$0xff]  }
 0x732   :  { %14174 = vmatprep.subr.bf16.mxu0 %v17426_v8  ;;  %v17466_v8 = vld [vmem:[#allocation16 + $0x248] ss:$16 sps:$4 sm:$0xff]  }
 0x734   :  { %14010 = vmatpush1.bf16.msra.mxu1 %v17421_v42  ;;  %v17469_v42 = vld [vmem:[#allocation16 + $0x268] ss:$16 sps:$4 sm:$0xff]  }
 0x735   :  { %14011 = vmatprep.subr.bf16.mxu1 %v17429_v33  ;;  %14175 = vmatpush1.bf16.msra.mxu0 %v17424_v32  ;;  %v17474_v32 = vld [vmem:[#allocation16 + $0x28c] ss:$16 sps:$4 sm:$0xff]   ;;  %v17514_v33 = vld [vmem:[#allocation16 + $0x420] ss:$16 sps:$4 sm:$0xff]  }
 0x736   :  { %14176 = vmatprep.subr.bf16.mxu0 %v17432_v12  ;;  %v17522_v12 = vld [vmem:[#allocation16 + $0x444] ss:$16 sps:$4 sm:$0xff]  }
 0x738   :  { %14012 = vmatpush1.bf16.msra.mxu1 %v17427_v56  ;;  %v17472_v56 = vld [vmem:[#allocation16 + $0x288] ss:$16 sps:$4 sm:$0xff]  }
 0x739   :  { %14013 = vmatprep.subr.bf16.mxu1 %v17435_v30  ;;  %14177 = vmatpush1.bf16.msra.mxu0 %v17430_v49  ;;  %v17475_v49 = vld [vmem:[#allocation16 + $0x2a8] ss:$16 sps:$4 sm:$0xff]  }
 0x73a   :  { %14178 = vmatprep.subr.bf16.mxu0 %v17438_v54  ;;  %v17480_v54 = vld [vmem:[#allocation16 + $0x2cc] ss:$16 sps:$4 sm:$0xff]  }
 0x73b   :  { %v16202_v51 = vpop.f32.mrb[48].mxu1 }
 0x73c   :  { %14014 = vmatpush1.bf16.msra.mxu1 %v17433_v31  ;;  %v16203_v41 = vpop.f32.mrb[49].mxu1 }
 0x73d   :  { %v16204_v23 = vadd.f32 %v16203_v41, %v16202_v51  ;;  %v16205_v50 = vpop.f32.mrb[50].mxu1  ;;  %14015 = vmatprep.subr.bf16.mxu1 %v17441_v44  ;;  %14179 = vmatpush1.bf16.msra.mxu0 %v17436_v11  ;;  %v17528_v51 = vld [vmem:[#allocation16 + $0x464] ss:$16 sps:$4 sm:$0xff]  }
 0x73e   :  { %v16206_v3 = vpop.f32.mrb[51].mxu1  ;;  %14180 = vmatprep.subr.bf16.mxu0 %v17444_v47  ;;  %v17526_v47 = vld [vmem:[#allocation16 + $0x460] ss:$16 sps:$4 sm:$0xff]  }
 0x73f   :  { %v19053_v35 = vadd.f32 %v16204_v23, %v19042_v15  ;;  %v16207_v26 = vadd.f32 %v16206_v3, %v16205_v50  ;;  %v17459_v15 = vld [vmem:[#allocation16 + $0x3c4] ss:$16 sps:$4 sm:$0xff]   ;;  %v17532_v3 = vld [vmem:[#allocation16 + $0x480] ss:$16 sps:$4 sm:$0xff]  }
 0x740   :  { %14016 = vmatpush1.bf16.msra.mxu1 %v17439_v17  ;;  %v17478_v17 = vld [vmem:[#allocation16 + $0x2c8] ss:$16 sps:$4 sm:$0xff]  }
 0x741   :  { %v19056_v20 = vadd.f32 %v16207_v26, %v19044_v37  ;;  %14017 = vmatprep.subr.bf16.mxu1 %v17447_v0  ;;  %14181 = vmatpush1.bf16.msra.mxu0 %v17442_v22  ;;  %v17483_v22 = vld [vmem:[#allocation16 + $0x2ec] ss:$16 sps:$4 sm:$0xff]   ;;  %v17481_v26 = vld [vmem:[#allocation16 + $0x2e8] ss:$16 sps:$4 sm:$0xff]  }
 0x742   :  { %14182 = vmatprep.subr.bf16.mxu0 %v17450_v62  ;;  %v17534_v62 = vld [vmem:[#allocation16 + $0x484] ss:$16 sps:$4 sm:$0xff]  }
 0x743   :  { %v16208_v9 = vpop.f32.mrb[52].mxu1 }
 0x744   :  { %14018 = vmatpush1.bf16.msra.mxu1 %v17445_v38  ;;  %v16209_v13 = vpop.f32.mrb[53].mxu1 }
 0x745   :  { %v16210_v48 = vadd.f32 %v16209_v13, %v16208_v9  ;;  %v16211_v1 = vpop.f32.mrb[54].mxu1  ;;  %14019 = vmatprep.subr.bf16.mxu1 %v17453_v27  ;;  %14183 = vmatpush1.bf16.msra.mxu0 %v17448_v52  ;;  %v17486_v27 = vld [vmem:[#allocation16 + $0x30c] ss:$16 sps:$4 sm:$0xff]  }
 0x746   :  { %v16212_v25 = vpop.f32.mrb[55].mxu1  ;;  %14205 = vmatprep.subr.bf16.mxu0 %v17456_v39 }
 0x747   :  { %v19059_v37 = vadd.f32 %v16210_v48, %v19048_v4  ;;  %v16213_v34 = vadd.f32 %v16212_v25, %v16211_v1  ;;  %v17463_v4 = vld [vmem:[#allocation16 + $0x3e0] ss:$16 sps:$4 sm:$0xff]   ;;  %v17540_v25 = vld [vmem:[#allocation16 + $0x4a4] ss:$16 sps:$4 sm:$0xff]  }
 0x748   :  { %14020 = vmatpush1.bf16.msra.mxu1 %v17451_v5  ;;  %14185 = vmatmul.mubr.bf16.vlgmr.msra.gmra.mrb[32].mxu0 %v19011_v53  ;;  %v17471_v53 = vld [vmem:[#allocation16 + $0x26c] ss:$16 sps:$4 sm:$0xff]   ;;  %v17484_v5 = vld [vmem:[#allocation16 + $0x308] ss:$16 sps:$4 sm:$0xff]  }
 0x749   :  { %v19063_v6 = vadd.f32 %v16213_v34, %v19050_v45  ;;  %14021 = vmatprep.subr.bf16.mxu1 %v17459_v15  ;;  %14194 = vmatprep.mubr.bf16.mxu0 %v19019_v21  ;;  %v17508_v45 = vld [vmem:[#allocation16 + $0x400] ss:$16 sps:$4 sm:$0xff]   ;;  %v17516_v21 = vld [vmem:[#allocation16 + $0x424] ss:$16 sps:$4 sm:$0xff]  }
 0x74a   :  { %14206 = vmatpush1.bf16.msra.mxu0 %v17454_v36  ;;  %v17538_v15 = vld [vmem:[#allocation16 + $0x4a0] ss:$16 sps:$4 sm:$0xff]  }
 0x74b   :  { %14207 = vmatprep.subr.bf16.mxu0 %v17462_v55  ;;  %v17487_v55 = vld [vmem:[#allocation16 + $0x328] ss:$16 sps:$4 sm:$0xff]  }
 0x74c   :  { %14022 = vmatpush1.bf16.msra.mxu1 %v17457_v57 }
 0x74d   :  { %14023 = vmatprep.subr.bf16.mxu1 %v17465_v59  ;;  %v17492_v59 = vld [vmem:[#allocation16 + $0x34c] ss:$16 sps:$4 sm:$0xff]  }
 0x74e   :  { %14208 = vmatpush1.bf16.msra.mxu0 %v17460_v19 }
 0x74f   :  { %14209 = vmatprep.subr.bf16.mxu0 %v17468_v28  ;;  %v17490_v28 = vld [vmem:[#allocation16 + $0x348] ss:$16 sps:$4 sm:$0xff]  }
 0x750   :  { %14024 = vmatpush1.bf16.msra.mxu1 %v17463_v4  ;;  %14195 = vmatmul.mubr.bf16.gmra.mrb[36].mxu0 %v19015_v2  ;;  %v17477_v2 = vld [vmem:[#allocation16 + $0x2ac] ss:$16 sps:$4 sm:$0xff]   ;;  %v17546_v4 = vld [vmem:[#allocation16 + $0x4c4] ss:$16 sps:$4 sm:$0xff]  }
 0x751   :  { %14237 = vmatprep.mubr.bf16.mxu0 %v19029_v58  ;;  %14046 = vmatprep.subr.bf16.mxu1 %v17510_v24  ;;  %v17520_v58 = vld [vmem:[#allocation16 + $0x440] ss:$16 sps:$4 sm:$0xff]  }
 0x752   :  { %14210 = vmatpush1.bf16.msra.mxu0 %v17466_v8 }
 0x753   :  { %14026 = vmatmul.mubr.bf16.vlgmr.msra.gmra.mrb[64].mxu1 %v19023_v7  ;;  %14211 = vmatprep.subr.bf16.mxu0 %v17471_v53 }
 0x754   :  { %14035 = vmatprep.mubr.bf16.mxu1 %v19032_v63  ;;  %14047 = vmatpush1.bf16.msra.mxu1 %v17508_v45  ;;  %v17544_v45 = vld [vmem:[#allocation16 + $0x4c0] ss:$16 sps:$4 sm:$0xff]  }
 0x755   :  { %14048 = vmatprep.subr.bf16.mxu1 %v17516_v21 }
 0x756   :  { %14212 = vmatpush1.bf16.msra.mxu0 %v17469_v42 }
 0x757   :  { %14213 = vmatprep.subr.bf16.mxu0 %v17474_v32  ;;  %v17493_v32 = vld [vmem:[#allocation16 + $0x368] ss:$16 sps:$4 sm:$0xff]  }
 0x758   :  { %14049 = vmatpush1.bf16.msra.mxu1 %v17514_v33  ;;  %v17552_v33 = vld [vmem:[#allocation16 + $0x4e4] ss:$16 sps:$4 sm:$0xff]  }
 0x759   :  { %14050 = vmatprep.subr.bf16.mxu1 %v17522_v12 }
 0x75a   :  { %14214 = vmatpush1.bf16.msra.mxu0 %v17472_v56 }
 0x75b   :  { %14036 = vmatmul.mubr.bf16.gmra.mrb[68].mxu1 %v19034_v60  ;;  %v16230_v30 = vpop.f32.mrb[56].mxu1  ;;  %14215 = vmatprep.subr.bf16.mxu0 %v17477_v2  ;;  %v17498_v2 = vld [vmem:[#allocation16 + $0x38c] ss:$16 sps:$4 sm:$0xff]  }
 0x75c   :  { %v16231_v31 = vpop.f32.mrb[57].mxu1  ;;  %14051 = vmatpush1.bf16.msra.mxu1 %v17520_v58  ;;  %v17550_v58 = vld [vmem:[#allocation16 + $0x4e0] ss:$16 sps:$4 sm:$0xff]  }
 0x75d   :  { %v16232_v11 = vadd.f32 %v16231_v31, %v16230_v30  ;;  %v16233_v44 = vpop.f32.mrb[58].mxu1  ;;  %14052 = vmatprep.subr.bf16.mxu1 %v17528_v51  ;;  %v17558_v31 = vld [vmem:[#allocation16 + $0x504] ss:$16 sps:$4 sm:$0xff]  }
 0x75e   :  { %14216 = vmatpush1.bf16.msra.mxu0 %v17475_v49  ;;  %v16234_v41 = vpop.f32.mrb[59].mxu1 }
 0x75f   :  { %v12255_v23 = vadd.f32 %v16232_v11, %v19053_v35  ;;  %v16235_v50 = vadd.f32 %v16234_v41, %v16233_v44  ;;  %14217 = vmatprep.subr.bf16.mxu0 %v17480_v54  ;;  %v17496_v54 = vld [vmem:[#allocation16 + $0x388] ss:$16 sps:$4 sm:$0xff]   ;;  %v17501_v44 = vld [vmem:[#allocation16 + $0x3ac] ss:$16 sps:$4 sm:$0xff]  }
 0x760   :  { %14053 = vmatpush1.bf16.msra.mxu1 %v17526_v47  ;;  %v17556_v47 = vld [vmem:[#allocation16 + $0x500] ss:$16 sps:$4 sm:$0xff]   ;;  %v17499_v41 = vld [vmem:[#allocation16 + $0x3a8] ss:$16 sps:$4 sm:$0xff]  }
 0x761   :  { %v12258_v0 = vadd.f32 %v16235_v50, %v19056_v20  ;;  %14054 = vmatprep.subr.bf16.mxu1 %v17534_v62  ;;  %v17489_v20 = vld [vmem:[#allocation16 + $0x32c] ss:$16 sps:$4 sm:$0xff]  }
 0x762   :  { %14218 = vmatpush1.bf16.msra.mxu0 %v17478_v17  ;;  %v17564_v17 = vld [vmem:[#allocation16 + $0x524] ss:$16 sps:$4 sm:$0xff]   ;;  %v17504_v50 = vld [vmem:[#allocation16 + $0x3cc] ss:$16 sps:$4 sm:$0xff]  }
 0x763   :  { %v12275_v38 = vadd.f32 %v12258_v0, %v12255_v23  ;;  %v16236_v52 = vpop.f32.mrb[60].mxu1  ;;  %14219 = vmatprep.subr.bf16.mxu0 %v17483_v22  ;;  %v17562_v22 = vld [vmem:[#allocation16 + $0x520] ss:$16 sps:$4 sm:$0xff]   ;;  %v17507_v62 = vld [vmem:[#allocation16 + $0x3ec] ss:$16 sps:$4 sm:$0xff]  }
 0x764   :  { %v16237_v39 = vpop.f32.mrb[61].mxu1  ;;  %14055 = vmatpush1.bf16.msra.mxu1 %v17532_v3  ;;  %v17570_v3 = vld [vmem:[#allocation16 + $0x544] ss:$16 sps:$4 sm:$0xff]  }
 0x765   :  { %v16238_v9 = vadd.f32 %v16237_v39, %v16236_v52  ;;  %v16239_v35 = vpop.f32.mrb[62].mxu1  ;;  %14056 = vmatprep.subr.bf16.mxu1 %v17540_v25  ;;  %v17576_v52 = vld [vmem:[#allocation16 + $0x564] ss:$16 sps:$4 sm:$0xff]   ;;  %v17574_v39 = vld [vmem:[#allocation16 + $0x560] ss:$16 sps:$4 sm:$0xff]   ;;  %v12475_v25 = vrot.slane %v18968_v46, %v18786_v61 }
 0x766   :  { %14220 = vmatpush1.bf16.msra.mxu0 %v17481_v26  ;;  %v16240_v13 = vpop.f32.mrb[63].mxu1  ;;  %v17568_v26 = vld [vmem:[#allocation16 + $0x540] ss:$16 sps:$4 sm:$0xff]  }
 0x767   :  { %v12263_v48 = vadd.f32 %v16238_v9, %v19059_v37  ;;  %v16241_v1 = vadd.f32 %v16240_v13, %v16239_v35  ;;  %14221 = vmatprep.subr.bf16.mxu0 %v17486_v27  ;;  %v17513_v27 = vld [vmem:[#allocation16 + $0x40c] ss:$16 sps:$4 sm:$0xff]   ;;  %v12424_v9 = vrot.slane %v18960_v29, %v18786_v61  ;;  %v17511_v35 = vld [vmem:[#allocation16 + $0x408] ss:$16 sps:$4 sm:$0xff]   ;;  %v17582_v13 = vld [vmem:[#allocation16 + $0x584] ss:$16 sps:$4 sm:$0xff]  }
 0x768   :  { %14057 = vmatpush1.bf16.msra.mxu1 %v17538_v15  ;;  %v17588_v15 = vld [vmem:[#allocation16 + $0x5a4] ss:$16 sps:$4 sm:$0xff]  }
 0x769   :  { %v12282_v36 = vadd.f32 %v12275_v38, %v12263_v48  ;;  %v12266_v34 = vadd.f32 %v16241_v1, %v19063_v6  ;;  %v17495_v6 = vld [vmem:[#allocation16 + $0x36c] ss:$16 sps:$4 sm:$0xff]   ;;  %14058 = vmatprep.subr.bf16.mxu1 %v17546_v4  ;;  %v17505_v38 = vld [vmem:[#allocation16 + $0x3e8] ss:$16 sps:$4 sm:$0xff]   ;;  %v17580_v1 = vld [vmem:[#allocation16 + $0x580] ss:$16 sps:$4 sm:$0xff]  }
 0x76a   :  { %14222 = vmatpush1.bf16.msra.mxu0 %v17484_v5  ;;  %v17523_v4 = vld [vmem:[#allocation16 + $0x448] ss:$16 sps:$4 sm:$0xff]  }
 0x76b   :  { %v12289_v57 = vadd.f32 %v12282_v36, %v12266_v34  ;;  %14223 = vmatprep.subr.bf16.mxu0 %v17489_v20  ;;  %v17586_v36 = vld [vmem:[#allocation16 + $0x5a0] ss:$16 sps:$4 sm:$0xff]  }
 0x76c   :  { %14059 = vmatpush1.bf16.msra.mxu1 %v17544_v45 }
 0x76d   :  { %v12296_v19 = vmul.f32 0.25, %v12289_v57  ;;  %14060 = vmatprep.subr.bf16.mxu1 %v17552_v33  ;;  %v17517_v57 = vld [vmem:[#allocation16 + $0x428] ss:$16 sps:$4 sm:$0xff]  }
 0x76e   :  { %14224 = vmatpush1.bf16.msra.mxu0 %v17487_v55 }
 0x76f   :  { %v19075_v37 = vsub.f32 %v12255_v23, %v12296_v19  ;;  %v19077_v24 = vsub.f32 %v12258_v0, %v12296_v19  ;;  %v19079_v8 = vsub.f32 %v12263_v48, %v12296_v19  ;;  %v19081_v53 = vsub.f32 %v12266_v34, %v12296_v19  ;;  %14225 = vmatprep.subr.bf16.mxu0 %v17492_v59  ;;  %v17502_v0 = vld [vmem:[#allocation16 + $0x3c8] ss:$16 sps:$4 sm:$0xff]   ;;  %v17519_v48 = vld [vmem:[#allocation16 + $0x42c] ss:$16 sps:$4 sm:$0xff]   ;;  %v17594_v59 = vld [vmem:[#allocation16 + $0x5c4] ss:$16 sps:$4 sm:$0xff]  }
 0x770   :  { %14061 = vmatpush1.bf16.msra.mxu1 %v17550_v58  ;;  %v17525_v19 = vld [vmem:[#allocation16 + $0x44c] ss:$16 sps:$4 sm:$0xff]   ;;  %v17535_v58 = vld [vmem:[#allocation16 + $0x488] ss:$16 sps:$4 sm:$0xff]  }
 0x771   :  { %v12331_v21 = vmul.f32 %v19075_v37, %v19075_v37  ;;  %v12338_v42 = vmul.f32 %v19077_v24, %v19077_v24  ;;  %v12352_v56 = vmul.f32 %v19079_v8, %v19079_v8  ;;  %v12366_v30 = vmul.f32 %v19081_v53, %v19081_v53  ;;  %14062 = vmatprep.subr.bf16.mxu1 %v17558_v31  ;;  %v17555_v31 = vld [vmem:[#allocation16 + $0x4ec] ss:$16 sps:$4 sm:$0xff]  }
 0x772   :  { %14226 = vmatpush1.bf16.msra.mxu0 %v17490_v28 }
 0x773   :  { %v12345_v12 = vadd.f32 %v12338_v42, %v12331_v21  ;;  %14227 = vmatprep.subr.bf16.mxu0 %v17495_v6  ;;  %v17531_v21 = vld [vmem:[#allocation16 + $0x46c] ss:$16 sps:$4 sm:$0xff]  }
 0x774   :  { %14063 = vmatpush1.bf16.msra.mxu1 %v17556_v47  ;;  %v17559_v47 = vld [vmem:[#allocation16 + $0x508] ss:$16 sps:$4 sm:$0xff]  }
 0x775   :  { %v12359_v49 = vadd.f32 %v12352_v56, %v12345_v12  ;;  %14064 = vmatprep.subr.bf16.mxu1 %v17564_v17  ;;  %v17529_v12 = vld [vmem:[#allocation16 + $0x468] ss:$16 sps:$4 sm:$0xff]   ;;  %v17606_v56 = vld [vmem:[#allocation16 + $0x604] ss:$16 sps:$4 sm:$0xff]   ;;  %v17573_v17 = vld [vmem:[#allocation16 + $0x54c] ss:$16 sps:$4 sm:$0xff]  }
 0x776   :  { %14228 = vmatpush1.bf16.msra.mxu0 %v17493_v32 }
 0x777   :  { %v12373_v11 = vadd.f32 %v12366_v30, %v12359_v49  ;;  %14229 = vmatprep.subr.bf16.mxu0 %v17498_v2  ;;  %v17537_v2 = vld [vmem:[#allocation16 + $0x48c] ss:$16 sps:$4 sm:$0xff]   ;;  %v17541_v30 = vld [vmem:[#allocation16 + $0x4a8] ss:$16 sps:$4 sm:$0xff]  }
 0x778   :  { %14065 = vmatpush1.bf16.msra.mxu1 %v17562_v22  ;;  %v17543_v49 = vld [vmem:[#allocation16 + $0x4ac] ss:$16 sps:$4 sm:$0xff]   ;;  %v17577_v22 = vld [vmem:[#allocation16 + $0x568] ss:$16 sps:$4 sm:$0xff]  }
 0x779   :  { %v12380_v51 = vmul.f32 0.25, %v12373_v11  ;;  %14066 = vmatprep.subr.bf16.mxu1 %v17570_v3  ;;  %v17553_v11 = vld [vmem:[#allocation16 + $0x4e8] ss:$16 sps:$4 sm:$0xff]  }
 0x77a   :  { %14230 = vmatpush1.bf16.msra.mxu0 %v17496_v54  ;;  %v17547_v54 = vld [vmem:[#allocation16 + $0x4c8] ss:$16 sps:$4 sm:$0xff]  }
 0x77b   :  { %v12387_v23 = vadd.f32 1e-05, %v12380_v51  ;;  %14231 = vmatprep.subr.bf16.mxu0 %v17501_v44  ;;  %v17561_v44 = vld [vmem:[#allocation16 + $0x50c] ss:$16 sps:$4 sm:$0xff]   ;;  %v17583_v3 = vld [vmem:[#allocation16 + $0x588] ss:$16 sps:$4 sm:$0xff]  }
 0x77c   :  { %14067 = vmatpush1.bf16.msra.mxu1 %v17568_v26  ;;  %v17567_v51 = vld [vmem:[#allocation16 + $0x52c] ss:$16 sps:$4 sm:$0xff]   ;;  %v17589_v26 = vld [vmem:[#allocation16 + $0x5a8] ss:$16 sps:$4 sm:$0xff]  }
 0x77d   :  { %17676 = vrsqrt.f32 %v12387_v23  ;;  %14068 = vmatprep.subr.bf16.mxu1 %v17576_v52  ;;  %v17571_v23 = vld [vmem:[#allocation16 + $0x548] ss:$16 sps:$4 sm:$0xff]  }
 0x77e   :  { %14232 = vmatpush1.bf16.msra.mxu0 %v17499_v41  ;;  %v17565_v41 = vld [vmem:[#allocation16 + $0x528] ss:$16 sps:$4 sm:$0xff]  }
 0x77f   :  { %14233 = vmatprep.subr.bf16.mxu0 %v17504_v50  ;;  %v17579_v50 = vld [vmem:[#allocation16 + $0x56c] ss:$16 sps:$4 sm:$0xff]   ;;  %v17595_v52 = vld [vmem:[#allocation16 + $0x5c8] ss:$16 sps:$4 sm:$0xff]  }
 0x780   :  { %14069 = vmatpush1.bf16.msra.mxu1 %v17574_v39  ;;  %v17601_v39 = vld [vmem:[#allocation16 + $0x5e8] ss:$16 sps:$4 sm:$0xff]  }
 0x781   :  { %14070 = vmatprep.subr.bf16.mxu1 %v17582_v13 }
 0x782   :  { %14234 = vmatpush1.bf16.msra.mxu0 %v17502_v0  ;;  %v17585_v0 = vld [vmem:[#allocation16 + $0x58c] ss:$16 sps:$4 sm:$0xff]  }
 0x783   :  { %14235 = vmatprep.subr.bf16.mxu0 %v17507_v62  ;;  %v17591_v62 = vld [vmem:[#allocation16 + $0x5ac] ss:$16 sps:$4 sm:$0xff]  }
 0x784   :  { %14071 = vmatpush1.bf16.msra.mxu1 %v17580_v1 }
 0x785   :  { %14072 = vmatprep.subr.bf16.mxu1 %v17588_v15 }
 0x786   :  { %14236 = vmatpush1.bf16.msra.mxu0 %v17505_v38  ;;  %v17597_v38 = vld [vmem:[#allocation16 + $0x5cc] ss:$16 sps:$4 sm:$0xff]  }
 0x787   :  { %v17677_v5 = vpop.eup %17676  ;;  %14258 = vmatprep.subr.bf16.mxu0 %v17513_v27  ;;  %v17603_v27 = vld [vmem:[#allocation16 + $0x5ec] ss:$16 sps:$4 sm:$0xff]  }
 0x788   :  { %v12438_v20 = vmul.f32 %v17677_v5, %v12424_v9  ;;  %14073 = vmatpush1.bf16.msra.mxu1 %v17586_v36  ;;  %v17609_v9 = vld [vmem:[#allocation16 + $0x60c] ss:$16 sps:$4 sm:$0xff]  }
 0x789   :  { %14238 = vmatmul.mubr.bf16.vlgmr.msra.gmra.mrb[32].mxu0 %v19023_v7  ;;  %14074 = vmatprep.subr.bf16.mxu1 %v17594_v59 }
 0x78a   :  { %v12445_v29 = vmul.f32 %v12438_v20, %v19075_v37  ;;  %v12503_v34 = vmul.f32 %v12438_v20, %v19077_v24  ;;  %v12545_v55 = vmul.f32 %v12438_v20, %v19081_v53  ;;  %14247 = vmatprep.mubr.bf16.mxu0 %v19032_v63  ;;  %14259 = vmatpush1.bf16.msra.mxu0 %v17511_v35  ;;  %v17592_v37 = vld [vmem:[#allocation16 + $0x5c0] ss:$16 sps:$4 sm:$0xff]   ;;  %v17600_v24 = vld [vmem:[#allocation16 + $0x5e4] ss:$16 sps:$4 sm:$0xff]   ;;  %v17686_v35 = vld [vmem:[#allocation11] sm:$0xff] }
 0x78b   :  { %14260 = vmatprep.subr.bf16.mxu0 %v17519_v48  ;;  %v12524_v61 = vmul.f32 %v12438_v20, %v19079_v8  ;;  %v17598_v8 = vld [vmem:[#allocation16 + $0x5e0] ss:$16 sps:$4 sm:$0xff]   ;;  %v9117_v13 = vrot.slane %v17686_v35, %v18708_v18  ;;  %v9121_v48 = vrot.slane %v17686_v35, %v18711_v16 }
 0x78c   :  { %v12489_v46 = vadd.f32 %v12475_v25, %v12445_v29  ;;  %v12510_v7 = vadd.f32 %v12503_v34, %v12475_v25  ;;  %v12552_v28 = vadd.f32 %v12545_v55, %v12475_v25  ;;  %14075 = vmatpush1.bf16.msra.mxu1 %v17592_v37 }
 0x78d   :  { %v12531_v6 = vadd.f32 %v12524_v61, %v12475_v25  ;;  %14076 = vmatprep.subr.bf16.mxu1 %v17600_v24 }
 0x78e   :  { %14261 = vmatpush1.bf16.msra.mxu0 %v17517_v57  ;;  %v12496_v53 = vmax.f32 %v12489_v46, 0.0  ;;  %v12517_v63 = vmax.f32 %v12510_v7, 0.0  ;;  %v12559_v45 = vmax.f32 %v12552_v28, 0.0 }
 0x78f   :  { %14262 = vmatprep.subr.bf16.mxu0 %v17525_v19  ;;  %v12538_v42 = vmax.f32 %v12531_v6, 0.0 }
 0x790   :  { %v19101_v32 = vpack.c.bf16 %v12517_v63, %v12496_v53  ;;  %14077 = vmatpush1.bf16.msra.mxu1 %v17598_v8 }
 0x791   :  { %14248 = vmatmul.mubr.bf16.gmra.mrb[36].mxu0 %v19034_v60  ;;  %v19104_v33 = vpack.c.bf16 %v12559_v45, %v12538_v42  ;;  %14099 = vmatprep.subr.bf16.mxu1 %v17606_v56  ;;  %v17549_v60 = vld [vmem:[#allocation16 + $0x4cc] ss:$16 sps:$4 sm:$0xff]  }
 0x792   :  { %14263 = vmatpush1.bf16.msra.mxu0 %v17523_v4 }
 0x793   :  { %14264 = vmatprep.subr.bf16.mxu0 %v17531_v21 }
 0x796   :  { %14265 = vmatpush1.bf16.msra.mxu0 %v17529_v12 }
 0x797   :  { %14266 = vmatprep.subr.bf16.mxu0 %v17537_v2 }
 0x79a   :  { %14267 = vmatpush1.bf16.msra.mxu0 %v17535_v58 }
 0x79b   :  { %14268 = vmatprep.subr.bf16.mxu0 %v17543_v49 }
 0x79e   :  { %14269 = vmatpush1.bf16.msra.mxu0 %v17541_v30 }
 0x79f   :  { %14270 = vmatprep.subr.bf16.mxu0 %v17549_v60 }
 0x7a2   :  { %14271 = vmatpush1.bf16.msra.mxu0 %v17547_v54 }
 0x7a3   :  { %14272 = vmatprep.subr.bf16.mxu0 %v17555_v31 }
 0x7a6   :  { %14273 = vmatpush1.bf16.msra.mxu0 %v17553_v11 }
 0x7a7   :  { %14274 = vmatprep.subr.bf16.mxu0 %v17561_v44 }
 0x7aa   :  { %14275 = vmatpush1.bf16.msra.mxu0 %v17559_v47 }
 0x7ab   :  { %14276 = vmatprep.subr.bf16.mxu0 %v17567_v51 }
 0x7ae   :  { %14277 = vmatpush1.bf16.msra.mxu0 %v17565_v41 }
 0x7af   :  { %14278 = vmatprep.subr.bf16.mxu0 %v17573_v17 }
 0x7b2   :  { %14279 = vmatpush1.bf16.msra.mxu0 %v17571_v23 }
 0x7b3   :  { %14280 = vmatprep.subr.bf16.mxu0 %v17579_v50 }
 0x7b6   :  { %14281 = vmatpush1.bf16.msra.mxu0 %v17577_v22 }
 0x7b7   :  { %14282 = vmatprep.subr.bf16.mxu0 %v17585_v0 }
 0x7ba   :  { %14283 = vmatpush1.bf16.msra.mxu0 %v17583_v3 }
 0x7bb   :  { %14284 = vmatprep.subr.bf16.mxu0 %v17591_v62 }
 0x7be   :  { %14285 = vmatpush1.bf16.msra.mxu0 %v17589_v26 }
 0x7bf   :  { %14286 = vmatprep.subr.bf16.mxu0 %v17597_v38 }
 0x7c2   :  { %14287 = vmatpush1.bf16.msra.mxu0 %v17595_v52 }
 0x7c3   :  { %14288 = vmatprep.subr.bf16.mxu0 %v17603_v27  ;;  %v17687_v27 = vld [vmem:[#allocation13] sm:$0xff] }
 0x7c6   :  { %14289 = vmatpush1.bf16.msra.mxu0 %v17601_v39  ;;  %v12416_v39 = vrot.slane %v17687_v27, %v18708_v18 }
 0x7c7   :  { %14311 = vmatprep.subr.bf16.mxu0 %v17609_v9  ;;  %v12420_v9 = vrot.slane %v17687_v27, %v18711_v16  ;;  %v17639_v27 = vld [vmem:[#allocation16 + $0x6ac] ss:$16 sps:$4 sm:$0xff]  }
 0x7db   :  { %v12054_v5 = vpop.f32.mrb[24].mxu0 }
 0x7dc   :  { %v12056_v1 = vpop.f32.mrb[25].mxu0  ;;  %v16298_v15 = vadd.f32 %v12054_v5, %v9117_v13 }
 0x7dd   :  { %v12058_v20 = vpop.f32.mrb[26].mxu0  ;;  %v16299_v29 = vadd.f32 %v12056_v1, %v9121_v48 }
 0x7de   :  { %v16300_v25 = vadd.f32 %v12058_v20, %v9117_v13  ;;  %v12060_v36 = vpop.f32.mrb[27].mxu0 }
 0x7df   :  { %v16301_v34 = vadd.f32 %v12060_v36, %v9121_v48 }
 0x7e0   :  { %v12273_v55 = vadd.f32 %v16300_v25, %v16298_v15 }
 0x7e1   :  { %v12274_v57 = vadd.f32 %v16301_v34, %v16299_v29 }
 0x7e3   :  { %v12064_v59 = vpop.f32.mrb[28].mxu0 }
 0x7e4   :  { %v16302_v19 = vadd.f32 %v12064_v59, %v9117_v13  ;;  %v12066_v61 = vpop.f32.mrb[29].mxu0 }
 0x7e5   :  { %v16303_v46 = vadd.f32 %v12066_v61, %v9121_v48  ;;  %v12068_v7 = vpop.f32.mrb[30].mxu0 }
 0x7e6   :  { %v12280_v28 = vadd.f32 %v16302_v19, %v12273_v55  ;;  %v16304_v4 = vadd.f32 %v12068_v7, %v9117_v13  ;;  %v12070_v37 = vpop.f32.mrb[31].mxu0 }
 0x7e7   :  { %v12281_v6 = vadd.f32 %v16303_v46, %v12274_v57  ;;  %v16305_v24 = vadd.f32 %v12070_v37, %v9121_v48  ;;  %v17688_v48 = vld [vmem:[#allocation14] sm:$0xff] }
 0x7e8   :  { %v12287_v53 = vadd.f32 %v16304_v4, %v12280_v28  ;;  %v12467_v1 = vrot.slane %v17688_v48, %v18708_v18 }
 0x7e9   :  { %v12288_v63 = vadd.f32 %v16305_v24, %v12281_v6 }
 0x7ea   :  { %v12294_v45 = vmul.f32 0.25, %v12287_v53 }
 0x7eb   :  { %v12295_v21 = vmul.f32 0.25, %v12288_v63 }
 0x7ec   :  { %v12301_v42 = vsub.f32 %v16298_v15, %v12294_v45  ;;  %v12308_v8 = vsub.f32 %v16300_v25, %v12294_v45  ;;  %v12315_v12 = vsub.f32 %v16302_v19, %v12294_v45  ;;  %v12322_v56 = vsub.f32 %v16304_v4, %v12294_v45 }
 0x7ed   :  { %v12302_v2 = vsub.f32 %v16299_v29, %v12295_v21  ;;  %v12309_v58 = vsub.f32 %v16301_v34, %v12295_v21  ;;  %v12316_v49 = vsub.f32 %v16303_v46, %v12295_v21  ;;  %v12323_v30 = vsub.f32 %v16305_v24, %v12295_v21 }
 0x7ee   :  { %v12329_v60 = vmul.f32 %v12301_v42, %v12301_v42  ;;  %v12336_v54 = vmul.f32 %v12308_v8, %v12308_v8  ;;  %v12350_v47 = vmul.f32 %v12315_v12, %v12315_v12  ;;  %v12364_v23 = vmul.f32 %v12322_v56, %v12322_v56 }
 0x7ef   :  { %v12330_v31 = vmul.f32 %v12302_v2, %v12302_v2  ;;  %v12337_v11 = vmul.f32 %v12309_v58, %v12309_v58  ;;  %v12351_v41 = vmul.f32 %v12316_v49, %v12316_v49  ;;  %v12365_v22 = vmul.f32 %v12323_v30, %v12323_v30 }
 0x7f0   :  { %v12343_v44 = vadd.f32 %v12336_v54, %v12329_v60  ;;  %v12471_v15 = vrot.slane %v17688_v48, %v18711_v16  ;;  %v17612_v60 = vld [vmem:[#allocation16 + $0x624] ss:$16 sps:$4 sm:$0xff]   ;;  %v17615_v54 = vld [vmem:[#allocation16 + $0x62c] ss:$16 sps:$4 sm:$0xff]   ;;  %v17643_v48 = vld [vmem:[#allocation16 + $0x6c8] ss:$16 sps:$4 sm:$0xff]  }
 0x7f1   :  { %v12344_v51 = vadd.f32 %v12337_v11, %v12330_v31  ;;  %v17610_v31 = vld [vmem:[#allocation16 + $0x620] ss:$16 sps:$4 sm:$0xff]   ;;  %v17613_v11 = vld [vmem:[#allocation16 + $0x628] ss:$16 sps:$4 sm:$0xff]  }
 0x7f2   :  { %v12357_v17 = vadd.f32 %v12350_v47, %v12343_v44  ;;  %v17618_v44 = vld [vmem:[#allocation16 + $0x644] ss:$16 sps:$4 sm:$0xff]   ;;  %v17621_v47 = vld [vmem:[#allocation16 + $0x64c] ss:$16 sps:$4 sm:$0xff]  }
 0x7f3   :  { %v12358_v50 = vadd.f32 %v12351_v41, %v12344_v51  ;;  %v17616_v51 = vld [vmem:[#allocation16 + $0x640] ss:$16 sps:$4 sm:$0xff]   ;;  %v17619_v41 = vld [vmem:[#allocation16 + $0x648] ss:$16 sps:$4 sm:$0xff]  }
 0x7f4   :  { %v12371_v0 = vadd.f32 %v12364_v23, %v12357_v17  ;;  %v17624_v17 = vld [vmem:[#allocation16 + $0x664] ss:$16 sps:$4 sm:$0xff]   ;;  %v17627_v23 = vld [vmem:[#allocation16 + $0x66c] ss:$16 sps:$4 sm:$0xff]  }
 0x7f5   :  { %v12372_v3 = vadd.f32 %v12365_v22, %v12358_v50  ;;  %v17622_v50 = vld [vmem:[#allocation16 + $0x660] ss:$16 sps:$4 sm:$0xff]   ;;  %v17625_v22 = vld [vmem:[#allocation16 + $0x668] ss:$16 sps:$4 sm:$0xff]  }
 0x7f6   :  { %v12378_v62 = vmul.f32 0.25, %v12371_v0  ;;  %v17630_v0 = vld [vmem:[#allocation16 + $0x684] ss:$16 sps:$4 sm:$0xff]  }
 0x7f7   :  { %v12379_v26 = vmul.f32 0.25, %v12372_v3  ;;  %v17633_v3 = vld [vmem:[#allocation16 + $0x68c] ss:$16 sps:$4 sm:$0xff]  }
 0x7f8   :  { %v12385_v38 = vadd.f32 1e-05, %v12378_v62  ;;  %v17961_v62 = vmov 0  }
 0x7f9   :  { %v12386_v52 = vadd.f32 1e-05, %v12379_v26  ;;  %v17628_v26 = vld [vmem:[#allocation16 + $0x680] ss:$16 sps:$4 sm:$0xff]  }
 0x7fa   :  { %17678 = vrsqrt.f32 %v12385_v38  ;;  %v17631_v38 = vld [vmem:[#allocation16 + $0x688] ss:$16 sps:$4 sm:$0xff]  }
 0x7fb   :  { %17680 = vrsqrt.f32 %v12386_v52  ;;  %v17636_v52 = vld [vmem:[#allocation16 + $0x6a4] ss:$16 sps:$4 sm:$0xff]  }
 0x804   :  { %v17679_v35 = vpop.eup %17678 }
 0x805   :  { %v17681_v13 = vpop.eup %17680  ;;  %v12436_v5 = vmul.f32 %v17679_v35, %v12416_v39  ;;  %v17634_v39 = vld [vmem:[#allocation16 + $0x6a0] ss:$16 sps:$4 sm:$0xff]   ;;  %v17642_v35 = vld [vmem:[#allocation16 + $0x6c4] ss:$16 sps:$4 sm:$0xff]  }
 0x806   :  { %v12437_v20 = vmul.f32 %v17681_v13, %v12420_v9  ;;  %v17637_v9 = vld [vmem:[#allocation16 + $0x6a8] ss:$16 sps:$4 sm:$0xff]   ;;  %v17645_v13 = vld [vmem:[#allocation16 + $0x6cc] ss:$16 sps:$4 sm:$0xff]  }
 0x807   :  { %v12443_v25 = vmul.f32 %v12436_v5, %v12301_v42  ;;  %v12501_v36 = vmul.f32 %v12436_v5, %v12308_v8  ;;  %v12543_v29 = vmul.f32 %v12436_v5, %v12322_v56  ;;  %v12522_v34 = vmul.f32 %v12436_v5, %v12315_v12  ;;  %v17640_v5 = vld [vmem:[#allocation16 + $0x6c0] ss:$16 sps:$4 sm:$0xff]  }
 0x808   :  { %v12544_v55 = vmul.f32 %v12437_v20, %v12323_v30  ;;  %v12444_v57 = vmul.f32 %v12437_v20, %v12302_v2  ;;  %v12502_v59 = vmul.f32 %v12437_v20, %v12309_v58  ;;  %v12523_v19 = vmul.f32 %v12437_v20, %v12316_v49  ;;  %v17604_v58 = vld [vmem:[#allocation16 + $0x600] ss:$16 sps:$4 sm:$0xff]   ;;  %v17607_v49 = vld [vmem:[#allocation16 + $0x608] ss:$16 sps:$4 sm:$0xff]   ;;  %v17651_v20 = vld [vmem:[#allocation16 + $0x6ec] ss:$16 sps:$4 sm:$0xff]  }
 0x809   :  { %v12487_v61 = vadd.f32 %v12467_v1, %v12443_v25  ;;  %v12508_v46 = vadd.f32 %v12501_v36, %v12467_v1  ;;  %v12529_v7 = vadd.f32 %v12522_v34, %v12467_v1  ;;  %v12550_v28 = vadd.f32 %v12543_v29, %v12467_v1  ;;  %v17648_v1 = vld [vmem:[#allocation16 + $0x6e4] ss:$16 sps:$4 sm:$0xff]   ;;  %v17649_v25 = vld [vmem:[#allocation16 + $0x6e8] ss:$16 sps:$4 sm:$0xff]   ;;  %v12798_v36 = vld [vmem:[#allocation17] sm:$0xf] }
 0x80a   :  { %v12488_v4 = vadd.f32 %v12471_v15, %v12444_v57  ;;  %v12509_v37 = vadd.f32 %v12502_v59, %v12471_v15  ;;  %v12530_v6 = vadd.f32 %v12523_v19, %v12471_v15  ;;  %v12551_v24 = vadd.f32 %v12544_v55, %v12471_v15  ;;  %v17646_v15 = vld [vmem:[#allocation16 + $0x6e0] ss:$16 sps:$4 sm:$0xff]  }
 0x80b   :  { %v12494_v18 = vmax.f32 %v12487_v61, 0.0  ;;  %v12515_v53 = vmax.f32 %v12508_v46, 0.0  ;;  %v12536_v63 = vmax.f32 %v12529_v7, 0.0  ;;  %v12557_v16 = vmax.f32 %v12550_v28, 0.0 }
 0x80c   :  { %v12495_v45 = vmax.f32 %v12488_v4, 0.0  ;;  %v12516_v21 = vmax.f32 %v12509_v37, 0.0  ;;  %v12537_v42 = vmax.f32 %v12530_v6, 0.0  ;;  %v12558_v8 = vmax.f32 %v12551_v24, 0.0 }
 0x80d   :  { %v12564_v12 = vpack.c.bf16 %v12515_v53, %v12494_v18  ;;  %v12571_v56 = vpack.c.bf16 %v12557_v16, %v12536_v63  ;;  %v12803_v29 = vrot.slane %v12798_v36, %v18469_v14  ;;  %v12811_v34 = vrot.slane %v12798_v36, %v18579_v40 }
 0x80e   :  { %v12565_v2 = vpack.c.bf16 %v12516_v21, %v12495_v45  ;;  %v12572_v30 = vpack.c.bf16 %v12558_v8, %v12537_v42  ;;  %v12807_v55 = vrot.slane %v12798_v36, %v18473_v43  ;;  %v12815_v57 = vrot.slane %v12798_v36, %v18582_v10 }
 0x810   :  { %14078 = vmatprep.mubr.bf16.mxu1 %v12565_v2  ;;  %14290 = vmatprep.mubr.bf16.mxu0 %v12565_v2 }
 0x811   :  { %14079 = vmatmul.mubr.bf16.vlgmr.msra.gmra.mrb[64].mxu1 %v12564_v12  ;;  %14291 = vmatmul.mubr.bf16.vlgmr.msra.gmra.mrb[32].mxu0 %v12564_v12 }
 0x812   :  { %14100 = vmatpush1.bf16.msra.mxu1 %v17604_v58  ;;  %14312 = vmatpush1.bf16.msra.mxu0 %v17607_v49 }
 0x813   :  { %14088 = vmatprep.mubr.bf16.mxu1 %v12572_v30  ;;  %14300 = vmatprep.mubr.bf16.mxu0 %v12572_v30 }
 0x814   :  { %14101 = vmatprep.subr.bf16.mxu1 %v17612_v60  ;;  %14313 = vmatprep.subr.bf16.mxu0 %v17615_v54 }
 0x816   :  { %14102 = vmatpush1.bf16.msra.mxu1 %v17610_v31  ;;  %14314 = vmatpush1.bf16.msra.mxu0 %v17613_v11 }
 0x817   :  { %14103 = vmatprep.subr.bf16.mxu1 %v17618_v44  ;;  %14315 = vmatprep.subr.bf16.mxu0 %v17621_v47 }
 0x819   :  { %14089 = vmatmul.mubr.bf16.gmra.mrb[68].mxu1 %v12571_v56  ;;  %14301 = vmatmul.mubr.bf16.gmra.mrb[36].mxu0 %v12571_v56 }
 0x81a   :  { %14104 = vmatpush1.bf16.msra.mxu1 %v17616_v51  ;;  %14316 = vmatpush1.bf16.msra.mxu0 %v17619_v41 }
 0x81b   :  { %14105 = vmatprep.subr.bf16.mxu1 %v17624_v17  ;;  %14317 = vmatprep.subr.bf16.mxu0 %v17627_v23 }
 0x81c   :  { %14131 = vmatprep.mubr.bf16.mxu1 %v17961_v62  ;;  %14343 = vmatprep.mubr.bf16.mxu0 %v17961_v62 }
 0x81e   :  { %14106 = vmatpush1.bf16.msra.mxu1 %v17622_v50  ;;  %14318 = vmatpush1.bf16.msra.mxu0 %v17625_v22 }
 0x81f   :  { %14107 = vmatprep.subr.bf16.mxu1 %v17630_v0  ;;  %14319 = vmatprep.subr.bf16.mxu0 %v17633_v3 }
 0x822   :  { %14108 = vmatpush1.bf16.msra.mxu1 %v17628_v26  ;;  %14320 = vmatpush1.bf16.msra.mxu0 %v17631_v38 }
 0x823   :  { %14109 = vmatprep.subr.bf16.mxu1 %v17636_v52  ;;  %14321 = vmatprep.subr.bf16.mxu0 %v17639_v27 }
 0x826   :  { %14110 = vmatpush1.bf16.msra.mxu1 %v17634_v39  ;;  %14322 = vmatpush1.bf16.msra.mxu0 %v17637_v9 }
 0x827   :  { %14111 = vmatprep.subr.bf16.mxu1 %v17642_v35  ;;  %14323 = vmatprep.subr.bf16.mxu0 %v17645_v13 }
 0x82a   :  { %14112 = vmatpush1.bf16.msra.mxu1 %v17640_v5  ;;  %14324 = vmatpush1.bf16.msra.mxu0 %v17643_v48 }
 0x82b   :  { %14113 = vmatprep.subr.bf16.mxu1 %v17648_v1  ;;  %14325 = vmatprep.subr.bf16.mxu0 %v17651_v20 }
 0x82e   :  { %14114 = vmatpush1.bf16.msra.mxu1 %v17646_v15  ;;  %14326 = vmatpush1.bf16.msra.mxu0 %v17649_v25 }
 0x831   :  { %14132 = vmatmul.mubr.bf16.vlgmr.msra.gmra.mrb[64].mxu1 %v19101_v32  ;;  %14344 = vmatmul.mubr.bf16.vlgmr.msra.gmra.mrb[32].mxu0 %v19101_v32 }
 0x832   :  { %14141 = vmatprep.mubr.bf16.mxu1 %v17961_v62  ;;  %14353 = vmatprep.mubr.bf16.mxu0 %v17961_v62 }
 0x839   :  { %14142 = vmatmul.mubr.bf16.gmra.mrb[68].mxu1 %v19104_v33  ;;  %14354 = vmatmul.mubr.bf16.gmra.mrb[36].mxu0 %v19104_v33 }
 0x904   :  { %v14133_v59 = vpop.f32.mrb[64].mxu1  ;;  %v14345_v19 = vpop.f32.mrb[32].mxu0 }
 0x905   :  { %v16306_v61 = vadd.f32 %v14133_v59, %v12803_v29  ;;  %v16314_v46 = vadd.f32 %v14345_v19, %v12811_v34  ;;  %v14135_v32 = vpop.f32.mrb[65].mxu1  ;;  %v14347_v7 = vpop.f32.mrb[33].mxu0 }
 0x906   :  { %v16307_v28 = vadd.f32 %v14135_v32, %v12807_v55  ;;  %v16315_v4 = vadd.f32 %v14347_v7, %v12815_v57  ;;  %v14137_v37 = vpop.f32.mrb[66].mxu1  ;;  %v14349_v6 = vpop.f32.mrb[34].mxu0 }
 0x907   :  { %14364 = vst [vmem:[#allocation19] sm:$0xff] %v16306_v61  ;;  %14366 = vst [vmem:[#allocation19 + $0x10] sm:$0xff] %v16314_v46  ;;  %v16308_v33 = vadd.f32 %v14137_v37, %v12803_v29  ;;  %v16316_v14 = vadd.f32 %v14349_v6, %v12811_v34  ;;  %v14139_v24 = vpop.f32.mrb[67].mxu1  ;;  %v14351_v40 = vpop.f32.mrb[35].mxu0 }
 0x908   :  { %14365 = vst [vmem:[#allocation19 + $0x8] sm:$0xff] %v16307_v28  ;;  %14367 = vst [vmem:[#allocation19 + $0x18] sm:$0xff] %v16315_v4  ;;  %v16309_v43 = vadd.f32 %v14139_v24, %v12807_v55  ;;  %v16317_v10 = vadd.f32 %v14351_v40, %v12815_v57 }
 0x909   :  { %14368 = vst [vmem:[#allocation19 + $0x20] sm:$0xff] %v16308_v33  ;;  %14370 = vst [vmem:[#allocation19 + $0x30] sm:$0xff] %v16316_v14 }
 0x90a   :  { %14369 = vst [vmem:[#allocation19 + $0x28] sm:$0xff] %v16309_v43  ;;  %14371 = vst [vmem:[#allocation19 + $0x38] sm:$0xff] %v16317_v10 }
 0x90c   :  { %v14143_v18 = vpop.f32.mrb[68].mxu1  ;;  %v14355_v53 = vpop.f32.mrb[36].mxu0 }
 0x90d   :  { %v16310_v63 = vadd.f32 %v14143_v18, %v12803_v29  ;;  %v16318_v16 = vadd.f32 %v14355_v53, %v12811_v34  ;;  %v14145_v45 = vpop.f32.mrb[69].mxu1  ;;  %v14357_v21 = vpop.f32.mrb[37].mxu0 }
 0x90e   :  { %v16311_v42 = vadd.f32 %v14145_v45, %v12807_v55  ;;  %v16319_v8 = vadd.f32 %v14357_v21, %v12815_v57  ;;  %v14147_v12 = vpop.f32.mrb[70].mxu1  ;;  %v14359_v56 = vpop.f32.mrb[38].mxu0 }
 0x90f   :  { %14372 = vst [vmem:[#allocation19 + $0x40] sm:$0xff] %v16310_v63  ;;  %14374 = vst [vmem:[#allocation19 + $0x50] sm:$0xff] %v16318_v16  ;;  %v16312_v2 = vadd.f32 %v14147_v12, %v12803_v29  ;;  %v16320_v58 = vadd.f32 %v14359_v56, %v12811_v34  ;;  %v14149_v49 = vpop.f32.mrb[71].mxu1  ;;  %v14361_v30 = vpop.f32.mrb[39].mxu0 }
 0x910   :  { %14373 = vst [vmem:[#allocation19 + $0x48] sm:$0xff] %v16311_v42  ;;  %14375 = vst [vmem:[#allocation19 + $0x58] sm:$0xff] %v16319_v8  ;;  %v16313_v60 = vadd.f32 %v14149_v49, %v12807_v55  ;;  %v16321_v54 = vadd.f32 %v14361_v30, %v12815_v57 }
 0x911   :  { %14376 = vst [vmem:[#allocation19 + $0x60] sm:$0xff] %v16312_v2  ;;  %14378 = vst [vmem:[#allocation19 + $0x70] sm:$0xff] %v16320_v58 }
 0x912   :  { %14377 = vst [vmem:[#allocation19 + $0x68] sm:$0xff] %v16313_v60  ;;  %14379 = vst [vmem:[#allocation19 + $0x78] sm:$0xff] %v16321_v54 }
 0x913   :  { %17920 = shalt.err (!%p17917_p0)
}
 0x914   :  { %s17921_s24 = scalar_lea.hbm %s19146_s11, 2048 }
 0x915   :  { %p17922_p1 = scmp.ne.s32.totalorder %s19146_s11, %s17921_s24  ;;  %p17925_p2 = scmp.lt.u32.totalorder %s17921_s24, %s19146_s11 }
 0x917   :  { %p17927_p3 = pnand %p17925_p2, %p17922_p1 }
 0x919   :  { %17930 = shalt.err (!%p17927_p3)
}
 0x91a   :  { %14391 = dma.vmem_to_hbm [thread:$0]  %s14386_s21, 2048, %s19146_s11, [#allocation4], %s17950_s8, %s17950_s8, %s17951_s25  }
 0x91b   :  { %17943 = dma.done.wait [#allocation4], 2048  }
 0x91c   :  { %17944 = vsyncadd [#allocation4], 4294965248 }
 0x91d   :  { %14395 = vsyncpa [#allocation3], 1 }
 0x91e   :  { %14396 = vsyncpa [#allocation6], 1 }
 0x91f   :  { %14397 = vsyncpa [#allocation9], 1 }
 0x920   :  { %14398 = vsyncpa [#allocation12], 1 }
 0x921   :  { %14399 = vsyncpa [#allocation15], 1 }
 0x922   :  { %14400 = vsyncpa [#allocation18], 1 }
 0x923   :  { %14401 = vsyncpa [#allocation4], 1 }

</bundles_post_ra>
